<compile_context>
chip_gen: v5e
topology: v5e:2x2
jax: 0.10.0
libtpu: 0.0.40
codegen_flags: <defaults>
</compile_context>

<pallas_src>
import numpy as np
import jax
import jax.numpy as jnp
from jax.experimental import pallas as pl
from jax.experimental.pallas import tpu as pltpu

NUM_RDB = 6  # EBlock has 6 RDBlocks


def _round_up(n, m):
    return ((n + m - 1) // m) * m


# ----------------------------------------------------------------------------
# Fused EBlock kernel
# ----------------------------------------------------------------------------
def make_eblock_kernel(H, W, Bg, C, Cp, num_rdb, mm_dtype):
    HW = H * W
    L = Bg * HW                                   # lane extent (Bg images side by side)
    OFFS = tuple((dh, dw) for dh in (-1, 0, 1) for dw in (-1, 0, 1))
    INV_SQRT2 = 0.7071067811865476

    def _erf(z):
        # Abramowitz & Stegun 7.1.26 rational approximation, |err| <= 1.5e-7.
        a1, a2, a3, a4, a5 = (0.254829592, -0.284496736, 1.421413741,
                              -1.453152027, 1.061405429)
        p = 0.3275911
        az = jnp.abs(z)
        den = 1.0 + p * az
        # EUP approximate reciprocal seed + one Newton step: full f32 accuracy,
        # cheaper than a full-precision VPU divide, and the seed runs on the
        # otherwise-idle EUP slot.
        t = pl.reciprocal(den, approx=True)
        t = t * (2.0 - den * t)
        poly = ((((a5 * t + a4) * t + a3) * t + a2) * t + a1) * t
        y = 1.0 - poly * jnp.exp(-az * az)
        return jnp.where(z < 0.0, -y, y)

    def _gelu(z):
        # exact-erf GELU (nn.GELU() default)
        return 0.5 * z * (1.0 + _erf(z * INV_SQRT2))

    def kernel(x_ref, w0_ref, w1_ref, w2_ref, wl_ref, mask_ref, o_ref, tap_ref):
        # Hoist the 9 boundary masks (broadcast to (Cp, L)) once; reused across all
        # RDBs and sources (JAX does not CSE broadcast_in_dim inside the loops).
        m = mask_ref[...]                                           # (9, L) f32
        bmask = [jnp.broadcast_to(m[t:t + 1], (Cp, L)) for t in range(9)]

        def write_taps(src, s):
            # src: (Cp, L) f32, pad rows (C..Cp) are zero.  Write its 9 shifted+masked
            # taps into the stacked-K scratch rows [s*9*Cp, (s+1)*9*Cp).  Every store
            # is a full 8-sublane-aligned (Cp, L) tile.
            for t, (dh, dw) in enumerate(OFFS):
                off = dh * W + dw
                if off == 0:
                    tap = src                                       # center tap, no mask
                else:
                    tap = pltpu.roll(src, (-off) % L, axis=1) * bmask[t]
                tap_ref[pl.ds((s * 9 + t) * Cp, Cp), :] = tap.astype(mm_dtype)

        def conv_dot(w_ref, r, nsrc):
            # ONE MXU dot per conv: (Cp, nsrc*9*Cp) @ (nsrc*9*Cp, L), f32 accumulate.
            act = tap_ref[pl.ds(0, nsrc * 9 * Cp), :]
            return jnp.dot(w_ref[r], act, preferred_element_type=jnp.float32)

        feat = x_ref[0].astype(jnp.float32)                         # (Cp, L)
        for r in range(num_rdb):
            x_in = feat
            write_taps(x_in, 0)
            y1 = _gelu(conv_dot(w0_ref, r, 1))                      # RDB_Conv0
            write_taps(y1, 1)
            y2 = _gelu(conv_dot(w1_ref, r, 2))                      # RDB_Conv1 (reuses x taps)
            write_taps(y2, 2)
            y3 = _gelu(conv_dot(w2_ref, r, 3))                      # RDB_Conv2 (reuses x,y1 taps)
            # LFF 1x1 over cat([x, y1, y2, y3]) as one K=4*Cp dot + RDBlock residual.
            cat4 = jnp.concatenate([x_in, y1, y2, y3], axis=0).astype(mm_dtype)
            feat = x_in + jnp.dot(wl_ref[r], cat4,
                                  preferred_element_type=jnp.float32)
        o_ref[0] = feat.astype(o_ref.dtype)

    return kernel


def _build_tap_masks(H, W, Bg):
    """(9, Bg*H*W) 0/1 masks; tap t=(kh*3+kw) valid where (r+kh-1, c+kw-1) is in-image.
    Tiled per image so cross-image (and row-wrap) roll contamination is zeroed."""
    HW = H * W
    rr = np.arange(H)[:, None]
    cc = np.arange(W)[None, :]
    m = np.zeros((9, HW), np.float32)
    t = 0
    for dh in (-1, 0, 1):
        for dw in (-1, 0, 1):
            ok = ((rr + dh >= 0) & (rr + dh < H) & (cc + dw >= 0) & (cc + dw < W))
            m[t] = ok.reshape(HW).astype(np.float32)
            t += 1
    return jnp.asarray(np.tile(m, (1, Bg)))


def eblock_forward(x_nchw, w0, w1, w2, wl, *, num_groups=None,
                   matmul_dtype=jnp.float32):
    """x_nchw: (B, C, H, W).  w0/w1/w2/wl: packed weights from pack_eblock_weights,
    shapes (R, Cp, 9*Cp), (R, Cp, 18*Cp), (R, Cp, 27*Cp), (R, Cp, 4*Cp).

    num_groups: grid size; B//num_groups images are packed side by side on the lane
    axis per grid step.  Default 2 when B is even (keeps both v7x TensorCores busy);
    use num_groups=1 on single-TC v5e/v6e to fold the whole batch onto lanes.
    """
    B, C, H, W = x_nchw.shape
    HW = H * W
    num_rdb, Cp, _ = w0.shape
    if num_groups is None:
        num_groups = 2 if (B % 2 == 0 and B >= 2) else 1
    G = num_groups
    assert B % G == 0, (B, G)
    Bg = B // G
    L = Bg * HW

    # Layout: (B, C, H, W) -> (G, Cp, Bg*HW): channels (padded to 8 sublanes) on the
    # sublane axis, Bg*H*W on the lane axis.  One small host-side transpose, no
    # transposes inside the kernel.
    x = x_nchw.reshape(G, Bg, C, HW).transpose(0, 2, 1, 3).reshape(G, C, L)
    x = jnp.pad(x, ((0, 0), (0, Cp - C), (0, 0)))
    masks = _build_tap_masks(H, W, Bg)
    kernel = make_eblock_kernel(H, W, Bg, C, Cp, num_rdb, matmul_dtype)

    out = pl.pallas_call(
        kernel,
        out_shape=jax.ShapeDtypeStruct((G, Cp, L), x_nchw.dtype),
        grid=(G,),
        in_specs=[
            pl.BlockSpec((1, Cp, L), lambda g: (g, 0, 0)),
            # Weights / masks: constant block index -> fetched once, VMEM-resident.
            pl.BlockSpec(w0.shape, lambda g: (0, 0, 0)),
            pl.BlockSpec(w1.shape, lambda g: (0, 0, 0)),
            pl.BlockSpec(w2.shape, lambda g: (0, 0, 0)),
            pl.BlockSpec(wl.shape, lambda g: (0, 0, 0)),
            pl.BlockSpec(masks.shape, lambda g: (0, 0)),
        ],
        out_specs=pl.BlockSpec((1, Cp, L), lambda g: (g, 0, 0)),
        scratch_shapes=[pltpu.VMEM((3 * 9 * Cp, L), matmul_dtype)],   # stacked-K taps
        compiler_params=pltpu.CompilerParams(
            dimension_semantics=("parallel",)),     # one group per TensorCore on v7x
    )(x, w0, w1, w2, wl, masks)

    out = out[:, :C, :].reshape(G, C, Bg, HW).transpose(0, 2, 1, 3)
    return out.reshape(B, C, H, W)


# ----------------------------------------------------------------------------
# Glue: pack OIHW conv weights into the stacked-K, lane-dense kernel layout
# ----------------------------------------------------------------------------
def pack_eblock_weights(params, c, *, dtype=jnp.float32):
    """Row o in [0, Cp); column = src*9*Cp + tap*Cp + i, tap = kh*3 + kw.
    Channels zero-padded C -> Cp = round_up(C, 8) so every tap/source group is
    8-sublane aligned (zero rows/cols are free on the MXU)."""
    cp = _round_up(c, 8)

    def pack3(w, nsrc):                       # (C, nsrc*C, 3, 3) -> (Cp, nsrc*9*Cp)
        w = w.reshape(c, nsrc, c, 3, 3)                      # (o, s, i, kh, kw)
        w = jnp.transpose(w, (0, 1, 3, 4, 2)).reshape(c, nsrc, 9, c)   # (o, s, t, i)
        w = jnp.pad(w, ((0, cp - c), (0, 0), (0, 0), (0, cp - c)))
        return w.reshape(cp, nsrc * 9 * cp).astype(dtype)

    def pack1(w):                             # (C, 4C, 1, 1) -> (Cp, 4*Cp)
        w = w[:, :, 0, 0].reshape(c, 4, c)                   # (o, s, i)
        w = jnp.pad(w, ((0, cp - c), (0, 0), (0, cp - c)))
        return w.reshape(cp, 4 * cp).astype(dtype)

    w0 = jnp.stack([pack3(p["w0"], 1) for p in params], 0)
    w1 = jnp.stack([pack3(p["w1"], 2) for p in params], 0)
    w2 = jnp.stack([pack3(p["w2"], 3) for p in params], 0)
    wl = jnp.stack([pack1(p["wlff"]) for p in params], 0)
    return w0, w1, w2, wl


# ----------------------------------------------------------------------------
# Parameter construction (deterministic, mirrors freeze_conv.__init__/forward)
# ----------------------------------------------------------------------------
def init_freeze_conv_effective_weight(key, cin, cout, ksize, flag):
    """Effective conv weight sum_i flag_i * (s_i*W + (1-s_i)*B_i), OIHW layout."""
    keys = jax.random.split(key, 13)
    bound = float((cin * ksize * ksize) ** -0.5)
    shape = (cout, cin, ksize, ksize)
    weight = jax.random.uniform(keys[0], shape, jnp.float32, -bound, bound)
    eff = jnp.zeros(shape, jnp.float32)
    for i in range(3):
        residual = jax.random.uniform(keys[1 + i], shape, jnp.float32, -bound, bound)
        space = jax.random.uniform(keys[4 + i], (ksize, ksize), jnp.float32)
        cs1 = jax.random.uniform(keys[7 + i], (cout, cin), jnp.float32)
        cs2 = jax.random.uniform(keys[10 + i], (1, 1), jnp.float32)
        channel = jnp.einsum("ab,cd->acbd", cs1, cs2).reshape(cout, cin)
        score = channel[:, :, None, None] * space[None, None, :, :]
        thresh = jnp.mean(score) + 0.5 * jnp.std(score, ddof=1)   # torch.std (unbiased)
        bscore = (score >= thresh).astype(jnp.float32)            # BinarizerFn.forward
        w_i = bscore * weight + (1.0 - bscore) * residual
        eff = eff + flag[i] * w_i
    return eff


def init_rdblock_params(key, c, flag):
    k0, k1, k2, k3 = jax.random.split(key, 4)
    return {
        "w0": init_freeze_conv_effective_weight(k0, c, c, 3, flag),        # (C, C,3,3)
        "w1": init_freeze_conv_effective_weight(k1, 2 * c, c, 3, flag),    # (C,2C,3,3)
        "w2": init_freeze_conv_effective_weight(k2, 3 * c, c, 3, flag),    # (C,3C,3,3)
        "wlff": init_freeze_conv_effective_weight(k3, 4 * c, c, 1, flag),  # (C,4C,1,1)
    }


def init_eblock_params(key, c, flag=(1.0, 0.0, 0.0)):
    return [init_rdblock_params(k, c, flag) for k in jax.random.split(key, NUM_RDB)]


# ----------------------------------------------------------------------------
# Pure-JAX reference (matches the PyTorch module structure exactly)
# ----------------------------------------------------------------------------
def eblock_reference(x, params):
    def conv(z, w, pad):
        return jax.lax.conv_general_dilated(
            z, w, window_strides=(1, 1), padding=[(pad, pad), (pad, pad)],
            dimension_numbers=("NCHW", "OIHW", "NCHW"))

    out = x
    for p in params:
        x_in = out
        y = jax.nn.gelu(conv(x_in, p["w0"], 1), approximate=False)
        f = jnp.concatenate([x_in, y], axis=1)
        y = jax.nn.gelu(conv(f, p["w1"], 1), approximate=False)
        f = jnp.concatenate([f, y], axis=1)
        y = jax.nn.gelu(conv(f, p["w2"], 1), approximate=False)
        f = jnp.concatenate([f, y], axis=1)
        out = conv(f, p["wlff"], 0) + x_in
    return out


# ----------------------------------------------------------------------------
if __name__ == "__main__":
    B, C, H, W = 2, 4, 16, 16
    key = jax.random.PRNGKey(0)
    kx, kp = jax.random.split(key)
    x = jax.random.normal(kx, (B, C, H, W), jnp.float32)        # NCHW like torch
    params = init_eblock_params(kp, C, flag=(1.0, 0.0, 0.0))
    w0, w1, w2, wl = pack_eblock_weights(params, C)

    fwd = jax.jit(eblock_forward)
    out = jax.block_until_ready(fwd(x, w0, w1, w2, wl))

    assert out.shape == (B, C, H, W), out.shape
    assert bool(jnp.all(jnp.isfinite(out)))

    # Tolerance covers the A&S erf approximation (<=1.5e-7 abs) and the Newton-refined
    # EUP reciprocal, compounded over 24 chained convs / 18 GELUs.
    ref = jax.block_until_ready(eblock_reference(x, params))
    max_diff = float(jnp.max(jnp.abs(out - ref)))
    assert bool(jnp.allclose(out, ref, rtol=2e-3, atol=2e-3)), max_diff

    print("KERNEL_OK")
</pallas_src>

<mosaic_0001>
module attributes {stable_mosaic.version = 11 : i64} {
  func.func @kernel(%arg0: i32, %arg1: memref<1x8x256xf32, #tpu.memory_space<vmem>>, %arg2: memref<6x8x72xf32, #tpu.memory_space<vmem>>, %arg3: memref<6x8x144xf32, #tpu.memory_space<vmem>>, %arg4: memref<6x8x216xf32, #tpu.memory_space<vmem>>, %arg5: memref<6x8x32xf32, #tpu.memory_space<vmem>>, %arg6: memref<9x256xf32, #tpu.memory_space<vmem>>, %arg7: memref<1x8x256xf32, #tpu.memory_space<vmem>>, %arg8: memref<216x256xf32, #tpu.memory_space<vmem>>) attributes {dimension_semantics = [#tpu.dimension_semantics<parallel>], iteration_bounds = array<i64: 2>, scalar_prefetch = 0 : i64, scratch_operands = 1 : i64, tpu.core_type = #tpu.core_type<tc>, window_params = [{transform_indices = @transform_0, window_bounds = array<i64: 1, 8, 256>}, {pipeline_mode = #tpu.pipeline_mode<synchronous>, transform_indices = @transform_1, window_bounds = array<i64: 6, 8, 72>}, {pipeline_mode = #tpu.pipeline_mode<synchronous>, transform_indices = @transform_2, window_bounds = array<i64: 6, 8, 144>}, {pipeline_mode = #tpu.pipeline_mode<synchronous>, transform_indices = @transform_3, window_bounds = array<i64: 6, 8, 216>}, {pipeline_mode = #tpu.pipeline_mode<synchronous>, transform_indices = @transform_4, window_bounds = array<i64: 6, 8, 32>}, {pipeline_mode = #tpu.pipeline_mode<synchronous>, transform_indices = @transform_5, window_bounds = array<i64: 9, 256>}, {transform_indices = @transform_6, window_bounds = array<i64: 1, 8, 256>}]} {
    %c0 = arith.constant 0 : index
    %c0_0 = arith.constant 0 : index
    %0 = vector.load %arg6[%c0, %c0_0] : memref<9x256xf32, #tpu.memory_space<vmem>>, vector<9x256xf32>
    %1 = vector.extract_strided_slice %0 {offsets = [0, 0], sizes = [1, 256], strides = [1, 1]} : vector<9x256xf32> to vector<1x256xf32>
    %2 = vector.shape_cast %1 : vector<1x256xf32> to vector<1x256xf32>
    %3 = vector.broadcast %2 : vector<1x256xf32> to vector<8x256xf32>
    %4 = vector.extract_strided_slice %0 {offsets = [1, 0], sizes = [1, 256], strides = [1, 1]} : vector<9x256xf32> to vector<1x256xf32>
    %5 = vector.shape_cast %4 : vector<1x256xf32> to vector<1x256xf32>
    %6 = vector.broadcast %5 : vector<1x256xf32> to vector<8x256xf32>
    %7 = vector.extract_strided_slice %0 {offsets = [2, 0], sizes = [1, 256], strides = [1, 1]} : vector<9x256xf32> to vector<1x256xf32>
    %8 = vector.shape_cast %7 : vector<1x256xf32> to vector<1x256xf32>
    %9 = vector.broadcast %8 : vector<1x256xf32> to vector<8x256xf32>
    %10 = vector.extract_strided_slice %0 {offsets = [3, 0], sizes = [1, 256], strides = [1, 1]} : vector<9x256xf32> to vector<1x256xf32>
    %11 = vector.shape_cast %10 : vector<1x256xf32> to vector<1x256xf32>
    %12 = vector.broadcast %11 : vector<1x256xf32> to vector<8x256xf32>
    %13 = vector.extract_strided_slice %0 {offsets = [5, 0], sizes = [1, 256], strides = [1, 1]} : vector<9x256xf32> to vector<1x256xf32>
    %14 = vector.shape_cast %13 : vector<1x256xf32> to vector<1x256xf32>
    %15 = vector.broadcast %14 : vector<1x256xf32> to vector<8x256xf32>
    %16 = vector.extract_strided_slice %0 {offsets = [6, 0], sizes = [1, 256], strides = [1, 1]} : vector<9x256xf32> to vector<1x256xf32>
    %17 = vector.shape_cast %16 : vector<1x256xf32> to vector<1x256xf32>
    %18 = vector.broadcast %17 : vector<1x256xf32> to vector<8x256xf32>
    %19 = vector.extract_strided_slice %0 {offsets = [7, 0], sizes = [1, 256], strides = [1, 1]} : vector<9x256xf32> to vector<1x256xf32>
    %20 = vector.shape_cast %19 : vector<1x256xf32> to vector<1x256xf32>
    %21 = vector.broadcast %20 : vector<1x256xf32> to vector<8x256xf32>
    %22 = vector.extract_strided_slice %0 {offsets = [8, 0], sizes = [1, 256], strides = [1, 1]} : vector<9x256xf32> to vector<1x256xf32>
    %23 = vector.shape_cast %22 : vector<1x256xf32> to vector<1x256xf32>
    %24 = vector.broadcast %23 : vector<1x256xf32> to vector<8x256xf32>
    %c0_1 = arith.constant 0 : index
    %c0_2 = arith.constant 0 : index
    %c0_3 = arith.constant 0 : index
    %25 = vector.load %arg1[%c0_1, %c0_2, %c0_3] : memref<1x8x256xf32, #tpu.memory_space<vmem>>, vector<1x8x256xf32>
    %26 = vector.shape_cast %25 : vector<1x8x256xf32> to vector<8x256xf32>
    %c17_i32 = arith.constant 17 : i32
    %27 = tpu.dynamic_rotate %26 by %c17_i32 dim 1 : vector<8x256xf32>, i32 -> vector<8x256xf32>
    %28 = arith.mulf %27, %3 : vector<8x256xf32>
    %c0_4 = arith.constant 0 : index
    %c0_5 = arith.constant 0 : index
    %29 = vector.load %arg8[%c0_4, %c0_5] : memref<216x256xf32, #tpu.memory_space<vmem>>, vector<8x256xf32>
    tpu.vector_store %arg8[%c0_4, %c0_5], %28 {strides = array<i32>} : memref<216x256xf32, #tpu.memory_space<vmem>>, vector<8x256xf32>,
    %c16_i32 = arith.constant 16 : i32
    %30 = tpu.dynamic_rotate %26 by %c16_i32 dim 1 : vector<8x256xf32>, i32 -> vector<8x256xf32>
    %31 = arith.mulf %30, %6 : vector<8x256xf32>
    %c8 = arith.constant 8 : index
    %c0_6 = arith.constant 0 : index
    %32 = vector.load %arg8[%c8, %c0_6] : memref<216x256xf32, #tpu.memory_space<vmem>>, vector<8x256xf32>
    tpu.vector_store %arg8[%c8, %c0_6], %31 {strides = array<i32>} : memref<216x256xf32, #tpu.memory_space<vmem>>, vector<8x256xf32>,
    %c15_i32 = arith.constant 15 : i32
    %33 = tpu.dynamic_rotate %26 by %c15_i32 dim 1 : vector<8x256xf32>, i32 -> vector<8x256xf32>
    %34 = arith.mulf %33, %9 : vector<8x256xf32>
    %c16 = arith.constant 16 : index
    %c0_7 = arith.constant 0 : index
    %35 = vector.load %arg8[%c16, %c0_7] : memref<216x256xf32, #tpu.memory_space<vmem>>, vector<8x256xf32>
    tpu.vector_store %arg8[%c16, %c0_7], %34 {strides = array<i32>} : memref<216x256xf32, #tpu.memory_space<vmem>>, vector<8x256xf32>,
    %c1_i32 = arith.constant 1 : i32
    %36 = tpu.dynamic_rotate %26 by %c1_i32 dim 1 : vector<8x256xf32>, i32 -> vector<8x256xf32>
    %37 = arith.mulf %36, %12 : vector<8x256xf32>
    %c24 = arith.constant 24 : index
    %c0_8 = arith.constant 0 : index
    %38 = vector.load %arg8[%c24, %c0_8] : memref<216x256xf32, #tpu.memory_space<vmem>>, vector<8x256xf32>
    tpu.vector_store %arg8[%c24, %c0_8], %37 {strides = array<i32>} : memref<216x256xf32, #tpu.memory_space<vmem>>, vector<8x256xf32>,
    %c32 = arith.constant 32 : index
    %c0_9 = arith.constant 0 : index
    %39 = vector.load %arg8[%c32, %c0_9] : memref<216x256xf32, #tpu.memory_space<vmem>>, vector<8x256xf32>
    tpu.vector_store %arg8[%c32, %c0_9], %26 {strides = array<i32>} : memref<216x256xf32, #tpu.memory_space<vmem>>, vector<8x256xf32>,
    %c255_i32 = arith.constant 255 : i32
    %40 = tpu.dynamic_rotate %26 by %c255_i32 dim 1 : vector<8x256xf32>, i32 -> vector<8x256xf32>
    %41 = arith.mulf %40, %15 : vector<8x256xf32>
    %c40 = arith.constant 40 : index
    %c0_10 = arith.constant 0 : index
    %42 = vector.load %arg8[%c40, %c0_10] : memref<216x256xf32, #tpu.memory_space<vmem>>, vector<8x256xf32>
    tpu.vector_store %arg8[%c40, %c0_10], %41 {strides = array<i32>} : memref<216x256xf32, #tpu.memory_space<vmem>>, vector<8x256xf32>,
    %c241_i32 = arith.constant 241 : i32
    %43 = tpu.dynamic_rotate %26 by %c241_i32 dim 1 : vector<8x256xf32>, i32 -> vector<8x256xf32>
    %44 = arith.mulf %43, %18 : vector<8x256xf32>
    %c48 = arith.constant 48 : index
    %c0_11 = arith.constant 0 : index
    %45 = vector.load %arg8[%c48, %c0_11] : memref<216x256xf32, #tpu.memory_space<vmem>>, vector<8x256xf32>
    tpu.vector_store %arg8[%c48, %c0_11], %44 {strides = array<i32>} : memref<216x256xf32, #tpu.memory_space<vmem>>, vector<8x256xf32>,
    %c240_i32 = arith.constant 240 : i32
    %46 = tpu.dynamic_rotate %26 by %c240_i32 dim 1 : vector<8x256xf32>, i32 -> vector<8x256xf32>
    %47 = arith.mulf %46, %21 : vector<8x256xf32>
    %c56 = arith.constant 56 : index
    %c0_12 = arith.constant 0 : index
    %48 = vector.load %arg8[%c56, %c0_12] : memref<216x256xf32, #tpu.memory_space<vmem>>, vector<8x256xf32>
    tpu.vector_store %arg8[%c56, %c0_12], %47 {strides = array<i32>} : memref<216x256xf32, #tpu.memory_space<vmem>>, vector<8x256xf32>,
    %c239_i32 = arith.constant 239 : i32
    %49 = tpu.dynamic_rotate %26 by %c239_i32 dim 1 : vector<8x256xf32>, i32 -> vector<8x256xf32>
    %50 = arith.mulf %49, %24 : vector<8x256xf32>
    %c64 = arith.constant 64 : index
    %c0_13 = arith.constant 0 : index
    %51 = vector.load %arg8[%c64, %c0_13] : memref<216x256xf32, #tpu.memory_space<vmem>>, vector<8x256xf32>
    tpu.vector_store %arg8[%c64, %c0_13], %50 {strides = array<i32>} : memref<216x256xf32, #tpu.memory_space<vmem>>, vector<8x256xf32>,
    %c0_14 = arith.constant 0 : index
    %c0_15 = arith.constant 0 : index
    %52 = vector.load %arg8[%c0_14, %c0_15] : memref<216x256xf32, #tpu.memory_space<vmem>>, vector<72x256xf32>
    %c0_16 = arith.constant 0 : index
    %c0_17 = arith.constant 0 : index
    %c0_18 = arith.constant 0 : index
    %53 = vector.load %arg2[%c0_16, %c0_17, %c0_18] : memref<6x8x72xf32, #tpu.memory_space<vmem>>, vector<1x8x72xf32>
    %54 = vector.shape_cast %53 : vector<1x8x72xf32> to vector<8x72xf32>
    %cst = arith.constant dense<0.000000e+00> : vector<8x256xf32>
    %55 = tpu.matmul %54, %52, %cst {dimension_numbers = #tpu.dot_dimension_numbers<[1], [0], [0], [1], [0, 0, 1, 1], [], []>} : vector<8x72xf32>, vector<72x256xf32>, vector<8x256xf32> -> vector<8x256xf32>
    %cst_19 = arith.constant 5.000000e-01 : f32
    %56 = vector.broadcast %cst_19 : f32 to vector<8x256xf32>
    %57 = arith.mulf %56, %55 : vector<8x256xf32>
    %cst_20 = arith.constant 0.707106769 : f32
    %58 = vector.broadcast %cst_20 : f32 to vector<8x256xf32>
    %59 = arith.mulf %55, %58 : vector<8x256xf32>
    %60 = math.absf %59 : vector<8x256xf32>
    %cst_21 = arith.constant 0.327591091 : f32
    %61 = vector.broadcast %cst_21 : f32 to vector<8x256xf32>
    %62 = arith.mulf %61, %60 : vector<8x256xf32>
    %cst_22 = arith.constant 1.000000e+00 : f32
    %63 = vector.broadcast %cst_22 : f32 to vector<8x256xf32>
    %64 = arith.addf %63, %62 : vector<8x256xf32>
    %65 = tpu.reciprocal %64 {approx = true} : vector<8x256xf32> -> vector<8x256xf32>
    %66 = arith.mulf %64, %65 : vector<8x256xf32>
    %cst_23 = arith.constant 2.000000e+00 : f32
    %67 = vector.broadcast %cst_23 : f32 to vector<8x256xf32>
    %68 = arith.subf %67, %66 : vector<8x256xf32>
    %69 = arith.mulf %65, %68 : vector<8x256xf32>
    %cst_24 = arith.constant 1.06140542 : f32
    %70 = vector.broadcast %cst_24 : f32 to vector<8x256xf32>
    %71 = arith.mulf %70, %69 : vector<8x256xf32>
    %cst_25 = arith.constant -1.45315206 : f32
    %72 = vector.broadcast %cst_25 : f32 to vector<8x256xf32>
    %73 = arith.addf %71, %72 : vector<8x256xf32>
    %74 = arith.mulf %73, %69 : vector<8x256xf32>
    %cst_26 = arith.constant 1.42141378 : f32
    %75 = vector.broadcast %cst_26 : f32 to vector<8x256xf32>
    %76 = arith.addf %74, %75 : vector<8x256xf32>
    %77 = arith.mulf %76, %69 : vector<8x256xf32>
    %cst_27 = arith.constant -0.284496725 : f32
    %78 = vector.broadcast %cst_27 : f32 to vector<8x256xf32>
    %79 = arith.addf %77, %78 : vector<8x256xf32>
    %80 = arith.mulf %79, %69 : vector<8x256xf32>
    %cst_28 = arith.constant 0.254829586 : f32
    %81 = vector.broadcast %cst_28 : f32 to vector<8x256xf32>
    %82 = arith.addf %80, %81 : vector<8x256xf32>
    %83 = arith.mulf %82, %69 : vector<8x256xf32>
    %cst_29 = arith.constant 0.000000e+00 : f32
    %84 = vector.broadcast %cst_29 : f32 to vector<8x256xf32>
    %85 = arith.subf %84, %60 : vector<8x256xf32>
    %86 = arith.mulf %85, %60 : vector<8x256xf32>
    %87 = math.exp %86 : vector<8x256xf32>
    %88 = arith.mulf %83, %87 : vector<8x256xf32>
    %cst_30 = arith.constant 1.000000e+00 : f32
    %89 = vector.broadcast %cst_30 : f32 to vector<8x256xf32>
    %90 = arith.subf %89, %88 : vector<8x256xf32>
    %cst_31 = arith.constant 0.000000e+00 : f32
    %91 = vector.broadcast %cst_31 : f32 to vector<8x256xf32>
    %92 = arith.cmpf olt, %59, %91 : vector<8x256xf32>
    %cst_32 = arith.constant 0.000000e+00 : f32
    %93 = vector.broadcast %cst_32 : f32 to vector<8x256xf32>
    %94 = arith.subf %93, %90 : vector<8x256xf32>
    %95 = arith.select %92, %94, %90 : vector<8x256xi1>, vector<8x256xf32>
    %cst_33 = arith.constant 1.000000e+00 : f32
    %96 = vector.broadcast %cst_33 : f32 to vector<8x256xf32>
    %97 = arith.addf %96, %95 : vector<8x256xf32>
    %98 = arith.mulf %57, %97 : vector<8x256xf32>
    %c17_i32_34 = arith.constant 17 : i32
    %99 = tpu.dynamic_rotate %98 by %c17_i32_34 dim 1 : vector<8x256xf32>, i32 -> vector<8x256xf32>
    %100 = arith.mulf %99, %3 : vector<8x256xf32>
    %c72 = arith.constant 72 : index
    %c0_35 = arith.constant 0 : index
    %101 = vector.load %arg8[%c72, %c0_35] : memref<216x256xf32, #tpu.memory_space<vmem>>, vector<8x256xf32>
    tpu.vector_store %arg8[%c72, %c0_35], %100 {strides = array<i32>} : memref<216x256xf32, #tpu.memory_space<vmem>>, vector<8x256xf32>,
    %c16_i32_36 = arith.constant 16 : i32
    %102 = tpu.dynamic_rotate %98 by %c16_i32_36 dim 1 : vector<8x256xf32>, i32 -> vector<8x256xf32>
    %103 = arith.mulf %102, %6 : vector<8x256xf32>
    %c80 = arith.constant 80 : index
    %c0_37 = arith.constant 0 : index
    %104 = vector.load %arg8[%c80, %c0_37] : memref<216x256xf32, #tpu.memory_space<vmem>>, vector<8x256xf32>
    tpu.vector_store %arg8[%c80, %c0_37], %103 {strides = array<i32>} : memref<216x256xf32, #tpu.memory_space<vmem>>, vector<8x256xf32>,
    %c15_i32_38 = arith.constant 15 : i32
    %105 = tpu.dynamic_rotate %98 by %c15_i32_38 dim 1 : vector<8x256xf32>, i32 -> vector<8x256xf32>
    %106 = arith.mulf %105, %9 : vector<8x256xf32>
    %c88 = arith.constant 88 : index
    %c0_39 = arith.constant 0 : index
    %107 = vector.load %arg8[%c88, %c0_39] : memref<216x256xf32, #tpu.memory_space<vmem>>, vector<8x256xf32>
    tpu.vector_store %arg8[%c88, %c0_39], %106 {strides = array<i32>} : memref<216x256xf32, #tpu.memory_space<vmem>>, vector<8x256xf32>,
    %c1_i32_40 = arith.constant 1 : i32
    %108 = tpu.dynamic_rotate %98 by %c1_i32_40 dim 1 : vector<8x256xf32>, i32 -> vector<8x256xf32>
    %109 = arith.mulf %108, %12 : vector<8x256xf32>
    %c96 = arith.constant 96 : index
    %c0_41 = arith.constant 0 : index
    %110 = vector.load %arg8[%c96, %c0_41] : memref<216x256xf32, #tpu.memory_space<vmem>>, vector<8x256xf32>
    tpu.vector_store %arg8[%c96, %c0_41], %109 {strides = array<i32>} : memref<216x256xf32, #tpu.memory_space<vmem>>, vector<8x256xf32>,
    %c104 = arith.constant 104 : index
    %c0_42 = arith.constant 0 : index
    %111 = vector.load %arg8[%c104, %c0_42] : memref<216x256xf32, #tpu.memory_space<vmem>>, vector<8x256xf32>
    tpu.vector_store %arg8[%c104, %c0_42], %98 {strides = array<i32>} : memref<216x256xf32, #tpu.memory_space<vmem>>, vector<8x256xf32>,
    %c255_i32_43 = arith.constant 255 : i32
    %112 = tpu.dynamic_rotate %98 by %c255_i32_43 dim 1 : vector<8x256xf32>, i32 -> vector<8x256xf32>
    %113 = arith.mulf %112, %15 : vector<8x256xf32>
    %c112 = arith.constant 112 : index
    %c0_44 = arith.constant 0 : index
    %114 = vector.load %arg8[%c112, %c0_44] : memref<216x256xf32, #tpu.memory_space<vmem>>, vector<8x256xf32>
    tpu.vector_store %arg8[%c112, %c0_44], %113 {strides = array<i32>} : memref<216x256xf32, #tpu.memory_space<vmem>>, vector<8x256xf32>,
    %c241_i32_45 = arith.constant 241 : i32
    %115 = tpu.dynamic_rotate %98 by %c241_i32_45 dim 1 : vector<8x256xf32>, i32 -> vector<8x256xf32>
    %116 = arith.mulf %115, %18 : vector<8x256xf32>
    %c120 = arith.constant 120 : index
    %c0_46 = arith.constant 0 : index
    %117 = vector.load %arg8[%c120, %c0_46] : memref<216x256xf32, #tpu.memory_space<vmem>>, vector<8x256xf32>
    tpu.vector_store %arg8[%c120, %c0_46], %116 {strides = array<i32>} : memref<216x256xf32, #tpu.memory_space<vmem>>, vector<8x256xf32>,
    %c240_i32_47 = arith.constant 240 : i32
    %118 = tpu.dynamic_rotate %98 by %c240_i32_47 dim 1 : vector<8x256xf32>, i32 -> vector<8x256xf32>
    %119 = arith.mulf %118, %21 : vector<8x256xf32>
    %c128 = arith.constant 128 : index
    %c0_48 = arith.constant 0 : index
    %120 = vector.load %arg8[%c128, %c0_48] : memref<216x256xf32, #tpu.memory_space<vmem>>, vector<8x256xf32>
    tpu.vector_store %arg8[%c128, %c0_48], %119 {strides = array<i32>} : memref<216x256xf32, #tpu.memory_space<vmem>>, vector<8x256xf32>,
    %c239_i32_49 = arith.constant 239 : i32
    %121 = tpu.dynamic_rotate %98 by %c239_i32_49 dim 1 : vector<8x256xf32>, i32 -> vector<8x256xf32>
    %122 = arith.mulf %121, %24 : vector<8x256xf32>
    %c136 = arith.constant 136 : index
    %c0_50 = arith.constant 0 : index
    %123 = vector.load %arg8[%c136, %c0_50] : memref<216x256xf32, #tpu.memory_space<vmem>>, vector<8x256xf32>
    tpu.vector_store %arg8[%c136, %c0_50], %122 {strides = array<i32>} : memref<216x256xf32, #tpu.memory_space<vmem>>, vector<8x256xf32>,
    %c0_51 = arith.constant 0 : index
    %c0_52 = arith.constant 0 : index
    %124 = vector.load %arg8[%c0_51, %c0_52] : memref<216x256xf32, #tpu.memory_space<vmem>>, vector<144x256xf32>
    %c0_53 = arith.constant 0 : index
    %c0_54 = arith.constant 0 : index
    %c0_55 = arith.constant 0 : index
    %125 = vector.load %arg3[%c0_53, %c0_54, %c0_55] : memref<6x8x144xf32, #tpu.memory_space<vmem>>, vector<1x8x144xf32>
    %126 = vector.shape_cast %125 : vector<1x8x144xf32> to vector<8x144xf32>
    %cst_56 = arith.constant dense<0.000000e+00> : vector<8x256xf32>
    %127 = tpu.matmul %126, %124, %cst_56 {dimension_numbers = #tpu.dot_dimension_numbers<[1], [0], [0], [1], [0, 0, 1, 1], [], []>} : vector<8x144xf32>, vector<144x256xf32>, vector<8x256xf32> -> vector<8x256xf32>
    %cst_57 = arith.constant 5.000000e-01 : f32
    %128 = vector.broadcast %cst_57 : f32 to vector<8x256xf32>
    %129 = arith.mulf %128, %127 : vector<8x256xf32>
    %cst_58 = arith.constant 0.707106769 : f32
    %130 = vector.broadcast %cst_58 : f32 to vector<8x256xf32>
    %131 = arith.mulf %127, %130 : vector<8x256xf32>
    %132 = math.absf %131 : vector<8x256xf32>
    %cst_59 = arith.constant 0.327591091 : f32
    %133 = vector.broadcast %cst_59 : f32 to vector<8x256xf32>
    %134 = arith.mulf %133, %132 : vector<8x256xf32>
    %cst_60 = arith.constant 1.000000e+00 : f32
    %135 = vector.broadcast %cst_60 : f32 to vector<8x256xf32>
    %136 = arith.addf %135, %134 : vector<8x256xf32>
    %137 = tpu.reciprocal %136 {approx = true} : vector<8x256xf32> -> vector<8x256xf32>
    %138 = arith.mulf %136, %137 : vector<8x256xf32>
    %cst_61 = arith.constant 2.000000e+00 : f32
    %139 = vector.broadcast %cst_61 : f32 to vector<8x256xf32>
    %140 = arith.subf %139, %138 : vector<8x256xf32>
    %141 = arith.mulf %137, %140 : vector<8x256xf32>
    %cst_62 = arith.constant 1.06140542 : f32
    %142 = vector.broadcast %cst_62 : f32 to vector<8x256xf32>
    %143 = arith.mulf %142, %141 : vector<8x256xf32>
    %cst_63 = arith.constant -1.45315206 : f32
    %144 = vector.broadcast %cst_63 : f32 to vector<8x256xf32>
    %145 = arith.addf %143, %144 : vector<8x256xf32>
    %146 = arith.mulf %145, %141 : vector<8x256xf32>
    %cst_64 = arith.constant 1.42141378 : f32
    %147 = vector.broadcast %cst_64 : f32 to vector<8x256xf32>
    %148 = arith.addf %146, %147 : vector<8x256xf32>
    %149 = arith.mulf %148, %141 : vector<8x256xf32>
    %cst_65 = arith.constant -0.284496725 : f32
    %150 = vector.broadcast %cst_65 : f32 to vector<8x256xf32>
    %151 = arith.addf %149, %150 : vector<8x256xf32>
    %152 = arith.mulf %151, %141 : vector<8x256xf32>
    %cst_66 = arith.constant 0.254829586 : f32
    %153 = vector.broadcast %cst_66 : f32 to vector<8x256xf32>
    %154 = arith.addf %152, %153 : vector<8x256xf32>
    %155 = arith.mulf %154, %141 : vector<8x256xf32>
    %cst_67 = arith.constant 0.000000e+00 : f32
    %156 = vector.broadcast %cst_67 : f32 to vector<8x256xf32>
    %157 = arith.subf %156, %132 : vector<8x256xf32>
    %158 = arith.mulf %157, %132 : vector<8x256xf32>
    %159 = math.exp %158 : vector<8x256xf32>
    %160 = arith.mulf %155, %159 : vector<8x256xf32>
    %cst_68 = arith.constant 1.000000e+00 : f32
    %161 = vector.broadcast %cst_68 : f32 to vector<8x256xf32>
    %162 = arith.subf %161, %160 : vector<8x256xf32>
    %cst_69 = arith.constant 0.000000e+00 : f32
    %163 = vector.broadcast %cst_69 : f32 to vector<8x256xf32>
    %164 = arith.cmpf olt, %131, %163 : vector<8x256xf32>
    %cst_70 = arith.constant 0.000000e+00 : f32
    %165 = vector.broadcast %cst_70 : f32 to vector<8x256xf32>
    %166 = arith.subf %165, %162 : vector<8x256xf32>
    %167 = arith.select %164, %166, %162 : vector<8x256xi1>, vector<8x256xf32>
    %cst_71 = arith.constant 1.000000e+00 : f32
    %168 = vector.broadcast %cst_71 : f32 to vector<8x256xf32>
    %169 = arith.addf %168, %167 : vector<8x256xf32>
    %170 = arith.mulf %129, %169 : vector<8x256xf32>
    %c17_i32_72 = arith.constant 17 : i32
    %171 = tpu.dynamic_rotate %170 by %c17_i32_72 dim 1 : vector<8x256xf32>, i32 -> vector<8x256xf32>
    %172 = arith.mulf %171, %3 : vector<8x256xf32>
    %c144 = arith.constant 144 : index
    %c0_73 = arith.constant 0 : index
    %173 = vector.load %arg8[%c144, %c0_73] : memref<216x256xf32, #tpu.memory_space<vmem>>, vector<8x256xf32>
    tpu.vector_store %arg8[%c144, %c0_73], %172 {strides = array<i32>} : memref<216x256xf32, #tpu.memory_space<vmem>>, vector<8x256xf32>,
    %c16_i32_74 = arith.constant 16 : i32
    %174 = tpu.dynamic_rotate %170 by %c16_i32_74 dim 1 : vector<8x256xf32>, i32 -> vector<8x256xf32>
    %175 = arith.mulf %174, %6 : vector<8x256xf32>
    %c152 = arith.constant 152 : index
    %c0_75 = arith.constant 0 : index
    %176 = vector.load %arg8[%c152, %c0_75] : memref<216x256xf32, #tpu.memory_space<vmem>>, vector<8x256xf32>
    tpu.vector_store %arg8[%c152, %c0_75], %175 {strides = array<i32>} : memref<216x256xf32, #tpu.memory_space<vmem>>, vector<8x256xf32>,
    %c15_i32_76 = arith.constant 15 : i32
    %177 = tpu.dynamic_rotate %170 by %c15_i32_76 dim 1 : vector<8x256xf32>, i32 -> vector<8x256xf32>
    %178 = arith.mulf %177, %9 : vector<8x256xf32>
    %c160 = arith.constant 160 : index
    %c0_77 = arith.constant 0 : index
    %179 = vector.load %arg8[%c160, %c0_77] : memref<216x256xf32, #tpu.memory_space<vmem>>, vector<8x256xf32>
    tpu.vector_store %arg8[%c160, %c0_77], %178 {strides = array<i32>} : memref<216x256xf32, #tpu.memory_space<vmem>>, vector<8x256xf32>,
    %c1_i32_78 = arith.constant 1 : i32
    %180 = tpu.dynamic_rotate %170 by %c1_i32_78 dim 1 : vector<8x256xf32>, i32 -> vector<8x256xf32>
    %181 = arith.mulf %180, %12 : vector<8x256xf32>
    %c168 = arith.constant 168 : index
    %c0_79 = arith.constant 0 : index
    %182 = vector.load %arg8[%c168, %c0_79] : memref<216x256xf32, #tpu.memory_space<vmem>>, vector<8x256xf32>
    tpu.vector_store %arg8[%c168, %c0_79], %181 {strides = array<i32>} : memref<216x256xf32, #tpu.memory_space<vmem>>, vector<8x256xf32>,
    %c176 = arith.constant 176 : index
    %c0_80 = arith.constant 0 : index
    %183 = vector.load %arg8[%c176, %c0_80] : memref<216x256xf32, #tpu.memory_space<vmem>>, vector<8x256xf32>
    tpu.vector_store %arg8[%c176, %c0_80], %170 {strides = array<i32>} : memref<216x256xf32, #tpu.memory_space<vmem>>, vector<8x256xf32>,
    %c255_i32_81 = arith.constant 255 : i32
    %184 = tpu.dynamic_rotate %170 by %c255_i32_81 dim 1 : vector<8x256xf32>, i32 -> vector<8x256xf32>
    %185 = arith.mulf %184, %15 : vector<8x256xf32>
    %c184 = arith.constant 184 : index
    %c0_82 = arith.constant 0 : index
    %186 = vector.load %arg8[%c184, %c0_82] : memref<216x256xf32, #tpu.memory_space<vmem>>, vector<8x256xf32>
    tpu.vector_store %arg8[%c184, %c0_82], %185 {strides = array<i32>} : memref<216x256xf32, #tpu.memory_space<vmem>>, vector<8x256xf32>,
    %c241_i32_83 = arith.constant 241 : i32
    %187 = tpu.dynamic_rotate %170 by %c241_i32_83 dim 1 : vector<8x256xf32>, i32 -> vector<8x256xf32>
    %188 = arith.mulf %187, %18 : vector<8x256xf32>
    %c192 = arith.constant 192 : index
    %c0_84 = arith.constant 0 : index
    %189 = vector.load %arg8[%c192, %c0_84] : memref<216x256xf32, #tpu.memory_space<vmem>>, vector<8x256xf32>
    tpu.vector_store %arg8[%c192, %c0_84], %188 {strides = array<i32>} : memref<216x256xf32, #tpu.memory_space<vmem>>, vector<8x256xf32>,
    %c240_i32_85 = arith.constant 240 : i32
    %190 = tpu.dynamic_rotate %170 by %c240_i32_85 dim 1 : vector<8x256xf32>, i32 -> vector<8x256xf32>
    %191 = arith.mulf %190, %21 : vector<8x256xf32>
    %c200 = arith.constant 200 : index
    %c0_86 = arith.constant 0 : index
    %192 = vector.load %arg8[%c200, %c0_86] : memref<216x256xf32, #tpu.memory_space<vmem>>, vector<8x256xf32>
    tpu.vector_store %arg8[%c200, %c0_86], %191 {strides = array<i32>} : memref<216x256xf32, #tpu.memory_space<vmem>>, vector<8x256xf32>,
    %c239_i32_87 = arith.constant 239 : i32
    %193 = tpu.dynamic_rotate %170 by %c239_i32_87 dim 1 : vector<8x256xf32>, i32 -> vector<8x256xf32>
    %194 = arith.mulf %193, %24 : vector<8x256xf32>
    %c208 = arith.constant 208 : index
    %c0_88 = arith.constant 0 : index
    %195 = vector.load %arg8[%c208, %c0_88] : memref<216x256xf32, #tpu.memory_space<vmem>>, vector<8x256xf32>
    tpu.vector_store %arg8[%c208, %c0_88], %194 {strides = array<i32>} : memref<216x256xf32, #tpu.memory_space<vmem>>, vector<8x256xf32>,
    %c0_89 = arith.constant 0 : index
    %c0_90 = arith.constant 0 : index
    %196 = vector.load %arg8[%c0_89, %c0_90] : memref<216x256xf32, #tpu.memory_space<vmem>>, vector<216x256xf32>
    %c0_91 = arith.constant 0 : index
    %c0_92 = arith.constant 0 : index
    %c0_93 = arith.constant 0 : index
    %197 = vector.load %arg4[%c0_91, %c0_92, %c0_93] : memref<6x8x216xf32, #tpu.memory_space<vmem>>, vector<1x8x216xf32>
    %198 = vector.shape_cast %197 : vector<1x8x216xf32> to vector<8x216xf32>
    %cst_94 = arith.constant dense<0.000000e+00> : vector<8x256xf32>
    %199 = tpu.matmul %198, %196, %cst_94 {dimension_numbers = #tpu.dot_dimension_numbers<[1], [0], [0], [1], [0, 0, 1, 1], [], []>} : vector<8x216xf32>, vector<216x256xf32>, vector<8x256xf32> -> vector<8x256xf32>
    %cst_95 = arith.constant 5.000000e-01 : f32
    %200 = vector.broadcast %cst_95 : f32 to vector<8x256xf32>
    %201 = arith.mulf %200, %199 : vector<8x256xf32>
    %cst_96 = arith.constant 0.707106769 : f32
    %202 = vector.broadcast %cst_96 : f32 to vector<8x256xf32>
    %203 = arith.mulf %199, %202 : vector<8x256xf32>
    %204 = math.absf %203 : vector<8x256xf32>
    %cst_97 = arith.constant 0.327591091 : f32
    %205 = vector.broadcast %cst_97 : f32 to vector<8x256xf32>
    %206 = arith.mulf %205, %204 : vector<8x256xf32>
    %cst_98 = arith.constant 1.000000e+00 : f32
    %207 = vector.broadcast %cst_98 : f32 to vector<8x256xf32>
    %208 = arith.addf %207, %206 : vector<8x256xf32>
    %209 = tpu.reciprocal %208 {approx = true} : vector<8x256xf32> -> vector<8x256xf32>
    %210 = arith.mulf %208, %209 : vector<8x256xf32>
    %cst_99 = arith.constant 2.000000e+00 : f32
    %211 = vector.broadcast %cst_99 : f32 to vector<8x256xf32>
    %212 = arith.subf %211, %210 : vector<8x256xf32>
    %213 = arith.mulf %209, %212 : vector<8x256xf32>
    %cst_100 = arith.constant 1.06140542 : f32
    %214 = vector.broadcast %cst_100 : f32 to vector<8x256xf32>
    %215 = arith.mulf %214, %213 : vector<8x256xf32>
    %cst_101 = arith.constant -1.45315206 : f32
    %216 = vector.broadcast %cst_101 : f32 to vector<8x256xf32>
    %217 = arith.addf %215, %216 : vector<8x256xf32>
    %218 = arith.mulf %217, %213 : vector<8x256xf32>
    %cst_102 = arith.constant 1.42141378 : f32
    %219 = vector.broadcast %cst_102 : f32 to vector<8x256xf32>
    %220 = arith.addf %218, %219 : vector<8x256xf32>
    %221 = arith.mulf %220, %213 : vector<8x256xf32>
    %cst_103 = arith.constant -0.284496725 : f32
    %222 = vector.broadcast %cst_103 : f32 to vector<8x256xf32>
    %223 = arith.addf %221, %222 : vector<8x256xf32>
    %224 = arith.mulf %223, %213 : vector<8x256xf32>
    %cst_104 = arith.constant 0.254829586 : f32
    %225 = vector.broadcast %cst_104 : f32 to vector<8x256xf32>
    %226 = arith.addf %224, %225 : vector<8x256xf32>
    %227 = arith.mulf %226, %213 : vector<8x256xf32>
    %cst_105 = arith.constant 0.000000e+00 : f32
    %228 = vector.broadcast %cst_105 : f32 to vector<8x256xf32>
    %229 = arith.subf %228, %204 : vector<8x256xf32>
    %230 = arith.mulf %229, %204 : vector<8x256xf32>
    %231 = math.exp %230 : vector<8x256xf32>
    %232 = arith.mulf %227, %231 : vector<8x256xf32>
    %cst_106 = arith.constant 1.000000e+00 : f32
    %233 = vector.broadcast %cst_106 : f32 to vector<8x256xf32>
    %234 = arith.subf %233, %232 : vector<8x256xf32>
    %cst_107 = arith.constant 0.000000e+00 : f32
    %235 = vector.broadcast %cst_107 : f32 to vector<8x256xf32>
    %236 = arith.cmpf olt, %203, %235 : vector<8x256xf32>
    %cst_108 = arith.constant 0.000000e+00 : f32
    %237 = vector.broadcast %cst_108 : f32 to vector<8x256xf32>
    %238 = arith.subf %237, %234 : vector<8x256xf32>
    %239 = arith.select %236, %238, %234 : vector<8x256xi1>, vector<8x256xf32>
    %cst_109 = arith.constant 1.000000e+00 : f32
    %240 = vector.broadcast %cst_109 : f32 to vector<8x256xf32>
    %241 = arith.addf %240, %239 : vector<8x256xf32>
    %242 = arith.mulf %201, %241 : vector<8x256xf32>
    %243 = tpu.concatenate %26, %98, %170, %242 in 0 : vector<8x256xf32>, vector<8x256xf32>, vector<8x256xf32>, vector<8x256xf32> -> vector<32x256xf32>
    %c0_110 = arith.constant 0 : index
    %c0_111 = arith.constant 0 : index
    %c0_112 = arith.constant 0 : index
    %244 = vector.load %arg5[%c0_110, %c0_111, %c0_112] : memref<6x8x32xf32, #tpu.memory_space<vmem>>, vector<1x8x32xf32>
    %245 = vector.shape_cast %244 : vector<1x8x32xf32> to vector<8x32xf32>
    %cst_113 = arith.constant dense<0.000000e+00> : vector<8x256xf32>
    %246 = tpu.matmul %245, %243, %cst_113 {dimension_numbers = #tpu.dot_dimension_numbers<[1], [0], [0], [1], [0, 0, 1, 1], [], []>} : vector<8x32xf32>, vector<32x256xf32>, vector<8x256xf32> -> vector<8x256xf32>
    %247 = arith.addf %26, %246 : vector<8x256xf32>
    %c17_i32_114 = arith.constant 17 : i32
    %248 = tpu.dynamic_rotate %247 by %c17_i32_114 dim 1 : vector<8x256xf32>, i32 -> vector<8x256xf32>
    %249 = arith.mulf %248, %3 : vector<8x256xf32>
    %c0_115 = arith.constant 0 : index
    %c0_116 = arith.constant 0 : index
    %250 = vector.load %arg8[%c0_115, %c0_116] : memref<216x256xf32, #tpu.memory_space<vmem>>, vector<8x256xf32>
    tpu.vector_store %arg8[%c0_115, %c0_116], %249 {strides = array<i32>} : memref<216x256xf32, #tpu.memory_space<vmem>>, vector<8x256xf32>,
    %c16_i32_117 = arith.constant 16 : i32
    %251 = tpu.dynamic_rotate %247 by %c16_i32_117 dim 1 : vector<8x256xf32>, i32 -> vector<8x256xf32>
    %252 = arith.mulf %251, %6 : vector<8x256xf32>
    %c8_118 = arith.constant 8 : index
    %c0_119 = arith.constant 0 : index
    %253 = vector.load %arg8[%c8_118, %c0_119] : memref<216x256xf32, #tpu.memory_space<vmem>>, vector<8x256xf32>
    tpu.vector_store %arg8[%c8_118, %c0_119], %252 {strides = array<i32>} : memref<216x256xf32, #tpu.memory_space<vmem>>, vector<8x256xf32>,
    %c15_i32_120 = arith.constant 15 : i32
    %254 = tpu.dynamic_rotate %247 by %c15_i32_120 dim 1 : vector<8x256xf32>, i32 -> vector<8x256xf32>
    %255 = arith.mulf %254, %9 : vector<8x256xf32>
    %c16_121 = arith.constant 16 : index
    %c0_122 = arith.constant 0 : index
    %256 = vector.load %arg8[%c16_121, %c0_122] : memref<216x256xf32, #tpu.memory_space<vmem>>, vector<8x256xf32>
    tpu.vector_store %arg8[%c16_121, %c0_122], %255 {strides = array<i32>} : memref<216x256xf32, #tpu.memory_space<vmem>>, vector<8x256xf32>,
    %c1_i32_123 = arith.constant 1 : i32
    %257 = tpu.dynamic_rotate %247 by %c1_i32_123 dim 1 : vector<8x256xf32>, i32 -> vector<8x256xf32>
    %258 = arith.mulf %257, %12 : vector<8x256xf32>
    %c24_124 = arith.constant 24 : index
    %c0_125 = arith.constant 0 : index
    %259 = vector.load %arg8[%c24_124, %c0_125] : memref<216x256xf32, #tpu.memory_space<vmem>>, vector<8x256xf32>
    tpu.vector_store %arg8[%c24_124, %c0_125], %258 {strides = array<i32>} : memref<216x256xf32, #tpu.memory_space<vmem>>, vector<8x256xf32>,
    %c32_126 = arith.constant 32 : index
    %c0_127 = arith.constant 0 : index
    %260 = vector.load %arg8[%c32_126, %c0_127] : memref<216x256xf32, #tpu.memory_space<vmem>>, vector<8x256xf32>
    tpu.vector_store %arg8[%c32_126, %c0_127], %247 {strides = array<i32>} : memref<216x256xf32, #tpu.memory_space<vmem>>, vector<8x256xf32>,
    %c255_i32_128 = arith.constant 255 : i32
    %261 = tpu.dynamic_rotate %247 by %c255_i32_128 dim 1 : vector<8x256xf32>, i32 -> vector<8x256xf32>
    %262 = arith.mulf %261, %15 : vector<8x256xf32>
    %c40_129 = arith.constant 40 : index
    %c0_130 = arith.constant 0 : index
    %263 = vector.load %arg8[%c40_129, %c0_130] : memref<216x256xf32, #tpu.memory_space<vmem>>, vector<8x256xf32>
    tpu.vector_store %arg8[%c40_129, %c0_130], %262 {strides = array<i32>} : memref<216x256xf32, #tpu.memory_space<vmem>>, vector<8x256xf32>,
    %c241_i32_131 = arith.constant 241 : i32
    %264 = tpu.dynamic_rotate %247 by %c241_i32_131 dim 1 : vector<8x256xf32>, i32 -> vector<8x256xf32>
    %265 = arith.mulf %264, %18 : vector<8x256xf32>
    %c48_132 = arith.constant 48 : index
    %c0_133 = arith.constant 0 : index
    %266 = vector.load %arg8[%c48_132, %c0_133] : memref<216x256xf32, #tpu.memory_space<vmem>>, vector<8x256xf32>
    tpu.vector_store %arg8[%c48_132, %c0_133], %265 {strides = array<i32>} : memref<216x256xf32, #tpu.memory_space<vmem>>, vector<8x256xf32>,
    %c240_i32_134 = arith.constant 240 : i32
    %267 = tpu.dynamic_rotate %247 by %c240_i32_134 dim 1 : vector<8x256xf32>, i32 -> vector<8x256xf32>
    %268 = arith.mulf %267, %21 : vector<8x256xf32>
    %c56_135 = arith.constant 56 : index
    %c0_136 = arith.constant 0 : index
    %269 = vector.load %arg8[%c56_135, %c0_136] : memref<216x256xf32, #tpu.memory_space<vmem>>, vector<8x256xf32>
    tpu.vector_store %arg8[%c56_135, %c0_136], %268 {strides = array<i32>} : memref<216x256xf32, #tpu.memory_space<vmem>>, vector<8x256xf32>,
    %c239_i32_137 = arith.constant 239 : i32
    %270 = tpu.dynamic_rotate %247 by %c239_i32_137 dim 1 : vector<8x256xf32>, i32 -> vector<8x256xf32>
    %271 = arith.mulf %270, %24 : vector<8x256xf32>
    %c64_138 = arith.constant 64 : index
    %c0_139 = arith.constant 0 : index
    %272 = vector.load %arg8[%c64_138, %c0_139] : memref<216x256xf32, #tpu.memory_space<vmem>>, vector<8x256xf32>
    tpu.vector_store %arg8[%c64_138, %c0_139], %271 {strides = array<i32>} : memref<216x256xf32, #tpu.memory_space<vmem>>, vector<8x256xf32>,
    %c0_140 = arith.constant 0 : index
    %c0_141 = arith.constant 0 : index
    %273 = vector.load %arg8[%c0_140, %c0_141] : memref<216x256xf32, #tpu.memory_space<vmem>>, vector<72x256xf32>
    %c1 = arith.constant 1 : index
    %c0_142 = arith.constant 0 : index
    %c0_143 = arith.constant 0 : index
    %274 = vector.load %arg2[%c1, %c0_142, %c0_143] : memref<6x8x72xf32, #tpu.memory_space<vmem>>, vector<1x8x72xf32>
    %275 = vector.shape_cast %274 : vector<1x8x72xf32> to vector<8x72xf32>
    %cst_144 = arith.constant dense<0.000000e+00> : vector<8x256xf32>
    %276 = tpu.matmul %275, %273, %cst_144 {dimension_numbers = #tpu.dot_dimension_numbers<[1], [0], [0], [1], [0, 0, 1, 1], [], []>} : vector<8x72xf32>, vector<72x256xf32>, vector<8x256xf32> -> vector<8x256xf32>
    %cst_145 = arith.constant 5.000000e-01 : f32
    %277 = vector.broadcast %cst_145 : f32 to vector<8x256xf32>
    %278 = arith.mulf %277, %276 : vector<8x256xf32>
    %cst_146 = arith.constant 0.707106769 : f32
    %279 = vector.broadcast %cst_146 : f32 to vector<8x256xf32>
    %280 = arith.mulf %276, %279 : vector<8x256xf32>
    %281 = math.absf %280 : vector<8x256xf32>
    %cst_147 = arith.constant 0.327591091 : f32
    %282 = vector.broadcast %cst_147 : f32 to vector<8x256xf32>
    %283 = arith.mulf %282, %281 : vector<8x256xf32>
    %cst_148 = arith.constant 1.000000e+00 : f32
    %284 = vector.broadcast %cst_148 : f32 to vector<8x256xf32>
    %285 = arith.addf %284, %283 : vector<8x256xf32>
    %286 = tpu.reciprocal %285 {approx = true} : vector<8x256xf32> -> vector<8x256xf32>
    %287 = arith.mulf %285, %286 : vector<8x256xf32>
    %cst_149 = arith.constant 2.000000e+00 : f32
    %288 = vector.broadcast %cst_149 : f32 to vector<8x256xf32>
    %289 = arith.subf %288, %287 : vector<8x256xf32>
    %290 = arith.mulf %286, %289 : vector<8x256xf32>
    %cst_150 = arith.constant 1.06140542 : f32
    %291 = vector.broadcast %cst_150 : f32 to vector<8x256xf32>
    %292 = arith.mulf %291, %290 : vector<8x256xf32>
    %cst_151 = arith.constant -1.45315206 : f32
    %293 = vector.broadcast %cst_151 : f32 to vector<8x256xf32>
    %294 = arith.addf %292, %293 : vector<8x256xf32>
    %295 = arith.mulf %294, %290 : vector<8x256xf32>
    %cst_152 = arith.constant 1.42141378 : f32
    %296 = vector.broadcast %cst_152 : f32 to vector<8x256xf32>
    %297 = arith.addf %295, %296 : vector<8x256xf32>
    %298 = arith.mulf %297, %290 : vector<8x256xf32>
    %cst_153 = arith.constant -0.284496725 : f32
    %299 = vector.broadcast %cst_153 : f32 to vector<8x256xf32>
    %300 = arith.addf %298, %299 : vector<8x256xf32>
    %301 = arith.mulf %300, %290 : vector<8x256xf32>
    %cst_154 = arith.constant 0.254829586 : f32
    %302 = vector.broadcast %cst_154 : f32 to vector<8x256xf32>
    %303 = arith.addf %301, %302 : vector<8x256xf32>
    %304 = arith.mulf %303, %290 : vector<8x256xf32>
    %cst_155 = arith.constant 0.000000e+00 : f32
    %305 = vector.broadcast %cst_155 : f32 to vector<8x256xf32>
    %306 = arith.subf %305, %281 : vector<8x256xf32>
    %307 = arith.mulf %306, %281 : vector<8x256xf32>
    %308 = math.exp %307 : vector<8x256xf32>
    %309 = arith.mulf %304, %308 : vector<8x256xf32>
    %cst_156 = arith.constant 1.000000e+00 : f32
    %310 = vector.broadcast %cst_156 : f32 to vector<8x256xf32>
    %311 = arith.subf %310, %309 : vector<8x256xf32>
    %cst_157 = arith.constant 0.000000e+00 : f32
    %312 = vector.broadcast %cst_157 : f32 to vector<8x256xf32>
    %313 = arith.cmpf olt, %280, %312 : vector<8x256xf32>
    %cst_158 = arith.constant 0.000000e+00 : f32
    %314 = vector.broadcast %cst_158 : f32 to vector<8x256xf32>
    %315 = arith.subf %314, %311 : vector<8x256xf32>
    %316 = arith.select %313, %315, %311 : vector<8x256xi1>, vector<8x256xf32>
    %cst_159 = arith.constant 1.000000e+00 : f32
    %317 = vector.broadcast %cst_159 : f32 to vector<8x256xf32>
    %318 = arith.addf %317, %316 : vector<8x256xf32>
    %319 = arith.mulf %278, %318 : vector<8x256xf32>
    %c17_i32_160 = arith.constant 17 : i32
    %320 = tpu.dynamic_rotate %319 by %c17_i32_160 dim 1 : vector<8x256xf32>, i32 -> vector<8x256xf32>
    %321 = arith.mulf %320, %3 : vector<8x256xf32>
    %c72_161 = arith.constant 72 : index
    %c0_162 = arith.constant 0 : index
    %322 = vector.load %arg8[%c72_161, %c0_162] : memref<216x256xf32, #tpu.memory_space<vmem>>, vector<8x256xf32>
    tpu.vector_store %arg8[%c72_161, %c0_162], %321 {strides = array<i32>} : memref<216x256xf32, #tpu.memory_space<vmem>>, vector<8x256xf32>,
    %c16_i32_163 = arith.constant 16 : i32
    %323 = tpu.dynamic_rotate %319 by %c16_i32_163 dim 1 : vector<8x256xf32>, i32 -> vector<8x256xf32>
    %324 = arith.mulf %323, %6 : vector<8x256xf32>
    %c80_164 = arith.constant 80 : index
    %c0_165 = arith.constant 0 : index
    %325 = vector.load %arg8[%c80_164, %c0_165] : memref<216x256xf32, #tpu.memory_space<vmem>>, vector<8x256xf32>
    tpu.vector_store %arg8[%c80_164, %c0_165], %324 {strides = array<i32>} : memref<216x256xf32, #tpu.memory_space<vmem>>, vector<8x256xf32>,
    %c15_i32_166 = arith.constant 15 : i32
    %326 = tpu.dynamic_rotate %319 by %c15_i32_166 dim 1 : vector<8x256xf32>, i32 -> vector<8x256xf32>
    %327 = arith.mulf %326, %9 : vector<8x256xf32>
    %c88_167 = arith.constant 88 : index
    %c0_168 = arith.constant 0 : index
    %328 = vector.load %arg8[%c88_167, %c0_168] : memref<216x256xf32, #tpu.memory_space<vmem>>, vector<8x256xf32>
    tpu.vector_store %arg8[%c88_167, %c0_168], %327 {strides = array<i32>} : memref<216x256xf32, #tpu.memory_space<vmem>>, vector<8x256xf32>,
    %c1_i32_169 = arith.constant 1 : i32
    %329 = tpu.dynamic_rotate %319 by %c1_i32_169 dim 1 : vector<8x256xf32>, i32 -> vector<8x256xf32>
    %330 = arith.mulf %329, %12 : vector<8x256xf32>
    %c96_170 = arith.constant 96 : index
    %c0_171 = arith.constant 0 : index
    %331 = vector.load %arg8[%c96_170, %c0_171] : memref<216x256xf32, #tpu.memory_space<vmem>>, vector<8x256xf32>
    tpu.vector_store %arg8[%c96_170, %c0_171], %330 {strides = array<i32>} : memref<216x256xf32, #tpu.memory_space<vmem>>, vector<8x256xf32>,
    %c104_172 = arith.constant 104 : index
    %c0_173 = arith.constant 0 : index
    %332 = vector.load %arg8[%c104_172, %c0_173] : memref<216x256xf32, #tpu.memory_space<vmem>>, vector<8x256xf32>
    tpu.vector_store %arg8[%c104_172, %c0_173], %319 {strides = array<i32>} : memref<216x256xf32, #tpu.memory_space<vmem>>, vector<8x256xf32>,
    %c255_i32_174 = arith.constant 255 : i32
    %333 = tpu.dynamic_rotate %319 by %c255_i32_174 dim 1 : vector<8x256xf32>, i32 -> vector<8x256xf32>
    %334 = arith.mulf %333, %15 : vector<8x256xf32>
    %c112_175 = arith.constant 112 : index
    %c0_176 = arith.constant 0 : index
    %335 = vector.load %arg8[%c112_175, %c0_176] : memref<216x256xf32, #tpu.memory_space<vmem>>, vector<8x256xf32>
    tpu.vector_store %arg8[%c112_175, %c0_176], %334 {strides = array<i32>} : memref<216x256xf32, #tpu.memory_space<vmem>>, vector<8x256xf32>,
    %c241_i32_177 = arith.constant 241 : i32
    %336 = tpu.dynamic_rotate %319 by %c241_i32_177 dim 1 : vector<8x256xf32>, i32 -> vector<8x256xf32>
    %337 = arith.mulf %336, %18 : vector<8x256xf32>
    %c120_178 = arith.constant 120 : index
    %c0_179 = arith.constant 0 : index
    %338 = vector.load %arg8[%c120_178, %c0_179] : memref<216x256xf32, #tpu.memory_space<vmem>>, vector<8x256xf32>
    tpu.vector_store %arg8[%c120_178, %c0_179], %337 {strides = array<i32>} : memref<216x256xf32, #tpu.memory_space<vmem>>, vector<8x256xf32>,
    %c240_i32_180 = arith.constant 240 : i32
    %339 = tpu.dynamic_rotate %319 by %c240_i32_180 dim 1 : vector<8x256xf32>, i32 -> vector<8x256xf32>
    %340 = arith.mulf %339, %21 : vector<8x256xf32>
    %c128_181 = arith.constant 128 : index
    %c0_182 = arith.constant 0 : index
    %341 = vector.load %arg8[%c128_181, %c0_182] : memref<216x256xf32, #tpu.memory_space<vmem>>, vector<8x256xf32>
    tpu.vector_store %arg8[%c128_181, %c0_182], %340 {strides = array<i32>} : memref<216x256xf32, #tpu.memory_space<vmem>>, vector<8x256xf32>,
    %c239_i32_183 = arith.constant 239 : i32
    %342 = tpu.dynamic_rotate %319 by %c239_i32_183 dim 1 : vector<8x256xf32>, i32 -> vector<8x256xf32>
    %343 = arith.mulf %342, %24 : vector<8x256xf32>
    %c136_184 = arith.constant 136 : index
    %c0_185 = arith.constant 0 : index
    %344 = vector.load %arg8[%c136_184, %c0_185] : memref<216x256xf32, #tpu.memory_space<vmem>>, vector<8x256xf32>
    tpu.vector_store %arg8[%c136_184, %c0_185], %343 {strides = array<i32>} : memref<216x256xf32, #tpu.memory_space<vmem>>, vector<8x256xf32>,
    %c0_186 = arith.constant 0 : index
    %c0_187 = arith.constant 0 : index
    %345 = vector.load %arg8[%c0_186, %c0_187] : memref<216x256xf32, #tpu.memory_space<vmem>>, vector<144x256xf32>
    %c1_188 = arith.constant 1 : index
    %c0_189 = arith.constant 0 : index
    %c0_190 = arith.constant 0 : index
    %346 = vector.load %arg3[%c1_188, %c0_189, %c0_190] : memref<6x8x144xf32, #tpu.memory_space<vmem>>, vector<1x8x144xf32>
    %347 = vector.shape_cast %346 : vector<1x8x144xf32> to vector<8x144xf32>
    %cst_191 = arith.constant dense<0.000000e+00> : vector<8x256xf32>
    %348 = tpu.matmul %347, %345, %cst_191 {dimension_numbers = #tpu.dot_dimension_numbers<[1], [0], [0], [1], [0, 0, 1, 1], [], []>} : vector<8x144xf32>, vector<144x256xf32>, vector<8x256xf32> -> vector<8x256xf32>
    %cst_192 = arith.constant 5.000000e-01 : f32
    %349 = vector.broadcast %cst_192 : f32 to vector<8x256xf32>
    %350 = arith.mulf %349, %348 : vector<8x256xf32>
    %cst_193 = arith.constant 0.707106769 : f32
    %351 = vector.broadcast %cst_193 : f32 to vector<8x256xf32>
    %352 = arith.mulf %348, %351 : vector<8x256xf32>
    %353 = math.absf %352 : vector<8x256xf32>
    %cst_194 = arith.constant 0.327591091 : f32
    %354 = vector.broadcast %cst_194 : f32 to vector<8x256xf32>
    %355 = arith.mulf %354, %353 : vector<8x256xf32>
    %cst_195 = arith.constant 1.000000e+00 : f32
    %356 = vector.broadcast %cst_195 : f32 to vector<8x256xf32>
    %357 = arith.addf %356, %355 : vector<8x256xf32>
    %358 = tpu.reciprocal %357 {approx = true} : vector<8x256xf32> -> vector<8x256xf32>
    %359 = arith.mulf %357, %358 : vector<8x256xf32>
    %cst_196 = arith.constant 2.000000e+00 : f32
    %360 = vector.broadcast %cst_196 : f32 to vector<8x256xf32>
    %361 = arith.subf %360, %359 : vector<8x256xf32>
    %362 = arith.mulf %358, %361 : vector<8x256xf32>
    %cst_197 = arith.constant 1.06140542 : f32
    %363 = vector.broadcast %cst_197 : f32 to vector<8x256xf32>
    %364 = arith.mulf %363, %362 : vector<8x256xf32>
    %cst_198 = arith.constant -1.45315206 : f32
    %365 = vector.broadcast %cst_198 : f32 to vector<8x256xf32>
    %366 = arith.addf %364, %365 : vector<8x256xf32>
    %367 = arith.mulf %366, %362 : vector<8x256xf32>
    %cst_199 = arith.constant 1.42141378 : f32
    %368 = vector.broadcast %cst_199 : f32 to vector<8x256xf32>
    %369 = arith.addf %367, %368 : vector<8x256xf32>
    %370 = arith.mulf %369, %362 : vector<8x256xf32>
    %cst_200 = arith.constant -0.284496725 : f32
    %371 = vector.broadcast %cst_200 : f32 to vector<8x256xf32>
    %372 = arith.addf %370, %371 : vector<8x256xf32>
    %373 = arith.mulf %372, %362 : vector<8x256xf32>
    %cst_201 = arith.constant 0.254829586 : f32
    %374 = vector.broadcast %cst_201 : f32 to vector<8x256xf32>
    %375 = arith.addf %373, %374 : vector<8x256xf32>
    %376 = arith.mulf %375, %362 : vector<8x256xf32>
    %cst_202 = arith.constant 0.000000e+00 : f32
    %377 = vector.broadcast %cst_202 : f32 to vector<8x256xf32>
    %378 = arith.subf %377, %353 : vector<8x256xf32>
    %379 = arith.mulf %378, %353 : vector<8x256xf32>
    %380 = math.exp %379 : vector<8x256xf32>
    %381 = arith.mulf %376, %380 : vector<8x256xf32>
    %cst_203 = arith.constant 1.000000e+00 : f32
    %382 = vector.broadcast %cst_203 : f32 to vector<8x256xf32>
    %383 = arith.subf %382, %381 : vector<8x256xf32>
    %cst_204 = arith.constant 0.000000e+00 : f32
    %384 = vector.broadcast %cst_204 : f32 to vector<8x256xf32>
    %385 = arith.cmpf olt, %352, %384 : vector<8x256xf32>
    %cst_205 = arith.constant 0.000000e+00 : f32
    %386 = vector.broadcast %cst_205 : f32 to vector<8x256xf32>
    %387 = arith.subf %386, %383 : vector<8x256xf32>
    %388 = arith.select %385, %387, %383 : vector<8x256xi1>, vector<8x256xf32>
    %cst_206 = arith.constant 1.000000e+00 : f32
    %389 = vector.broadcast %cst_206 : f32 to vector<8x256xf32>
    %390 = arith.addf %389, %388 : vector<8x256xf32>
    %391 = arith.mulf %350, %390 : vector<8x256xf32>
    %c17_i32_207 = arith.constant 17 : i32
    %392 = tpu.dynamic_rotate %391 by %c17_i32_207 dim 1 : vector<8x256xf32>, i32 -> vector<8x256xf32>
    %393 = arith.mulf %392, %3 : vector<8x256xf32>
    %c144_208 = arith.constant 144 : index
    %c0_209 = arith.constant 0 : index
    %394 = vector.load %arg8[%c144_208, %c0_209] : memref<216x256xf32, #tpu.memory_space<vmem>>, vector<8x256xf32>
    tpu.vector_store %arg8[%c144_208, %c0_209], %393 {strides = array<i32>} : memref<216x256xf32, #tpu.memory_space<vmem>>, vector<8x256xf32>,
    %c16_i32_210 = arith.constant 16 : i32
    %395 = tpu.dynamic_rotate %391 by %c16_i32_210 dim 1 : vector<8x256xf32>, i32 -> vector<8x256xf32>
    %396 = arith.mulf %395, %6 : vector<8x256xf32>
    %c152_211 = arith.constant 152 : index
    %c0_212 = arith.constant 0 : index
    %397 = vector.load %arg8[%c152_211, %c0_212] : memref<216x256xf32, #tpu.memory_space<vmem>>, vector<8x256xf32>
    tpu.vector_store %arg8[%c152_211, %c0_212], %396 {strides = array<i32>} : memref<216x256xf32, #tpu.memory_space<vmem>>, vector<8x256xf32>,
    %c15_i32_213 = arith.constant 15 : i32
    %398 = tpu.dynamic_rotate %391 by %c15_i32_213 dim 1 : vector<8x256xf32>, i32 -> vector<8x256xf32>
    %399 = arith.mulf %398, %9 : vector<8x256xf32>
    %c160_214 = arith.constant 160 : index
    %c0_215 = arith.constant 0 : index
    %400 = vector.load %arg8[%c160_214, %c0_215] : memref<216x256xf32, #tpu.memory_space<vmem>>, vector<8x256xf32>
    tpu.vector_store %arg8[%c160_214, %c0_215], %399 {strides = array<i32>} : memref<216x256xf32, #tpu.memory_space<vmem>>, vector<8x256xf32>,
    %c1_i32_216 = arith.constant 1 : i32
    %401 = tpu.dynamic_rotate %391 by %c1_i32_216 dim 1 : vector<8x256xf32>, i32 -> vector<8x256xf32>
    %402 = arith.mulf %401, %12 : vector<8x256xf32>
    %c168_217 = arith.constant 168 : index
    %c0_218 = arith.constant 0 : index
    %403 = vector.load %arg8[%c168_217, %c0_218] : memref<216x256xf32, #tpu.memory_space<vmem>>, vector<8x256xf32>
    tpu.vector_store %arg8[%c168_217, %c0_218], %402 {strides = array<i32>} : memref<216x256xf32, #tpu.memory_space<vmem>>, vector<8x256xf32>,
    %c176_219 = arith.constant 176 : index
    %c0_220 = arith.constant 0 : index
    %404 = vector.load %arg8[%c176_219, %c0_220] : memref<216x256xf32, #tpu.memory_space<vmem>>, vector<8x256xf32>
    tpu.vector_store %arg8[%c176_219, %c0_220], %391 {strides = array<i32>} : memref<216x256xf32, #tpu.memory_space<vmem>>, vector<8x256xf32>,
    %c255_i32_221 = arith.constant 255 : i32
    %405 = tpu.dynamic_rotate %391 by %c255_i32_221 dim 1 : vector<8x256xf32>, i32 -> vector<8x256xf32>
    %406 = arith.mulf %405, %15 : vector<8x256xf32>
    %c184_222 = arith.constant 184 : index
    %c0_223 = arith.constant 0 : index
    %407 = vector.load %arg8[%c184_222, %c0_223] : memref<216x256xf32, #tpu.memory_space<vmem>>, vector<8x256xf32>
    tpu.vector_store %arg8[%c184_222, %c0_223], %406 {strides = array<i32>} : memref<216x256xf32, #tpu.memory_space<vmem>>, vector<8x256xf32>,
    %c241_i32_224 = arith.constant 241 : i32
    %408 = tpu.dynamic_rotate %391 by %c241_i32_224 dim 1 : vector<8x256xf32>, i32 -> vector<8x256xf32>
    %409 = arith.mulf %408, %18 : vector<8x256xf32>
    %c192_225 = arith.constant 192 : index
    %c0_226 = arith.constant 0 : index
    %410 = vector.load %arg8[%c192_225, %c0_226] : memref<216x256xf32, #tpu.memory_space<vmem>>, vector<8x256xf32>
    tpu.vector_store %arg8[%c192_225, %c0_226], %409 {strides = array<i32>} : memref<216x256xf32, #tpu.memory_space<vmem>>, vector<8x256xf32>,
    %c240_i32_227 = arith.constant 240 : i32
    %411 = tpu.dynamic_rotate %391 by %c240_i32_227 dim 1 : vector<8x256xf32>, i32 -> vector<8x256xf32>
    %412 = arith.mulf %411, %21 : vector<8x256xf32>
    %c200_228 = arith.constant 200 : index
    %c0_229 = arith.constant 0 : index
    %413 = vector.load %arg8[%c200_228, %c0_229] : memref<216x256xf32, #tpu.memory_space<vmem>>, vector<8x256xf32>
    tpu.vector_store %arg8[%c200_228, %c0_229], %412 {strides = array<i32>} : memref<216x256xf32, #tpu.memory_space<vmem>>, vector<8x256xf32>,
    %c239_i32_230 = arith.constant 239 : i32
    %414 = tpu.dynamic_rotate %391 by %c239_i32_230 dim 1 : vector<8x256xf32>, i32 -> vector<8x256xf32>
    %415 = arith.mulf %414, %24 : vector<8x256xf32>
    %c208_231 = arith.constant 208 : index
    %c0_232 = arith.constant 0 : index
    %416 = vector.load %arg8[%c208_231, %c0_232] : memref<216x256xf32, #tpu.memory_space<vmem>>, vector<8x256xf32>
    tpu.vector_store %arg8[%c208_231, %c0_232], %415 {strides = array<i32>} : memref<216x256xf32, #tpu.memory_space<vmem>>, vector<8x256xf32>,
    %c0_233 = arith.constant 0 : index
    %c0_234 = arith.constant 0 : index
    %417 = vector.load %arg8[%c0_233, %c0_234] : memref<216x256xf32, #tpu.memory_space<vmem>>, vector<216x256xf32>
    %c1_235 = arith.constant 1 : index
    %c0_236 = arith.constant 0 : index
    %c0_237 = arith.constant 0 : index
    %418 = vector.load %arg4[%c1_235, %c0_236, %c0_237] : memref<6x8x216xf32, #tpu.memory_space<vmem>>, vector<1x8x216xf32>
    %419 = vector.shape_cast %418 : vector<1x8x216xf32> to vector<8x216xf32>
    %cst_238 = arith.constant dense<0.000000e+00> : vector<8x256xf32>
    %420 = tpu.matmul %419, %417, %cst_238 {dimension_numbers = #tpu.dot_dimension_numbers<[1], [0], [0], [1], [0, 0, 1, 1], [], []>} : vector<8x216xf32>, vector<216x256xf32>, vector<8x256xf32> -> vector<8x256xf32>
    %cst_239 = arith.constant 5.000000e-01 : f32
    %421 = vector.broadcast %cst_239 : f32 to vector<8x256xf32>
    %422 = arith.mulf %421, %420 : vector<8x256xf32>
    %cst_240 = arith.constant 0.707106769 : f32
    %423 = vector.broadcast %cst_240 : f32 to vector<8x256xf32>
    %424 = arith.mulf %420, %423 : vector<8x256xf32>
    %425 = math.absf %424 : vector<8x256xf32>
    %cst_241 = arith.constant 0.327591091 : f32
    %426 = vector.broadcast %cst_241 : f32 to vector<8x256xf32>
    %427 = arith.mulf %426, %425 : vector<8x256xf32>
    %cst_242 = arith.constant 1.000000e+00 : f32
    %428 = vector.broadcast %cst_242 : f32 to vector<8x256xf32>
    %429 = arith.addf %428, %427 : vector<8x256xf32>
    %430 = tpu.reciprocal %429 {approx = true} : vector<8x256xf32> -> vector<8x256xf32>
    %431 = arith.mulf %429, %430 : vector<8x256xf32>
    %cst_243 = arith.constant 2.000000e+00 : f32
    %432 = vector.broadcast %cst_243 : f32 to vector<8x256xf32>
    %433 = arith.subf %432, %431 : vector<8x256xf32>
    %434 = arith.mulf %430, %433 : vector<8x256xf32>
    %cst_244 = arith.constant 1.06140542 : f32
    %435 = vector.broadcast %cst_244 : f32 to vector<8x256xf32>
    %436 = arith.mulf %435, %434 : vector<8x256xf32>
    %cst_245 = arith.constant -1.45315206 : f32
    %437 = vector.broadcast %cst_245 : f32 to vector<8x256xf32>
    %438 = arith.addf %436, %437 : vector<8x256xf32>
    %439 = arith.mulf %438, %434 : vector<8x256xf32>
    %cst_246 = arith.constant 1.42141378 : f32
    %440 = vector.broadcast %cst_246 : f32 to vector<8x256xf32>
    %441 = arith.addf %439, %440 : vector<8x256xf32>
    %442 = arith.mulf %441, %434 : vector<8x256xf32>
    %cst_247 = arith.constant -0.284496725 : f32
    %443 = vector.broadcast %cst_247 : f32 to vector<8x256xf32>
    %444 = arith.addf %442, %443 : vector<8x256xf32>
    %445 = arith.mulf %444, %434 : vector<8x256xf32>
    %cst_248 = arith.constant 0.254829586 : f32
    %446 = vector.broadcast %cst_248 : f32 to vector<8x256xf32>
    %447 = arith.addf %445, %446 : vector<8x256xf32>
    %448 = arith.mulf %447, %434 : vector<8x256xf32>
    %cst_249 = arith.constant 0.000000e+00 : f32
    %449 = vector.broadcast %cst_249 : f32 to vector<8x256xf32>
    %450 = arith.subf %449, %425 : vector<8x256xf32>
    %451 = arith.mulf %450, %425 : vector<8x256xf32>
    %452 = math.exp %451 : vector<8x256xf32>
    %453 = arith.mulf %448, %452 : vector<8x256xf32>
    %cst_250 = arith.constant 1.000000e+00 : f32
    %454 = vector.broadcast %cst_250 : f32 to vector<8x256xf32>
    %455 = arith.subf %454, %453 : vector<8x256xf32>
    %cst_251 = arith.constant 0.000000e+00 : f32
    %456 = vector.broadcast %cst_251 : f32 to vector<8x256xf32>
    %457 = arith.cmpf olt, %424, %456 : vector<8x256xf32>
    %cst_252 = arith.constant 0.000000e+00 : f32
    %458 = vector.broadcast %cst_252 : f32 to vector<8x256xf32>
    %459 = arith.subf %458, %455 : vector<8x256xf32>
    %460 = arith.select %457, %459, %455 : vector<8x256xi1>, vector<8x256xf32>
    %cst_253 = arith.constant 1.000000e+00 : f32
    %461 = vector.broadcast %cst_253 : f32 to vector<8x256xf32>
    %462 = arith.addf %461, %460 : vector<8x256xf32>
    %463 = arith.mulf %422, %462 : vector<8x256xf32>
    %464 = tpu.concatenate %247, %319, %391, %463 in 0 : vector<8x256xf32>, vector<8x256xf32>, vector<8x256xf32>, vector<8x256xf32> -> vector<32x256xf32>
    %c1_254 = arith.constant 1 : index
    %c0_255 = arith.constant 0 : index
    %c0_256 = arith.constant 0 : index
    %465 = vector.load %arg5[%c1_254, %c0_255, %c0_256] : memref<6x8x32xf32, #tpu.memory_space<vmem>>, vector<1x8x32xf32>
    %466 = vector.shape_cast %465 : vector<1x8x32xf32> to vector<8x32xf32>
    %cst_257 = arith.constant dense<0.000000e+00> : vector<8x256xf32>
    %467 = tpu.matmul %466, %464, %cst_257 {dimension_numbers = #tpu.dot_dimension_numbers<[1], [0], [0], [1], [0, 0, 1, 1], [], []>} : vector<8x32xf32>, vector<32x256xf32>, vector<8x256xf32> -> vector<8x256xf32>
    %468 = arith.addf %247, %467 : vector<8x256xf32>
    %c17_i32_258 = arith.constant 17 : i32
    %469 = tpu.dynamic_rotate %468 by %c17_i32_258 dim 1 : vector<8x256xf32>, i32 -> vector<8x256xf32>
    %470 = arith.mulf %469, %3 : vector<8x256xf32>
    %c0_259 = arith.constant 0 : index
    %c0_260 = arith.constant 0 : index
    %471 = vector.load %arg8[%c0_259, %c0_260] : memref<216x256xf32, #tpu.memory_space<vmem>>, vector<8x256xf32>
    tpu.vector_store %arg8[%c0_259, %c0_260], %470 {strides = array<i32>} : memref<216x256xf32, #tpu.memory_space<vmem>>, vector<8x256xf32>,
    %c16_i32_261 = arith.constant 16 : i32
    %472 = tpu.dynamic_rotate %468 by %c16_i32_261 dim 1 : vector<8x256xf32>, i32 -> vector<8x256xf32>
    %473 = arith.mulf %472, %6 : vector<8x256xf32>
    %c8_262 = arith.constant 8 : index
    %c0_263 = arith.constant 0 : index
    %474 = vector.load %arg8[%c8_262, %c0_263] : memref<216x256xf32, #tpu.memory_space<vmem>>, vector<8x256xf32>
    tpu.vector_store %arg8[%c8_262, %c0_263], %473 {strides = array<i32>} : memref<216x256xf32, #tpu.memory_space<vmem>>, vector<8x256xf32>,
    %c15_i32_264 = arith.constant 15 : i32
    %475 = tpu.dynamic_rotate %468 by %c15_i32_264 dim 1 : vector<8x256xf32>, i32 -> vector<8x256xf32>
    %476 = arith.mulf %475, %9 : vector<8x256xf32>
    %c16_265 = arith.constant 16 : index
    %c0_266 = arith.constant 0 : index
    %477 = vector.load %arg8[%c16_265, %c0_266] : memref<216x256xf32, #tpu.memory_space<vmem>>, vector<8x256xf32>
    tpu.vector_store %arg8[%c16_265, %c0_266], %476 {strides = array<i32>} : memref<216x256xf32, #tpu.memory_space<vmem>>, vector<8x256xf32>,
    %c1_i32_267 = arith.constant 1 : i32
    %478 = tpu.dynamic_rotate %468 by %c1_i32_267 dim 1 : vector<8x256xf32>, i32 -> vector<8x256xf32>
    %479 = arith.mulf %478, %12 : vector<8x256xf32>
    %c24_268 = arith.constant 24 : index
    %c0_269 = arith.constant 0 : index
    %480 = vector.load %arg8[%c24_268, %c0_269] : memref<216x256xf32, #tpu.memory_space<vmem>>, vector<8x256xf32>
    tpu.vector_store %arg8[%c24_268, %c0_269], %479 {strides = array<i32>} : memref<216x256xf32, #tpu.memory_space<vmem>>, vector<8x256xf32>,
    %c32_270 = arith.constant 32 : index
    %c0_271 = arith.constant 0 : index
    %481 = vector.load %arg8[%c32_270, %c0_271] : memref<216x256xf32, #tpu.memory_space<vmem>>, vector<8x256xf32>
    tpu.vector_store %arg8[%c32_270, %c0_271], %468 {strides = array<i32>} : memref<216x256xf32, #tpu.memory_space<vmem>>, vector<8x256xf32>,
    %c255_i32_272 = arith.constant 255 : i32
    %482 = tpu.dynamic_rotate %468 by %c255_i32_272 dim 1 : vector<8x256xf32>, i32 -> vector<8x256xf32>
    %483 = arith.mulf %482, %15 : vector<8x256xf32>
    %c40_273 = arith.constant 40 : index
    %c0_274 = arith.constant 0 : index
    %484 = vector.load %arg8[%c40_273, %c0_274] : memref<216x256xf32, #tpu.memory_space<vmem>>, vector<8x256xf32>
    tpu.vector_store %arg8[%c40_273, %c0_274], %483 {strides = array<i32>} : memref<216x256xf32, #tpu.memory_space<vmem>>, vector<8x256xf32>,
    %c241_i32_275 = arith.constant 241 : i32
    %485 = tpu.dynamic_rotate %468 by %c241_i32_275 dim 1 : vector<8x256xf32>, i32 -> vector<8x256xf32>
    %486 = arith.mulf %485, %18 : vector<8x256xf32>
    %c48_276 = arith.constant 48 : index
    %c0_277 = arith.constant 0 : index
    %487 = vector.load %arg8[%c48_276, %c0_277] : memref<216x256xf32, #tpu.memory_space<vmem>>, vector<8x256xf32>
    tpu.vector_store %arg8[%c48_276, %c0_277], %486 {strides = array<i32>} : memref<216x256xf32, #tpu.memory_space<vmem>>, vector<8x256xf32>,
    %c240_i32_278 = arith.constant 240 : i32
    %488 = tpu.dynamic_rotate %468 by %c240_i32_278 dim 1 : vector<8x256xf32>, i32 -> vector<8x256xf32>
    %489 = arith.mulf %488, %21 : vector<8x256xf32>
    %c56_279 = arith.constant 56 : index
    %c0_280 = arith.constant 0 : index
    %490 = vector.load %arg8[%c56_279, %c0_280] : memref<216x256xf32, #tpu.memory_space<vmem>>, vector<8x256xf32>
    tpu.vector_store %arg8[%c56_279, %c0_280], %489 {strides = array<i32>} : memref<216x256xf32, #tpu.memory_space<vmem>>, vector<8x256xf32>,
    %c239_i32_281 = arith.constant 239 : i32
    %491 = tpu.dynamic_rotate %468 by %c239_i32_281 dim 1 : vector<8x256xf32>, i32 -> vector<8x256xf32>
    %492 = arith.mulf %491, %24 : vector<8x256xf32>
    %c64_282 = arith.constant 64 : index
    %c0_283 = arith.constant 0 : index
    %493 = vector.load %arg8[%c64_282, %c0_283] : memref<216x256xf32, #tpu.memory_space<vmem>>, vector<8x256xf32>
    tpu.vector_store %arg8[%c64_282, %c0_283], %492 {strides = array<i32>} : memref<216x256xf32, #tpu.memory_space<vmem>>, vector<8x256xf32>,
    %c0_284 = arith.constant 0 : index
    %c0_285 = arith.constant 0 : index
    %494 = vector.load %arg8[%c0_284, %c0_285] : memref<216x256xf32, #tpu.memory_space<vmem>>, vector<72x256xf32>
    %c2 = arith.constant 2 : index
    %c0_286 = arith.constant 0 : index
    %c0_287 = arith.constant 0 : index
    %495 = vector.load %arg2[%c2, %c0_286, %c0_287] : memref<6x8x72xf32, #tpu.memory_space<vmem>>, vector<1x8x72xf32>
    %496 = vector.shape_cast %495 : vector<1x8x72xf32> to vector<8x72xf32>
    %cst_288 = arith.constant dense<0.000000e+00> : vector<8x256xf32>
    %497 = tpu.matmul %496, %494, %cst_288 {dimension_numbers = #tpu.dot_dimension_numbers<[1], [0], [0], [1], [0, 0, 1, 1], [], []>} : vector<8x72xf32>, vector<72x256xf32>, vector<8x256xf32> -> vector<8x256xf32>
    %cst_289 = arith.constant 5.000000e-01 : f32
    %498 = vector.broadcast %cst_289 : f32 to vector<8x256xf32>
    %499 = arith.mulf %498, %497 : vector<8x256xf32>
    %cst_290 = arith.constant 0.707106769 : f32
    %500 = vector.broadcast %cst_290 : f32 to vector<8x256xf32>
    %501 = arith.mulf %497, %500 : vector<8x256xf32>
    %502 = math.absf %501 : vector<8x256xf32>
    %cst_291 = arith.constant 0.327591091 : f32
    %503 = vector.broadcast %cst_291 : f32 to vector<8x256xf32>
    %504 = arith.mulf %503, %502 : vector<8x256xf32>
    %cst_292 = arith.constant 1.000000e+00 : f32
    %505 = vector.broadcast %cst_292 : f32 to vector<8x256xf32>
    %506 = arith.addf %505, %504 : vector<8x256xf32>
    %507 = tpu.reciprocal %506 {approx = true} : vector<8x256xf32> -> vector<8x256xf32>
    %508 = arith.mulf %506, %507 : vector<8x256xf32>
    %cst_293 = arith.constant 2.000000e+00 : f32
    %509 = vector.broadcast %cst_293 : f32 to vector<8x256xf32>
    %510 = arith.subf %509, %508 : vector<8x256xf32>
    %511 = arith.mulf %507, %510 : vector<8x256xf32>
    %cst_294 = arith.constant 1.06140542 : f32
    %512 = vector.broadcast %cst_294 : f32 to vector<8x256xf32>
    %513 = arith.mulf %512, %511 : vector<8x256xf32>
    %cst_295 = arith.constant -1.45315206 : f32
    %514 = vector.broadcast %cst_295 : f32 to vector<8x256xf32>
    %515 = arith.addf %513, %514 : vector<8x256xf32>
    %516 = arith.mulf %515, %511 : vector<8x256xf32>
    %cst_296 = arith.constant 1.42141378 : f32
    %517 = vector.broadcast %cst_296 : f32 to vector<8x256xf32>
    %518 = arith.addf %516, %517 : vector<8x256xf32>
    %519 = arith.mulf %518, %511 : vector<8x256xf32>
    %cst_297 = arith.constant -0.284496725 : f32
    %520 = vector.broadcast %cst_297 : f32 to vector<8x256xf32>
    %521 = arith.addf %519, %520 : vector<8x256xf32>
    %522 = arith.mulf %521, %511 : vector<8x256xf32>
    %cst_298 = arith.constant 0.254829586 : f32
    %523 = vector.broadcast %cst_298 : f32 to vector<8x256xf32>
    %524 = arith.addf %522, %523 : vector<8x256xf32>
    %525 = arith.mulf %524, %511 : vector<8x256xf32>
    %cst_299 = arith.constant 0.000000e+00 : f32
    %526 = vector.broadcast %cst_299 : f32 to vector<8x256xf32>
    %527 = arith.subf %526, %502 : vector<8x256xf32>
    %528 = arith.mulf %527, %502 : vector<8x256xf32>
    %529 = math.exp %528 : vector<8x256xf32>
    %530 = arith.mulf %525, %529 : vector<8x256xf32>
    %cst_300 = arith.constant 1.000000e+00 : f32
    %531 = vector.broadcast %cst_300 : f32 to vector<8x256xf32>
    %532 = arith.subf %531, %530 : vector<8x256xf32>
    %cst_301 = arith.constant 0.000000e+00 : f32
    %533 = vector.broadcast %cst_301 : f32 to vector<8x256xf32>
    %534 = arith.cmpf olt, %501, %533 : vector<8x256xf32>
    %cst_302 = arith.constant 0.000000e+00 : f32
    %535 = vector.broadcast %cst_302 : f32 to vector<8x256xf32>
    %536 = arith.subf %535, %532 : vector<8x256xf32>
    %537 = arith.select %534, %536, %532 : vector<8x256xi1>, vector<8x256xf32>
    %cst_303 = arith.constant 1.000000e+00 : f32
    %538 = vector.broadcast %cst_303 : f32 to vector<8x256xf32>
    %539 = arith.addf %538, %537 : vector<8x256xf32>
    %540 = arith.mulf %499, %539 : vector<8x256xf32>
    %c17_i32_304 = arith.constant 17 : i32
    %541 = tpu.dynamic_rotate %540 by %c17_i32_304 dim 1 : vector<8x256xf32>, i32 -> vector<8x256xf32>
    %542 = arith.mulf %541, %3 : vector<8x256xf32>
    %c72_305 = arith.constant 72 : index
    %c0_306 = arith.constant 0 : index
    %543 = vector.load %arg8[%c72_305, %c0_306] : memref<216x256xf32, #tpu.memory_space<vmem>>, vector<8x256xf32>
    tpu.vector_store %arg8[%c72_305, %c0_306], %542 {strides = array<i32>} : memref<216x256xf32, #tpu.memory_space<vmem>>, vector<8x256xf32>,
    %c16_i32_307 = arith.constant 16 : i32
    %544 = tpu.dynamic_rotate %540 by %c16_i32_307 dim 1 : vector<8x256xf32>, i32 -> vector<8x256xf32>
    %545 = arith.mulf %544, %6 : vector<8x256xf32>
    %c80_308 = arith.constant 80 : index
    %c0_309 = arith.constant 0 : index
    %546 = vector.load %arg8[%c80_308, %c0_309] : memref<216x256xf32, #tpu.memory_space<vmem>>, vector<8x256xf32>
    tpu.vector_store %arg8[%c80_308, %c0_309], %545 {strides = array<i32>} : memref<216x256xf32, #tpu.memory_space<vmem>>, vector<8x256xf32>,
    %c15_i32_310 = arith.constant 15 : i32
    %547 = tpu.dynamic_rotate %540 by %c15_i32_310 dim 1 : vector<8x256xf32>, i32 -> vector<8x256xf32>
    %548 = arith.mulf %547, %9 : vector<8x256xf32>
    %c88_311 = arith.constant 88 : index
    %c0_312 = arith.constant 0 : index
    %549 = vector.load %arg8[%c88_311, %c0_312] : memref<216x256xf32, #tpu.memory_space<vmem>>, vector<8x256xf32>
    tpu.vector_store %arg8[%c88_311, %c0_312], %548 {strides = array<i32>} : memref<216x256xf32, #tpu.memory_space<vmem>>, vector<8x256xf32>,
    %c1_i32_313 = arith.constant 1 : i32
    %550 = tpu.dynamic_rotate %540 by %c1_i32_313 dim 1 : vector<8x256xf32>, i32 -> vector<8x256xf32>
    %551 = arith.mulf %550, %12 : vector<8x256xf32>
    %c96_314 = arith.constant 96 : index
    %c0_315 = arith.constant 0 : index
    %552 = vector.load %arg8[%c96_314, %c0_315] : memref<216x256xf32, #tpu.memory_space<vmem>>, vector<8x256xf32>
    tpu.vector_store %arg8[%c96_314, %c0_315], %551 {strides = array<i32>} : memref<216x256xf32, #tpu.memory_space<vmem>>, vector<8x256xf32>,
    %c104_316 = arith.constant 104 : index
    %c0_317 = arith.constant 0 : index
    %553 = vector.load %arg8[%c104_316, %c0_317] : memref<216x256xf32, #tpu.memory_space<vmem>>, vector<8x256xf32>
    tpu.vector_store %arg8[%c104_316, %c0_317], %540 {strides = array<i32>} : memref<216x256xf32, #tpu.memory_space<vmem>>, vector<8x256xf32>,
    %c255_i32_318 = arith.constant 255 : i32
    %554 = tpu.dynamic_rotate %540 by %c255_i32_318 dim 1 : vector<8x256xf32>, i32 -> vector<8x256xf32>
    %555 = arith.mulf %554, %15 : vector<8x256xf32>
    %c112_319 = arith.constant 112 : index
    %c0_320 = arith.constant 0 : index
    %556 = vector.load %arg8[%c112_319, %c0_320] : memref<216x256xf32, #tpu.memory_space<vmem>>, vector<8x256xf32>
    tpu.vector_store %arg8[%c112_319, %c0_320], %555 {strides = array<i32>} : memref<216x256xf32, #tpu.memory_space<vmem>>, vector<8x256xf32>,
    %c241_i32_321 = arith.constant 241 : i32
    %557 = tpu.dynamic_rotate %540 by %c241_i32_321 dim 1 : vector<8x256xf32>, i32 -> vector<8x256xf32>
    %558 = arith.mulf %557, %18 : vector<8x256xf32>
    %c120_322 = arith.constant 120 : index
    %c0_323 = arith.constant 0 : index
    %559 = vector.load %arg8[%c120_322, %c0_323] : memref<216x256xf32, #tpu.memory_space<vmem>>, vector<8x256xf32>
    tpu.vector_store %arg8[%c120_322, %c0_323], %558 {strides = array<i32>} : memref<216x256xf32, #tpu.memory_space<vmem>>, vector<8x256xf32>,
    %c240_i32_324 = arith.constant 240 : i32
    %560 = tpu.dynamic_rotate %540 by %c240_i32_324 dim 1 : vector<8x256xf32>, i32 -> vector<8x256xf32>
    %561 = arith.mulf %560, %21 : vector<8x256xf32>
    %c128_325 = arith.constant 128 : index
    %c0_326 = arith.constant 0 : index
    %562 = vector.load %arg8[%c128_325, %c0_326] : memref<216x256xf32, #tpu.memory_space<vmem>>, vector<8x256xf32>
    tpu.vector_store %arg8[%c128_325, %c0_326], %561 {strides = array<i32>} : memref<216x256xf32, #tpu.memory_space<vmem>>, vector<8x256xf32>,
    %c239_i32_327 = arith.constant 239 : i32
    %563 = tpu.dynamic_rotate %540 by %c239_i32_327 dim 1 : vector<8x256xf32>, i32 -> vector<8x256xf32>
    %564 = arith.mulf %563, %24 : vector<8x256xf32>
    %c136_328 = arith.constant 136 : index
    %c0_329 = arith.constant 0 : index
    %565 = vector.load %arg8[%c136_328, %c0_329] : memref<216x256xf32, #tpu.memory_space<vmem>>, vector<8x256xf32>
    tpu.vector_store %arg8[%c136_328, %c0_329], %564 {strides = array<i32>} : memref<216x256xf32, #tpu.memory_space<vmem>>, vector<8x256xf32>,
    %c0_330 = arith.constant 0 : index
    %c0_331 = arith.constant 0 : index
    %566 = vector.load %arg8[%c0_330, %c0_331] : memref<216x256xf32, #tpu.memory_space<vmem>>, vector<144x256xf32>
    %c2_332 = arith.constant 2 : index
    %c0_333 = arith.constant 0 : index
    %c0_334 = arith.constant 0 : index
    %567 = vector.load %arg3[%c2_332, %c0_333, %c0_334] : memref<6x8x144xf32, #tpu.memory_space<vmem>>, vector<1x8x144xf32>
    %568 = vector.shape_cast %567 : vector<1x8x144xf32> to vector<8x144xf32>
    %cst_335 = arith.constant dense<0.000000e+00> : vector<8x256xf32>
    %569 = tpu.matmul %568, %566, %cst_335 {dimension_numbers = #tpu.dot_dimension_numbers<[1], [0], [0], [1], [0, 0, 1, 1], [], []>} : vector<8x144xf32>, vector<144x256xf32>, vector<8x256xf32> -> vector<8x256xf32>
    %cst_336 = arith.constant 5.000000e-01 : f32
    %570 = vector.broadcast %cst_336 : f32 to vector<8x256xf32>
    %571 = arith.mulf %570, %569 : vector<8x256xf32>
    %cst_337 = arith.constant 0.707106769 : f32
    %572 = vector.broadcast %cst_337 : f32 to vector<8x256xf32>
    %573 = arith.mulf %569, %572 : vector<8x256xf32>
    %574 = math.absf %573 : vector<8x256xf32>
    %cst_338 = arith.constant 0.327591091 : f32
    %575 = vector.broadcast %cst_338 : f32 to vector<8x256xf32>
    %576 = arith.mulf %575, %574 : vector<8x256xf32>
    %cst_339 = arith.constant 1.000000e+00 : f32
    %577 = vector.broadcast %cst_339 : f32 to vector<8x256xf32>
    %578 = arith.addf %577, %576 : vector<8x256xf32>
    %579 = tpu.reciprocal %578 {approx = true} : vector<8x256xf32> -> vector<8x256xf32>
    %580 = arith.mulf %578, %579 : vector<8x256xf32>
    %cst_340 = arith.constant 2.000000e+00 : f32
    %581 = vector.broadcast %cst_340 : f32 to vector<8x256xf32>
    %582 = arith.subf %581, %580 : vector<8x256xf32>
    %583 = arith.mulf %579, %582 : vector<8x256xf32>
    %cst_341 = arith.constant 1.06140542 : f32
    %584 = vector.broadcast %cst_341 : f32 to vector<8x256xf32>
    %585 = arith.mulf %584, %583 : vector<8x256xf32>
    %cst_342 = arith.constant -1.45315206 : f32
    %586 = vector.broadcast %cst_342 : f32 to vector<8x256xf32>
    %587 = arith.addf %585, %586 : vector<8x256xf32>
    %588 = arith.mulf %587, %583 : vector<8x256xf32>
    %cst_343 = arith.constant 1.42141378 : f32
    %589 = vector.broadcast %cst_343 : f32 to vector<8x256xf32>
    %590 = arith.addf %588, %589 : vector<8x256xf32>
    %591 = arith.mulf %590, %583 : vector<8x256xf32>
    %cst_344 = arith.constant -0.284496725 : f32
    %592 = vector.broadcast %cst_344 : f32 to vector<8x256xf32>
    %593 = arith.addf %591, %592 : vector<8x256xf32>
    %594 = arith.mulf %593, %583 : vector<8x256xf32>
    %cst_345 = arith.constant 0.254829586 : f32
    %595 = vector.broadcast %cst_345 : f32 to vector<8x256xf32>
    %596 = arith.addf %594, %595 : vector<8x256xf32>
    %597 = arith.mulf %596, %583 : vector<8x256xf32>
    %cst_346 = arith.constant 0.000000e+00 : f32
    %598 = vector.broadcast %cst_346 : f32 to vector<8x256xf32>
    %599 = arith.subf %598, %574 : vector<8x256xf32>
    %600 = arith.mulf %599, %574 : vector<8x256xf32>
    %601 = math.exp %600 : vector<8x256xf32>
    %602 = arith.mulf %597, %601 : vector<8x256xf32>
    %cst_347 = arith.constant 1.000000e+00 : f32
    %603 = vector.broadcast %cst_347 : f32 to vector<8x256xf32>
    %604 = arith.subf %603, %602 : vector<8x256xf32>
    %cst_348 = arith.constant 0.000000e+00 : f32
    %605 = vector.broadcast %cst_348 : f32 to vector<8x256xf32>
    %606 = arith.cmpf olt, %573, %605 : vector<8x256xf32>
    %cst_349 = arith.constant 0.000000e+00 : f32
    %607 = vector.broadcast %cst_349 : f32 to vector<8x256xf32>
    %608 = arith.subf %607, %604 : vector<8x256xf32>
    %609 = arith.select %606, %608, %604 : vector<8x256xi1>, vector<8x256xf32>
    %cst_350 = arith.constant 1.000000e+00 : f32
    %610 = vector.broadcast %cst_350 : f32 to vector<8x256xf32>
    %611 = arith.addf %610, %609 : vector<8x256xf32>
    %612 = arith.mulf %571, %611 : vector<8x256xf32>
    %c17_i32_351 = arith.constant 17 : i32
    %613 = tpu.dynamic_rotate %612 by %c17_i32_351 dim 1 : vector<8x256xf32>, i32 -> vector<8x256xf32>
    %614 = arith.mulf %613, %3 : vector<8x256xf32>
    %c144_352 = arith.constant 144 : index
    %c0_353 = arith.constant 0 : index
    %615 = vector.load %arg8[%c144_352, %c0_353] : memref<216x256xf32, #tpu.memory_space<vmem>>, vector<8x256xf32>
    tpu.vector_store %arg8[%c144_352, %c0_353], %614 {strides = array<i32>} : memref<216x256xf32, #tpu.memory_space<vmem>>, vector<8x256xf32>,
    %c16_i32_354 = arith.constant 16 : i32
    %616 = tpu.dynamic_rotate %612 by %c16_i32_354 dim 1 : vector<8x256xf32>, i32 -> vector<8x256xf32>
    %617 = arith.mulf %616, %6 : vector<8x256xf32>
    %c152_355 = arith.constant 152 : index
    %c0_356 = arith.constant 0 : index
    %618 = vector.load %arg8[%c152_355, %c0_356] : memref<216x256xf32, #tpu.memory_space<vmem>>, vector<8x256xf32>
    tpu.vector_store %arg8[%c152_355, %c0_356], %617 {strides = array<i32>} : memref<216x256xf32, #tpu.memory_space<vmem>>, vector<8x256xf32>,
    %c15_i32_357 = arith.constant 15 : i32
    %619 = tpu.dynamic_rotate %612 by %c15_i32_357 dim 1 : vector<8x256xf32>, i32 -> vector<8x256xf32>
    %620 = arith.mulf %619, %9 : vector<8x256xf32>
    %c160_358 = arith.constant 160 : index
    %c0_359 = arith.constant 0 : index
    %621 = vector.load %arg8[%c160_358, %c0_359] : memref<216x256xf32, #tpu.memory_space<vmem>>, vector<8x256xf32>
    tpu.vector_store %arg8[%c160_358, %c0_359], %620 {strides = array<i32>} : memref<216x256xf32, #tpu.memory_space<vmem>>, vector<8x256xf32>,
    %c1_i32_360 = arith.constant 1 : i32
    %622 = tpu.dynamic_rotate %612 by %c1_i32_360 dim 1 : vector<8x256xf32>, i32 -> vector<8x256xf32>
    %623 = arith.mulf %622, %12 : vector<8x256xf32>
    %c168_361 = arith.constant 168 : index
    %c0_362 = arith.constant 0 : index
    %624 = vector.load %arg8[%c168_361, %c0_362] : memref<216x256xf32, #tpu.memory_space<vmem>>, vector<8x256xf32>
    tpu.vector_store %arg8[%c168_361, %c0_362], %623 {strides = array<i32>} : memref<216x256xf32, #tpu.memory_space<vmem>>, vector<8x256xf32>,
    %c176_363 = arith.constant 176 : index
    %c0_364 = arith.constant 0 : index
    %625 = vector.load %arg8[%c176_363, %c0_364] : memref<216x256xf32, #tpu.memory_space<vmem>>, vector<8x256xf32>
    tpu.vector_store %arg8[%c176_363, %c0_364], %612 {strides = array<i32>} : memref<216x256xf32, #tpu.memory_space<vmem>>, vector<8x256xf32>,
    %c255_i32_365 = arith.constant 255 : i32
    %626 = tpu.dynamic_rotate %612 by %c255_i32_365 dim 1 : vector<8x256xf32>, i32 -> vector<8x256xf32>
    %627 = arith.mulf %626, %15 : vector<8x256xf32>
    %c184_366 = arith.constant 184 : index
    %c0_367 = arith.constant 0 : index
    %628 = vector.load %arg8[%c184_366, %c0_367] : memref<216x256xf32, #tpu.memory_space<vmem>>, vector<8x256xf32>
    tpu.vector_store %arg8[%c184_366, %c0_367], %627 {strides = array<i32>} : memref<216x256xf32, #tpu.memory_space<vmem>>, vector<8x256xf32>,
    %c241_i32_368 = arith.constant 241 : i32
    %629 = tpu.dynamic_rotate %612 by %c241_i32_368 dim 1 : vector<8x256xf32>, i32 -> vector<8x256xf32>
    %630 = arith.mulf %629, %18 : vector<8x256xf32>
    %c192_369 = arith.constant 192 : index
    %c0_370 = arith.constant 0 : index
    %631 = vector.load %arg8[%c192_369, %c0_370] : memref<216x256xf32, #tpu.memory_space<vmem>>, vector<8x256xf32>
    tpu.vector_store %arg8[%c192_369, %c0_370], %630 {strides = array<i32>} : memref<216x256xf32, #tpu.memory_space<vmem>>, vector<8x256xf32>,
    %c240_i32_371 = arith.constant 240 : i32
    %632 = tpu.dynamic_rotate %612 by %c240_i32_371 dim 1 : vector<8x256xf32>, i32 -> vector<8x256xf32>
    %633 = arith.mulf %632, %21 : vector<8x256xf32>
    %c200_372 = arith.constant 200 : index
    %c0_373 = arith.constant 0 : index
    %634 = vector.load %arg8[%c200_372, %c0_373] : memref<216x256xf32, #tpu.memory_space<vmem>>, vector<8x256xf32>
    tpu.vector_store %arg8[%c200_372, %c0_373], %633 {strides = array<i32>} : memref<216x256xf32, #tpu.memory_space<vmem>>, vector<8x256xf32>,
    %c239_i32_374 = arith.constant 239 : i32
    %635 = tpu.dynamic_rotate %612 by %c239_i32_374 dim 1 : vector<8x256xf32>, i32 -> vector<8x256xf32>
    %636 = arith.mulf %635, %24 : vector<8x256xf32>
    %c208_375 = arith.constant 208 : index
    %c0_376 = arith.constant 0 : index
    %637 = vector.load %arg8[%c208_375, %c0_376] : memref<216x256xf32, #tpu.memory_space<vmem>>, vector<8x256xf32>
    tpu.vector_store %arg8[%c208_375, %c0_376], %636 {strides = array<i32>} : memref<216x256xf32, #tpu.memory_space<vmem>>, vector<8x256xf32>,
    %c0_377 = arith.constant 0 : index
    %c0_378 = arith.constant 0 : index
    %638 = vector.load %arg8[%c0_377, %c0_378] : memref<216x256xf32, #tpu.memory_space<vmem>>, vector<216x256xf32>
    %c2_379 = arith.constant 2 : index
    %c0_380 = arith.constant 0 : index
    %c0_381 = arith.constant 0 : index
    %639 = vector.load %arg4[%c2_379, %c0_380, %c0_381] : memref<6x8x216xf32, #tpu.memory_space<vmem>>, vector<1x8x216xf32>
    %640 = vector.shape_cast %639 : vector<1x8x216xf32> to vector<8x216xf32>
    %cst_382 = arith.constant dense<0.000000e+00> : vector<8x256xf32>
    %641 = tpu.matmul %640, %638, %cst_382 {dimension_numbers = #tpu.dot_dimension_numbers<[1], [0], [0], [1], [0, 0, 1, 1], [], []>} : vector<8x216xf32>, vector<216x256xf32>, vector<8x256xf32> -> vector<8x256xf32>
    %cst_383 = arith.constant 5.000000e-01 : f32
    %642 = vector.broadcast %cst_383 : f32 to vector<8x256xf32>
    %643 = arith.mulf %642, %641 : vector<8x256xf32>
    %cst_384 = arith.constant 0.707106769 : f32
    %644 = vector.broadcast %cst_384 : f32 to vector<8x256xf32>
    %645 = arith.mulf %641, %644 : vector<8x256xf32>
    %646 = math.absf %645 : vector<8x256xf32>
    %cst_385 = arith.constant 0.327591091 : f32
    %647 = vector.broadcast %cst_385 : f32 to vector<8x256xf32>
    %648 = arith.mulf %647, %646 : vector<8x256xf32>
    %cst_386 = arith.constant 1.000000e+00 : f32
    %649 = vector.broadcast %cst_386 : f32 to vector<8x256xf32>
    %650 = arith.addf %649, %648 : vector<8x256xf32>
    %651 = tpu.reciprocal %650 {approx = true} : vector<8x256xf32> -> vector<8x256xf32>
    %652 = arith.mulf %650, %651 : vector<8x256xf32>
    %cst_387 = arith.constant 2.000000e+00 : f32
    %653 = vector.broadcast %cst_387 : f32 to vector<8x256xf32>
    %654 = arith.subf %653, %652 : vector<8x256xf32>
    %655 = arith.mulf %651, %654 : vector<8x256xf32>
    %cst_388 = arith.constant 1.06140542 : f32
    %656 = vector.broadcast %cst_388 : f32 to vector<8x256xf32>
    %657 = arith.mulf %656, %655 : vector<8x256xf32>
    %cst_389 = arith.constant -1.45315206 : f32
    %658 = vector.broadcast %cst_389 : f32 to vector<8x256xf32>
    %659 = arith.addf %657, %658 : vector<8x256xf32>
    %660 = arith.mulf %659, %655 : vector<8x256xf32>
    %cst_390 = arith.constant 1.42141378 : f32
    %661 = vector.broadcast %cst_390 : f32 to vector<8x256xf32>
    %662 = arith.addf %660, %661 : vector<8x256xf32>
    %663 = arith.mulf %662, %655 : vector<8x256xf32>
    %cst_391 = arith.constant -0.284496725 : f32
    %664 = vector.broadcast %cst_391 : f32 to vector<8x256xf32>
    %665 = arith.addf %663, %664 : vector<8x256xf32>
    %666 = arith.mulf %665, %655 : vector<8x256xf32>
    %cst_392 = arith.constant 0.254829586 : f32
    %667 = vector.broadcast %cst_392 : f32 to vector<8x256xf32>
    %668 = arith.addf %666, %667 : vector<8x256xf32>
    %669 = arith.mulf %668, %655 : vector<8x256xf32>
    %cst_393 = arith.constant 0.000000e+00 : f32
    %670 = vector.broadcast %cst_393 : f32 to vector<8x256xf32>
    %671 = arith.subf %670, %646 : vector<8x256xf32>
    %672 = arith.mulf %671, %646 : vector<8x256xf32>
    %673 = math.exp %672 : vector<8x256xf32>
    %674 = arith.mulf %669, %673 : vector<8x256xf32>
    %cst_394 = arith.constant 1.000000e+00 : f32
    %675 = vector.broadcast %cst_394 : f32 to vector<8x256xf32>
    %676 = arith.subf %675, %674 : vector<8x256xf32>
    %cst_395 = arith.constant 0.000000e+00 : f32
    %677 = vector.broadcast %cst_395 : f32 to vector<8x256xf32>
    %678 = arith.cmpf olt, %645, %677 : vector<8x256xf32>
    %cst_396 = arith.constant 0.000000e+00 : f32
    %679 = vector.broadcast %cst_396 : f32 to vector<8x256xf32>
    %680 = arith.subf %679, %676 : vector<8x256xf32>
    %681 = arith.select %678, %680, %676 : vector<8x256xi1>, vector<8x256xf32>
    %cst_397 = arith.constant 1.000000e+00 : f32
    %682 = vector.broadcast %cst_397 : f32 to vector<8x256xf32>
    %683 = arith.addf %682, %681 : vector<8x256xf32>
    %684 = arith.mulf %643, %683 : vector<8x256xf32>
    %685 = tpu.concatenate %468, %540, %612, %684 in 0 : vector<8x256xf32>, vector<8x256xf32>, vector<8x256xf32>, vector<8x256xf32> -> vector<32x256xf32>
    %c2_398 = arith.constant 2 : index
    %c0_399 = arith.constant 0 : index
    %c0_400 = arith.constant 0 : index
    %686 = vector.load %arg5[%c2_398, %c0_399, %c0_400] : memref<6x8x32xf32, #tpu.memory_space<vmem>>, vector<1x8x32xf32>
    %687 = vector.shape_cast %686 : vector<1x8x32xf32> to vector<8x32xf32>
    %cst_401 = arith.constant dense<0.000000e+00> : vector<8x256xf32>
    %688 = tpu.matmul %687, %685, %cst_401 {dimension_numbers = #tpu.dot_dimension_numbers<[1], [0], [0], [1], [0, 0, 1, 1], [], []>} : vector<8x32xf32>, vector<32x256xf32>, vector<8x256xf32> -> vector<8x256xf32>
    %689 = arith.addf %468, %688 : vector<8x256xf32>
    %c17_i32_402 = arith.constant 17 : i32
    %690 = tpu.dynamic_rotate %689 by %c17_i32_402 dim 1 : vector<8x256xf32>, i32 -> vector<8x256xf32>
    %691 = arith.mulf %690, %3 : vector<8x256xf32>
    %c0_403 = arith.constant 0 : index
    %c0_404 = arith.constant 0 : index
    %692 = vector.load %arg8[%c0_403, %c0_404] : memref<216x256xf32, #tpu.memory_space<vmem>>, vector<8x256xf32>
    tpu.vector_store %arg8[%c0_403, %c0_404], %691 {strides = array<i32>} : memref<216x256xf32, #tpu.memory_space<vmem>>, vector<8x256xf32>,
    %c16_i32_405 = arith.constant 16 : i32
    %693 = tpu.dynamic_rotate %689 by %c16_i32_405 dim 1 : vector<8x256xf32>, i32 -> vector<8x256xf32>
    %694 = arith.mulf %693, %6 : vector<8x256xf32>
    %c8_406 = arith.constant 8 : index
    %c0_407 = arith.constant 0 : index
    %695 = vector.load %arg8[%c8_406, %c0_407] : memref<216x256xf32, #tpu.memory_space<vmem>>, vector<8x256xf32>
    tpu.vector_store %arg8[%c8_406, %c0_407], %694 {strides = array<i32>} : memref<216x256xf32, #tpu.memory_space<vmem>>, vector<8x256xf32>,
    %c15_i32_408 = arith.constant 15 : i32
    %696 = tpu.dynamic_rotate %689 by %c15_i32_408 dim 1 : vector<8x256xf32>, i32 -> vector<8x256xf32>
    %697 = arith.mulf %696, %9 : vector<8x256xf32>
    %c16_409 = arith.constant 16 : index
    %c0_410 = arith.constant 0 : index
    %698 = vector.load %arg8[%c16_409, %c0_410] : memref<216x256xf32, #tpu.memory_space<vmem>>, vector<8x256xf32>
    tpu.vector_store %arg8[%c16_409, %c0_410], %697 {strides = array<i32>} : memref<216x256xf32, #tpu.memory_space<vmem>>, vector<8x256xf32>,
    %c1_i32_411 = arith.constant 1 : i32
    %699 = tpu.dynamic_rotate %689 by %c1_i32_411 dim 1 : vector<8x256xf32>, i32 -> vector<8x256xf32>
    %700 = arith.mulf %699, %12 : vector<8x256xf32>
    %c24_412 = arith.constant 24 : index
    %c0_413 = arith.constant 0 : index
    %701 = vector.load %arg8[%c24_412, %c0_413] : memref<216x256xf32, #tpu.memory_space<vmem>>, vector<8x256xf32>
    tpu.vector_store %arg8[%c24_412, %c0_413], %700 {strides = array<i32>} : memref<216x256xf32, #tpu.memory_space<vmem>>, vector<8x256xf32>,
    %c32_414 = arith.constant 32 : index
    %c0_415 = arith.constant 0 : index
    %702 = vector.load %arg8[%c32_414, %c0_415] : memref<216x256xf32, #tpu.memory_space<vmem>>, vector<8x256xf32>
    tpu.vector_store %arg8[%c32_414, %c0_415], %689 {strides = array<i32>} : memref<216x256xf32, #tpu.memory_space<vmem>>, vector<8x256xf32>,
    %c255_i32_416 = arith.constant 255 : i32
    %703 = tpu.dynamic_rotate %689 by %c255_i32_416 dim 1 : vector<8x256xf32>, i32 -> vector<8x256xf32>
    %704 = arith.mulf %703, %15 : vector<8x256xf32>
    %c40_417 = arith.constant 40 : index
    %c0_418 = arith.constant 0 : index
    %705 = vector.load %arg8[%c40_417, %c0_418] : memref<216x256xf32, #tpu.memory_space<vmem>>, vector<8x256xf32>
    tpu.vector_store %arg8[%c40_417, %c0_418], %704 {strides = array<i32>} : memref<216x256xf32, #tpu.memory_space<vmem>>, vector<8x256xf32>,
    %c241_i32_419 = arith.constant 241 : i32
    %706 = tpu.dynamic_rotate %689 by %c241_i32_419 dim 1 : vector<8x256xf32>, i32 -> vector<8x256xf32>
    %707 = arith.mulf %706, %18 : vector<8x256xf32>
    %c48_420 = arith.constant 48 : index
    %c0_421 = arith.constant 0 : index
    %708 = vector.load %arg8[%c48_420, %c0_421] : memref<216x256xf32, #tpu.memory_space<vmem>>, vector<8x256xf32>
    tpu.vector_store %arg8[%c48_420, %c0_421], %707 {strides = array<i32>} : memref<216x256xf32, #tpu.memory_space<vmem>>, vector<8x256xf32>,
    %c240_i32_422 = arith.constant 240 : i32
    %709 = tpu.dynamic_rotate %689 by %c240_i32_422 dim 1 : vector<8x256xf32>, i32 -> vector<8x256xf32>
    %710 = arith.mulf %709, %21 : vector<8x256xf32>
    %c56_423 = arith.constant 56 : index
    %c0_424 = arith.constant 0 : index
    %711 = vector.load %arg8[%c56_423, %c0_424] : memref<216x256xf32, #tpu.memory_space<vmem>>, vector<8x256xf32>
    tpu.vector_store %arg8[%c56_423, %c0_424], %710 {strides = array<i32>} : memref<216x256xf32, #tpu.memory_space<vmem>>, vector<8x256xf32>,
    %c239_i32_425 = arith.constant 239 : i32
    %712 = tpu.dynamic_rotate %689 by %c239_i32_425 dim 1 : vector<8x256xf32>, i32 -> vector<8x256xf32>
    %713 = arith.mulf %712, %24 : vector<8x256xf32>
    %c64_426 = arith.constant 64 : index
    %c0_427 = arith.constant 0 : index
    %714 = vector.load %arg8[%c64_426, %c0_427] : memref<216x256xf32, #tpu.memory_space<vmem>>, vector<8x256xf32>
    tpu.vector_store %arg8[%c64_426, %c0_427], %713 {strides = array<i32>} : memref<216x256xf32, #tpu.memory_space<vmem>>, vector<8x256xf32>,
    %c0_428 = arith.constant 0 : index
    %c0_429 = arith.constant 0 : index
    %715 = vector.load %arg8[%c0_428, %c0_429] : memref<216x256xf32, #tpu.memory_space<vmem>>, vector<72x256xf32>
    %c3 = arith.constant 3 : index
    %c0_430 = arith.constant 0 : index
    %c0_431 = arith.constant 0 : index
    %716 = vector.load %arg2[%c3, %c0_430, %c0_431] : memref<6x8x72xf32, #tpu.memory_space<vmem>>, vector<1x8x72xf32>
    %717 = vector.shape_cast %716 : vector<1x8x72xf32> to vector<8x72xf32>
    %cst_432 = arith.constant dense<0.000000e+00> : vector<8x256xf32>
    %718 = tpu.matmul %717, %715, %cst_432 {dimension_numbers = #tpu.dot_dimension_numbers<[1], [0], [0], [1], [0, 0, 1, 1], [], []>} : vector<8x72xf32>, vector<72x256xf32>, vector<8x256xf32> -> vector<8x256xf32>
    %cst_433 = arith.constant 5.000000e-01 : f32
    %719 = vector.broadcast %cst_433 : f32 to vector<8x256xf32>
    %720 = arith.mulf %719, %718 : vector<8x256xf32>
    %cst_434 = arith.constant 0.707106769 : f32
    %721 = vector.broadcast %cst_434 : f32 to vector<8x256xf32>
    %722 = arith.mulf %718, %721 : vector<8x256xf32>
    %723 = math.absf %722 : vector<8x256xf32>
    %cst_435 = arith.constant 0.327591091 : f32
    %724 = vector.broadcast %cst_435 : f32 to vector<8x256xf32>
    %725 = arith.mulf %724, %723 : vector<8x256xf32>
    %cst_436 = arith.constant 1.000000e+00 : f32
    %726 = vector.broadcast %cst_436 : f32 to vector<8x256xf32>
    %727 = arith.addf %726, %725 : vector<8x256xf32>
    %728 = tpu.reciprocal %727 {approx = true} : vector<8x256xf32> -> vector<8x256xf32>
    %729 = arith.mulf %727, %728 : vector<8x256xf32>
    %cst_437 = arith.constant 2.000000e+00 : f32
    %730 = vector.broadcast %cst_437 : f32 to vector<8x256xf32>
    %731 = arith.subf %730, %729 : vector<8x256xf32>
    %732 = arith.mulf %728, %731 : vector<8x256xf32>
    %cst_438 = arith.constant 1.06140542 : f32
    %733 = vector.broadcast %cst_438 : f32 to vector<8x256xf32>
    %734 = arith.mulf %733, %732 : vector<8x256xf32>
    %cst_439 = arith.constant -1.45315206 : f32
    %735 = vector.broadcast %cst_439 : f32 to vector<8x256xf32>
    %736 = arith.addf %734, %735 : vector<8x256xf32>
    %737 = arith.mulf %736, %732 : vector<8x256xf32>
    %cst_440 = arith.constant 1.42141378 : f32
    %738 = vector.broadcast %cst_440 : f32 to vector<8x256xf32>
    %739 = arith.addf %737, %738 : vector<8x256xf32>
    %740 = arith.mulf %739, %732 : vector<8x256xf32>
    %cst_441 = arith.constant -0.284496725 : f32
    %741 = vector.broadcast %cst_441 : f32 to vector<8x256xf32>
    %742 = arith.addf %740, %741 : vector<8x256xf32>
    %743 = arith.mulf %742, %732 : vector<8x256xf32>
    %cst_442 = arith.constant 0.254829586 : f32
    %744 = vector.broadcast %cst_442 : f32 to vector<8x256xf32>
    %745 = arith.addf %743, %744 : vector<8x256xf32>
    %746 = arith.mulf %745, %732 : vector<8x256xf32>
    %cst_443 = arith.constant 0.000000e+00 : f32
    %747 = vector.broadcast %cst_443 : f32 to vector<8x256xf32>
    %748 = arith.subf %747, %723 : vector<8x256xf32>
    %749 = arith.mulf %748, %723 : vector<8x256xf32>
    %750 = math.exp %749 : vector<8x256xf32>
    %751 = arith.mulf %746, %750 : vector<8x256xf32>
    %cst_444 = arith.constant 1.000000e+00 : f32
    %752 = vector.broadcast %cst_444 : f32 to vector<8x256xf32>
    %753 = arith.subf %752, %751 : vector<8x256xf32>
    %cst_445 = arith.constant 0.000000e+00 : f32
    %754 = vector.broadcast %cst_445 : f32 to vector<8x256xf32>
    %755 = arith.cmpf olt, %722, %754 : vector<8x256xf32>
    %cst_446 = arith.constant 0.000000e+00 : f32
    %756 = vector.broadcast %cst_446 : f32 to vector<8x256xf32>
    %757 = arith.subf %756, %753 : vector<8x256xf32>
    %758 = arith.select %755, %757, %753 : vector<8x256xi1>, vector<8x256xf32>
    %cst_447 = arith.constant 1.000000e+00 : f32
    %759 = vector.broadcast %cst_447 : f32 to vector<8x256xf32>
    %760 = arith.addf %759, %758 : vector<8x256xf32>
    %761 = arith.mulf %720, %760 : vector<8x256xf32>
    %c17_i32_448 = arith.constant 17 : i32
    %762 = tpu.dynamic_rotate %761 by %c17_i32_448 dim 1 : vector<8x256xf32>, i32 -> vector<8x256xf32>
    %763 = arith.mulf %762, %3 : vector<8x256xf32>
    %c72_449 = arith.constant 72 : index
    %c0_450 = arith.constant 0 : index
    %764 = vector.load %arg8[%c72_449, %c0_450] : memref<216x256xf32, #tpu.memory_space<vmem>>, vector<8x256xf32>
    tpu.vector_store %arg8[%c72_449, %c0_450], %763 {strides = array<i32>} : memref<216x256xf32, #tpu.memory_space<vmem>>, vector<8x256xf32>,
    %c16_i32_451 = arith.constant 16 : i32
    %765 = tpu.dynamic_rotate %761 by %c16_i32_451 dim 1 : vector<8x256xf32>, i32 -> vector<8x256xf32>
    %766 = arith.mulf %765, %6 : vector<8x256xf32>
    %c80_452 = arith.constant 80 : index
    %c0_453 = arith.constant 0 : index
    %767 = vector.load %arg8[%c80_452, %c0_453] : memref<216x256xf32, #tpu.memory_space<vmem>>, vector<8x256xf32>
    tpu.vector_store %arg8[%c80_452, %c0_453], %766 {strides = array<i32>} : memref<216x256xf32, #tpu.memory_space<vmem>>, vector<8x256xf32>,
    %c15_i32_454 = arith.constant 15 : i32
    %768 = tpu.dynamic_rotate %761 by %c15_i32_454 dim 1 : vector<8x256xf32>, i32 -> vector<8x256xf32>
    %769 = arith.mulf %768, %9 : vector<8x256xf32>
    %c88_455 = arith.constant 88 : index
    %c0_456 = arith.constant 0 : index
    %770 = vector.load %arg8[%c88_455, %c0_456] : memref<216x256xf32, #tpu.memory_space<vmem>>, vector<8x256xf32>
    tpu.vector_store %arg8[%c88_455, %c0_456], %769 {strides = array<i32>} : memref<216x256xf32, #tpu.memory_space<vmem>>, vector<8x256xf32>,
    %c1_i32_457 = arith.constant 1 : i32
    %771 = tpu.dynamic_rotate %761 by %c1_i32_457 dim 1 : vector<8x256xf32>, i32 -> vector<8x256xf32>
    %772 = arith.mulf %771, %12 : vector<8x256xf32>
    %c96_458 = arith.constant 96 : index
    %c0_459 = arith.constant 0 : index
    %773 = vector.load %arg8[%c96_458, %c0_459] : memref<216x256xf32, #tpu.memory_space<vmem>>, vector<8x256xf32>
    tpu.vector_store %arg8[%c96_458, %c0_459], %772 {strides = array<i32>} : memref<216x256xf32, #tpu.memory_space<vmem>>, vector<8x256xf32>,
    %c104_460 = arith.constant 104 : index
    %c0_461 = arith.constant 0 : index
    %774 = vector.load %arg8[%c104_460, %c0_461] : memref<216x256xf32, #tpu.memory_space<vmem>>, vector<8x256xf32>
    tpu.vector_store %arg8[%c104_460, %c0_461], %761 {strides = array<i32>} : memref<216x256xf32, #tpu.memory_space<vmem>>, vector<8x256xf32>,
    %c255_i32_462 = arith.constant 255 : i32
    %775 = tpu.dynamic_rotate %761 by %c255_i32_462 dim 1 : vector<8x256xf32>, i32 -> vector<8x256xf32>
    %776 = arith.mulf %775, %15 : vector<8x256xf32>
    %c112_463 = arith.constant 112 : index
    %c0_464 = arith.constant 0 : index
    %777 = vector.load %arg8[%c112_463, %c0_464] : memref<216x256xf32, #tpu.memory_space<vmem>>, vector<8x256xf32>
    tpu.vector_store %arg8[%c112_463, %c0_464], %776 {strides = array<i32>} : memref<216x256xf32, #tpu.memory_space<vmem>>, vector<8x256xf32>,
    %c241_i32_465 = arith.constant 241 : i32
    %778 = tpu.dynamic_rotate %761 by %c241_i32_465 dim 1 : vector<8x256xf32>, i32 -> vector<8x256xf32>
    %779 = arith.mulf %778, %18 : vector<8x256xf32>
    %c120_466 = arith.constant 120 : index
    %c0_467 = arith.constant 0 : index
    %780 = vector.load %arg8[%c120_466, %c0_467] : memref<216x256xf32, #tpu.memory_space<vmem>>, vector<8x256xf32>
    tpu.vector_store %arg8[%c120_466, %c0_467], %779 {strides = array<i32>} : memref<216x256xf32, #tpu.memory_space<vmem>>, vector<8x256xf32>,
    %c240_i32_468 = arith.constant 240 : i32
    %781 = tpu.dynamic_rotate %761 by %c240_i32_468 dim 1 : vector<8x256xf32>, i32 -> vector<8x256xf32>
    %782 = arith.mulf %781, %21 : vector<8x256xf32>
    %c128_469 = arith.constant 128 : index
    %c0_470 = arith.constant 0 : index
    %783 = vector.load %arg8[%c128_469, %c0_470] : memref<216x256xf32, #tpu.memory_space<vmem>>, vector<8x256xf32>
    tpu.vector_store %arg8[%c128_469, %c0_470], %782 {strides = array<i32>} : memref<216x256xf32, #tpu.memory_space<vmem>>, vector<8x256xf32>,
    %c239_i32_471 = arith.constant 239 : i32
    %784 = tpu.dynamic_rotate %761 by %c239_i32_471 dim 1 : vector<8x256xf32>, i32 -> vector<8x256xf32>
    %785 = arith.mulf %784, %24 : vector<8x256xf32>
    %c136_472 = arith.constant 136 : index
    %c0_473 = arith.constant 0 : index
    %786 = vector.load %arg8[%c136_472, %c0_473] : memref<216x256xf32, #tpu.memory_space<vmem>>, vector<8x256xf32>
    tpu.vector_store %arg8[%c136_472, %c0_473], %785 {strides = array<i32>} : memref<216x256xf32, #tpu.memory_space<vmem>>, vector<8x256xf32>,
    %c0_474 = arith.constant 0 : index
    %c0_475 = arith.constant 0 : index
    %787 = vector.load %arg8[%c0_474, %c0_475] : memref<216x256xf32, #tpu.memory_space<vmem>>, vector<144x256xf32>
    %c3_476 = arith.constant 3 : index
    %c0_477 = arith.constant 0 : index
    %c0_478 = arith.constant 0 : index
    %788 = vector.load %arg3[%c3_476, %c0_477, %c0_478] : memref<6x8x144xf32, #tpu.memory_space<vmem>>, vector<1x8x144xf32>
    %789 = vector.shape_cast %788 : vector<1x8x144xf32> to vector<8x144xf32>
    %cst_479 = arith.constant dense<0.000000e+00> : vector<8x256xf32>
    %790 = tpu.matmul %789, %787, %cst_479 {dimension_numbers = #tpu.dot_dimension_numbers<[1], [0], [0], [1], [0, 0, 1, 1], [], []>} : vector<8x144xf32>, vector<144x256xf32>, vector<8x256xf32> -> vector<8x256xf32>
    %cst_480 = arith.constant 5.000000e-01 : f32
    %791 = vector.broadcast %cst_480 : f32 to vector<8x256xf32>
    %792 = arith.mulf %791, %790 : vector<8x256xf32>
    %cst_481 = arith.constant 0.707106769 : f32
    %793 = vector.broadcast %cst_481 : f32 to vector<8x256xf32>
    %794 = arith.mulf %790, %793 : vector<8x256xf32>
    %795 = math.absf %794 : vector<8x256xf32>
    %cst_482 = arith.constant 0.327591091 : f32
    %796 = vector.broadcast %cst_482 : f32 to vector<8x256xf32>
    %797 = arith.mulf %796, %795 : vector<8x256xf32>
    %cst_483 = arith.constant 1.000000e+00 : f32
    %798 = vector.broadcast %cst_483 : f32 to vector<8x256xf32>
    %799 = arith.addf %798, %797 : vector<8x256xf32>
    %800 = tpu.reciprocal %799 {approx = true} : vector<8x256xf32> -> vector<8x256xf32>
    %801 = arith.mulf %799, %800 : vector<8x256xf32>
    %cst_484 = arith.constant 2.000000e+00 : f32
    %802 = vector.broadcast %cst_484 : f32 to vector<8x256xf32>
    %803 = arith.subf %802, %801 : vector<8x256xf32>
    %804 = arith.mulf %800, %803 : vector<8x256xf32>
    %cst_485 = arith.constant 1.06140542 : f32
    %805 = vector.broadcast %cst_485 : f32 to vector<8x256xf32>
    %806 = arith.mulf %805, %804 : vector<8x256xf32>
    %cst_486 = arith.constant -1.45315206 : f32
    %807 = vector.broadcast %cst_486 : f32 to vector<8x256xf32>
    %808 = arith.addf %806, %807 : vector<8x256xf32>
    %809 = arith.mulf %808, %804 : vector<8x256xf32>
    %cst_487 = arith.constant 1.42141378 : f32
    %810 = vector.broadcast %cst_487 : f32 to vector<8x256xf32>
    %811 = arith.addf %809, %810 : vector<8x256xf32>
    %812 = arith.mulf %811, %804 : vector<8x256xf32>
    %cst_488 = arith.constant -0.284496725 : f32
    %813 = vector.broadcast %cst_488 : f32 to vector<8x256xf32>
    %814 = arith.addf %812, %813 : vector<8x256xf32>
    %815 = arith.mulf %814, %804 : vector<8x256xf32>
    %cst_489 = arith.constant 0.254829586 : f32
    %816 = vector.broadcast %cst_489 : f32 to vector<8x256xf32>
    %817 = arith.addf %815, %816 : vector<8x256xf32>
    %818 = arith.mulf %817, %804 : vector<8x256xf32>
    %cst_490 = arith.constant 0.000000e+00 : f32
    %819 = vector.broadcast %cst_490 : f32 to vector<8x256xf32>
    %820 = arith.subf %819, %795 : vector<8x256xf32>
    %821 = arith.mulf %820, %795 : vector<8x256xf32>
    %822 = math.exp %821 : vector<8x256xf32>
    %823 = arith.mulf %818, %822 : vector<8x256xf32>
    %cst_491 = arith.constant 1.000000e+00 : f32
    %824 = vector.broadcast %cst_491 : f32 to vector<8x256xf32>
    %825 = arith.subf %824, %823 : vector<8x256xf32>
    %cst_492 = arith.constant 0.000000e+00 : f32
    %826 = vector.broadcast %cst_492 : f32 to vector<8x256xf32>
    %827 = arith.cmpf olt, %794, %826 : vector<8x256xf32>
    %cst_493 = arith.constant 0.000000e+00 : f32
    %828 = vector.broadcast %cst_493 : f32 to vector<8x256xf32>
    %829 = arith.subf %828, %825 : vector<8x256xf32>
    %830 = arith.select %827, %829, %825 : vector<8x256xi1>, vector<8x256xf32>
    %cst_494 = arith.constant 1.000000e+00 : f32
    %831 = vector.broadcast %cst_494 : f32 to vector<8x256xf32>
    %832 = arith.addf %831, %830 : vector<8x256xf32>
    %833 = arith.mulf %792, %832 : vector<8x256xf32>
    %c17_i32_495 = arith.constant 17 : i32
    %834 = tpu.dynamic_rotate %833 by %c17_i32_495 dim 1 : vector<8x256xf32>, i32 -> vector<8x256xf32>
    %835 = arith.mulf %834, %3 : vector<8x256xf32>
    %c144_496 = arith.constant 144 : index
    %c0_497 = arith.constant 0 : index
    %836 = vector.load %arg8[%c144_496, %c0_497] : memref<216x256xf32, #tpu.memory_space<vmem>>, vector<8x256xf32>
    tpu.vector_store %arg8[%c144_496, %c0_497], %835 {strides = array<i32>} : memref<216x256xf32, #tpu.memory_space<vmem>>, vector<8x256xf32>,
    %c16_i32_498 = arith.constant 16 : i32
    %837 = tpu.dynamic_rotate %833 by %c16_i32_498 dim 1 : vector<8x256xf32>, i32 -> vector<8x256xf32>
    %838 = arith.mulf %837, %6 : vector<8x256xf32>
    %c152_499 = arith.constant 152 : index
    %c0_500 = arith.constant 0 : index
    %839 = vector.load %arg8[%c152_499, %c0_500] : memref<216x256xf32, #tpu.memory_space<vmem>>, vector<8x256xf32>
    tpu.vector_store %arg8[%c152_499, %c0_500], %838 {strides = array<i32>} : memref<216x256xf32, #tpu.memory_space<vmem>>, vector<8x256xf32>,
    %c15_i32_501 = arith.constant 15 : i32
    %840 = tpu.dynamic_rotate %833 by %c15_i32_501 dim 1 : vector<8x256xf32>, i32 -> vector<8x256xf32>
    %841 = arith.mulf %840, %9 : vector<8x256xf32>
    %c160_502 = arith.constant 160 : index
    %c0_503 = arith.constant 0 : index
    %842 = vector.load %arg8[%c160_502, %c0_503] : memref<216x256xf32, #tpu.memory_space<vmem>>, vector<8x256xf32>
    tpu.vector_store %arg8[%c160_502, %c0_503], %841 {strides = array<i32>} : memref<216x256xf32, #tpu.memory_space<vmem>>, vector<8x256xf32>,
    %c1_i32_504 = arith.constant 1 : i32
    %843 = tpu.dynamic_rotate %833 by %c1_i32_504 dim 1 : vector<8x256xf32>, i32 -> vector<8x256xf32>
    %844 = arith.mulf %843, %12 : vector<8x256xf32>
    %c168_505 = arith.constant 168 : index
    %c0_506 = arith.constant 0 : index
    %845 = vector.load %arg8[%c168_505, %c0_506] : memref<216x256xf32, #tpu.memory_space<vmem>>, vector<8x256xf32>
    tpu.vector_store %arg8[%c168_505, %c0_506], %844 {strides = array<i32>} : memref<216x256xf32, #tpu.memory_space<vmem>>, vector<8x256xf32>,
    %c176_507 = arith.constant 176 : index
    %c0_508 = arith.constant 0 : index
    %846 = vector.load %arg8[%c176_507, %c0_508] : memref<216x256xf32, #tpu.memory_space<vmem>>, vector<8x256xf32>
    tpu.vector_store %arg8[%c176_507, %c0_508], %833 {strides = array<i32>} : memref<216x256xf32, #tpu.memory_space<vmem>>, vector<8x256xf32>,
    %c255_i32_509 = arith.constant 255 : i32
    %847 = tpu.dynamic_rotate %833 by %c255_i32_509 dim 1 : vector<8x256xf32>, i32 -> vector<8x256xf32>
    %848 = arith.mulf %847, %15 : vector<8x256xf32>
    %c184_510 = arith.constant 184 : index
    %c0_511 = arith.constant 0 : index
    %849 = vector.load %arg8[%c184_510, %c0_511] : memref<216x256xf32, #tpu.memory_space<vmem>>, vector<8x256xf32>
    tpu.vector_store %arg8[%c184_510, %c0_511], %848 {strides = array<i32>} : memref<216x256xf32, #tpu.memory_space<vmem>>, vector<8x256xf32>,
    %c241_i32_512 = arith.constant 241 : i32
    %850 = tpu.dynamic_rotate %833 by %c241_i32_512 dim 1 : vector<8x256xf32>, i32 -> vector<8x256xf32>
    %851 = arith.mulf %850, %18 : vector<8x256xf32>
    %c192_513 = arith.constant 192 : index
    %c0_514 = arith.constant 0 : index
    %852 = vector.load %arg8[%c192_513, %c0_514] : memref<216x256xf32, #tpu.memory_space<vmem>>, vector<8x256xf32>
    tpu.vector_store %arg8[%c192_513, %c0_514], %851 {strides = array<i32>} : memref<216x256xf32, #tpu.memory_space<vmem>>, vector<8x256xf32>,
    %c240_i32_515 = arith.constant 240 : i32
    %853 = tpu.dynamic_rotate %833 by %c240_i32_515 dim 1 : vector<8x256xf32>, i32 -> vector<8x256xf32>
    %854 = arith.mulf %853, %21 : vector<8x256xf32>
    %c200_516 = arith.constant 200 : index
    %c0_517 = arith.constant 0 : index
    %855 = vector.load %arg8[%c200_516, %c0_517] : memref<216x256xf32, #tpu.memory_space<vmem>>, vector<8x256xf32>
    tpu.vector_store %arg8[%c200_516, %c0_517], %854 {strides = array<i32>} : memref<216x256xf32, #tpu.memory_space<vmem>>, vector<8x256xf32>,
    %c239_i32_518 = arith.constant 239 : i32
    %856 = tpu.dynamic_rotate %833 by %c239_i32_518 dim 1 : vector<8x256xf32>, i32 -> vector<8x256xf32>
    %857 = arith.mulf %856, %24 : vector<8x256xf32>
    %c208_519 = arith.constant 208 : index
    %c0_520 = arith.constant 0 : index
    %858 = vector.load %arg8[%c208_519, %c0_520] : memref<216x256xf32, #tpu.memory_space<vmem>>, vector<8x256xf32>
    tpu.vector_store %arg8[%c208_519, %c0_520], %857 {strides = array<i32>} : memref<216x256xf32, #tpu.memory_space<vmem>>, vector<8x256xf32>,
    %c0_521 = arith.constant 0 : index
    %c0_522 = arith.constant 0 : index
    %859 = vector.load %arg8[%c0_521, %c0_522] : memref<216x256xf32, #tpu.memory_space<vmem>>, vector<216x256xf32>
    %c3_523 = arith.constant 3 : index
    %c0_524 = arith.constant 0 : index
    %c0_525 = arith.constant 0 : index
    %860 = vector.load %arg4[%c3_523, %c0_524, %c0_525] : memref<6x8x216xf32, #tpu.memory_space<vmem>>, vector<1x8x216xf32>
    %861 = vector.shape_cast %860 : vector<1x8x216xf32> to vector<8x216xf32>
    %cst_526 = arith.constant dense<0.000000e+00> : vector<8x256xf32>
    %862 = tpu.matmul %861, %859, %cst_526 {dimension_numbers = #tpu.dot_dimension_numbers<[1], [0], [0], [1], [0, 0, 1, 1], [], []>} : vector<8x216xf32>, vector<216x256xf32>, vector<8x256xf32> -> vector<8x256xf32>
    %cst_527 = arith.constant 5.000000e-01 : f32
    %863 = vector.broadcast %cst_527 : f32 to vector<8x256xf32>
    %864 = arith.mulf %863, %862 : vector<8x256xf32>
    %cst_528 = arith.constant 0.707106769 : f32
    %865 = vector.broadcast %cst_528 : f32 to vector<8x256xf32>
    %866 = arith.mulf %862, %865 : vector<8x256xf32>
    %867 = math.absf %866 : vector<8x256xf32>
    %cst_529 = arith.constant 0.327591091 : f32
    %868 = vector.broadcast %cst_529 : f32 to vector<8x256xf32>
    %869 = arith.mulf %868, %867 : vector<8x256xf32>
    %cst_530 = arith.constant 1.000000e+00 : f32
    %870 = vector.broadcast %cst_530 : f32 to vector<8x256xf32>
    %871 = arith.addf %870, %869 : vector<8x256xf32>
    %872 = tpu.reciprocal %871 {approx = true} : vector<8x256xf32> -> vector<8x256xf32>
    %873 = arith.mulf %871, %872 : vector<8x256xf32>
    %cst_531 = arith.constant 2.000000e+00 : f32
    %874 = vector.broadcast %cst_531 : f32 to vector<8x256xf32>
    %875 = arith.subf %874, %873 : vector<8x256xf32>
    %876 = arith.mulf %872, %875 : vector<8x256xf32>
    %cst_532 = arith.constant 1.06140542 : f32
    %877 = vector.broadcast %cst_532 : f32 to vector<8x256xf32>
    %878 = arith.mulf %877, %876 : vector<8x256xf32>
    %cst_533 = arith.constant -1.45315206 : f32
    %879 = vector.broadcast %cst_533 : f32 to vector<8x256xf32>
    %880 = arith.addf %878, %879 : vector<8x256xf32>
    %881 = arith.mulf %880, %876 : vector<8x256xf32>
    %cst_534 = arith.constant 1.42141378 : f32
    %882 = vector.broadcast %cst_534 : f32 to vector<8x256xf32>
    %883 = arith.addf %881, %882 : vector<8x256xf32>
    %884 = arith.mulf %883, %876 : vector<8x256xf32>
    %cst_535 = arith.constant -0.284496725 : f32
    %885 = vector.broadcast %cst_535 : f32 to vector<8x256xf32>
    %886 = arith.addf %884, %885 : vector<8x256xf32>
    %887 = arith.mulf %886, %876 : vector<8x256xf32>
    %cst_536 = arith.constant 0.254829586 : f32
    %888 = vector.broadcast %cst_536 : f32 to vector<8x256xf32>
    %889 = arith.addf %887, %888 : vector<8x256xf32>
    %890 = arith.mulf %889, %876 : vector<8x256xf32>
    %cst_537 = arith.constant 0.000000e+00 : f32
    %891 = vector.broadcast %cst_537 : f32 to vector<8x256xf32>
    %892 = arith.subf %891, %867 : vector<8x256xf32>
    %893 = arith.mulf %892, %867 : vector<8x256xf32>
    %894 = math.exp %893 : vector<8x256xf32>
    %895 = arith.mulf %890, %894 : vector<8x256xf32>
    %cst_538 = arith.constant 1.000000e+00 : f32
    %896 = vector.broadcast %cst_538 : f32 to vector<8x256xf32>
    %897 = arith.subf %896, %895 : vector<8x256xf32>
    %cst_539 = arith.constant 0.000000e+00 : f32
    %898 = vector.broadcast %cst_539 : f32 to vector<8x256xf32>
    %899 = arith.cmpf olt, %866, %898 : vector<8x256xf32>
    %cst_540 = arith.constant 0.000000e+00 : f32
    %900 = vector.broadcast %cst_540 : f32 to vector<8x256xf32>
    %901 = arith.subf %900, %897 : vector<8x256xf32>
    %902 = arith.select %899, %901, %897 : vector<8x256xi1>, vector<8x256xf32>
    %cst_541 = arith.constant 1.000000e+00 : f32
    %903 = vector.broadcast %cst_541 : f32 to vector<8x256xf32>
    %904 = arith.addf %903, %902 : vector<8x256xf32>
    %905 = arith.mulf %864, %904 : vector<8x256xf32>
    %906 = tpu.concatenate %689, %761, %833, %905 in 0 : vector<8x256xf32>, vector<8x256xf32>, vector<8x256xf32>, vector<8x256xf32> -> vector<32x256xf32>
    %c3_542 = arith.constant 3 : index
    %c0_543 = arith.constant 0 : index
    %c0_544 = arith.constant 0 : index
    %907 = vector.load %arg5[%c3_542, %c0_543, %c0_544] : memref<6x8x32xf32, #tpu.memory_space<vmem>>, vector<1x8x32xf32>
    %908 = vector.shape_cast %907 : vector<1x8x32xf32> to vector<8x32xf32>
    %cst_545 = arith.constant dense<0.000000e+00> : vector<8x256xf32>
    %909 = tpu.matmul %908, %906, %cst_545 {dimension_numbers = #tpu.dot_dimension_numbers<[1], [0], [0], [1], [0, 0, 1, 1], [], []>} : vector<8x32xf32>, vector<32x256xf32>, vector<8x256xf32> -> vector<8x256xf32>
    %910 = arith.addf %689, %909 : vector<8x256xf32>
    %c17_i32_546 = arith.constant 17 : i32
    %911 = tpu.dynamic_rotate %910 by %c17_i32_546 dim 1 : vector<8x256xf32>, i32 -> vector<8x256xf32>
    %912 = arith.mulf %911, %3 : vector<8x256xf32>
    %c0_547 = arith.constant 0 : index
    %c0_548 = arith.constant 0 : index
    %913 = vector.load %arg8[%c0_547, %c0_548] : memref<216x256xf32, #tpu.memory_space<vmem>>, vector<8x256xf32>
    tpu.vector_store %arg8[%c0_547, %c0_548], %912 {strides = array<i32>} : memref<216x256xf32, #tpu.memory_space<vmem>>, vector<8x256xf32>,
    %c16_i32_549 = arith.constant 16 : i32
    %914 = tpu.dynamic_rotate %910 by %c16_i32_549 dim 1 : vector<8x256xf32>, i32 -> vector<8x256xf32>
    %915 = arith.mulf %914, %6 : vector<8x256xf32>
    %c8_550 = arith.constant 8 : index
    %c0_551 = arith.constant 0 : index
    %916 = vector.load %arg8[%c8_550, %c0_551] : memref<216x256xf32, #tpu.memory_space<vmem>>, vector<8x256xf32>
    tpu.vector_store %arg8[%c8_550, %c0_551], %915 {strides = array<i32>} : memref<216x256xf32, #tpu.memory_space<vmem>>, vector<8x256xf32>,
    %c15_i32_552 = arith.constant 15 : i32
    %917 = tpu.dynamic_rotate %910 by %c15_i32_552 dim 1 : vector<8x256xf32>, i32 -> vector<8x256xf32>
    %918 = arith.mulf %917, %9 : vector<8x256xf32>
    %c16_553 = arith.constant 16 : index
    %c0_554 = arith.constant 0 : index
    %919 = vector.load %arg8[%c16_553, %c0_554] : memref<216x256xf32, #tpu.memory_space<vmem>>, vector<8x256xf32>
    tpu.vector_store %arg8[%c16_553, %c0_554], %918 {strides = array<i32>} : memref<216x256xf32, #tpu.memory_space<vmem>>, vector<8x256xf32>,
    %c1_i32_555 = arith.constant 1 : i32
    %920 = tpu.dynamic_rotate %910 by %c1_i32_555 dim 1 : vector<8x256xf32>, i32 -> vector<8x256xf32>
    %921 = arith.mulf %920, %12 : vector<8x256xf32>
    %c24_556 = arith.constant 24 : index
    %c0_557 = arith.constant 0 : index
    %922 = vector.load %arg8[%c24_556, %c0_557] : memref<216x256xf32, #tpu.memory_space<vmem>>, vector<8x256xf32>
    tpu.vector_store %arg8[%c24_556, %c0_557], %921 {strides = array<i32>} : memref<216x256xf32, #tpu.memory_space<vmem>>, vector<8x256xf32>,
    %c32_558 = arith.constant 32 : index
    %c0_559 = arith.constant 0 : index
    %923 = vector.load %arg8[%c32_558, %c0_559] : memref<216x256xf32, #tpu.memory_space<vmem>>, vector<8x256xf32>
    tpu.vector_store %arg8[%c32_558, %c0_559], %910 {strides = array<i32>} : memref<216x256xf32, #tpu.memory_space<vmem>>, vector<8x256xf32>,
    %c255_i32_560 = arith.constant 255 : i32
    %924 = tpu.dynamic_rotate %910 by %c255_i32_560 dim 1 : vector<8x256xf32>, i32 -> vector<8x256xf32>
    %925 = arith.mulf %924, %15 : vector<8x256xf32>
    %c40_561 = arith.constant 40 : index
    %c0_562 = arith.constant 0 : index
    %926 = vector.load %arg8[%c40_561, %c0_562] : memref<216x256xf32, #tpu.memory_space<vmem>>, vector<8x256xf32>
    tpu.vector_store %arg8[%c40_561, %c0_562], %925 {strides = array<i32>} : memref<216x256xf32, #tpu.memory_space<vmem>>, vector<8x256xf32>,
    %c241_i32_563 = arith.constant 241 : i32
    %927 = tpu.dynamic_rotate %910 by %c241_i32_563 dim 1 : vector<8x256xf32>, i32 -> vector<8x256xf32>
    %928 = arith.mulf %927, %18 : vector<8x256xf32>
    %c48_564 = arith.constant 48 : index
    %c0_565 = arith.constant 0 : index
    %929 = vector.load %arg8[%c48_564, %c0_565] : memref<216x256xf32, #tpu.memory_space<vmem>>, vector<8x256xf32>
    tpu.vector_store %arg8[%c48_564, %c0_565], %928 {strides = array<i32>} : memref<216x256xf32, #tpu.memory_space<vmem>>, vector<8x256xf32>,
    %c240_i32_566 = arith.constant 240 : i32
    %930 = tpu.dynamic_rotate %910 by %c240_i32_566 dim 1 : vector<8x256xf32>, i32 -> vector<8x256xf32>
    %931 = arith.mulf %930, %21 : vector<8x256xf32>
    %c56_567 = arith.constant 56 : index
    %c0_568 = arith.constant 0 : index
    %932 = vector.load %arg8[%c56_567, %c0_568] : memref<216x256xf32, #tpu.memory_space<vmem>>, vector<8x256xf32>
    tpu.vector_store %arg8[%c56_567, %c0_568], %931 {strides = array<i32>} : memref<216x256xf32, #tpu.memory_space<vmem>>, vector<8x256xf32>,
    %c239_i32_569 = arith.constant 239 : i32
    %933 = tpu.dynamic_rotate %910 by %c239_i32_569 dim 1 : vector<8x256xf32>, i32 -> vector<8x256xf32>
    %934 = arith.mulf %933, %24 : vector<8x256xf32>
    %c64_570 = arith.constant 64 : index
    %c0_571 = arith.constant 0 : index
    %935 = vector.load %arg8[%c64_570, %c0_571] : memref<216x256xf32, #tpu.memory_space<vmem>>, vector<8x256xf32>
    tpu.vector_store %arg8[%c64_570, %c0_571], %934 {strides = array<i32>} : memref<216x256xf32, #tpu.memory_space<vmem>>, vector<8x256xf32>,
    %c0_572 = arith.constant 0 : index
    %c0_573 = arith.constant 0 : index
    %936 = vector.load %arg8[%c0_572, %c0_573] : memref<216x256xf32, #tpu.memory_space<vmem>>, vector<72x256xf32>
    %c4 = arith.constant 4 : index
    %c0_574 = arith.constant 0 : index
    %c0_575 = arith.constant 0 : index
    %937 = vector.load %arg2[%c4, %c0_574, %c0_575] : memref<6x8x72xf32, #tpu.memory_space<vmem>>, vector<1x8x72xf32>
    %938 = vector.shape_cast %937 : vector<1x8x72xf32> to vector<8x72xf32>
    %cst_576 = arith.constant dense<0.000000e+00> : vector<8x256xf32>
    %939 = tpu.matmul %938, %936, %cst_576 {dimension_numbers = #tpu.dot_dimension_numbers<[1], [0], [0], [1], [0, 0, 1, 1], [], []>} : vector<8x72xf32>, vector<72x256xf32>, vector<8x256xf32> -> vector<8x256xf32>
    %cst_577 = arith.constant 5.000000e-01 : f32
    %940 = vector.broadcast %cst_577 : f32 to vector<8x256xf32>
    %941 = arith.mulf %940, %939 : vector<8x256xf32>
    %cst_578 = arith.constant 0.707106769 : f32
    %942 = vector.broadcast %cst_578 : f32 to vector<8x256xf32>
    %943 = arith.mulf %939, %942 : vector<8x256xf32>
    %944 = math.absf %943 : vector<8x256xf32>
    %cst_579 = arith.constant 0.327591091 : f32
    %945 = vector.broadcast %cst_579 : f32 to vector<8x256xf32>
    %946 = arith.mulf %945, %944 : vector<8x256xf32>
    %cst_580 = arith.constant 1.000000e+00 : f32
    %947 = vector.broadcast %cst_580 : f32 to vector<8x256xf32>
    %948 = arith.addf %947, %946 : vector<8x256xf32>
    %949 = tpu.reciprocal %948 {approx = true} : vector<8x256xf32> -> vector<8x256xf32>
    %950 = arith.mulf %948, %949 : vector<8x256xf32>
    %cst_581 = arith.constant 2.000000e+00 : f32
    %951 = vector.broadcast %cst_581 : f32 to vector<8x256xf32>
    %952 = arith.subf %951, %950 : vector<8x256xf32>
    %953 = arith.mulf %949, %952 : vector<8x256xf32>
    %cst_582 = arith.constant 1.06140542 : f32
    %954 = vector.broadcast %cst_582 : f32 to vector<8x256xf32>
    %955 = arith.mulf %954, %953 : vector<8x256xf32>
    %cst_583 = arith.constant -1.45315206 : f32
    %956 = vector.broadcast %cst_583 : f32 to vector<8x256xf32>
    %957 = arith.addf %955, %956 : vector<8x256xf32>
    %958 = arith.mulf %957, %953 : vector<8x256xf32>
    %cst_584 = arith.constant 1.42141378 : f32
    %959 = vector.broadcast %cst_584 : f32 to vector<8x256xf32>
    %960 = arith.addf %958, %959 : vector<8x256xf32>
    %961 = arith.mulf %960, %953 : vector<8x256xf32>
    %cst_585 = arith.constant -0.284496725 : f32
    %962 = vector.broadcast %cst_585 : f32 to vector<8x256xf32>
    %963 = arith.addf %961, %962 : vector<8x256xf32>
    %964 = arith.mulf %963, %953 : vector<8x256xf32>
    %cst_586 = arith.constant 0.254829586 : f32
    %965 = vector.broadcast %cst_586 : f32 to vector<8x256xf32>
    %966 = arith.addf %964, %965 : vector<8x256xf32>
    %967 = arith.mulf %966, %953 : vector<8x256xf32>
    %cst_587 = arith.constant 0.000000e+00 : f32
    %968 = vector.broadcast %cst_587 : f32 to vector<8x256xf32>
    %969 = arith.subf %968, %944 : vector<8x256xf32>
    %970 = arith.mulf %969, %944 : vector<8x256xf32>
    %971 = math.exp %970 : vector<8x256xf32>
    %972 = arith.mulf %967, %971 : vector<8x256xf32>
    %cst_588 = arith.constant 1.000000e+00 : f32
    %973 = vector.broadcast %cst_588 : f32 to vector<8x256xf32>
    %974 = arith.subf %973, %972 : vector<8x256xf32>
    %cst_589 = arith.constant 0.000000e+00 : f32
    %975 = vector.broadcast %cst_589 : f32 to vector<8x256xf32>
    %976 = arith.cmpf olt, %943, %975 : vector<8x256xf32>
    %cst_590 = arith.constant 0.000000e+00 : f32
    %977 = vector.broadcast %cst_590 : f32 to vector<8x256xf32>
    %978 = arith.subf %977, %974 : vector<8x256xf32>
    %979 = arith.select %976, %978, %974 : vector<8x256xi1>, vector<8x256xf32>
    %cst_591 = arith.constant 1.000000e+00 : f32
    %980 = vector.broadcast %cst_591 : f32 to vector<8x256xf32>
    %981 = arith.addf %980, %979 : vector<8x256xf32>
    %982 = arith.mulf %941, %981 : vector<8x256xf32>
    %c17_i32_592 = arith.constant 17 : i32
    %983 = tpu.dynamic_rotate %982 by %c17_i32_592 dim 1 : vector<8x256xf32>, i32 -> vector<8x256xf32>
    %984 = arith.mulf %983, %3 : vector<8x256xf32>
    %c72_593 = arith.constant 72 : index
    %c0_594 = arith.constant 0 : index
    %985 = vector.load %arg8[%c72_593, %c0_594] : memref<216x256xf32, #tpu.memory_space<vmem>>, vector<8x256xf32>
    tpu.vector_store %arg8[%c72_593, %c0_594], %984 {strides = array<i32>} : memref<216x256xf32, #tpu.memory_space<vmem>>, vector<8x256xf32>,
    %c16_i32_595 = arith.constant 16 : i32
    %986 = tpu.dynamic_rotate %982 by %c16_i32_595 dim 1 : vector<8x256xf32>, i32 -> vector<8x256xf32>
    %987 = arith.mulf %986, %6 : vector<8x256xf32>
    %c80_596 = arith.constant 80 : index
    %c0_597 = arith.constant 0 : index
    %988 = vector.load %arg8[%c80_596, %c0_597] : memref<216x256xf32, #tpu.memory_space<vmem>>, vector<8x256xf32>
    tpu.vector_store %arg8[%c80_596, %c0_597], %987 {strides = array<i32>} : memref<216x256xf32, #tpu.memory_space<vmem>>, vector<8x256xf32>,
    %c15_i32_598 = arith.constant 15 : i32
    %989 = tpu.dynamic_rotate %982 by %c15_i32_598 dim 1 : vector<8x256xf32>, i32 -> vector<8x256xf32>
    %990 = arith.mulf %989, %9 : vector<8x256xf32>
    %c88_599 = arith.constant 88 : index
    %c0_600 = arith.constant 0 : index
    %991 = vector.load %arg8[%c88_599, %c0_600] : memref<216x256xf32, #tpu.memory_space<vmem>>, vector<8x256xf32>
    tpu.vector_store %arg8[%c88_599, %c0_600], %990 {strides = array<i32>} : memref<216x256xf32, #tpu.memory_space<vmem>>, vector<8x256xf32>,
    %c1_i32_601 = arith.constant 1 : i32
    %992 = tpu.dynamic_rotate %982 by %c1_i32_601 dim 1 : vector<8x256xf32>, i32 -> vector<8x256xf32>
    %993 = arith.mulf %992, %12 : vector<8x256xf32>
    %c96_602 = arith.constant 96 : index
    %c0_603 = arith.constant 0 : index
    %994 = vector.load %arg8[%c96_602, %c0_603] : memref<216x256xf32, #tpu.memory_space<vmem>>, vector<8x256xf32>
    tpu.vector_store %arg8[%c96_602, %c0_603], %993 {strides = array<i32>} : memref<216x256xf32, #tpu.memory_space<vmem>>, vector<8x256xf32>,
    %c104_604 = arith.constant 104 : index
    %c0_605 = arith.constant 0 : index
    %995 = vector.load %arg8[%c104_604, %c0_605] : memref<216x256xf32, #tpu.memory_space<vmem>>, vector<8x256xf32>
    tpu.vector_store %arg8[%c104_604, %c0_605], %982 {strides = array<i32>} : memref<216x256xf32, #tpu.memory_space<vmem>>, vector<8x256xf32>,
    %c255_i32_606 = arith.constant 255 : i32
    %996 = tpu.dynamic_rotate %982 by %c255_i32_606 dim 1 : vector<8x256xf32>, i32 -> vector<8x256xf32>
    %997 = arith.mulf %996, %15 : vector<8x256xf32>
    %c112_607 = arith.constant 112 : index
    %c0_608 = arith.constant 0 : index
    %998 = vector.load %arg8[%c112_607, %c0_608] : memref<216x256xf32, #tpu.memory_space<vmem>>, vector<8x256xf32>
    tpu.vector_store %arg8[%c112_607, %c0_608], %997 {strides = array<i32>} : memref<216x256xf32, #tpu.memory_space<vmem>>, vector<8x256xf32>,
    %c241_i32_609 = arith.constant 241 : i32
    %999 = tpu.dynamic_rotate %982 by %c241_i32_609 dim 1 : vector<8x256xf32>, i32 -> vector<8x256xf32>
    %1000 = arith.mulf %999, %18 : vector<8x256xf32>
    %c120_610 = arith.constant 120 : index
    %c0_611 = arith.constant 0 : index
    %1001 = vector.load %arg8[%c120_610, %c0_611] : memref<216x256xf32, #tpu.memory_space<vmem>>, vector<8x256xf32>
    tpu.vector_store %arg8[%c120_610, %c0_611], %1000 {strides = array<i32>} : memref<216x256xf32, #tpu.memory_space<vmem>>, vector<8x256xf32>,
    %c240_i32_612 = arith.constant 240 : i32
    %1002 = tpu.dynamic_rotate %982 by %c240_i32_612 dim 1 : vector<8x256xf32>, i32 -> vector<8x256xf32>
    %1003 = arith.mulf %1002, %21 : vector<8x256xf32>
    %c128_613 = arith.constant 128 : index
    %c0_614 = arith.constant 0 : index
    %1004 = vector.load %arg8[%c128_613, %c0_614] : memref<216x256xf32, #tpu.memory_space<vmem>>, vector<8x256xf32>
    tpu.vector_store %arg8[%c128_613, %c0_614], %1003 {strides = array<i32>} : memref<216x256xf32, #tpu.memory_space<vmem>>, vector<8x256xf32>,
    %c239_i32_615 = arith.constant 239 : i32
    %1005 = tpu.dynamic_rotate %982 by %c239_i32_615 dim 1 : vector<8x256xf32>, i32 -> vector<8x256xf32>
    %1006 = arith.mulf %1005, %24 : vector<8x256xf32>
    %c136_616 = arith.constant 136 : index
    %c0_617 = arith.constant 0 : index
    %1007 = vector.load %arg8[%c136_616, %c0_617] : memref<216x256xf32, #tpu.memory_space<vmem>>, vector<8x256xf32>
    tpu.vector_store %arg8[%c136_616, %c0_617], %1006 {strides = array<i32>} : memref<216x256xf32, #tpu.memory_space<vmem>>, vector<8x256xf32>,
    %c0_618 = arith.constant 0 : index
    %c0_619 = arith.constant 0 : index
    %1008 = vector.load %arg8[%c0_618, %c0_619] : memref<216x256xf32, #tpu.memory_space<vmem>>, vector<144x256xf32>
    %c4_620 = arith.constant 4 : index
    %c0_621 = arith.constant 0 : index
    %c0_622 = arith.constant 0 : index
    %1009 = vector.load %arg3[%c4_620, %c0_621, %c0_622] : memref<6x8x144xf32, #tpu.memory_space<vmem>>, vector<1x8x144xf32>
    %1010 = vector.shape_cast %1009 : vector<1x8x144xf32> to vector<8x144xf32>
    %cst_623 = arith.constant dense<0.000000e+00> : vector<8x256xf32>
    %1011 = tpu.matmul %1010, %1008, %cst_623 {dimension_numbers = #tpu.dot_dimension_numbers<[1], [0], [0], [1], [0, 0, 1, 1], [], []>} : vector<8x144xf32>, vector<144x256xf32>, vector<8x256xf32> -> vector<8x256xf32>
    %cst_624 = arith.constant 5.000000e-01 : f32
    %1012 = vector.broadcast %cst_624 : f32 to vector<8x256xf32>
    %1013 = arith.mulf %1012, %1011 : vector<8x256xf32>
    %cst_625 = arith.constant 0.707106769 : f32
    %1014 = vector.broadcast %cst_625 : f32 to vector<8x256xf32>
    %1015 = arith.mulf %1011, %1014 : vector<8x256xf32>
    %1016 = math.absf %1015 : vector<8x256xf32>
    %cst_626 = arith.constant 0.327591091 : f32
    %1017 = vector.broadcast %cst_626 : f32 to vector<8x256xf32>
    %1018 = arith.mulf %1017, %1016 : vector<8x256xf32>
    %cst_627 = arith.constant 1.000000e+00 : f32
    %1019 = vector.broadcast %cst_627 : f32 to vector<8x256xf32>
    %1020 = arith.addf %1019, %1018 : vector<8x256xf32>
    %1021 = tpu.reciprocal %1020 {approx = true} : vector<8x256xf32> -> vector<8x256xf32>
    %1022 = arith.mulf %1020, %1021 : vector<8x256xf32>
    %cst_628 = arith.constant 2.000000e+00 : f32
    %1023 = vector.broadcast %cst_628 : f32 to vector<8x256xf32>
    %1024 = arith.subf %1023, %1022 : vector<8x256xf32>
    %1025 = arith.mulf %1021, %1024 : vector<8x256xf32>
    %cst_629 = arith.constant 1.06140542 : f32
    %1026 = vector.broadcast %cst_629 : f32 to vector<8x256xf32>
    %1027 = arith.mulf %1026, %1025 : vector<8x256xf32>
    %cst_630 = arith.constant -1.45315206 : f32
    %1028 = vector.broadcast %cst_630 : f32 to vector<8x256xf32>
    %1029 = arith.addf %1027, %1028 : vector<8x256xf32>
    %1030 = arith.mulf %1029, %1025 : vector<8x256xf32>
    %cst_631 = arith.constant 1.42141378 : f32
    %1031 = vector.broadcast %cst_631 : f32 to vector<8x256xf32>
    %1032 = arith.addf %1030, %1031 : vector<8x256xf32>
    %1033 = arith.mulf %1032, %1025 : vector<8x256xf32>
    %cst_632 = arith.constant -0.284496725 : f32
    %1034 = vector.broadcast %cst_632 : f32 to vector<8x256xf32>
    %1035 = arith.addf %1033, %1034 : vector<8x256xf32>
    %1036 = arith.mulf %1035, %1025 : vector<8x256xf32>
    %cst_633 = arith.constant 0.254829586 : f32
    %1037 = vector.broadcast %cst_633 : f32 to vector<8x256xf32>
    %1038 = arith.addf %1036, %1037 : vector<8x256xf32>
    %1039 = arith.mulf %1038, %1025 : vector<8x256xf32>
    %cst_634 = arith.constant 0.000000e+00 : f32
    %1040 = vector.broadcast %cst_634 : f32 to vector<8x256xf32>
    %1041 = arith.subf %1040, %1016 : vector<8x256xf32>
    %1042 = arith.mulf %1041, %1016 : vector<8x256xf32>
    %1043 = math.exp %1042 : vector<8x256xf32>
    %1044 = arith.mulf %1039, %1043 : vector<8x256xf32>
    %cst_635 = arith.constant 1.000000e+00 : f32
    %1045 = vector.broadcast %cst_635 : f32 to vector<8x256xf32>
    %1046 = arith.subf %1045, %1044 : vector<8x256xf32>
    %cst_636 = arith.constant 0.000000e+00 : f32
    %1047 = vector.broadcast %cst_636 : f32 to vector<8x256xf32>
    %1048 = arith.cmpf olt, %1015, %1047 : vector<8x256xf32>
    %cst_637 = arith.constant 0.000000e+00 : f32
    %1049 = vector.broadcast %cst_637 : f32 to vector<8x256xf32>
    %1050 = arith.subf %1049, %1046 : vector<8x256xf32>
    %1051 = arith.select %1048, %1050, %1046 : vector<8x256xi1>, vector<8x256xf32>
    %cst_638 = arith.constant 1.000000e+00 : f32
    %1052 = vector.broadcast %cst_638 : f32 to vector<8x256xf32>
    %1053 = arith.addf %1052, %1051 : vector<8x256xf32>
    %1054 = arith.mulf %1013, %1053 : vector<8x256xf32>
    %c17_i32_639 = arith.constant 17 : i32
    %1055 = tpu.dynamic_rotate %1054 by %c17_i32_639 dim 1 : vector<8x256xf32>, i32 -> vector<8x256xf32>
    %1056 = arith.mulf %1055, %3 : vector<8x256xf32>
    %c144_640 = arith.constant 144 : index
    %c0_641 = arith.constant 0 : index
    %1057 = vector.load %arg8[%c144_640, %c0_641] : memref<216x256xf32, #tpu.memory_space<vmem>>, vector<8x256xf32>
    tpu.vector_store %arg8[%c144_640, %c0_641], %1056 {strides = array<i32>} : memref<216x256xf32, #tpu.memory_space<vmem>>, vector<8x256xf32>,
    %c16_i32_642 = arith.constant 16 : i32
    %1058 = tpu.dynamic_rotate %1054 by %c16_i32_642 dim 1 : vector<8x256xf32>, i32 -> vector<8x256xf32>
    %1059 = arith.mulf %1058, %6 : vector<8x256xf32>
    %c152_643 = arith.constant 152 : index
    %c0_644 = arith.constant 0 : index
    %1060 = vector.load %arg8[%c152_643, %c0_644] : memref<216x256xf32, #tpu.memory_space<vmem>>, vector<8x256xf32>
    tpu.vector_store %arg8[%c152_643, %c0_644], %1059 {strides = array<i32>} : memref<216x256xf32, #tpu.memory_space<vmem>>, vector<8x256xf32>,
    %c15_i32_645 = arith.constant 15 : i32
    %1061 = tpu.dynamic_rotate %1054 by %c15_i32_645 dim 1 : vector<8x256xf32>, i32 -> vector<8x256xf32>
    %1062 = arith.mulf %1061, %9 : vector<8x256xf32>
    %c160_646 = arith.constant 160 : index
    %c0_647 = arith.constant 0 : index
    %1063 = vector.load %arg8[%c160_646, %c0_647] : memref<216x256xf32, #tpu.memory_space<vmem>>, vector<8x256xf32>
    tpu.vector_store %arg8[%c160_646, %c0_647], %1062 {strides = array<i32>} : memref<216x256xf32, #tpu.memory_space<vmem>>, vector<8x256xf32>,
    %c1_i32_648 = arith.constant 1 : i32
    %1064 = tpu.dynamic_rotate %1054 by %c1_i32_648 dim 1 : vector<8x256xf32>, i32 -> vector<8x256xf32>
    %1065 = arith.mulf %1064, %12 : vector<8x256xf32>
    %c168_649 = arith.constant 168 : index
    %c0_650 = arith.constant 0 : index
    %1066 = vector.load %arg8[%c168_649, %c0_650] : memref<216x256xf32, #tpu.memory_space<vmem>>, vector<8x256xf32>
    tpu.vector_store %arg8[%c168_649, %c0_650], %1065 {strides = array<i32>} : memref<216x256xf32, #tpu.memory_space<vmem>>, vector<8x256xf32>,
    %c176_651 = arith.constant 176 : index
    %c0_652 = arith.constant 0 : index
    %1067 = vector.load %arg8[%c176_651, %c0_652] : memref<216x256xf32, #tpu.memory_space<vmem>>, vector<8x256xf32>
    tpu.vector_store %arg8[%c176_651, %c0_652], %1054 {strides = array<i32>} : memref<216x256xf32, #tpu.memory_space<vmem>>, vector<8x256xf32>,
    %c255_i32_653 = arith.constant 255 : i32
    %1068 = tpu.dynamic_rotate %1054 by %c255_i32_653 dim 1 : vector<8x256xf32>, i32 -> vector<8x256xf32>
    %1069 = arith.mulf %1068, %15 : vector<8x256xf32>
    %c184_654 = arith.constant 184 : index
    %c0_655 = arith.constant 0 : index
    %1070 = vector.load %arg8[%c184_654, %c0_655] : memref<216x256xf32, #tpu.memory_space<vmem>>, vector<8x256xf32>
    tpu.vector_store %arg8[%c184_654, %c0_655], %1069 {strides = array<i32>} : memref<216x256xf32, #tpu.memory_space<vmem>>, vector<8x256xf32>,
    %c241_i32_656 = arith.constant 241 : i32
    %1071 = tpu.dynamic_rotate %1054 by %c241_i32_656 dim 1 : vector<8x256xf32>, i32 -> vector<8x256xf32>
    %1072 = arith.mulf %1071, %18 : vector<8x256xf32>
    %c192_657 = arith.constant 192 : index
    %c0_658 = arith.constant 0 : index
    %1073 = vector.load %arg8[%c192_657, %c0_658] : memref<216x256xf32, #tpu.memory_space<vmem>>, vector<8x256xf32>
    tpu.vector_store %arg8[%c192_657, %c0_658], %1072 {strides = array<i32>} : memref<216x256xf32, #tpu.memory_space<vmem>>, vector<8x256xf32>,
    %c240_i32_659 = arith.constant 240 : i32
    %1074 = tpu.dynamic_rotate %1054 by %c240_i32_659 dim 1 : vector<8x256xf32>, i32 -> vector<8x256xf32>
    %1075 = arith.mulf %1074, %21 : vector<8x256xf32>
    %c200_660 = arith.constant 200 : index
    %c0_661 = arith.constant 0 : index
    %1076 = vector.load %arg8[%c200_660, %c0_661] : memref<216x256xf32, #tpu.memory_space<vmem>>, vector<8x256xf32>
    tpu.vector_store %arg8[%c200_660, %c0_661], %1075 {strides = array<i32>} : memref<216x256xf32, #tpu.memory_space<vmem>>, vector<8x256xf32>,
    %c239_i32_662 = arith.constant 239 : i32
    %1077 = tpu.dynamic_rotate %1054 by %c239_i32_662 dim 1 : vector<8x256xf32>, i32 -> vector<8x256xf32>
    %1078 = arith.mulf %1077, %24 : vector<8x256xf32>
    %c208_663 = arith.constant 208 : index
    %c0_664 = arith.constant 0 : index
    %1079 = vector.load %arg8[%c208_663, %c0_664] : memref<216x256xf32, #tpu.memory_space<vmem>>, vector<8x256xf32>
    tpu.vector_store %arg8[%c208_663, %c0_664], %1078 {strides = array<i32>} : memref<216x256xf32, #tpu.memory_space<vmem>>, vector<8x256xf32>,
    %c0_665 = arith.constant 0 : index
    %c0_666 = arith.constant 0 : index
    %1080 = vector.load %arg8[%c0_665, %c0_666] : memref<216x256xf32, #tpu.memory_space<vmem>>, vector<216x256xf32>
    %c4_667 = arith.constant 4 : index
    %c0_668 = arith.constant 0 : index
    %c0_669 = arith.constant 0 : index
    %1081 = vector.load %arg4[%c4_667, %c0_668, %c0_669] : memref<6x8x216xf32, #tpu.memory_space<vmem>>, vector<1x8x216xf32>
    %1082 = vector.shape_cast %1081 : vector<1x8x216xf32> to vector<8x216xf32>
    %cst_670 = arith.constant dense<0.000000e+00> : vector<8x256xf32>
    %1083 = tpu.matmul %1082, %1080, %cst_670 {dimension_numbers = #tpu.dot_dimension_numbers<[1], [0], [0], [1], [0, 0, 1, 1], [], []>} : vector<8x216xf32>, vector<216x256xf32>, vector<8x256xf32> -> vector<8x256xf32>
    %cst_671 = arith.constant 5.000000e-01 : f32
    %1084 = vector.broadcast %cst_671 : f32 to vector<8x256xf32>
    %1085 = arith.mulf %1084, %1083 : vector<8x256xf32>
    %cst_672 = arith.constant 0.707106769 : f32
    %1086 = vector.broadcast %cst_672 : f32 to vector<8x256xf32>
    %1087 = arith.mulf %1083, %1086 : vector<8x256xf32>
    %1088 = math.absf %1087 : vector<8x256xf32>
    %cst_673 = arith.constant 0.327591091 : f32
    %1089 = vector.broadcast %cst_673 : f32 to vector<8x256xf32>
    %1090 = arith.mulf %1089, %1088 : vector<8x256xf32>
    %cst_674 = arith.constant 1.000000e+00 : f32
    %1091 = vector.broadcast %cst_674 : f32 to vector<8x256xf32>
    %1092 = arith.addf %1091, %1090 : vector<8x256xf32>
    %1093 = tpu.reciprocal %1092 {approx = true} : vector<8x256xf32> -> vector<8x256xf32>
    %1094 = arith.mulf %1092, %1093 : vector<8x256xf32>
    %cst_675 = arith.constant 2.000000e+00 : f32
    %1095 = vector.broadcast %cst_675 : f32 to vector<8x256xf32>
    %1096 = arith.subf %1095, %1094 : vector<8x256xf32>
    %1097 = arith.mulf %1093, %1096 : vector<8x256xf32>
    %cst_676 = arith.constant 1.06140542 : f32
    %1098 = vector.broadcast %cst_676 : f32 to vector<8x256xf32>
    %1099 = arith.mulf %1098, %1097 : vector<8x256xf32>
    %cst_677 = arith.constant -1.45315206 : f32
    %1100 = vector.broadcast %cst_677 : f32 to vector<8x256xf32>
    %1101 = arith.addf %1099, %1100 : vector<8x256xf32>
    %1102 = arith.mulf %1101, %1097 : vector<8x256xf32>
    %cst_678 = arith.constant 1.42141378 : f32
    %1103 = vector.broadcast %cst_678 : f32 to vector<8x256xf32>
    %1104 = arith.addf %1102, %1103 : vector<8x256xf32>
    %1105 = arith.mulf %1104, %1097 : vector<8x256xf32>
    %cst_679 = arith.constant -0.284496725 : f32
    %1106 = vector.broadcast %cst_679 : f32 to vector<8x256xf32>
    %1107 = arith.addf %1105, %1106 : vector<8x256xf32>
    %1108 = arith.mulf %1107, %1097 : vector<8x256xf32>
    %cst_680 = arith.constant 0.254829586 : f32
    %1109 = vector.broadcast %cst_680 : f32 to vector<8x256xf32>
    %1110 = arith.addf %1108, %1109 : vector<8x256xf32>
    %1111 = arith.mulf %1110, %1097 : vector<8x256xf32>
    %cst_681 = arith.constant 0.000000e+00 : f32
    %1112 = vector.broadcast %cst_681 : f32 to vector<8x256xf32>
    %1113 = arith.subf %1112, %1088 : vector<8x256xf32>
    %1114 = arith.mulf %1113, %1088 : vector<8x256xf32>
    %1115 = math.exp %1114 : vector<8x256xf32>
    %1116 = arith.mulf %1111, %1115 : vector<8x256xf32>
    %cst_682 = arith.constant 1.000000e+00 : f32
    %1117 = vector.broadcast %cst_682 : f32 to vector<8x256xf32>
    %1118 = arith.subf %1117, %1116 : vector<8x256xf32>
    %cst_683 = arith.constant 0.000000e+00 : f32
    %1119 = vector.broadcast %cst_683 : f32 to vector<8x256xf32>
    %1120 = arith.cmpf olt, %1087, %1119 : vector<8x256xf32>
    %cst_684 = arith.constant 0.000000e+00 : f32
    %1121 = vector.broadcast %cst_684 : f32 to vector<8x256xf32>
    %1122 = arith.subf %1121, %1118 : vector<8x256xf32>
    %1123 = arith.select %1120, %1122, %1118 : vector<8x256xi1>, vector<8x256xf32>
    %cst_685 = arith.constant 1.000000e+00 : f32
    %1124 = vector.broadcast %cst_685 : f32 to vector<8x256xf32>
    %1125 = arith.addf %1124, %1123 : vector<8x256xf32>
    %1126 = arith.mulf %1085, %1125 : vector<8x256xf32>
    %1127 = tpu.concatenate %910, %982, %1054, %1126 in 0 : vector<8x256xf32>, vector<8x256xf32>, vector<8x256xf32>, vector<8x256xf32> -> vector<32x256xf32>
    %c4_686 = arith.constant 4 : index
    %c0_687 = arith.constant 0 : index
    %c0_688 = arith.constant 0 : index
    %1128 = vector.load %arg5[%c4_686, %c0_687, %c0_688] : memref<6x8x32xf32, #tpu.memory_space<vmem>>, vector<1x8x32xf32>
    %1129 = vector.shape_cast %1128 : vector<1x8x32xf32> to vector<8x32xf32>
    %cst_689 = arith.constant dense<0.000000e+00> : vector<8x256xf32>
    %1130 = tpu.matmul %1129, %1127, %cst_689 {dimension_numbers = #tpu.dot_dimension_numbers<[1], [0], [0], [1], [0, 0, 1, 1], [], []>} : vector<8x32xf32>, vector<32x256xf32>, vector<8x256xf32> -> vector<8x256xf32>
    %1131 = arith.addf %910, %1130 : vector<8x256xf32>
    %c17_i32_690 = arith.constant 17 : i32
    %1132 = tpu.dynamic_rotate %1131 by %c17_i32_690 dim 1 : vector<8x256xf32>, i32 -> vector<8x256xf32>
    %1133 = arith.mulf %1132, %3 : vector<8x256xf32>
    %c0_691 = arith.constant 0 : index
    %c0_692 = arith.constant 0 : index
    %1134 = vector.load %arg8[%c0_691, %c0_692] : memref<216x256xf32, #tpu.memory_space<vmem>>, vector<8x256xf32>
    tpu.vector_store %arg8[%c0_691, %c0_692], %1133 {strides = array<i32>} : memref<216x256xf32, #tpu.memory_space<vmem>>, vector<8x256xf32>,
    %c16_i32_693 = arith.constant 16 : i32
    %1135 = tpu.dynamic_rotate %1131 by %c16_i32_693 dim 1 : vector<8x256xf32>, i32 -> vector<8x256xf32>
    %1136 = arith.mulf %1135, %6 : vector<8x256xf32>
    %c8_694 = arith.constant 8 : index
    %c0_695 = arith.constant 0 : index
    %1137 = vector.load %arg8[%c8_694, %c0_695] : memref<216x256xf32, #tpu.memory_space<vmem>>, vector<8x256xf32>
    tpu.vector_store %arg8[%c8_694, %c0_695], %1136 {strides = array<i32>} : memref<216x256xf32, #tpu.memory_space<vmem>>, vector<8x256xf32>,
    %c15_i32_696 = arith.constant 15 : i32
    %1138 = tpu.dynamic_rotate %1131 by %c15_i32_696 dim 1 : vector<8x256xf32>, i32 -> vector<8x256xf32>
    %1139 = arith.mulf %1138, %9 : vector<8x256xf32>
    %c16_697 = arith.constant 16 : index
    %c0_698 = arith.constant 0 : index
    %1140 = vector.load %arg8[%c16_697, %c0_698] : memref<216x256xf32, #tpu.memory_space<vmem>>, vector<8x256xf32>
    tpu.vector_store %arg8[%c16_697, %c0_698], %1139 {strides = array<i32>} : memref<216x256xf32, #tpu.memory_space<vmem>>, vector<8x256xf32>,
    %c1_i32_699 = arith.constant 1 : i32
    %1141 = tpu.dynamic_rotate %1131 by %c1_i32_699 dim 1 : vector<8x256xf32>, i32 -> vector<8x256xf32>
    %1142 = arith.mulf %1141, %12 : vector<8x256xf32>
    %c24_700 = arith.constant 24 : index
    %c0_701 = arith.constant 0 : index
    %1143 = vector.load %arg8[%c24_700, %c0_701] : memref<216x256xf32, #tpu.memory_space<vmem>>, vector<8x256xf32>
    tpu.vector_store %arg8[%c24_700, %c0_701], %1142 {strides = array<i32>} : memref<216x256xf32, #tpu.memory_space<vmem>>, vector<8x256xf32>,
    %c32_702 = arith.constant 32 : index
    %c0_703 = arith.constant 0 : index
    %1144 = vector.load %arg8[%c32_702, %c0_703] : memref<216x256xf32, #tpu.memory_space<vmem>>, vector<8x256xf32>
    tpu.vector_store %arg8[%c32_702, %c0_703], %1131 {strides = array<i32>} : memref<216x256xf32, #tpu.memory_space<vmem>>, vector<8x256xf32>,
    %c255_i32_704 = arith.constant 255 : i32
    %1145 = tpu.dynamic_rotate %1131 by %c255_i32_704 dim 1 : vector<8x256xf32>, i32 -> vector<8x256xf32>
    %1146 = arith.mulf %1145, %15 : vector<8x256xf32>
    %c40_705 = arith.constant 40 : index
    %c0_706 = arith.constant 0 : index
    %1147 = vector.load %arg8[%c40_705, %c0_706] : memref<216x256xf32, #tpu.memory_space<vmem>>, vector<8x256xf32>
    tpu.vector_store %arg8[%c40_705, %c0_706], %1146 {strides = array<i32>} : memref<216x256xf32, #tpu.memory_space<vmem>>, vector<8x256xf32>,
    %c241_i32_707 = arith.constant 241 : i32
    %1148 = tpu.dynamic_rotate %1131 by %c241_i32_707 dim 1 : vector<8x256xf32>, i32 -> vector<8x256xf32>
    %1149 = arith.mulf %1148, %18 : vector<8x256xf32>
    %c48_708 = arith.constant 48 : index
    %c0_709 = arith.constant 0 : index
    %1150 = vector.load %arg8[%c48_708, %c0_709] : memref<216x256xf32, #tpu.memory_space<vmem>>, vector<8x256xf32>
    tpu.vector_store %arg8[%c48_708, %c0_709], %1149 {strides = array<i32>} : memref<216x256xf32, #tpu.memory_space<vmem>>, vector<8x256xf32>,
    %c240_i32_710 = arith.constant 240 : i32
    %1151 = tpu.dynamic_rotate %1131 by %c240_i32_710 dim 1 : vector<8x256xf32>, i32 -> vector<8x256xf32>
    %1152 = arith.mulf %1151, %21 : vector<8x256xf32>
    %c56_711 = arith.constant 56 : index
    %c0_712 = arith.constant 0 : index
    %1153 = vector.load %arg8[%c56_711, %c0_712] : memref<216x256xf32, #tpu.memory_space<vmem>>, vector<8x256xf32>
    tpu.vector_store %arg8[%c56_711, %c0_712], %1152 {strides = array<i32>} : memref<216x256xf32, #tpu.memory_space<vmem>>, vector<8x256xf32>,
    %c239_i32_713 = arith.constant 239 : i32
    %1154 = tpu.dynamic_rotate %1131 by %c239_i32_713 dim 1 : vector<8x256xf32>, i32 -> vector<8x256xf32>
    %1155 = arith.mulf %1154, %24 : vector<8x256xf32>
    %c64_714 = arith.constant 64 : index
    %c0_715 = arith.constant 0 : index
    %1156 = vector.load %arg8[%c64_714, %c0_715] : memref<216x256xf32, #tpu.memory_space<vmem>>, vector<8x256xf32>
    tpu.vector_store %arg8[%c64_714, %c0_715], %1155 {strides = array<i32>} : memref<216x256xf32, #tpu.memory_space<vmem>>, vector<8x256xf32>,
    %c0_716 = arith.constant 0 : index
    %c0_717 = arith.constant 0 : index
    %1157 = vector.load %arg8[%c0_716, %c0_717] : memref<216x256xf32, #tpu.memory_space<vmem>>, vector<72x256xf32>
    %c5 = arith.constant 5 : index
    %c0_718 = arith.constant 0 : index
    %c0_719 = arith.constant 0 : index
    %1158 = vector.load %arg2[%c5, %c0_718, %c0_719] : memref<6x8x72xf32, #tpu.memory_space<vmem>>, vector<1x8x72xf32>
    %1159 = vector.shape_cast %1158 : vector<1x8x72xf32> to vector<8x72xf32>
    %cst_720 = arith.constant dense<0.000000e+00> : vector<8x256xf32>
    %1160 = tpu.matmul %1159, %1157, %cst_720 {dimension_numbers = #tpu.dot_dimension_numbers<[1], [0], [0], [1], [0, 0, 1, 1], [], []>} : vector<8x72xf32>, vector<72x256xf32>, vector<8x256xf32> -> vector<8x256xf32>
    %cst_721 = arith.constant 5.000000e-01 : f32
    %1161 = vector.broadcast %cst_721 : f32 to vector<8x256xf32>
    %1162 = arith.mulf %1161, %1160 : vector<8x256xf32>
    %cst_722 = arith.constant 0.707106769 : f32
    %1163 = vector.broadcast %cst_722 : f32 to vector<8x256xf32>
    %1164 = arith.mulf %1160, %1163 : vector<8x256xf32>
    %1165 = math.absf %1164 : vector<8x256xf32>
    %cst_723 = arith.constant 0.327591091 : f32
    %1166 = vector.broadcast %cst_723 : f32 to vector<8x256xf32>
    %1167 = arith.mulf %1166, %1165 : vector<8x256xf32>
    %cst_724 = arith.constant 1.000000e+00 : f32
    %1168 = vector.broadcast %cst_724 : f32 to vector<8x256xf32>
    %1169 = arith.addf %1168, %1167 : vector<8x256xf32>
    %1170 = tpu.reciprocal %1169 {approx = true} : vector<8x256xf32> -> vector<8x256xf32>
    %1171 = arith.mulf %1169, %1170 : vector<8x256xf32>
    %cst_725 = arith.constant 2.000000e+00 : f32
    %1172 = vector.broadcast %cst_725 : f32 to vector<8x256xf32>
    %1173 = arith.subf %1172, %1171 : vector<8x256xf32>
    %1174 = arith.mulf %1170, %1173 : vector<8x256xf32>
    %cst_726 = arith.constant 1.06140542 : f32
    %1175 = vector.broadcast %cst_726 : f32 to vector<8x256xf32>
    %1176 = arith.mulf %1175, %1174 : vector<8x256xf32>
    %cst_727 = arith.constant -1.45315206 : f32
    %1177 = vector.broadcast %cst_727 : f32 to vector<8x256xf32>
    %1178 = arith.addf %1176, %1177 : vector<8x256xf32>
    %1179 = arith.mulf %1178, %1174 : vector<8x256xf32>
    %cst_728 = arith.constant 1.42141378 : f32
    %1180 = vector.broadcast %cst_728 : f32 to vector<8x256xf32>
    %1181 = arith.addf %1179, %1180 : vector<8x256xf32>
    %1182 = arith.mulf %1181, %1174 : vector<8x256xf32>
    %cst_729 = arith.constant -0.284496725 : f32
    %1183 = vector.broadcast %cst_729 : f32 to vector<8x256xf32>
    %1184 = arith.addf %1182, %1183 : vector<8x256xf32>
    %1185 = arith.mulf %1184, %1174 : vector<8x256xf32>
    %cst_730 = arith.constant 0.254829586 : f32
    %1186 = vector.broadcast %cst_730 : f32 to vector<8x256xf32>
    %1187 = arith.addf %1185, %1186 : vector<8x256xf32>
    %1188 = arith.mulf %1187, %1174 : vector<8x256xf32>
    %cst_731 = arith.constant 0.000000e+00 : f32
    %1189 = vector.broadcast %cst_731 : f32 to vector<8x256xf32>
    %1190 = arith.subf %1189, %1165 : vector<8x256xf32>
    %1191 = arith.mulf %1190, %1165 : vector<8x256xf32>
    %1192 = math.exp %1191 : vector<8x256xf32>
    %1193 = arith.mulf %1188, %1192 : vector<8x256xf32>
    %cst_732 = arith.constant 1.000000e+00 : f32
    %1194 = vector.broadcast %cst_732 : f32 to vector<8x256xf32>
    %1195 = arith.subf %1194, %1193 : vector<8x256xf32>
    %cst_733 = arith.constant 0.000000e+00 : f32
    %1196 = vector.broadcast %cst_733 : f32 to vector<8x256xf32>
    %1197 = arith.cmpf olt, %1164, %1196 : vector<8x256xf32>
    %cst_734 = arith.constant 0.000000e+00 : f32
    %1198 = vector.broadcast %cst_734 : f32 to vector<8x256xf32>
    %1199 = arith.subf %1198, %1195 : vector<8x256xf32>
    %1200 = arith.select %1197, %1199, %1195 : vector<8x256xi1>, vector<8x256xf32>
    %cst_735 = arith.constant 1.000000e+00 : f32
    %1201 = vector.broadcast %cst_735 : f32 to vector<8x256xf32>
    %1202 = arith.addf %1201, %1200 : vector<8x256xf32>
    %1203 = arith.mulf %1162, %1202 : vector<8x256xf32>
    %c17_i32_736 = arith.constant 17 : i32
    %1204 = tpu.dynamic_rotate %1203 by %c17_i32_736 dim 1 : vector<8x256xf32>, i32 -> vector<8x256xf32>
    %1205 = arith.mulf %1204, %3 : vector<8x256xf32>
    %c72_737 = arith.constant 72 : index
    %c0_738 = arith.constant 0 : index
    %1206 = vector.load %arg8[%c72_737, %c0_738] : memref<216x256xf32, #tpu.memory_space<vmem>>, vector<8x256xf32>
    tpu.vector_store %arg8[%c72_737, %c0_738], %1205 {strides = array<i32>} : memref<216x256xf32, #tpu.memory_space<vmem>>, vector<8x256xf32>,
    %c16_i32_739 = arith.constant 16 : i32
    %1207 = tpu.dynamic_rotate %1203 by %c16_i32_739 dim 1 : vector<8x256xf32>, i32 -> vector<8x256xf32>
    %1208 = arith.mulf %1207, %6 : vector<8x256xf32>
    %c80_740 = arith.constant 80 : index
    %c0_741 = arith.constant 0 : index
    %1209 = vector.load %arg8[%c80_740, %c0_741] : memref<216x256xf32, #tpu.memory_space<vmem>>, vector<8x256xf32>
    tpu.vector_store %arg8[%c80_740, %c0_741], %1208 {strides = array<i32>} : memref<216x256xf32, #tpu.memory_space<vmem>>, vector<8x256xf32>,
    %c15_i32_742 = arith.constant 15 : i32
    %1210 = tpu.dynamic_rotate %1203 by %c15_i32_742 dim 1 : vector<8x256xf32>, i32 -> vector<8x256xf32>
    %1211 = arith.mulf %1210, %9 : vector<8x256xf32>
    %c88_743 = arith.constant 88 : index
    %c0_744 = arith.constant 0 : index
    %1212 = vector.load %arg8[%c88_743, %c0_744] : memref<216x256xf32, #tpu.memory_space<vmem>>, vector<8x256xf32>
    tpu.vector_store %arg8[%c88_743, %c0_744], %1211 {strides = array<i32>} : memref<216x256xf32, #tpu.memory_space<vmem>>, vector<8x256xf32>,
    %c1_i32_745 = arith.constant 1 : i32
    %1213 = tpu.dynamic_rotate %1203 by %c1_i32_745 dim 1 : vector<8x256xf32>, i32 -> vector<8x256xf32>
    %1214 = arith.mulf %1213, %12 : vector<8x256xf32>
    %c96_746 = arith.constant 96 : index
    %c0_747 = arith.constant 0 : index
    %1215 = vector.load %arg8[%c96_746, %c0_747] : memref<216x256xf32, #tpu.memory_space<vmem>>, vector<8x256xf32>
    tpu.vector_store %arg8[%c96_746, %c0_747], %1214 {strides = array<i32>} : memref<216x256xf32, #tpu.memory_space<vmem>>, vector<8x256xf32>,
    %c104_748 = arith.constant 104 : index
    %c0_749 = arith.constant 0 : index
    %1216 = vector.load %arg8[%c104_748, %c0_749] : memref<216x256xf32, #tpu.memory_space<vmem>>, vector<8x256xf32>
    tpu.vector_store %arg8[%c104_748, %c0_749], %1203 {strides = array<i32>} : memref<216x256xf32, #tpu.memory_space<vmem>>, vector<8x256xf32>,
    %c255_i32_750 = arith.constant 255 : i32
    %1217 = tpu.dynamic_rotate %1203 by %c255_i32_750 dim 1 : vector<8x256xf32>, i32 -> vector<8x256xf32>
    %1218 = arith.mulf %1217, %15 : vector<8x256xf32>
    %c112_751 = arith.constant 112 : index
    %c0_752 = arith.constant 0 : index
    %1219 = vector.load %arg8[%c112_751, %c0_752] : memref<216x256xf32, #tpu.memory_space<vmem>>, vector<8x256xf32>
    tpu.vector_store %arg8[%c112_751, %c0_752], %1218 {strides = array<i32>} : memref<216x256xf32, #tpu.memory_space<vmem>>, vector<8x256xf32>,
    %c241_i32_753 = arith.constant 241 : i32
    %1220 = tpu.dynamic_rotate %1203 by %c241_i32_753 dim 1 : vector<8x256xf32>, i32 -> vector<8x256xf32>
    %1221 = arith.mulf %1220, %18 : vector<8x256xf32>
    %c120_754 = arith.constant 120 : index
    %c0_755 = arith.constant 0 : index
    %1222 = vector.load %arg8[%c120_754, %c0_755] : memref<216x256xf32, #tpu.memory_space<vmem>>, vector<8x256xf32>
    tpu.vector_store %arg8[%c120_754, %c0_755], %1221 {strides = array<i32>} : memref<216x256xf32, #tpu.memory_space<vmem>>, vector<8x256xf32>,
    %c240_i32_756 = arith.constant 240 : i32
    %1223 = tpu.dynamic_rotate %1203 by %c240_i32_756 dim 1 : vector<8x256xf32>, i32 -> vector<8x256xf32>
    %1224 = arith.mulf %1223, %21 : vector<8x256xf32>
    %c128_757 = arith.constant 128 : index
    %c0_758 = arith.constant 0 : index
    %1225 = vector.load %arg8[%c128_757, %c0_758] : memref<216x256xf32, #tpu.memory_space<vmem>>, vector<8x256xf32>
    tpu.vector_store %arg8[%c128_757, %c0_758], %1224 {strides = array<i32>} : memref<216x256xf32, #tpu.memory_space<vmem>>, vector<8x256xf32>,
    %c239_i32_759 = arith.constant 239 : i32
    %1226 = tpu.dynamic_rotate %1203 by %c239_i32_759 dim 1 : vector<8x256xf32>, i32 -> vector<8x256xf32>
    %1227 = arith.mulf %1226, %24 : vector<8x256xf32>
    %c136_760 = arith.constant 136 : index
    %c0_761 = arith.constant 0 : index
    %1228 = vector.load %arg8[%c136_760, %c0_761] : memref<216x256xf32, #tpu.memory_space<vmem>>, vector<8x256xf32>
    tpu.vector_store %arg8[%c136_760, %c0_761], %1227 {strides = array<i32>} : memref<216x256xf32, #tpu.memory_space<vmem>>, vector<8x256xf32>,
    %c0_762 = arith.constant 0 : index
    %c0_763 = arith.constant 0 : index
    %1229 = vector.load %arg8[%c0_762, %c0_763] : memref<216x256xf32, #tpu.memory_space<vmem>>, vector<144x256xf32>
    %c5_764 = arith.constant 5 : index
    %c0_765 = arith.constant 0 : index
    %c0_766 = arith.constant 0 : index
    %1230 = vector.load %arg3[%c5_764, %c0_765, %c0_766] : memref<6x8x144xf32, #tpu.memory_space<vmem>>, vector<1x8x144xf32>
    %1231 = vector.shape_cast %1230 : vector<1x8x144xf32> to vector<8x144xf32>
    %cst_767 = arith.constant dense<0.000000e+00> : vector<8x256xf32>
    %1232 = tpu.matmul %1231, %1229, %cst_767 {dimension_numbers = #tpu.dot_dimension_numbers<[1], [0], [0], [1], [0, 0, 1, 1], [], []>} : vector<8x144xf32>, vector<144x256xf32>, vector<8x256xf32> -> vector<8x256xf32>
    %cst_768 = arith.constant 5.000000e-01 : f32
    %1233 = vector.broadcast %cst_768 : f32 to vector<8x256xf32>
    %1234 = arith.mulf %1233, %1232 : vector<8x256xf32>
    %cst_769 = arith.constant 0.707106769 : f32
    %1235 = vector.broadcast %cst_769 : f32 to vector<8x256xf32>
    %1236 = arith.mulf %1232, %1235 : vector<8x256xf32>
    %1237 = math.absf %1236 : vector<8x256xf32>
    %cst_770 = arith.constant 0.327591091 : f32
    %1238 = vector.broadcast %cst_770 : f32 to vector<8x256xf32>
    %1239 = arith.mulf %1238, %1237 : vector<8x256xf32>
    %cst_771 = arith.constant 1.000000e+00 : f32
    %1240 = vector.broadcast %cst_771 : f32 to vector<8x256xf32>
    %1241 = arith.addf %1240, %1239 : vector<8x256xf32>
    %1242 = tpu.reciprocal %1241 {approx = true} : vector<8x256xf32> -> vector<8x256xf32>
    %1243 = arith.mulf %1241, %1242 : vector<8x256xf32>
    %cst_772 = arith.constant 2.000000e+00 : f32
    %1244 = vector.broadcast %cst_772 : f32 to vector<8x256xf32>
    %1245 = arith.subf %1244, %1243 : vector<8x256xf32>
    %1246 = arith.mulf %1242, %1245 : vector<8x256xf32>
    %cst_773 = arith.constant 1.06140542 : f32
    %1247 = vector.broadcast %cst_773 : f32 to vector<8x256xf32>
    %1248 = arith.mulf %1247, %1246 : vector<8x256xf32>
    %cst_774 = arith.constant -1.45315206 : f32
    %1249 = vector.broadcast %cst_774 : f32 to vector<8x256xf32>
    %1250 = arith.addf %1248, %1249 : vector<8x256xf32>
    %1251 = arith.mulf %1250, %1246 : vector<8x256xf32>
    %cst_775 = arith.constant 1.42141378 : f32
    %1252 = vector.broadcast %cst_775 : f32 to vector<8x256xf32>
    %1253 = arith.addf %1251, %1252 : vector<8x256xf32>
    %1254 = arith.mulf %1253, %1246 : vector<8x256xf32>
    %cst_776 = arith.constant -0.284496725 : f32
    %1255 = vector.broadcast %cst_776 : f32 to vector<8x256xf32>
    %1256 = arith.addf %1254, %1255 : vector<8x256xf32>
    %1257 = arith.mulf %1256, %1246 : vector<8x256xf32>
    %cst_777 = arith.constant 0.254829586 : f32
    %1258 = vector.broadcast %cst_777 : f32 to vector<8x256xf32>
    %1259 = arith.addf %1257, %1258 : vector<8x256xf32>
    %1260 = arith.mulf %1259, %1246 : vector<8x256xf32>
    %cst_778 = arith.constant 0.000000e+00 : f32
    %1261 = vector.broadcast %cst_778 : f32 to vector<8x256xf32>
    %1262 = arith.subf %1261, %1237 : vector<8x256xf32>
    %1263 = arith.mulf %1262, %1237 : vector<8x256xf32>
    %1264 = math.exp %1263 : vector<8x256xf32>
    %1265 = arith.mulf %1260, %1264 : vector<8x256xf32>
    %cst_779 = arith.constant 1.000000e+00 : f32
    %1266 = vector.broadcast %cst_779 : f32 to vector<8x256xf32>
    %1267 = arith.subf %1266, %1265 : vector<8x256xf32>
    %cst_780 = arith.constant 0.000000e+00 : f32
    %1268 = vector.broadcast %cst_780 : f32 to vector<8x256xf32>
    %1269 = arith.cmpf olt, %1236, %1268 : vector<8x256xf32>
    %cst_781 = arith.constant 0.000000e+00 : f32
    %1270 = vector.broadcast %cst_781 : f32 to vector<8x256xf32>
    %1271 = arith.subf %1270, %1267 : vector<8x256xf32>
    %1272 = arith.select %1269, %1271, %1267 : vector<8x256xi1>, vector<8x256xf32>
    %cst_782 = arith.constant 1.000000e+00 : f32
    %1273 = vector.broadcast %cst_782 : f32 to vector<8x256xf32>
    %1274 = arith.addf %1273, %1272 : vector<8x256xf32>
    %1275 = arith.mulf %1234, %1274 : vector<8x256xf32>
    %c17_i32_783 = arith.constant 17 : i32
    %1276 = tpu.dynamic_rotate %1275 by %c17_i32_783 dim 1 : vector<8x256xf32>, i32 -> vector<8x256xf32>
    %1277 = arith.mulf %1276, %3 : vector<8x256xf32>
    %c144_784 = arith.constant 144 : index
    %c0_785 = arith.constant 0 : index
    %1278 = vector.load %arg8[%c144_784, %c0_785] : memref<216x256xf32, #tpu.memory_space<vmem>>, vector<8x256xf32>
    tpu.vector_store %arg8[%c144_784, %c0_785], %1277 {strides = array<i32>} : memref<216x256xf32, #tpu.memory_space<vmem>>, vector<8x256xf32>,
    %c16_i32_786 = arith.constant 16 : i32
    %1279 = tpu.dynamic_rotate %1275 by %c16_i32_786 dim 1 : vector<8x256xf32>, i32 -> vector<8x256xf32>
    %1280 = arith.mulf %1279, %6 : vector<8x256xf32>
    %c152_787 = arith.constant 152 : index
    %c0_788 = arith.constant 0 : index
    %1281 = vector.load %arg8[%c152_787, %c0_788] : memref<216x256xf32, #tpu.memory_space<vmem>>, vector<8x256xf32>
    tpu.vector_store %arg8[%c152_787, %c0_788], %1280 {strides = array<i32>} : memref<216x256xf32, #tpu.memory_space<vmem>>, vector<8x256xf32>,
    %c15_i32_789 = arith.constant 15 : i32
    %1282 = tpu.dynamic_rotate %1275 by %c15_i32_789 dim 1 : vector<8x256xf32>, i32 -> vector<8x256xf32>
    %1283 = arith.mulf %1282, %9 : vector<8x256xf32>
    %c160_790 = arith.constant 160 : index
    %c0_791 = arith.constant 0 : index
    %1284 = vector.load %arg8[%c160_790, %c0_791] : memref<216x256xf32, #tpu.memory_space<vmem>>, vector<8x256xf32>
    tpu.vector_store %arg8[%c160_790, %c0_791], %1283 {strides = array<i32>} : memref<216x256xf32, #tpu.memory_space<vmem>>, vector<8x256xf32>,
    %c1_i32_792 = arith.constant 1 : i32
    %1285 = tpu.dynamic_rotate %1275 by %c1_i32_792 dim 1 : vector<8x256xf32>, i32 -> vector<8x256xf32>
    %1286 = arith.mulf %1285, %12 : vector<8x256xf32>
    %c168_793 = arith.constant 168 : index
    %c0_794 = arith.constant 0 : index
    %1287 = vector.load %arg8[%c168_793, %c0_794] : memref<216x256xf32, #tpu.memory_space<vmem>>, vector<8x256xf32>
    tpu.vector_store %arg8[%c168_793, %c0_794], %1286 {strides = array<i32>} : memref<216x256xf32, #tpu.memory_space<vmem>>, vector<8x256xf32>,
    %c176_795 = arith.constant 176 : index
    %c0_796 = arith.constant 0 : index
    %1288 = vector.load %arg8[%c176_795, %c0_796] : memref<216x256xf32, #tpu.memory_space<vmem>>, vector<8x256xf32>
    tpu.vector_store %arg8[%c176_795, %c0_796], %1275 {strides = array<i32>} : memref<216x256xf32, #tpu.memory_space<vmem>>, vector<8x256xf32>,
    %c255_i32_797 = arith.constant 255 : i32
    %1289 = tpu.dynamic_rotate %1275 by %c255_i32_797 dim 1 : vector<8x256xf32>, i32 -> vector<8x256xf32>
    %1290 = arith.mulf %1289, %15 : vector<8x256xf32>
    %c184_798 = arith.constant 184 : index
    %c0_799 = arith.constant 0 : index
    %1291 = vector.load %arg8[%c184_798, %c0_799] : memref<216x256xf32, #tpu.memory_space<vmem>>, vector<8x256xf32>
    tpu.vector_store %arg8[%c184_798, %c0_799], %1290 {strides = array<i32>} : memref<216x256xf32, #tpu.memory_space<vmem>>, vector<8x256xf32>,
    %c241_i32_800 = arith.constant 241 : i32
    %1292 = tpu.dynamic_rotate %1275 by %c241_i32_800 dim 1 : vector<8x256xf32>, i32 -> vector<8x256xf32>
    %1293 = arith.mulf %1292, %18 : vector<8x256xf32>
    %c192_801 = arith.constant 192 : index
    %c0_802 = arith.constant 0 : index
    %1294 = vector.load %arg8[%c192_801, %c0_802] : memref<216x256xf32, #tpu.memory_space<vmem>>, vector<8x256xf32>
    tpu.vector_store %arg8[%c192_801, %c0_802], %1293 {strides = array<i32>} : memref<216x256xf32, #tpu.memory_space<vmem>>, vector<8x256xf32>,
    %c240_i32_803 = arith.constant 240 : i32
    %1295 = tpu.dynamic_rotate %1275 by %c240_i32_803 dim 1 : vector<8x256xf32>, i32 -> vector<8x256xf32>
    %1296 = arith.mulf %1295, %21 : vector<8x256xf32>
    %c200_804 = arith.constant 200 : index
    %c0_805 = arith.constant 0 : index
    %1297 = vector.load %arg8[%c200_804, %c0_805] : memref<216x256xf32, #tpu.memory_space<vmem>>, vector<8x256xf32>
    tpu.vector_store %arg8[%c200_804, %c0_805], %1296 {strides = array<i32>} : memref<216x256xf32, #tpu.memory_space<vmem>>, vector<8x256xf32>,
    %c239_i32_806 = arith.constant 239 : i32
    %1298 = tpu.dynamic_rotate %1275 by %c239_i32_806 dim 1 : vector<8x256xf32>, i32 -> vector<8x256xf32>
    %1299 = arith.mulf %1298, %24 : vector<8x256xf32>
    %c208_807 = arith.constant 208 : index
    %c0_808 = arith.constant 0 : index
    %1300 = vector.load %arg8[%c208_807, %c0_808] : memref<216x256xf32, #tpu.memory_space<vmem>>, vector<8x256xf32>
    tpu.vector_store %arg8[%c208_807, %c0_808], %1299 {strides = array<i32>} : memref<216x256xf32, #tpu.memory_space<vmem>>, vector<8x256xf32>,
    %c0_809 = arith.constant 0 : index
    %c0_810 = arith.constant 0 : index
    %1301 = vector.load %arg8[%c0_809, %c0_810] : memref<216x256xf32, #tpu.memory_space<vmem>>, vector<216x256xf32>
    %c5_811 = arith.constant 5 : index
    %c0_812 = arith.constant 0 : index
    %c0_813 = arith.constant 0 : index
    %1302 = vector.load %arg4[%c5_811, %c0_812, %c0_813] : memref<6x8x216xf32, #tpu.memory_space<vmem>>, vector<1x8x216xf32>
    %1303 = vector.shape_cast %1302 : vector<1x8x216xf32> to vector<8x216xf32>
    %cst_814 = arith.constant dense<0.000000e+00> : vector<8x256xf32>
    %1304 = tpu.matmul %1303, %1301, %cst_814 {dimension_numbers = #tpu.dot_dimension_numbers<[1], [0], [0], [1], [0, 0, 1, 1], [], []>} : vector<8x216xf32>, vector<216x256xf32>, vector<8x256xf32> -> vector<8x256xf32>
    %cst_815 = arith.constant 5.000000e-01 : f32
    %1305 = vector.broadcast %cst_815 : f32 to vector<8x256xf32>
    %1306 = arith.mulf %1305, %1304 : vector<8x256xf32>
    %cst_816 = arith.constant 0.707106769 : f32
    %1307 = vector.broadcast %cst_816 : f32 to vector<8x256xf32>
    %1308 = arith.mulf %1304, %1307 : vector<8x256xf32>
    %1309 = math.absf %1308 : vector<8x256xf32>
    %cst_817 = arith.constant 0.327591091 : f32
    %1310 = vector.broadcast %cst_817 : f32 to vector<8x256xf32>
    %1311 = arith.mulf %1310, %1309 : vector<8x256xf32>
    %cst_818 = arith.constant 1.000000e+00 : f32
    %1312 = vector.broadcast %cst_818 : f32 to vector<8x256xf32>
    %1313 = arith.addf %1312, %1311 : vector<8x256xf32>
    %1314 = tpu.reciprocal %1313 {approx = true} : vector<8x256xf32> -> vector<8x256xf32>
    %1315 = arith.mulf %1313, %1314 : vector<8x256xf32>
    %cst_819 = arith.constant 2.000000e+00 : f32
    %1316 = vector.broadcast %cst_819 : f32 to vector<8x256xf32>
    %1317 = arith.subf %1316, %1315 : vector<8x256xf32>
    %1318 = arith.mulf %1314, %1317 : vector<8x256xf32>
    %cst_820 = arith.constant 1.06140542 : f32
    %1319 = vector.broadcast %cst_820 : f32 to vector<8x256xf32>
    %1320 = arith.mulf %1319, %1318 : vector<8x256xf32>
    %cst_821 = arith.constant -1.45315206 : f32
    %1321 = vector.broadcast %cst_821 : f32 to vector<8x256xf32>
    %1322 = arith.addf %1320, %1321 : vector<8x256xf32>
    %1323 = arith.mulf %1322, %1318 : vector<8x256xf32>
    %cst_822 = arith.constant 1.42141378 : f32
    %1324 = vector.broadcast %cst_822 : f32 to vector<8x256xf32>
    %1325 = arith.addf %1323, %1324 : vector<8x256xf32>
    %1326 = arith.mulf %1325, %1318 : vector<8x256xf32>
    %cst_823 = arith.constant -0.284496725 : f32
    %1327 = vector.broadcast %cst_823 : f32 to vector<8x256xf32>
    %1328 = arith.addf %1326, %1327 : vector<8x256xf32>
    %1329 = arith.mulf %1328, %1318 : vector<8x256xf32>
    %cst_824 = arith.constant 0.254829586 : f32
    %1330 = vector.broadcast %cst_824 : f32 to vector<8x256xf32>
    %1331 = arith.addf %1329, %1330 : vector<8x256xf32>
    %1332 = arith.mulf %1331, %1318 : vector<8x256xf32>
    %cst_825 = arith.constant 0.000000e+00 : f32
    %1333 = vector.broadcast %cst_825 : f32 to vector<8x256xf32>
    %1334 = arith.subf %1333, %1309 : vector<8x256xf32>
    %1335 = arith.mulf %1334, %1309 : vector<8x256xf32>
    %1336 = math.exp %1335 : vector<8x256xf32>
    %1337 = arith.mulf %1332, %1336 : vector<8x256xf32>
    %cst_826 = arith.constant 1.000000e+00 : f32
    %1338 = vector.broadcast %cst_826 : f32 to vector<8x256xf32>
    %1339 = arith.subf %1338, %1337 : vector<8x256xf32>
    %cst_827 = arith.constant 0.000000e+00 : f32
    %1340 = vector.broadcast %cst_827 : f32 to vector<8x256xf32>
    %1341 = arith.cmpf olt, %1308, %1340 : vector<8x256xf32>
    %cst_828 = arith.constant 0.000000e+00 : f32
    %1342 = vector.broadcast %cst_828 : f32 to vector<8x256xf32>
    %1343 = arith.subf %1342, %1339 : vector<8x256xf32>
    %1344 = arith.select %1341, %1343, %1339 : vector<8x256xi1>, vector<8x256xf32>
    %cst_829 = arith.constant 1.000000e+00 : f32
    %1345 = vector.broadcast %cst_829 : f32 to vector<8x256xf32>
    %1346 = arith.addf %1345, %1344 : vector<8x256xf32>
    %1347 = arith.mulf %1306, %1346 : vector<8x256xf32>
    %1348 = tpu.concatenate %1131, %1203, %1275, %1347 in 0 : vector<8x256xf32>, vector<8x256xf32>, vector<8x256xf32>, vector<8x256xf32> -> vector<32x256xf32>
    %c5_830 = arith.constant 5 : index
    %c0_831 = arith.constant 0 : index
    %c0_832 = arith.constant 0 : index
    %1349 = vector.load %arg5[%c5_830, %c0_831, %c0_832] : memref<6x8x32xf32, #tpu.memory_space<vmem>>, vector<1x8x32xf32>
    %1350 = vector.shape_cast %1349 : vector<1x8x32xf32> to vector<8x32xf32>
    %cst_833 = arith.constant dense<0.000000e+00> : vector<8x256xf32>
    %1351 = tpu.matmul %1350, %1348, %cst_833 {dimension_numbers = #tpu.dot_dimension_numbers<[1], [0], [0], [1], [0, 0, 1, 1], [], []>} : vector<8x32xf32>, vector<32x256xf32>, vector<8x256xf32> -> vector<8x256xf32>
    %1352 = arith.addf %1131, %1351 : vector<8x256xf32>
    %c0_834 = arith.constant 0 : index
    %c0_835 = arith.constant 0 : index
    %c0_836 = arith.constant 0 : index
    %1353 = vector.load %arg7[%c0_834, %c0_835, %c0_836] : memref<1x8x256xf32, #tpu.memory_space<vmem>>, vector<1x8x256xf32>
    %1354 = vector.shape_cast %1353 : vector<1x8x256xf32> to vector<8x256xf32>
    %1355 = vector.shape_cast %1352 : vector<8x256xf32> to vector<1x8x256xf32>
    tpu.vector_store %arg7[%c0_834, %c0_835, %c0_836], %1355 {strides = array<i32>} : memref<1x8x256xf32, #tpu.memory_space<vmem>>, vector<1x8x256xf32>,
    return
  }
  func.func @transform_0(%arg0: i32) -> (i32, i32, i32) {
    %c0_i32 = arith.constant 0 : i32
    %c0_i32_0 = arith.constant 0 : i32
    %c0_i32_1 = arith.constant 0 : i32
    return %arg0, %c0_i32, %c0_i32_0 : i32, i32, i32
  }
  func.func @transform_1(%arg0: i32) -> (i32, i32, i32) {
    %c0_i32 = arith.constant 0 : i32
    %c0_i32_0 = arith.constant 0 : i32
    %c0_i32_1 = arith.constant 0 : i32
    %c0_i32_2 = arith.constant 0 : i32
    return %c0_i32, %c0_i32_0, %c0_i32_1 : i32, i32, i32
  }
  func.func @transform_2(%arg0: i32) -> (i32, i32, i32) {
    %c0_i32 = arith.constant 0 : i32
    %c0_i32_0 = arith.constant 0 : i32
    %c0_i32_1 = arith.constant 0 : i32
    %c0_i32_2 = arith.constant 0 : i32
    return %c0_i32, %c0_i32_0, %c0_i32_1 : i32, i32, i32
  }
  func.func @transform_3(%arg0: i32) -> (i32, i32, i32) {
    %c0_i32 = arith.constant 0 : i32
    %c0_i32_0 = arith.constant 0 : i32
    %c0_i32_1 = arith.constant 0 : i32
    %c0_i32_2 = arith.constant 0 : i32
    return %c0_i32, %c0_i32_0, %c0_i32_1 : i32, i32, i32
  }
  func.func @transform_4(%arg0: i32) -> (i32, i32, i32) {
    %c0_i32 = arith.constant 0 : i32
    %c0_i32_0 = arith.constant 0 : i32
    %c0_i32_1 = arith.constant 0 : i32
    %c0_i32_2 = arith.constant 0 : i32
    return %c0_i32, %c0_i32_0, %c0_i32_1 : i32, i32, i32
  }
  func.func @transform_5(%arg0: i32) -> (i32, i32) {
    %c0_i32 = arith.constant 0 : i32
    %c0_i32_0 = arith.constant 0 : i32
    %c0_i32_1 = arith.constant 0 : i32
    return %c0_i32, %c0_i32_0 : i32, i32
  }
  func.func @transform_6(%arg0: i32) -> (i32, i32, i32) {
    %c0_i32 = arith.constant 0 : i32
    %c0_i32_0 = arith.constant 0 : i32
    %c0_i32_1 = arith.constant 0 : i32
    return %arg0, %c0_i32, %c0_i32_0 : i32, i32, i32
  }
}

</mosaic_0001>

<bundles_post_ra>
// kernel: eblock_forward.1
= control target key start
LH: loop header
LB: loop body
LE: loop exit
PB: predicated region body
PF: predicated region fallthrough
CT: control target
= control target key end

     0   :  { %11 = vsyncpa [#allocation4], 0  ;;  %s8286_s0 = inlined_call_operand.vmem [shape: f32[2,8,256], index: 0, kind: input, shape index: {}]   ;;  %s8287_s1 = inlined_call_operand.hbm [shape: f32[6,8,72], index: 1, kind: input, shape index: {}]   ;;  %s8288_s2 = inlined_call_operand.vmem [shape: f32[6,8,144], index: 2, kind: input, shape index: {}]   ;;  %s8289_s3 = inlined_call_operand.vmem [shape: f32[6,8,216], index: 3, kind: input, shape index: {}]   ;;  %s8290_s4 = inlined_call_operand.hbm [shape: f32[6,8,32], index: 4, kind: input, shape index: {}]   ;;  %s8291_s5 = inlined_call_operand.hbm [shape: f32[9,256], index: 5, kind: input, shape index: {}]   ;;  %s8292_s6 = inlined_call_operand.vmem [shape: f32[2,8,256], index: 6, kind: output, shape index: {}]  }
   0x1   :  { %12 = vsyncpa [#allocation6], 0  ;;  %s5626_s21 = smov 0  }
   0x2 LB: > { %s5632_s22 = sadd.s32 4294967295, %s5574_s21   ;;  %p5176_p0 = scmp.ge.s32.totalorder %s5574_s21, 1  ;;  %s5574_s21 = sphi %s5626_s21, %s18_s21  }
   0x3   : > { %p180_p1 = scmp.lt.s32.totalorder %s5574_s21, 3  ;;  %p5283_p2 = scmp.eq.s32.totalorder %s5632_s22, 0 }
   0x4   : > { %s211_s25 = sshll.u32 %s8290_s4, 4  ;;  %s191_s29 = sshll.u32 %s8287_s1, 4  ;;  %s212_s25 = int_to_ptr.hbm [resolvable:$true] %s211_s25  ;;  %s192_s29 = int_to_ptr.hbm [resolvable:$true] %s191_s29 }
   0x5   : > { %p5640_p3 = pnand %p5176_p0, %p180_p1  ;;  %s5576_s30 = smov [#allocation5]  }
   0x6   : > { %s213_s7 = sshll.u32 %s5576_s30, 4  ;;  %s5577_s9 = smov [#allocation3]   ;;  %s214_s7 = int_to_ptr.vmem [resolvable:$true] %s213_s7 }
   0x7   : > { %p5273_p4 = pneg %p5640_p3  ;;  %s193_s10 = sshll.u32 %s5577_s9, 4  ;;  %s194_s10 = int_to_ptr.vmem [resolvable:$true] %s193_s10 }
   0x8   : > { %s225_s13 = sshll.u32 %s8291_s5, 4  ;;  %s5578_s14 = smov 128   ;;  %s226_s13 = int_to_ptr.hbm [resolvable:$true] %s225_s13 }
   0x9   : > { %p5651_p5 = pnand %p5283_p2, %p5273_p4  ;;  %s5579_s15 = smov 8  }
   0xa   : > { %s5580_s16 = smov [#allocation7]   ;;  %s5581_s18 = smov 256  }
   0xb   : > { %5279 = dma.hbm_to_vmem [thread:$0]  (!%p5651_p5), %s212_s25, 768, %s214_s7, [#allocation6], %s5578_s14, %s5578_s14, %s5579_s15  }
   0xc   : > { %5276 = dma.hbm_to_vmem [thread:$0]  (!%p5651_p5), %s192_s29, 768, %s194_s10, [#allocation4], %s5578_s14, %s5578_s14, %s5579_s15  }
   0xd   : > { %s227_s17 = sshll.u32 %s5580_s16, 4  ;;  %s5582_s19 = smov 16   ;;  %s228_s17 = int_to_ptr.vmem [resolvable:$true] %s227_s17 }
   0xe   : > { %5282 = dma.hbm_to_vmem [thread:$0]  (!%p5651_p5), %s226_s13, 512, %s228_s17, [#allocation6], %s5581_s18, %s5581_s18, %s5582_s19  }
   0xf   : > { %251 = sbr.rel (%p5640_p3) target bundleno = 6988 (0x1b4c), region = 44 }
  0x14   : > { %5565 = dma.done.wait (%p5283_p2), [#allocation4], 768  }
  0x15   : > { %5567 = vsyncadd (%p5283_p2), [#allocation4], 4294966528 }
  0x16   : > { %5569 = dma.done.wait (%p5283_p2), [#allocation6], 1280  }
  0x17   : > { %5571 = vsyncadd (%p5283_p2), [#allocation6], 4294966016  ;;  %p292_p6 = scmp.lt.s32.totalorder %s5632_s22, 1  ;;  %s5583_s26 = smov 112   ;;  %v328_v3 = vlaneseq  ;;  %v5726_v8 = vld [vmem:[#allocation7] sm:$0xff]  ;;  %v5728_v9 = vld [vmem:[#allocation7 + $0x8] sm:$0xff] }
  0x18   : > { %s5584_s27 = smov 111   ;;  %s5585_s28 = smov 113   ;;  %v5732_v10 = vld [vmem:[#allocation7 + $0x10] ss:$0 sm:$0xff]  ;;  %v5734_v11 = vld [vmem:[#allocation7 + $0x18] ss:$0 sm:$0xff] }
  0x19   : > { %s8320_s22 = smov (!%p292_p6, %s5632_s22), 1  ;;  %s5586_s29 = smov 127   ;;  %v5724_v6 = vand.u32 127, %v328_v3  ;;  %v5738_v14 = vperm.slane %v5726_v8, 7  ;;  %v5741_v15 = vperm.slane %v5728_v9, 7  ;;  %v5758_v22 = vperm.slane %v5726_v8, 6 }
  0x1a   : > { %s5259_s20 = sshll.u32 %s8320_s22, 4  ;;  %s5587_s30 = smov 1   ;;  %v5761_v23 = vperm.slane %v5728_v9, 6  ;;  %v5785_v31 = vperm.slane %v5726_v8, 5  ;;  %v5788_v32 = vperm.slane %v5728_v9, 5  ;;  %v5806_v39 = vperm.slane %v5726_v8, 3 }
  0x1b   : > { %s5684_s25 = scalar_lea.vmem %s8286_s0, %s5259_s20  ;;  %s5588_s7 = smov 15   ;;  %vm398_vm0 = vcmp.lt.s32.totalorder %v5724_v6, 112  ;;  %vm409_vm1 = vcmp.lt.s32.totalorder %v5724_v6, 111  ;;  %vm387_vm2 = vcmp.lt.s32.totalorder %v5724_v6, 113  ;;  %vm376_vm3 = vcmp.lt.s32.totalorder %v5724_v6, 127 }
  0x1c   : > { %v5687_v0 = vld [vmem:[%s5684_s25] sm:$0xff]  ;;  %v5696_v1 = vld [vmem:[%s5684_s25 + $0x8] sm:$0xff]  ;;  %s5589_s8 = smov 16   ;;  %s5590_s9 = smov 17   ;;  %vm363_vm4 = vcmp.lt.s32.totalorder %v5724_v6, 1  ;;  %v5811_v40 = vperm.slane %v5728_v9, 3 }
  0x1d   : > { %394 = vrot.lane.b32.xlu1 %v5687_v0, %s5583_s26  ;;  %405 = vrot.lane.b32.xlu0 %v5687_v0, %s5584_s27  ;;  %vm352_vm5 = vcmp.lt.s32.totalorder %v5724_v6, 15  ;;  %v5815_v42 = vperm.slane %v5726_v8, 2  ;;  %v5818_v43 = vperm.slane %v5728_v9, 2  ;;  %vm341_vm6 = vcmp.lt.s32.totalorder %v5724_v6, 16 }
  0x1e   : > { %383 = vrot.lane.b32.xlu2 %v5687_v0, %s5585_s28  ;;  %v5846_v54 = vperm.slane %v5726_v8, 1  ;;  %v5849_v55 = vperm.slane %v5728_v9, 1  ;;  %vm330_vm7 = vcmp.lt.s32.totalorder %v5724_v6, 17  ;;  %v5865_v63 = vperm.slane %v5726_v8, 0  ;;  %v5252_v6 = vld [vmem:[%s8289_s3 + $0x58] sm:$0xff] }
  0x1f   : > { %vm435_vm8 = vcmask 588800   ;;  %vm657_vm11 = vcmask 130048   ;;  %vm937_vm14 = vcmask 719872  }
  0x25   : > { %396 = vrot.lane.b32.xlu1 %v5696_v1, %s5583_s26  ;;  %407 = vrot.lane.b32.xlu0 %v5696_v1, %s5584_s27 }
  0x26   : > { %385 = vrot.lane.b32.xlu2 %v5696_v1, %s5585_s28 }
  0x2d   : > { %374 = vrot.lane.b32.xlu1 %v5696_v1, %s5586_s29  ;;  %372 = vrot.lane.b32.xlu0 %v5687_v0, %s5586_s29 }
  0x2e   : > { %359 = vrot.lane.b32.xlu2 %v5687_v0, %s5587_s30 }
  0x35   : > { %348 = vrot.lane.b32.xlu1 %v5687_v0, %s5588_s7  ;;  %361 = vrot.lane.b32.xlu0 %v5696_v1, %s5587_s30 }
  0x36   : > { %350 = vrot.lane.b32.xlu2 %v5696_v1, %s5588_s7 }
  0x3d   : > { %339 = vrot.lane.b32.xlu1 %v5696_v1, %s5589_s8  ;;  %337 = vrot.lane.b32.xlu0 %v5687_v0, %s5589_s8 }
  0x3e   : > { %324 = vrot.lane.b32.xlu2 %v5687_v0, %s5590_s9 }
  0x45   : > { %326 = vrot.lane.b32.xlu0 %v5696_v1, %s5590_s9 }
  0x78   : > { %v384_v2 = vpop.permute.xlu2 %383 }
  0x80   : > { %v386_v7 = vpop.permute.xlu2 %385 }
  0x81   : > { %v388_v24 = vsel %vm387_vm2, %v384_v2, %v386_v7  ;;  %v389_v25 = vsel %vm387_vm2, %v386_v7, %v384_v2  ;;  %v5868_v2 = vperm.slane %v5728_v9, 0 }
  0x82   : > { %v5779_v29 = vmul.f32 %v388_v24, %v5758_v22  ;;  %v5782_v30 = vmul.f32 %v389_v25, %v5761_v23 }
  0x88   : > { %v360_v28 = vpop.permute.xlu2 %359 }
  0x8f   : > { %v395_v4 = vpop.permute.xlu1 %394  ;;  %v406_v5 = vpop.permute.xlu0 %405 }
  0x90   : > { %v351_v41 = vpop.permute.xlu2 %350 }
  0x97   : > { %v397_v12 = vpop.permute.xlu1 %396  ;;  %v408_v13 = vpop.permute.xlu0 %407 }
  0x98   : > { %v399_v16 = vsel %vm398_vm0, %v395_v4, %v397_v12  ;;  %v400_v17 = vsel %vm398_vm0, %v397_v12, %v395_v4  ;;  %v410_v18 = vsel %vm409_vm1, %v406_v5, %v408_v13  ;;  %v411_v19 = vsel %vm409_vm1, %v408_v13, %v406_v5  ;;  %v325_v62 = vpop.permute.xlu2 %324  ;;  %v434_v13 = vld [vmem:[#allocation3] sm:$0xff] }
  0x99   : > { %v5752_v20 = vmul.f32 %v5732_v10, %v410_v18  ;;  %v5755_v21 = vmul.f32 %v5734_v11, %v411_v19  ;;  %v5770_v26 = vmul.f32 %v399_v16, %v5738_v14  ;;  %v5773_v27 = vmul.f32 %v400_v17, %v5741_v15 }
  0x9b   : > { %446 = vmatpush.msra.mxu0 %v5752_v20  ;;  %466 = vmatpush.msra.mxu1 %v5755_v21 }
  0x9d   : > { %447 = vmatpush.msra.mxu0 %v5770_v26  ;;  %467 = vmatpush.msra.mxu1 %v5773_v27 }
  0x9f   : > { %v375_v33 = vpop.permute.xlu1 %374  ;;  %v373_v34 = vpop.permute.xlu0 %372  ;;  %448 = vmatpush.msra.mxu0 %v5779_v29  ;;  %468 = vmatpush.msra.mxu1 %v5782_v30 }
  0xa0   : > { %v377_v35 = vsel %vm376_vm3, %v373_v34, %v375_v33  ;;  %v378_v36 = vsel %vm376_vm3, %v375_v33, %v373_v34 }
  0xa1   : > { %v5797_v37 = vmul.f32 %v377_v35, %v5785_v31  ;;  %v5800_v38 = vmul.f32 %v378_v36, %v5788_v32 }
  0xa3   : > { %449 = vmatpush.msra.mxu0 %v5797_v37  ;;  %469 = vmatpush.msra.mxu1 %v5800_v38 }
  0xa5   : > { %450 = vmatpush.msra.mxu0 %v5687_v0  ;;  %470 = vmatpush.msra.mxu1 %v5696_v1 }
  0xa7   : > { %v349_v44 = vpop.permute.xlu1 %348  ;;  %v362_v45 = vpop.permute.xlu0 %361 }
  0xa8   : > { %v364_v46 = vsel %vm363_vm4, %v360_v28, %v362_v45  ;;  %v365_v47 = vsel %vm363_vm4, %v362_v45, %v360_v28  ;;  %v353_v48 = vsel %vm352_vm5, %v349_v44, %v351_v41  ;;  %v354_v49 = vsel %vm352_vm5, %v351_v41, %v349_v44 }
  0xa9   : > { %v5829_v50 = vmul.f32 %v365_v47, %v5806_v39  ;;  %v5832_v51 = vmul.f32 %v364_v46, %v5811_v40  ;;  %v5835_v52 = vmul.f32 %v354_v49, %v5815_v42  ;;  %v5838_v53 = vmul.f32 %v353_v48, %v5818_v43 }
  0xab   : > { %451 = vmatpush.msra.mxu0 %v5829_v50  ;;  %471 = vmatpush.msra.mxu1 %v5832_v51 }
  0xad   : > { %452 = vmatpush.msra.mxu0 %v5835_v52  ;;  %472 = vmatpush.msra.mxu1 %v5838_v53 }
  0xaf   : > { %v340_v56 = vpop.permute.xlu1 %339  ;;  %v338_v57 = vpop.permute.xlu0 %337 }
  0xb0   : > { %v342_v58 = vsel %vm341_vm6, %v338_v57, %v340_v56  ;;  %v343_v59 = vsel %vm341_vm6, %v340_v56, %v338_v57 }
  0xb1   : > { %v5856_v60 = vmul.f32 %v343_v59, %v5846_v54  ;;  %v5859_v61 = vmul.f32 %v342_v58, %v5849_v55 }
  0xb3   : > { %453 = vmatpush.msra.mxu0 %v5856_v60  ;;  %473 = vmatpush.msra.mxu1 %v5859_v61 }
  0xb7   : > { %v327_v3 = vpop.permute.xlu0 %326 }
  0xb8   : > { %v331_v4 = vsel %vm330_vm7, %v325_v62, %v327_v3  ;;  %v332_v5 = vsel %vm330_vm7, %v327_v3, %v325_v62 }
  0xb9   : > { %v5875_v7 = vmul.f32 %v332_v5, %v5865_v63  ;;  %v5878_v12 = vmul.f32 %v331_v4, %v5868_v2 }
  0xbb   : > { %8307 = vst [vmem:[#allocation10_spill] sm:$0xff] %v5878_v12  ;;  %454 = vmatpush.msra.mxu0 %v5875_v7  ;;  %474 = vmatpush.msra.mxu1 %v5878_v12 }
  0xbc   : > { %5189 = vmatmul.msk.f32.vlgmr.msra.gmra.mxu0 %vm435_vm8, %v434_v13  ;;  %5190 = vmatmul.msk.f32.vlgmr.msra.gmra.mxu1 %vm435_vm8, %v434_v13 }
 0x139   : > { %v456_v8 = vpop.f32.mrf.mxu0  ;;  %v476_v9 = vpop.f32.mrf.mxu1 }
 0x13a   : > { %v481_v16 = vmul.f32 0.70710677, %v456_v8  ;;  %v482_v17 = vmul.f32 0.70710677, %v476_v9 }
 0x13c   : > { %v483_v18 = vand.u32 2147483647, %v481_v16  ;;  %v484_v19 = vand.u32 2147483647, %v482_v17  ;;  %vm527_vm9 = vcmp.lt.f32.partialorder %v481_v16, 0.0  ;;  %vm528_vm10 = vcmp.lt.f32.partialorder %v482_v17, 0.0 }
 0x13e   : > { %v485_v24 = vmul.f32 0.3275911, %v483_v18  ;;  %v486_v25 = vmul.f32 0.3275911, %v484_v19  ;;  %v515_v47 = vsub.f32 0.0, %v483_v18  ;;  %v516_v56 = vsub.f32 0.0, %v484_v19 }
 0x140   : > { %v487_v28 = vadd.f32 1.0, %v485_v24  ;;  %v488_v33 = vadd.f32 1.0, %v486_v25  ;;  %v517_v59 = vmul.f32 %v515_v47, %v483_v18  ;;  %v518_v4 = vmul.f32 %v516_v56, %v484_v19 }
 0x142   : > { %5314 = vrcp.f32 %v487_v28  ;;  %v519_v24 = vmul.f32 1.442695, %v517_v59 }
 0x143   : > { %5316 = vrcp.f32 %v488_v33 }
 0x144   : > { %5318 = vpow2.f32 %v519_v24  ;;  %v480_v24 = vmul.f32 0.5, %v476_v9 }
 0x148   : > { %v5315_v34 = vpop.eup %5314 }
 0x149   : > { %v5317_v35 = vpop.eup %5316  ;;  %v491_v36 = vmul.f32 %v5315_v34, %v487_v28  ;;  %v521_v28 = vmul.f32 1.442695, %v518_v4 }
 0x14a   : > { %v492_v41 = vmul.f32 %v5317_v35, %v488_v33  ;;  %v5319_v18 = vpop.eup %5318 }
 0x14b   : > { %v493_v44 = vsub.f32 2.0, %v491_v36  ;;  %5320 = vpow2.f32 %v521_v28 }
 0x14c   : > { %v494_v45 = vsub.f32 2.0, %v492_v41 }
 0x14d   : > { %v495_v46 = vmul.f32 %v5315_v34, %v493_v44 }
 0x14e   : > { %v496_v48 = vmul.f32 %v5317_v35, %v494_v45 }
 0x14f   : > { %v497_v49 = vmul.f32 1.0614054, %v495_v46 }
 0x150   : > { %v498_v57 = vmul.f32 1.0614054, %v496_v48 }
 0x151   : > { %v499_v58 = vadd.f32 -1.4531521, %v497_v49 }
 0x152   : > { %v500_v62 = vadd.f32 -1.4531521, %v498_v57  ;;  %v5321_v57 = vpop.eup %5320 }
 0x153   : > { %v501_v3 = vmul.f32 %v499_v58, %v495_v46 }
 0x154   : > { %v502_v5 = vmul.f32 %v500_v62, %v496_v48 }
 0x155   : > { %v503_v13 = vadd.f32 1.4214138, %v501_v3 }
 0x156   : > { %v504_v25 = vadd.f32 1.4214138, %v502_v5 }
 0x157   : > { %v505_v12 = vmul.f32 %v503_v13, %v495_v46 }
 0x158   : > { %v506_v33 = vmul.f32 %v504_v25, %v496_v48 }
 0x159   : > { %v507_v36 = vadd.f32 -0.28449672, %v505_v12  ;;  %v479_v12 = vmul.f32 0.5, %v456_v8 }
 0x15a   : > { %v508_v34 = vadd.f32 -0.28449672, %v506_v33 }
 0x15b   : > { %v509_v41 = vmul.f32 %v507_v36, %v495_v46 }
 0x15c   : > { %v510_v35 = vmul.f32 %v508_v34, %v496_v48 }
 0x15d   : > { %v511_v44 = vadd.f32 0.2548296, %v509_v41 }
 0x15e   : > { %v512_v45 = vadd.f32 0.2548296, %v510_v35 }
 0x15f   : > { %v513_v49 = vmul.f32 %v511_v44, %v495_v46 }
 0x160   : > { %v514_v47 = vmul.f32 %v512_v45, %v496_v48 }
 0x161   : > { %v523_v19 = vmul.f32 %v5319_v18, %v513_v49 }
 0x162   : > { %v524_v56 = vmul.f32 %v5321_v57, %v514_v47 }
 0x163   : > { %v525_v58 = vsub.f32 1.0, %v523_v19 }
 0x164   : > { %v526_v59 = vsub.f32 1.0, %v524_v56 }
 0x165   : > { %v529_v62 = vsub.f32 0.0, %v525_v58 }
 0x166   : > { %v530_v3 = vsub.f32 0.0, %v526_v59 }
 0x167   : > { %v531_v4 = vsel %vm527_vm9, %v529_v62, %v525_v58 }
 0x168   : > { %v533_v5 = vadd.f32 1.0, %v531_v4  ;;  %v532_v13 = vsel %vm528_vm10, %v530_v3, %v526_v59  ;;  %vm1080_vm10 = vcmask 261120  }
 0x169   : > { %v534_v25 = vadd.f32 1.0, %v532_v13 }
 0x16a   : > { %v5884_v28 = vmul.f32 %v533_v5, %v479_v12 }
 0x16b   : > { %v5886_v46 = vmul.f32 %v534_v25, %v480_v24 }
 0x16c   : > { %579 = vrot.lane.b32.xlu0 %v5884_v28, %s5586_s29  ;;  %589 = vrot.lane.b32.xlu1 %v5884_v28, %s5585_s28 }
 0x16d   : > { %591 = vrot.lane.b32.xlu2 %v5886_v46, %s5585_s28 }
 0x174   : > { %569 = vrot.lane.b32.xlu0 %v5886_v46, %s5587_s30  ;;  %581 = vrot.lane.b32.xlu1 %v5886_v46, %s5586_s29 }
 0x175   : > { %567 = vrot.lane.b32.xlu2 %v5884_v28, %s5587_s30 }
 0x17c   : > { %547 = vrot.lane.b32.xlu0 %v5884_v28, %s5589_s8  ;;  %557 = vrot.lane.b32.xlu1 %v5884_v28, %s5588_s7 }
 0x17d   : > { %559 = vrot.lane.b32.xlu2 %v5886_v46, %s5588_s7 }
 0x184   : > { %539 = vrot.lane.b32.xlu0 %v5886_v46, %s5590_s9  ;;  %549 = vrot.lane.b32.xlu1 %v5886_v46, %s5589_s8 }
 0x185   : > { %537 = vrot.lane.b32.xlu2 %v5884_v28, %s5590_s9 }
 0x18c   : > { %599 = vrot.lane.b32.xlu0 %v5884_v28, %s5583_s26  ;;  %609 = vrot.lane.b32.xlu1 %v5884_v28, %s5584_s27 }
 0x18d   : > { %611 = vrot.lane.b32.xlu2 %v5886_v46, %s5584_s27 }
 0x194   : > { %601 = vrot.lane.b32.xlu1 %v5886_v46, %s5583_s26 }
 0x1c7   : > { %v592_v8 = vpop.permute.xlu2 %591 }
 0x1cf   : > { %v5924_v48 = vpop.permute.xlu2 %567 }
 0x1d7   : > { %v5937_v45 = vpop.permute.xlu2 %559 }
 0x1de   : > { %v5920_v9 = vpop.permute.xlu0 %579  ;;  %v590_v16 = vpop.permute.xlu1 %589 }
 0x1df   : > { %v593_v17 = vsel %vm387_vm2, %v590_v16, %v592_v8  ;;  %v5951_v56 = vpop.permute.xlu2 %537 }
 0x1e0   : > { %v595_v33 = vmul.f32 %v593_v17, %v5758_v22 }
 0x1e2   : > { %661 = vmatpush.msra.mxu2 %v595_v33  ;;  %941 = vmatpush.msrb.mxu1 %v595_v33 }
 0x1e6   : > { %v5927_v36 = vpop.permute.xlu0 %569  ;;  %v582_v34 = vpop.permute.xlu1 %581 }
 0x1e7   : > { %v583_v41 = vsel %vm376_vm3, %v5920_v9, %v582_v34  ;;  %v572_v44 = vsel %vm363_vm4, %v5927_v36, %v5924_v48  ;;  %v612_v5 = vpop.permute.xlu2 %611 }
 0x1e8   : > { %v585_v35 = vmul.f32 %v583_v41, %v5785_v31  ;;  %v573_v49 = vmul.f32 %v572_v44, %v5806_v39  ;;  %v594_v44 = vsel %vm387_vm2, %v592_v8, %v590_v16  ;;  %v656_v16 = vld [vmem:[%s8288_s2 + $0x8] sm:$0xff] }
 0x1e9   : > { %v596_v8 = vmul.f32 %v594_v44, %v5761_v23 }
 0x1ea   : > { %662 = vmatpush.msra.mxu2 %v585_v35  ;;  %942 = vmatpush.msrb.mxu1 %v585_v35 }
 0x1ec   : > { %663 = vmatpush.msra.mxu2 %v5884_v28  ;;  %943 = vmatpush.msrb.mxu1 %v5884_v28 }
 0x1ee   : > { %v5942_v18 = vpop.permute.xlu0 %547  ;;  %664 = vmatpush.msra.mxu2 %v573_v49  ;;  %944 = vmatpush.msrb.mxu1 %v573_v49  ;;  %v5944_v47 = vpop.permute.xlu1 %557 }
 0x1ef   : > { %v562_v57 = vsel %vm352_vm5, %v5937_v45, %v5944_v47 }
 0x1f0   : > { %v563_v19 = vmul.f32 %v562_v57, %v5815_v42 }
 0x1f2   : > { %665 = vmatpush.msra.mxu2 %v563_v19  ;;  %945 = vmatpush.msrb.mxu1 %v563_v19 }
 0x1f6   : > { %v5953_v58 = vpop.permute.xlu0 %539  ;;  %v550_v59 = vpop.permute.xlu1 %549 }
 0x1f7   : > { %v552_v62 = vsel %vm341_vm6, %v550_v59, %v5942_v18  ;;  %v542_v3 = vsel %vm330_vm7, %v5953_v58, %v5951_v56 }
 0x1f8   : > { %v553_v4 = vmul.f32 %v552_v62, %v5846_v54  ;;  %v543_v12 = vmul.f32 %v542_v3, %v5865_v63 }
 0x1fa   : > { %666 = vmatpush.msra.mxu2 %v553_v4  ;;  %946 = vmatpush.msrb.mxu1 %v553_v4 }
 0x1fc   : > { %667 = vmatpush.msra.mxu2 %v543_v12  ;;  %947 = vmatpush.msrb.mxu1 %v543_v12 }
 0x1fe   : > { %668 = vmatpush.msra.mxu2 %v5752_v20  ;;  %948 = vmatpush.msrb.mxu1 %v5752_v20  ;;  %v610_v13 = vpop.permute.xlu1 %609  ;;  %v600_v20 = vpop.permute.xlu0 %599 }
 0x1ff   : > { %v613_v24 = vsel %vm409_vm1, %v610_v13, %v612_v5  ;;  %v614_v25 = vsel %vm409_vm1, %v612_v5, %v610_v13 }
 0x200   : > { %669 = vmatpush.msra.mxu2 %v5770_v26  ;;  %949 = vmatpush.msrb.mxu1 %v5770_v26  ;;  %v5973_v17 = vmul.f32 %v5732_v10, %v613_v24  ;;  %v5976_v33 = vmul.f32 %v5734_v11, %v614_v25 }
 0x202   : > { %670 = vmatpush.msra.mxu2 %v5779_v29  ;;  %695 = vmatpush.msra.mxu3 %v5973_v17 }
 0x203   : > { %735 = vmatpush.msrb.mxu0 %v5976_v33  ;;  %950 = vmatpush.msrb.mxu1 %v5779_v29 }
 0x204   : > { %671 = vmatpush.msra.mxu2 %v5797_v37 }
 0x205   : > { %951 = vmatpush.msrb.mxu1 %v5797_v37 }
 0x206   : > { %672 = vmatpush.msra.mxu2 %v5687_v0  ;;  %v602_v26 = vpop.permute.xlu1 %601 }
 0x207   : > { %952 = vmatpush.msrb.mxu1 %v5687_v0  ;;  %v603_v41 = vsel %vm398_vm0, %v600_v20, %v602_v26  ;;  %v604_v35 = vsel %vm398_vm0, %v602_v26, %v600_v20  ;;  %v584_v0 = vsel %vm376_vm3, %v582_v34, %v5920_v9  ;;  %v655_v9 = vld [vmem:[%s8288_s2] sm:$0xff]  ;;  %v571_v34 = vsel %vm363_vm4, %v5924_v48, %v5927_v36 }
 0x208   : > { %673 = vmatpush.msra.mxu2 %v5829_v50  ;;  %v5994_v29 = vmul.f32 %v603_v41, %v5738_v14  ;;  %v5997_v37 = vmul.f32 %v604_v35, %v5741_v15  ;;  %v551_v48 = vsel %vm341_vm6, %v5942_v18, %v550_v59  ;;  %v541_v36 = vsel %vm330_vm7, %v5951_v56, %v5953_v58 }
 0x209   : > { %953 = vmatpush.msrb.mxu1 %v5829_v50  ;;  %v586_v50 = vmul.f32 %v584_v0, %v5788_v32  ;;  %v544_v49 = vmul.f32 %v541_v36, %v5868_v2 }
 0x20a   : > { %674 = vmatpush.msra.mxu2 %v5835_v52  ;;  %696 = vmatpush.msra.mxu3 %v5994_v29 }
 0x20b   : > { %736 = vmatpush.msrb.mxu0 %v5997_v37  ;;  %954 = vmatpush.msrb.mxu1 %v5835_v52  ;;  %v561_v52 = vsel %vm352_vm5, %v5944_v47, %v5937_v45  ;;  %v554_v45 = vmul.f32 %v551_v48, %v5849_v55 }
 0x20c   : > { %701 = vmatpush.msrb.mxu3 %v596_v8  ;;  %675 = vmatpush.msra.mxu2 %v5856_v60 }
 0x20d   : > { %955 = vmatpush.msrb.mxu1 %v5856_v60  ;;  %5191 = vmatmul.msk.f32.vlgmr.msra.gmra.mxu3 %vm657_vm11, %v656_v16  ;;  %v574_v60 = vmul.f32 %v571_v34, %v5811_v40 }
 0x20e   : > { %702 = vmatpush.msrb.mxu3 %v586_v50  ;;  %676 = vmatpush.msra.mxu2 %v5875_v7 }
 0x20f   : > { %956 = vmatpush.msrb.mxu1 %v5875_v7  ;;  %677 = vmatmul.f32.vlgmr.msra.gmra.mxu2 %v655_v9  ;;  %v564_v7 = vmul.f32 %v561_v52, %v5818_v43 }
 0x210   : > { %703 = vmatpush.msrb.mxu3 %v5886_v46  ;;  %981 = vmatpush.msrb.mxu2 %v596_v8 }
 0x211   : > { %5192 = vmatmul.msk.f32.vlgmr.msrb.gmra.mxu0 %vm657_vm11, %v656_v16 }
 0x212   : > { %704 = vmatpush.msrb.mxu3 %v574_v60  ;;  %982 = vmatpush.msrb.mxu2 %v586_v50 }
 0x214   : > { %705 = vmatpush.msrb.mxu3 %v564_v7  ;;  %983 = vmatpush.msrb.mxu2 %v5886_v46 }
 0x216   : > { %706 = vmatpush.msrb.mxu3 %v554_v45  ;;  %984 = vmatpush.msrb.mxu2 %v574_v60 }
 0x218   : > { %707 = vmatpush.msrb.mxu3 %v544_v49  ;;  %985 = vmatpush.msrb.mxu2 %v564_v7 }
 0x21a   : > { %708 = vmatpush.msrb.mxu3 %v5755_v21  ;;  %986 = vmatpush.msrb.mxu2 %v554_v45 }
 0x21c   : > { %709 = vmatpush.msrb.mxu3 %v5773_v27  ;;  %987 = vmatpush.msrb.mxu2 %v544_v49 }
 0x21e   : > { %710 = vmatpush.msrb.mxu3 %v5782_v30  ;;  %988 = vmatpush.msrb.mxu2 %v5755_v21  ;;  %v8308_v21 = vld [vmem:[#allocation10_spill] sm:$0xff] }
 0x220   : > { %711 = vmatpush.msrb.mxu3 %v5800_v38  ;;  %989 = vmatpush.msrb.mxu2 %v5773_v27 }
 0x222   : > { %712 = vmatpush.msrb.mxu3 %v5696_v1  ;;  %990 = vmatpush.msrb.mxu2 %v5782_v30 }
 0x224   : > { %713 = vmatpush.msrb.mxu3 %v5832_v51  ;;  %991 = vmatpush.msrb.mxu2 %v5800_v38 }
 0x226   : > { %714 = vmatpush.msrb.mxu3 %v5838_v53  ;;  %992 = vmatpush.msrb.mxu2 %v5696_v1 }
 0x228   : > { %715 = vmatpush.msrb.mxu3 %v5859_v61  ;;  %993 = vmatpush.msrb.mxu2 %v5832_v51 }
 0x22a   : > { %716 = vmatpush.msrb.mxu3 %v8308_v21  ;;  %994 = vmatpush.msrb.mxu2 %v5838_v53 }
 0x22b   : > { %717 = vmatmul.f32.vlgmr.msrb.gmra.mxu3 %v655_v9 }
 0x22c   : > { %995 = vmatpush.msrb.mxu2 %v5859_v61 }
 0x22e   : > { %996 = vmatpush.msrb.mxu2 %v8308_v21 }
 0x28e   : > { %v738_v3 = vpop.f32.mrf.mxu0 }
 0x290   : > { %v698_v27 = vpop.f32.mrf.mxu3 }
 0x292   : > { %v678_v30 = vpop.f32.mrf.mxu2 }
 0x293   : > { %v699_v38 = vadd.f32 %v698_v27, %v678_v30 }
 0x295   : > { %v743_v18 = vmul.f32 0.70710677, %v699_v38  ;;  %v741_v45 = vmul.f32 0.5, %v699_v38 }
 0x297   : > { %v745_v47 = vand.u32 2147483647, %v743_v18  ;;  %vm789_vm12 = vcmp.lt.f32.partialorder %v743_v18, 0.0 }
 0x299   : > { %v747_v57 = vmul.f32 0.3275911, %v745_v47  ;;  %v777_v59 = vsub.f32 0.0, %v745_v47 }
 0x29b   : > { %v749_v1 = vadd.f32 1.0, %v747_v57  ;;  %v779_v4 = vmul.f32 %v777_v59, %v745_v47 }
 0x29d   : > { %5322 = vrcp.f32 %v749_v1  ;;  %v781_v24 = vmul.f32 1.442695, %v779_v4 }
 0x29f   : > { %5324 = vpow2.f32 %v781_v24 }
 0x2a3   : > { %v5323_v19 = vpop.eup %5322 }
 0x2a4   : > { %v753_v56 = vmul.f32 %v5323_v19, %v749_v1 }
 0x2a5   : > { %v5325_v50 = vpop.eup %5324 }
 0x2a6   : > { %v755_v51 = vsub.f32 2.0, %v753_v56 }
 0x2a8   : > { %v757_v58 = vmul.f32 %v5323_v19, %v755_v51 }
 0x2aa   : > { %v759_v62 = vmul.f32 1.0614054, %v757_v58 }
 0x2ac   : > { %v761_v53 = vadd.f32 -1.4531521, %v759_v62 }
 0x2ae   : > { %v763_v61 = vmul.f32 %v761_v53, %v757_v58  ;;  %v718_v12 = vpop.f32.mrf.mxu3 }
 0x2af   : > { %v739_v5 = vadd.f32 %v738_v3, %v718_v12 }
 0x2b0   : > { %v765_v13 = vadd.f32 1.4214138, %v763_v61 }
 0x2b1   : > { %v744_v25 = vmul.f32 0.70710677, %v739_v5 }
 0x2b2   : > { %v767_v20 = vmul.f32 %v765_v13, %v757_v58  ;;  %v742_v13 = vmul.f32 0.5, %v739_v5 }
 0x2b3   : > { %v746_v26 = vand.u32 2147483647, %v744_v25  ;;  %vm790_vm13 = vcmp.lt.f32.partialorder %v744_v25, 0.0 }
 0x2b4   : > { %v769_v41 = vadd.f32 -0.28449672, %v767_v20 }
 0x2b5   : > { %v748_v35 = vmul.f32 0.3275911, %v746_v26  ;;  %v778_v30 = vsub.f32 0.0, %v746_v26 }
 0x2b6   : > { %v771_v44 = vmul.f32 %v769_v41, %v757_v58 }
 0x2b7   : > { %v750_v0 = vadd.f32 1.0, %v748_v35  ;;  %v780_v1 = vmul.f32 %v778_v30, %v746_v26 }
 0x2b8   : > { %v773_v8 = vadd.f32 0.2548296, %v771_v44 }
 0x2b9   : > { %5326 = vrcp.f32 %v750_v0  ;;  %v783_v18 = vmul.f32 1.442695, %v780_v1 }
 0x2ba   : > { %v775_v16 = vmul.f32 %v773_v8, %v757_v58 }
 0x2bb   : > { %5328 = vpow2.f32 %v783_v18 }
 0x2bc   : > { %v785_v9 = vmul.f32 %v5325_v50, %v775_v16 }
 0x2be   : > { %v787_v34 = vsub.f32 1.0, %v785_v9 }
 0x2bf   : > { %v5327_v52 = vpop.eup %5326 }
 0x2c0   : > { %v791_v60 = vsub.f32 0.0, %v787_v34  ;;  %v754_v48 = vmul.f32 %v5327_v52, %v750_v0 }
 0x2c1   : > { %v5329_v53 = vpop.eup %5328 }
 0x2c2   : > { %v793_v7 = vsel %vm789_vm12, %v791_v60, %v787_v34  ;;  %v756_v36 = vsub.f32 2.0, %v754_v48 }
 0x2c3   : > { %v795_v49 = vadd.f32 1.0, %v793_v7 }
 0x2c4   : > { %v758_v21 = vmul.f32 %v5327_v52, %v756_v36 }
 0x2c5   : > { %v6060_v27 = vmul.f32 %v795_v49, %v741_v45  ;;  %v935_v49 = vld [vmem:[%s8289_s3] sm:$0xff] }
 0x2c6   : > { %v760_v47 = vmul.f32 1.0614054, %v758_v21  ;;  %957 = vmatmul.f32.vlgmr.msrb.gmra.mxu1 %v935_v49  ;;  %997 = vmatmul.f32.vlgmr.msrb.gmra.mxu2 %v935_v49 }
 0x2c7   : > { %861 = vrot.lane.b32.xlu1 %v6060_v27, %s5583_s26  ;;  %871 = vrot.lane.b32.xlu2 %v6060_v27, %s5584_s27 }
 0x2c8   : > { %v762_v57 = vadd.f32 -1.4531521, %v760_v47 }
 0x2ca   : > { %v764_v19 = vmul.f32 %v762_v57, %v758_v21 }
 0x2cc   : > { %v766_v56 = vadd.f32 1.4214138, %v764_v19 }
 0x2ce   : > { %v768_v51 = vmul.f32 %v766_v56, %v758_v21 }
 0x2d0   : > { %v770_v58 = vadd.f32 -0.28449672, %v768_v51 }
 0x2d2   : > { %v772_v38 = vmul.f32 %v770_v58, %v758_v21 }
 0x2d4   : > { %v774_v59 = vadd.f32 0.2548296, %v772_v38 }
 0x2d6   : > { %v776_v62 = vmul.f32 %v774_v59, %v758_v21 }
 0x2d8   : > { %v786_v3 = vmul.f32 %v5329_v53, %v776_v62 }
 0x2da   : > { %v788_v4 = vsub.f32 1.0, %v786_v3 }
 0x2dc   : > { %v792_v61 = vsub.f32 0.0, %v788_v4 }
 0x2de   : > { %v794_v12 = vsel %vm790_vm13, %v792_v61, %v788_v4 }
 0x2df   : > { %v796_v24 = vadd.f32 1.0, %v794_v12 }
 0x2e1   : > { %v6066_v20 = vmul.f32 %v796_v24, %v742_v13 }
 0x2e3   : > { %873 = vrot.lane.b32.xlu0 %v6066_v20, %s5584_s27  ;;  %853 = vrot.lane.b32.xlu1 %v6066_v20, %s5585_s28 }
 0x2e4   : > { %863 = vrot.lane.b32.xlu2 %v6066_v20, %s5583_s26 }
 0x2eb   : > { %851 = vrot.lane.b32.xlu0 %v6060_v27, %s5585_s28  ;;  %829 = vrot.lane.b32.xlu1 %v6060_v27, %s5587_s30 }
 0x2ec   : > { %841 = vrot.lane.b32.xlu2 %v6060_v27, %s5586_s29 }
 0x2f3   : > { %843 = vrot.lane.b32.xlu0 %v6066_v20, %s5586_s29  ;;  %821 = vrot.lane.b32.xlu1 %v6066_v20, %s5588_s7 }
 0x2f4   : > { %831 = vrot.lane.b32.xlu2 %v6066_v20, %s5587_s30 }
 0x2fb   : > { %819 = vrot.lane.b32.xlu0 %v6060_v27, %s5588_s7  ;;  %799 = vrot.lane.b32.xlu1 %v6060_v27, %s5590_s9 }
 0x2fc   : > { %809 = vrot.lane.b32.xlu2 %v6060_v27, %s5589_s8 }
 0x303   : > { %811 = vrot.lane.b32.xlu0 %v6066_v20, %s5589_s8 }
 0x304   : > { %801 = vrot.lane.b32.xlu2 %v6066_v20, %s5590_s9 }
 0x321   : > { %v872_v5 = vpop.permute.xlu2 %871 }
 0x339   : > { %v862_v25 = vpop.permute.xlu1 %861 }
 0x33e   : > { %v864_v26 = vpop.permute.xlu2 %863 }
 0x33f   : > { %v865_v44 = vsel %vm398_vm0, %v862_v25, %v864_v26  ;;  %v866_v0 = vsel %vm398_vm0, %v864_v26, %v862_v25 }
 0x340   : > { %v867_v52 = vmul.f32 %v865_v44, %v5738_v14  ;;  %v868_v60 = vmul.f32 %v866_v0, %v5741_v15 }
 0x346   : > { %v842_v50 = vpop.permute.xlu2 %841 }
 0x34e   : > { %v832_v21 = vpop.permute.xlu2 %831 }
 0x355   : > { %v874_v41 = vpop.permute.xlu0 %873  ;;  %v854_v35 = vpop.permute.xlu1 %853 }
 0x356   : > { %v875_v8 = vsel %vm409_vm1, %v872_v5, %v874_v41  ;;  %v876_v16 = vsel %vm409_vm1, %v874_v41, %v872_v5  ;;  %v810_v58 = vpop.permute.xlu2 %809 }
 0x357   : > { %v877_v9 = vmul.f32 %v5732_v10, %v875_v8  ;;  %v878_v34 = vmul.f32 %v5734_v11, %v876_v16  ;;  %v936_v16 = vld [vmem:[%s8289_s3 + $0x8] sm:$0xff] }
 0x359   : > { %966 = vmatpush.msra.mxu0 %v877_v9  ;;  %1006 = vmatpush.msra.mxu3 %v878_v34 }
 0x35b   : > { %967 = vmatpush.msra.mxu0 %v867_v52  ;;  %1007 = vmatpush.msra.mxu3 %v868_v60 }
 0x35d   : > { %v852_v48 = vpop.permute.xlu0 %851  ;;  %v830_v45 = vpop.permute.xlu1 %829 }
 0x35e   : > { %v855_v7 = vsel %vm387_vm2, %v852_v48, %v854_v35  ;;  %v856_v36 = vsel %vm387_vm2, %v854_v35, %v852_v48  ;;  %v833_v56 = vsel %vm363_vm4, %v830_v45, %v832_v21  ;;  %v834_v18 = vsel %vm363_vm4, %v832_v21, %v830_v45  ;;  %v802_v13 = vpop.permute.xlu2 %801 }
 0x35f   : > { %v857_v10 = vmul.f32 %v855_v7, %v5758_v22  ;;  %v858_v11 = vmul.f32 %v856_v36, %v5761_v23  ;;  %v835_v38 = vmul.f32 %v834_v18, %v5806_v39  ;;  %v836_v59 = vmul.f32 %v833_v56, %v5811_v40 }
 0x361   : > { %968 = vmatpush.msra.mxu0 %v857_v10  ;;  %1008 = vmatpush.msra.mxu3 %v858_v11 }
 0x365   : > { %v844_v30 = vpop.permute.xlu0 %843  ;;  %v822_v51 = vpop.permute.xlu1 %821 }
 0x366   : > { %v845_v47 = vsel %vm376_vm3, %v842_v50, %v844_v30  ;;  %v846_v57 = vsel %vm376_vm3, %v844_v30, %v842_v50  ;;  %v958_v50 = vpop.f32.mrf.mxu1 }
 0x367   : > { %v847_v1 = vmul.f32 %v845_v47, %v5785_v31  ;;  %v848_v19 = vmul.f32 %v846_v57, %v5788_v32 }
 0x369   : > { %969 = vmatpush.msra.mxu0 %v847_v1  ;;  %1009 = vmatpush.msra.mxu3 %v848_v19 }
 0x36b   : > { %970 = vmatpush.msra.mxu0 %v6060_v27  ;;  %1010 = vmatpush.msra.mxu3 %v6066_v20 }
 0x36d   : > { %v820_v62 = vpop.permute.xlu0 %819  ;;  %971 = vmatpush.msra.mxu0 %v835_v38  ;;  %1011 = vmatpush.msra.mxu3 %v836_v59  ;;  %v800_v12 = vpop.permute.xlu1 %799 }
 0x36e   : > { %v823_v53 = vsel %vm352_vm5, %v820_v62, %v822_v51  ;;  %v824_v3 = vsel %vm352_vm5, %v822_v51, %v820_v62  ;;  %v803_v5 = vsel %vm330_vm7, %v800_v12, %v802_v13  ;;  %v804_v25 = vsel %vm330_vm7, %v802_v13, %v800_v12 }
 0x36f   : > { %v825_v4 = vmul.f32 %v824_v3, %v5815_v42  ;;  %v826_v61 = vmul.f32 %v823_v53, %v5818_v43  ;;  %v805_v0 = vmul.f32 %v804_v25, %v5865_v63  ;;  %v806_v8 = vmul.f32 %v803_v5, %v5868_v2 }
 0x371   : > { %972 = vmatpush.msra.mxu0 %v825_v4  ;;  %1012 = vmatpush.msra.mxu3 %v826_v61 }
 0x375   : > { %v812_v24 = vpop.permute.xlu0 %811 }
 0x376   : > { %v813_v26 = vsel %vm341_vm6, %v810_v58, %v812_v24  ;;  %v814_v41 = vsel %vm341_vm6, %v812_v24, %v810_v58 }
 0x377   : > { %v815_v35 = vmul.f32 %v814_v41, %v5846_v54  ;;  %v816_v44 = vmul.f32 %v813_v26, %v5849_v55 }
 0x379   : > { %973 = vmatpush.msra.mxu0 %v815_v35  ;;  %1013 = vmatpush.msra.mxu3 %v816_v44 }
 0x37b   : > { %974 = vmatpush.msra.mxu0 %v805_v0  ;;  %1014 = vmatpush.msra.mxu3 %v806_v8 }
 0x37d   : > { %975 = vmatpush.msra.mxu0 %v5973_v17  ;;  %1015 = vmatpush.msra.mxu3 %v5976_v33  ;;  %v998_v17 = vpop.f32.mrf.mxu2 }
 0x37f   : > { %976 = vmatpush.msra.mxu0 %v5994_v29  ;;  %1016 = vmatpush.msra.mxu3 %v5997_v37 }
 0x380   : > { %5193 = vmatmul.msk.f32.vlgmr.msra.gmra.mxu0 %vm937_vm14, %v936_v16  ;;  %5194 = vmatmul.msk.f32.vlgmr.msra.gmra.mxu3 %vm937_vm14, %v936_v16 }
 0x3fd   : > { %v978_v9 = vpop.f32.mrf.mxu0 }
 0x3fe   : > { %v979_v34 = vadd.f32 %v978_v9, %v958_v50 }
 0x400   : > { %v1023_v52 = vmul.f32 0.70710677, %v979_v34 }
 0x402   : > { %v1025_v60 = vand.u32 2147483647, %v1023_v52  ;;  %vm1069_vm15 = vcmp.lt.f32.partialorder %v1023_v52, 0.0  ;;  %v1079_v52 = vld [vmem:[#allocation5] sm:$0xff] }
 0x403   : > { %v1018_v33 = vpop.f32.mrf.mxu3 }
 0x404   : > { %v1027_v48 = vmul.f32 0.3275911, %v1025_v60  ;;  %v1019_v7 = vadd.f32 %v1018_v33, %v998_v17  ;;  %v1057_v57 = vsub.f32 0.0, %v1025_v60 }
 0x406   : > { %v1029_v36 = vadd.f32 1.0, %v1027_v48  ;;  %v1024_v45 = vmul.f32 0.70710677, %v1019_v7  ;;  %v1059_v51 = vmul.f32 %v1057_v57, %v1025_v60 }
 0x408   : > { %5330 = vrcp.f32 %v1029_v36  ;;  %v1026_v10 = vand.u32 2147483647, %v1024_v45  ;;  %v1061_v3 = vmul.f32 1.442695, %v1059_v51  ;;  %vm1070_vm9 = vcmp.lt.f32.partialorder %v1024_v45, 0.0 }
 0x40a   : > { %v1028_v29 = vmul.f32 0.3275911, %v1026_v10  ;;  %v1058_v59 = vsub.f32 0.0, %v1026_v10 }
 0x40c   : > { %v1030_v11 = vadd.f32 1.0, %v1028_v29  ;;  %v1060_v12 = vmul.f32 %v1058_v59, %v1026_v10  ;;  %v1021_v29 = vmul.f32 0.5, %v979_v34  ;;  %v5459_v34 = vld [vmem:[%s5684_s25 + $0x8] sm:$0xff] }
 0x40e   : > { %v5331_v37 = vpop.eup %5330  ;;  %5332 = vrcp.f32 %v1030_v11  ;;  %v1063_v26 = vmul.f32 1.442695, %v1060_v12 }
 0x40f   : > { %v1033_v49 = vmul.f32 %v5331_v37, %v1029_v36  ;;  %5334 = vpow2.f32 %v1061_v3  ;;  %v6206_v3 = vld [vmem:[#allocation7 + $0x10] ss:$0 sm:$0xff] }
 0x410   : > { %5336 = vpow2.f32 %v1063_v26 }
 0x411   : > { %v1035_v21 = vsub.f32 2.0, %v1033_v49 }
 0x413   : > { %v1037_v30 = vmul.f32 %v5331_v37, %v1035_v21 }
 0x414   : > { %v5333_v47 = vpop.eup %5332 }
 0x415   : > { %v1039_v1 = vmul.f32 1.0614054, %v1037_v30  ;;  %v1034_v19 = vmul.f32 %v5333_v47, %v1030_v11  ;;  %v5335_v8 = vpop.eup %5334 }
 0x416   : > { %v5337_v48 = vpop.eup %5336 }
 0x417   : > { %v1041_v56 = vadd.f32 -1.4531521, %v1039_v1  ;;  %v1036_v18 = vsub.f32 2.0, %v1034_v19  ;;  %v5458_v19 = vld [vmem:[%s5684_s25] sm:$0xff] }
 0x419   : > { %v1043_v58 = vmul.f32 %v1041_v56, %v1037_v30  ;;  %v1038_v38 = vmul.f32 %v5333_v47, %v1036_v18  ;;  %v1022_v47 = vmul.f32 0.5, %v1019_v7 }
 0x41b   : > { %v1045_v62 = vadd.f32 1.4214138, %v1043_v58  ;;  %v1040_v53 = vmul.f32 1.0614054, %v1038_v38 }
 0x41d   : > { %v1047_v4 = vmul.f32 %v1045_v62, %v1037_v30  ;;  %v1042_v61 = vadd.f32 -1.4531521, %v1040_v53 }
 0x41f   : > { %v1049_v13 = vadd.f32 -0.28449672, %v1047_v4  ;;  %v1044_v24 = vmul.f32 %v1042_v61, %v1038_v38  ;;  %v6211_v61 = vld [vmem:[#allocation7 + $0x18] ss:$0 sm:$0xff] }
 0x421   : > { %v1051_v5 = vmul.f32 %v1049_v13, %v1037_v30  ;;  %v1046_v25 = vadd.f32 1.4214138, %v1044_v24 }
 0x423   : > { %v1053_v41 = vadd.f32 0.2548296, %v1051_v5  ;;  %v1048_v35 = vmul.f32 %v1046_v25, %v1038_v38 }
 0x425   : > { %v1055_v44 = vmul.f32 %v1053_v41, %v1037_v30  ;;  %v1050_v0 = vadd.f32 -0.28449672, %v1048_v35 }
 0x427   : > { %v1065_v16 = vmul.f32 %v5335_v8, %v1055_v44  ;;  %v1052_v50 = vmul.f32 %v1050_v0, %v1038_v38 }
 0x429   : > { %v1067_v9 = vsub.f32 1.0, %v1065_v16  ;;  %v1054_v17 = vadd.f32 0.2548296, %v1052_v50 }
 0x42b   : > { %v1071_v60 = vsub.f32 0.0, %v1067_v9  ;;  %v1056_v33 = vmul.f32 %v1054_v17, %v1038_v38 }
 0x42d   : > { %v1073_v36 = vsel %vm1069_vm15, %v1071_v60, %v1067_v9  ;;  %v1066_v10 = vmul.f32 %v5337_v48, %v1056_v33 }
 0x42e   : > { %v1075_v11 = vadd.f32 1.0, %v1073_v36 }
 0x42f   : > { %v1068_v37 = vsub.f32 1.0, %v1066_v10 }
 0x430   : > { %v1077_v49 = vmul.f32 %v1075_v11, %v1021_v29 }
 0x431   : > { %v1072_v21 = vsub.f32 0.0, %v1068_v37 }
 0x432   : > { %1096 = vmatpush.msrb.mxu0 %v1077_v49 }
 0x433   : > { %v1074_v30 = vsel %vm1070_vm9, %v1072_v21, %v1068_v37 }
 0x434   : > { %v1076_v57 = vadd.f32 1.0, %v1074_v30  ;;  %1097 = vmatpush.msrb.mxu0 %v6060_v27 }
 0x436   : > { %v1078_v1 = vmul.f32 %v1076_v57, %v1022_v47  ;;  %1098 = vmatpush.msrb.mxu0 %v5884_v28 }
 0x438   : > { %1099 = vmatpush.msrb.mxu0 %v5458_v19  ;;  %1116 = vmatpush.msra.mxu1 %v1078_v1 }
 0x439   : > { %5195 = vmatmul.msk.f32.vlgmr.msrb.gmra.mxu0 %vm1080_vm10, %v1079_v52 }
 0x43a   : > { %1117 = vmatpush.msra.mxu1 %v6066_v20 }
 0x43c   : > { %1118 = vmatpush.msra.mxu1 %v5886_v46 }
 0x43e   : > { %1119 = vmatpush.msra.mxu1 %v5459_v34 }
 0x43f   : > { %5196 = vmatmul.msk.f32.vlgmr.msra.gmra.mxu1 %vm1080_vm10, %v1079_v52 }
 0x4b6   : > { %v1101_v7 = vpop.f32.mrf.mxu0 }
 0x4b7   : > { %v6166_v27 = vadd.f32 %v5458_v19, %v1101_v7 }
 0x4b9   : > { %1178 = vrot.lane.b32.xlu1 %v6166_v27, %s5585_s28  ;;  %1188 = vrot.lane.b32.xlu2 %v6166_v27, %s5583_s26 }
 0x4ba   : > { %1198 = vrot.lane.b32.xlu0 %v6166_v27, %s5584_s27 }
 0x4bc   : > { %v1121_v28 = vpop.f32.mrf.mxu1 }
 0x4bd   : > { %v6180_v46 = vadd.f32 %v5459_v34, %v1121_v28 }
 0x4c1   : > { %1146 = vrot.lane.b32.xlu1 %v6166_v27, %s5588_s7  ;;  %1156 = vrot.lane.b32.xlu2 %v6166_v27, %s5587_s30 }
 0x4c2   : > { %1168 = vrot.lane.b32.xlu0 %v6166_v27, %s5586_s29 }
 0x4c9   : > { %1180 = vrot.lane.b32.xlu2 %v6180_v46, %s5585_s28  ;;  %1200 = vrot.lane.b32.xlu1 %v6180_v46, %s5584_s27 }
 0x4ca   : > { %1136 = vrot.lane.b32.xlu0 %v6166_v27, %s5589_s8 }
 0x4d1   : > { %1148 = vrot.lane.b32.xlu2 %v6180_v46, %s5588_s7  ;;  %1170 = vrot.lane.b32.xlu1 %v6180_v46, %s5586_s29 }
 0x4d2   : > { %1190 = vrot.lane.b32.xlu0 %v6180_v46, %s5583_s26 }
 0x4d9   : > { %1126 = vrot.lane.b32.xlu2 %v6166_v27, %s5590_s9  ;;  %1138 = vrot.lane.b32.xlu1 %v6180_v46, %s5589_s8 }
 0x4da   : > { %1158 = vrot.lane.b32.xlu0 %v6180_v46, %s5587_s30 }
 0x4e2   : > { %1128 = vrot.lane.b32.xlu0 %v6180_v46, %s5590_s9 }
 0x513   : > { %v1189_v45 = vpop.permute.xlu2 %1188 }
 0x51b   : > { %v1157_v58 = vpop.permute.xlu2 %1156 }
 0x523   : > { %v1181_v13 = vpop.permute.xlu2 %1180 }
 0x52b   : > { %v1179_v20 = vpop.permute.xlu1 %1178  ;;  %v1149_v17 = vpop.permute.xlu2 %1148 }
 0x52c   : > { %v1199_v56 = vpop.permute.xlu0 %1198  ;;  %v1182_v25 = vsel %vm387_vm2, %v1179_v20, %v1181_v13  ;;  %v1183_v26 = vsel %vm387_vm2, %v1181_v13, %v1179_v20 }
 0x52d   : > { %v6239_v50 = vmul.f32 %v1182_v25, %v5758_v22  ;;  %v6242_v9 = vmul.f32 %v1183_v26, %v5761_v23 }
 0x533   : > { %v1147_v18 = vpop.permute.xlu1 %1146  ;;  %v1127_v34 = vpop.permute.xlu2 %1126 }
 0x534   : > { %v1169_v51 = vpop.permute.xlu0 %1168  ;;  %v1150_v10 = vsel %vm352_vm5, %v1147_v18, %v1149_v17  ;;  %v1151_v29 = vsel %vm352_vm5, %v1149_v17, %v1147_v18  ;;  %v1227_v18 = vld [vmem:[#allocation3 + $0x8] sm:$0xff] }
 0x535   : > { %v6277_v57 = vmul.f32 %v1151_v29, %v5815_v42  ;;  %v6280_v1 = vmul.f32 %v1150_v10, %v5818_v43 }
 0x53b   : > { %v1201_v38 = vpop.permute.xlu1 %1200 }
 0x53c   : > { %v1137_v59 = vpop.permute.xlu0 %1136  ;;  %v1202_v62 = vsel %vm409_vm1, %v1199_v56, %v1201_v38  ;;  %v1203_v53 = vsel %vm409_vm1, %v1201_v38, %v1199_v56 }
 0x53d   : > { %v6209_v4 = vmul.f32 %v6206_v3, %v1202_v62  ;;  %v6214_v12 = vmul.f32 %v6211_v61, %v1203_v53 }
 0x53f   : > { %1238 = vmatpush.msra.mxu0 %v6209_v4  ;;  %1258 = vmatpush.msrb.mxu1 %v6214_v12 }
 0x543   : > { %v1171_v24 = vpop.permute.xlu1 %1170 }
 0x544   : > { %v1191_v5 = vpop.permute.xlu0 %1190  ;;  %v1172_v8 = vsel %vm376_vm3, %v1169_v51, %v1171_v24  ;;  %v1173_v16 = vsel %vm376_vm3, %v1171_v24, %v1169_v51 }
 0x545   : > { %v1192_v41 = vsel %vm398_vm0, %v1189_v45, %v1191_v5  ;;  %v1193_v35 = vsel %vm398_vm0, %v1191_v5, %v1189_v45  ;;  %v6247_v60 = vmul.f32 %v1172_v8, %v5785_v31  ;;  %v6250_v33 = vmul.f32 %v1173_v16, %v5788_v32 }
 0x546   : > { %v6227_v44 = vmul.f32 %v1192_v41, %v5738_v14  ;;  %v6230_v0 = vmul.f32 %v1193_v35, %v5741_v15 }
 0x548   : > { %1239 = vmatpush.msra.mxu0 %v6227_v44  ;;  %1259 = vmatpush.msrb.mxu1 %v6230_v0 }
 0x54a   : > { %1240 = vmatpush.msra.mxu0 %v6239_v50  ;;  %1260 = vmatpush.msrb.mxu1 %v6242_v9 }
 0x54b   : > { %v1139_v36 = vpop.permute.xlu1 %1138 }
 0x54c   : > { %v1159_v48 = vpop.permute.xlu0 %1158  ;;  %1241 = vmatpush.msra.mxu0 %v6247_v60  ;;  %1261 = vmatpush.msrb.mxu1 %v6250_v33  ;;  %v1140_v30 = vsel %vm341_vm6, %v1137_v59, %v1139_v36  ;;  %v1141_v47 = vsel %vm341_vm6, %v1139_v36, %v1137_v59 }
 0x54d   : > { %v1160_v11 = vsel %vm363_vm4, %v1157_v58, %v1159_v48  ;;  %v1161_v37 = vsel %vm363_vm4, %v1159_v48, %v1157_v58  ;;  %v6285_v52 = vmul.f32 %v1141_v47, %v5846_v54  ;;  %v6288_v19 = vmul.f32 %v1140_v30, %v5849_v55 }
 0x54e   : > { %1242 = vmatpush.msra.mxu0 %v6166_v27  ;;  %1262 = vmatpush.msrb.mxu1 %v6180_v46  ;;  %v6265_v49 = vmul.f32 %v1161_v37, %v5806_v39  ;;  %v6268_v21 = vmul.f32 %v1160_v11, %v5811_v40 }
 0x550   : > { %1243 = vmatpush.msra.mxu0 %v6265_v49  ;;  %1263 = vmatpush.msrb.mxu1 %v6268_v21 }
 0x552   : > { %1244 = vmatpush.msra.mxu0 %v6277_v57  ;;  %1264 = vmatpush.msrb.mxu1 %v6280_v1 }
 0x554   : > { %v1129_v7 = vpop.permute.xlu0 %1128  ;;  %1245 = vmatpush.msra.mxu0 %v6285_v52  ;;  %1265 = vmatpush.msrb.mxu1 %v6288_v19 }
 0x555   : > { %v1130_v28 = vsel %vm330_vm7, %v1127_v34, %v1129_v7  ;;  %v1131_v20 = vsel %vm330_vm7, %v1129_v7, %v1127_v34 }
 0x556   : > { %v6297_v45 = vmul.f32 %v1131_v20, %v5865_v63  ;;  %v6300_v56 = vmul.f32 %v1130_v28, %v5868_v2 }
 0x558   : > { %8309 = vst [vmem:[#allocation10_spill] sm:$0xff] %v6300_v56  ;;  %1246 = vmatpush.msra.mxu0 %v6297_v45  ;;  %1266 = vmatpush.msrb.mxu1 %v6300_v56 }
 0x559   : > { %5197 = vmatmul.msk.f32.vlgmr.msra.gmra.mxu0 %vm435_vm8, %v1227_v18  ;;  %5198 = vmatmul.msk.f32.vlgmr.msrb.gmra.mxu1 %vm435_vm8, %v1227_v18 }
 0x5d6   : > { %v1248_v51 = vpop.f32.mrf.mxu0  ;;  %v1268_v58 = vpop.f32.mrf.mxu1 }
 0x5d7   : > { %v1273_v38 = vmul.f32 0.70710677, %v1248_v51  ;;  %v1274_v59 = vmul.f32 0.70710677, %v1268_v58 }
 0x5d9   : > { %v1275_v62 = vand.u32 2147483647, %v1273_v38  ;;  %v1276_v53 = vand.u32 2147483647, %v1274_v59  ;;  %vm1319_vm12 = vcmp.lt.f32.partialorder %v1273_v38, 0.0  ;;  %vm1320_vm13 = vcmp.lt.f32.partialorder %v1274_v59, 0.0 }
 0x5db   : > { %v1277_v13 = vmul.f32 0.3275911, %v1275_v62  ;;  %v1278_v24 = vmul.f32 0.3275911, %v1276_v53  ;;  %v1307_v36 = vsub.f32 0.0, %v1275_v62  ;;  %v1308_v11 = vsub.f32 0.0, %v1276_v53 }
 0x5dd   : > { %v1279_v5 = vadd.f32 1.0, %v1277_v13  ;;  %v1280_v25 = vadd.f32 1.0, %v1278_v24  ;;  %v1309_v47 = vmul.f32 %v1307_v36, %v1275_v62  ;;  %v1310_v28 = vmul.f32 %v1308_v11, %v1276_v53 }
 0x5df   : > { %5338 = vrcp.f32 %v1279_v5  ;;  %v1311_v13 = vmul.f32 1.442695, %v1309_v47 }
 0x5e0   : > { %5340 = vrcp.f32 %v1280_v25 }
 0x5e1   : > { %5342 = vpow2.f32 %v1311_v13  ;;  %v1272_v13 = vmul.f32 0.5, %v1268_v58 }
 0x5e5   : > { %v5339_v26 = vpop.eup %5338 }
 0x5e6   : > { %v5341_v41 = vpop.eup %5340  ;;  %v1283_v35 = vmul.f32 %v5339_v26, %v1279_v5  ;;  %v1313_v5 = vmul.f32 1.442695, %v1310_v28 }
 0x5e7   : > { %v1284_v8 = vmul.f32 %v5341_v41, %v1280_v25  ;;  %v5343_v62 = vpop.eup %5342 }
 0x5e8   : > { %v1285_v16 = vsub.f32 2.0, %v1283_v35  ;;  %5344 = vpow2.f32 %v1313_v5 }
 0x5e9   : > { %v1286_v17 = vsub.f32 2.0, %v1284_v8 }
 0x5ea   : > { %v1287_v48 = vmul.f32 %v5339_v26, %v1285_v16 }
 0x5eb   : > { %v1288_v10 = vmul.f32 %v5341_v41, %v1286_v17 }
 0x5ec   : > { %v1289_v29 = vmul.f32 1.0614054, %v1287_v48 }
 0x5ed   : > { %v1290_v37 = vmul.f32 1.0614054, %v1288_v10 }
 0x5ee   : > { %v1291_v30 = vadd.f32 -1.4531521, %v1289_v29 }
 0x5ef   : > { %v1292_v34 = vadd.f32 -1.4531521, %v1290_v37  ;;  %v5345_v37 = vpop.eup %5344 }
 0x5f0   : > { %v1293_v7 = vmul.f32 %v1291_v30, %v1287_v48 }
 0x5f1   : > { %v1294_v20 = vmul.f32 %v1292_v34, %v1288_v10 }
 0x5f2   : > { %v1295_v18 = vadd.f32 1.4214138, %v1293_v7 }
 0x5f3   : > { %v1296_v24 = vadd.f32 1.4214138, %v1294_v20 }
 0x5f4   : > { %v1297_v56 = vmul.f32 %v1295_v18, %v1287_v48 }
 0x5f5   : > { %v1298_v25 = vmul.f32 %v1296_v24, %v1288_v10 }
 0x5f6   : > { %v1299_v35 = vadd.f32 -0.28449672, %v1297_v56  ;;  %v1271_v56 = vmul.f32 0.5, %v1248_v51 }
 0x5f7   : > { %v1300_v26 = vadd.f32 -0.28449672, %v1298_v25 }
 0x5f8   : > { %v1301_v8 = vmul.f32 %v1299_v35, %v1287_v48 }
 0x5f9   : > { %v1302_v41 = vmul.f32 %v1300_v26, %v1288_v10 }
 0x5fa   : > { %v1303_v16 = vadd.f32 0.2548296, %v1301_v8 }
 0x5fb   : > { %v1304_v17 = vadd.f32 0.2548296, %v1302_v41 }
 0x5fc   : > { %v1305_v29 = vmul.f32 %v1303_v16, %v1287_v48 }
 0x5fd   : > { %v1306_v36 = vmul.f32 %v1304_v17, %v1288_v10 }
 0x5fe   : > { %v1315_v53 = vmul.f32 %v5343_v62, %v1305_v29 }
 0x5ff   : > { %v1316_v11 = vmul.f32 %v5345_v37, %v1306_v36 }
 0x600   : > { %v1317_v30 = vsub.f32 1.0, %v1315_v53 }
 0x601   : > { %v1318_v47 = vsub.f32 1.0, %v1316_v11 }
 0x602   : > { %v1321_v34 = vsub.f32 0.0, %v1317_v30 }
 0x603   : > { %v1322_v7 = vsub.f32 0.0, %v1318_v47 }
 0x604   : > { %v1323_v28 = vsel %vm1319_vm12, %v1321_v34, %v1317_v30 }
 0x605   : > { %v1325_v20 = vadd.f32 1.0, %v1323_v28  ;;  %v1324_v18 = vsel %vm1320_vm13, %v1322_v7, %v1318_v47 }
 0x606   : > { %v1326_v24 = vadd.f32 1.0, %v1324_v18 }
 0x607   : > { %v6306_v5 = vmul.f32 %v1325_v20, %v1271_v56 }
 0x608   : > { %v6308_v48 = vmul.f32 %v1326_v24, %v1272_v13 }
 0x609   : > { %1371 = vrot.lane.b32.xlu0 %v6306_v5, %s5586_s29  ;;  %1381 = vrot.lane.b32.xlu1 %v6306_v5, %s5585_s28 }
 0x60a   : > { %1383 = vrot.lane.b32.xlu2 %v6308_v48, %s5585_s28 }
 0x611   : > { %1361 = vrot.lane.b32.xlu0 %v6308_v48, %s5587_s30  ;;  %1373 = vrot.lane.b32.xlu1 %v6308_v48, %s5586_s29 }
 0x612   : > { %1359 = vrot.lane.b32.xlu2 %v6306_v5, %s5587_s30 }
 0x619   : > { %1339 = vrot.lane.b32.xlu0 %v6306_v5, %s5589_s8  ;;  %1349 = vrot.lane.b32.xlu1 %v6306_v5, %s5588_s7 }
 0x61a   : > { %1351 = vrot.lane.b32.xlu2 %v6308_v48, %s5588_s7 }
 0x621   : > { %1331 = vrot.lane.b32.xlu0 %v6308_v48, %s5590_s9  ;;  %1341 = vrot.lane.b32.xlu1 %v6308_v48, %s5589_s8 }
 0x622   : > { %1329 = vrot.lane.b32.xlu2 %v6306_v5, %s5590_s9 }
 0x629   : > { %1391 = vrot.lane.b32.xlu0 %v6306_v5, %s5583_s26  ;;  %1401 = vrot.lane.b32.xlu1 %v6306_v5, %s5584_s27 }
 0x62a   : > { %1403 = vrot.lane.b32.xlu2 %v6308_v48, %s5584_s27 }
 0x631   : > { %1393 = vrot.lane.b32.xlu1 %v6308_v48, %s5583_s26 }
 0x664   : > { %v1384_v51 = vpop.permute.xlu2 %1383 }
 0x66c   : > { %v1360_v25 = vpop.permute.xlu2 %1359 }
 0x674   : > { %v1352_v53 = vpop.permute.xlu2 %1351 }
 0x67b   : > { %v1372_v58 = vpop.permute.xlu0 %1371  ;;  %v1382_v38 = vpop.permute.xlu1 %1381 }
 0x67c   : > { %v1385_v59 = vsel %vm387_vm2, %v1382_v38, %v1384_v51  ;;  %v1386_v10 = vsel %vm387_vm2, %v1384_v51, %v1382_v38  ;;  %v1330_v18 = vpop.permute.xlu2 %1329 }
 0x67d   : > { %v6347_v35 = vmul.f32 %v1385_v59, %v5758_v22  ;;  %v6350_v26 = vmul.f32 %v1386_v10, %v5761_v23 }
 0x67f   : > { %1453 = vmatpush.msrb.mxu3 %v6347_v35  ;;  %1493 = vmatpush.msra.mxu2 %v6350_v26 }
 0x683   : > { %v1362_v8 = vpop.permute.xlu0 %1361  ;;  %v1374_v41 = vpop.permute.xlu1 %1373 }
 0x684   : > { %v1375_v16 = vsel %vm376_vm3, %v1372_v58, %v1374_v41  ;;  %v1376_v17 = vsel %vm376_vm3, %v1374_v41, %v1372_v58  ;;  %v1363_v36 = vsel %vm363_vm4, %v1360_v25, %v1362_v8  ;;  %v1364_v37 = vsel %vm363_vm4, %v1362_v8, %v1360_v25 }
 0x685   : > { %v6359_v29 = vmul.f32 %v1375_v16, %v5785_v31  ;;  %v6362_v62 = vmul.f32 %v1376_v17, %v5788_v32  ;;  %v6373_v11 = vmul.f32 %v1364_v37, %v5806_v39  ;;  %v6376_v30 = vmul.f32 %v1363_v36, %v5811_v40  ;;  %v1404_v16 = vpop.permute.xlu2 %1403 }
 0x687   : > { %1454 = vmatpush.msrb.mxu3 %v6359_v29  ;;  %1494 = vmatpush.msra.mxu2 %v6362_v62 }
 0x689   : > { %1455 = vmatpush.msrb.mxu3 %v6306_v5  ;;  %1495 = vmatpush.msra.mxu2 %v6308_v48 }
 0x68b   : > { %v1340_v47 = vpop.permute.xlu0 %1339  ;;  %v1350_v34 = vpop.permute.xlu1 %1349  ;;  %1456 = vmatpush.msrb.mxu3 %v6373_v11  ;;  %1496 = vmatpush.msra.mxu2 %v6376_v30 }
 0x68c   : > { %v1353_v7 = vsel %vm352_vm5, %v1350_v34, %v1352_v53  ;;  %v1354_v28 = vsel %vm352_vm5, %v1352_v53, %v1350_v34 }
 0x68d   : > { %v6385_v56 = vmul.f32 %v1354_v28, %v5815_v42  ;;  %v6388_v20 = vmul.f32 %v1353_v7, %v5818_v43 }
 0x68f   : > { %1457 = vmatpush.msrb.mxu3 %v6385_v56  ;;  %1497 = vmatpush.msra.mxu2 %v6388_v20 }
 0x693   : > { %v1332_v13 = vpop.permute.xlu0 %1331  ;;  %v1342_v24 = vpop.permute.xlu1 %1341 }
 0x694   : > { %v1333_v51 = vsel %vm330_vm7, %v1330_v18, %v1332_v13  ;;  %v1334_v58 = vsel %vm330_vm7, %v1332_v13, %v1330_v18  ;;  %v1343_v38 = vsel %vm341_vm6, %v1340_v47, %v1342_v24  ;;  %v1344_v59 = vsel %vm341_vm6, %v1342_v24, %v1340_v47 }
 0x695   : > { %v1345_v10 = vmul.f32 %v1344_v59, %v5846_v54  ;;  %v1346_v25 = vmul.f32 %v1343_v38, %v5849_v55  ;;  %v1335_v8 = vmul.f32 %v1334_v58, %v5865_v63  ;;  %v1336_v41 = vmul.f32 %v1333_v51, %v5868_v2  ;;  %v5200_v51 = vld [vmem:[%s8288_s2 + $0x18] sm:$0xff]  ;;  %v5199_v58 = vld [vmem:[%s8288_s2 + $0x10] sm:$0xff]  ;;  %v8310_v38 = vld [vmem:[#allocation10_spill] sm:$0xff] }
 0x697   : > { %1458 = vmatpush.msrb.mxu3 %v1345_v10  ;;  %1498 = vmatpush.msra.mxu2 %v1346_v25 }
 0x699   : > { %1459 = vmatpush.msrb.mxu3 %v1335_v8  ;;  %1499 = vmatpush.msra.mxu2 %v1336_v41 }
 0x69b   : > { %v1402_v17 = vpop.permute.xlu1 %1401  ;;  %1460 = vmatpush.msrb.mxu3 %v6209_v4  ;;  %1500 = vmatpush.msra.mxu2 %v6214_v12  ;;  %v1392_v34 = vpop.permute.xlu0 %1391 }
 0x69c   : > { %v1405_v36 = vsel %vm409_vm1, %v1402_v17, %v1404_v16  ;;  %v1406_v37 = vsel %vm409_vm1, %v1404_v16, %v1402_v17 }
 0x69d   : > { %v6411_v53 = vmul.f32 %v6206_v3, %v1405_v36  ;;  %v6414_v47 = vmul.f32 %v6211_v61, %v1406_v37  ;;  %1461 = vmatpush.msrb.mxu3 %v6227_v44  ;;  %1501 = vmatpush.msra.mxu2 %v6230_v0 }
 0x69f   : > { %1462 = vmatpush.msrb.mxu3 %v6239_v50  ;;  %1487 = vmatpush.msra.mxu1 %v6411_v53 }
 0x6a0   : > { %1502 = vmatpush.msra.mxu2 %v6242_v9  ;;  %1527 = vmatpush.msrb.mxu0 %v6414_v47 }
 0x6a1   : > { %1463 = vmatpush.msrb.mxu3 %v6247_v60 }
 0x6a2   : > { %1503 = vmatpush.msra.mxu2 %v6250_v33 }
 0x6a3   : > { %v1394_v7 = vpop.permute.xlu1 %1393  ;;  %1464 = vmatpush.msrb.mxu3 %v6166_v27 }
 0x6a4   : > { %v1395_v28 = vsel %vm398_vm0, %v1392_v34, %v1394_v7  ;;  %v1396_v18 = vsel %vm398_vm0, %v1394_v7, %v1392_v34  ;;  %1504 = vmatpush.msra.mxu2 %v6180_v46 }
 0x6a5   : > { %1465 = vmatpush.msrb.mxu3 %v6265_v49  ;;  %v6432_v13 = vmul.f32 %v1395_v28, %v5738_v14  ;;  %v6435_v24 = vmul.f32 %v1396_v18, %v5741_v15 }
 0x6a6   : > { %1505 = vmatpush.msra.mxu2 %v6268_v21 }
 0x6a7   : > { %1466 = vmatpush.msrb.mxu3 %v6277_v57  ;;  %1488 = vmatpush.msra.mxu1 %v6432_v13 }
 0x6a8   : > { %1506 = vmatpush.msra.mxu2 %v6280_v1  ;;  %1528 = vmatpush.msrb.mxu0 %v6435_v24 }
 0x6a9   : > { %1733 = vmatpush.msrb.mxu1 %v6347_v35  ;;  %1467 = vmatpush.msrb.mxu3 %v6285_v52 }
 0x6aa   : > { %1507 = vmatpush.msra.mxu2 %v6288_v19  ;;  %5201 = vmatmul.msk.f32.vlgmr.msra.gmra.mxu1 %vm657_vm11, %v5200_v51 }
 0x6ab   : > { %1734 = vmatpush.msrb.mxu1 %v6359_v29  ;;  %1468 = vmatpush.msrb.mxu3 %v6297_v45 }
 0x6ac   : > { %1508 = vmatpush.msra.mxu2 %v8310_v38  ;;  %1469 = vmatmul.f32.vlgmr.msrb.gmra.mxu3 %v5199_v58 }
 0x6ad   : > { %1509 = vmatmul.f32.vlgmr.msra.gmra.mxu2 %v5199_v58  ;;  %1735 = vmatpush.msrb.mxu1 %v6306_v5 }
 0x6ae   : > { %1773 = vmatpush.msra.mxu3 %v6350_v26  ;;  %5202 = vmatmul.msk.f32.vlgmr.msrb.gmra.mxu0 %vm657_vm11, %v5200_v51 }
 0x6af   : > { %1736 = vmatpush.msrb.mxu1 %v6373_v11 }
 0x6b0   : > { %1774 = vmatpush.msra.mxu3 %v6362_v62 }
 0x6b1   : > { %1737 = vmatpush.msrb.mxu1 %v6385_v56 }
 0x6b2   : > { %1775 = vmatpush.msra.mxu3 %v6308_v48 }
 0x6b3   : > { %1738 = vmatpush.msrb.mxu1 %v1345_v10 }
 0x6b4   : > { %1776 = vmatpush.msra.mxu3 %v6376_v30 }
 0x6b5   : > { %1739 = vmatpush.msrb.mxu1 %v1335_v8 }
 0x6b6   : > { %1777 = vmatpush.msra.mxu3 %v6388_v20 }
 0x6b7   : > { %1740 = vmatpush.msrb.mxu1 %v6209_v4 }
 0x6b8   : > { %1778 = vmatpush.msra.mxu3 %v1346_v25 }
 0x6b9   : > { %1741 = vmatpush.msrb.mxu1 %v6227_v44 }
 0x6ba   : > { %1779 = vmatpush.msra.mxu3 %v1336_v41 }
 0x6bb   : > { %1742 = vmatpush.msrb.mxu1 %v6239_v50 }
 0x6bc   : > { %1780 = vmatpush.msra.mxu3 %v6214_v12 }
 0x6bd   : > { %1743 = vmatpush.msrb.mxu1 %v6247_v60 }
 0x6be   : > { %1781 = vmatpush.msra.mxu3 %v6230_v0 }
 0x6bf   : > { %1744 = vmatpush.msrb.mxu1 %v6166_v27 }
 0x6c0   : > { %1782 = vmatpush.msra.mxu3 %v6242_v9 }
 0x6c1   : > { %1745 = vmatpush.msrb.mxu1 %v6265_v49 }
 0x6c2   : > { %1783 = vmatpush.msra.mxu3 %v6250_v33 }
 0x6c3   : > { %1746 = vmatpush.msrb.mxu1 %v6277_v57 }
 0x6c4   : > { %1784 = vmatpush.msra.mxu3 %v6180_v46 }
 0x6c5   : > { %1747 = vmatpush.msrb.mxu1 %v6285_v52 }
 0x6c6   : > { %1785 = vmatpush.msra.mxu3 %v6268_v21 }
 0x6c7   : > { %1748 = vmatpush.msrb.mxu1 %v6297_v45 }
 0x6c8   : > { %1786 = vmatpush.msra.mxu3 %v6280_v1 }
 0x6ca   : > { %1787 = vmatpush.msra.mxu3 %v6288_v19 }
 0x6cc   : > { %1788 = vmatpush.msra.mxu3 %v8310_v38 }
 0x727   : > { %v1490_v4 = vpop.f32.mrf.mxu1 }
 0x72b   : > { %v1530_v12 = vpop.f32.mrf.mxu0 }
 0x72f   : > { %v1470_v44 = vpop.f32.mrf.mxu3 }
 0x730   : > { %v1491_v0 = vadd.f32 %v1490_v4, %v1470_v44  ;;  %v1510_v50 = vpop.f32.mrf.mxu2 }
 0x731   : > { %v1531_v9 = vadd.f32 %v1530_v12, %v1510_v50 }
 0x732   : > { %v1535_v60 = vmul.f32 0.70710677, %v1491_v0 }
 0x733   : > { %v1536_v33 = vmul.f32 0.70710677, %v1531_v9 }
 0x734   : > { %v1537_v49 = vand.u32 2147483647, %v1535_v60  ;;  %vm1581_vm15 = vcmp.lt.f32.partialorder %v1535_v60, 0.0 }
 0x735   : > { %v1538_v57 = vand.u32 2147483647, %v1536_v33  ;;  %vm1582_vm9 = vcmp.lt.f32.partialorder %v1536_v33, 0.0 }
 0x736   : > { %v1539_v52 = vmul.f32 0.3275911, %v1537_v49  ;;  %v1569_v56 = vsub.f32 0.0, %v1537_v49 }
 0x737   : > { %v1540_v21 = vmul.f32 0.3275911, %v1538_v57  ;;  %v1570_v10 = vsub.f32 0.0, %v1538_v57 }
 0x738   : > { %v1541_v35 = vadd.f32 1.0, %v1539_v52  ;;  %v1571_v41 = vmul.f32 %v1569_v56, %v1537_v49  ;;  %v1533_v56 = vmul.f32 0.5, %v1491_v0 }
 0x739   : > { %v1542_v45 = vadd.f32 1.0, %v1540_v21  ;;  %v1572_v36 = vmul.f32 %v1570_v10, %v1538_v57 }
 0x73a   : > { %5346 = vrcp.f32 %v1541_v35  ;;  %v1573_v7 = vmul.f32 1.442695, %v1571_v41 }
 0x73b   : > { %5348 = vrcp.f32 %v1542_v45  ;;  %v1575_v51 = vmul.f32 1.442695, %v1572_v36 }
 0x73c   : > { %5350 = vpow2.f32 %v1573_v7 }
 0x73d   : > { %5352 = vpow2.f32 %v1575_v51  ;;  %v5203_v51 = vld [vmem:[%s8289_s3 + $0x10] sm:$0xff] }
 0x73e   : > { %1749 = vmatmul.f32.vlgmr.msrb.gmra.mxu1 %v5203_v51  ;;  %1789 = vmatmul.f32.vlgmr.msra.gmra.mxu3 %v5203_v51 }
 0x740   : > { %v5347_v1 = vpop.eup %5346 }
 0x741   : > { %v5349_v19 = vpop.eup %5348  ;;  %v1545_v26 = vmul.f32 %v5347_v1, %v1541_v35 }
 0x742   : > { %v1546_v29 = vmul.f32 %v5349_v19, %v1542_v45  ;;  %v5351_v49 = vpop.eup %5350 }
 0x743   : > { %v1547_v62 = vsub.f32 2.0, %v1545_v26  ;;  %v5353_v45 = vpop.eup %5352 }
 0x744   : > { %v1548_v11 = vsub.f32 2.0, %v1546_v29 }
 0x745   : > { %v1549_v30 = vmul.f32 %v5347_v1, %v1547_v62 }
 0x746   : > { %v1550_v20 = vmul.f32 %v5349_v19, %v1548_v11 }
 0x747   : > { %v1551_v59 = vmul.f32 1.0614054, %v1549_v30 }
 0x748   : > { %v1552_v25 = vmul.f32 1.0614054, %v1550_v20 }
 0x749   : > { %v1553_v8 = vadd.f32 -1.4531521, %v1551_v59 }
 0x74a   : > { %v1554_v16 = vadd.f32 -1.4531521, %v1552_v25  ;;  %v1534_v25 = vmul.f32 0.5, %v1531_v9 }
 0x74b   : > { %v1555_v17 = vmul.f32 %v1553_v8, %v1549_v30 }
 0x74c   : > { %v1556_v37 = vmul.f32 %v1554_v16, %v1550_v20 }
 0x74d   : > { %v1557_v34 = vadd.f32 1.4214138, %v1555_v17 }
 0x74e   : > { %v1558_v28 = vadd.f32 1.4214138, %v1556_v37 }
 0x74f   : > { %v1559_v18 = vmul.f32 %v1557_v34, %v1549_v30 }
 0x750   : > { %v1560_v58 = vmul.f32 %v1558_v28, %v1550_v20 }
 0x751   : > { %v1561_v38 = vadd.f32 -0.28449672, %v1559_v18 }
 0x752   : > { %v1562_v4 = vadd.f32 -0.28449672, %v1560_v58 }
 0x753   : > { %v1563_v12 = vmul.f32 %v1561_v38, %v1549_v30 }
 0x754   : > { %v1564_v44 = vmul.f32 %v1562_v4, %v1550_v20 }
 0x755   : > { %v1565_v50 = vadd.f32 0.2548296, %v1563_v12 }
 0x756   : > { %v1566_v52 = vadd.f32 0.2548296, %v1564_v44 }
 0x757   : > { %v1567_v21 = vmul.f32 %v1565_v50, %v1549_v30 }
 0x758   : > { %v1568_v35 = vmul.f32 %v1566_v52, %v1550_v20 }
 0x759   : > { %v1577_v57 = vmul.f32 %v5351_v49, %v1567_v21 }
 0x75a   : > { %v1578_v1 = vmul.f32 %v5353_v45, %v1568_v35 }
 0x75b   : > { %v1579_v19 = vsub.f32 1.0, %v1577_v57 }
 0x75c   : > { %v1580_v26 = vsub.f32 1.0, %v1578_v1 }
 0x75d   : > { %v1583_v29 = vsub.f32 0.0, %v1579_v19 }
 0x75e   : > { %v1584_v62 = vsub.f32 0.0, %v1580_v26 }
 0x75f   : > { %v1585_v11 = vsel %vm1581_vm15, %v1583_v29, %v1579_v19 }
 0x760   : > { %v1587_v59 = vadd.f32 1.0, %v1585_v11  ;;  %v1586_v10 = vsel %vm1582_vm9, %v1584_v62, %v1580_v26 }
 0x761   : > { %v1588_v8 = vadd.f32 1.0, %v1586_v10 }
 0x762   : > { %v6482_v41 = vmul.f32 %v1587_v59, %v1533_v56  ;;  %v5204_v59 = vld [vmem:[%s8289_s3 + $0x18] sm:$0xff] }
 0x763   : > { %v6484_v30 = vmul.f32 %v1588_v8, %v1534_v25 }
 0x764   : > { %1653 = vrot.lane.b32.xlu1 %v6482_v41, %s5583_s26  ;;  %1663 = vrot.lane.b32.xlu2 %v6482_v41, %s5584_s27 }
 0x765   : > { %1665 = vrot.lane.b32.xlu0 %v6484_v30, %s5584_s27 }
 0x76c   : > { %1645 = vrot.lane.b32.xlu1 %v6484_v30, %s5585_s28  ;;  %1655 = vrot.lane.b32.xlu2 %v6484_v30, %s5583_s26 }
 0x76d   : > { %1643 = vrot.lane.b32.xlu0 %v6482_v41, %s5585_s28 }
 0x774   : > { %1621 = vrot.lane.b32.xlu1 %v6482_v41, %s5587_s30  ;;  %1633 = vrot.lane.b32.xlu2 %v6482_v41, %s5586_s29 }
 0x775   : > { %1635 = vrot.lane.b32.xlu0 %v6484_v30, %s5586_s29 }
 0x77c   : > { %1613 = vrot.lane.b32.xlu1 %v6484_v30, %s5588_s7  ;;  %1623 = vrot.lane.b32.xlu2 %v6484_v30, %s5587_s30 }
 0x77d   : > { %1611 = vrot.lane.b32.xlu0 %v6482_v41, %s5588_s7 }
 0x784   : > { %1591 = vrot.lane.b32.xlu1 %v6482_v41, %s5590_s9  ;;  %1601 = vrot.lane.b32.xlu2 %v6482_v41, %s5589_s8 }
 0x785   : > { %1603 = vrot.lane.b32.xlu0 %v6484_v30, %s5589_s8 }
 0x78c   : > { %1593 = vrot.lane.b32.xlu2 %v6484_v30, %s5590_s9 }
 0x7be   : > { %v1664_v0 = vpop.permute.xlu2 %1663 }
 0x7c6   : > { %v1656_v9 = vpop.permute.xlu2 %1655 }
 0x7ce   : > { %v1634_v17 = vpop.permute.xlu2 %1633 }
 0x7d6   : > { %v1654_v60 = vpop.permute.xlu1 %1653  ;;  %v1624_v58 = vpop.permute.xlu2 %1623 }
 0x7d7   : > { %v1666_v33 = vpop.permute.xlu0 %1665  ;;  %v1657_v16 = vsel %vm398_vm0, %v1654_v60, %v1656_v9  ;;  %v1658_v10 = vsel %vm398_vm0, %v1656_v9, %v1654_v60 }
 0x7d8   : > { %v1667_v20 = vsel %vm409_vm1, %v1664_v0, %v1666_v33  ;;  %v1659_v37 = vmul.f32 %v1657_v16, %v5738_v14  ;;  %v1668_v56 = vsel %vm409_vm1, %v1666_v33, %v1664_v0  ;;  %v1660_v0 = vmul.f32 %v1658_v10, %v5741_v15 }
 0x7d9   : > { %v1669_v36 = vmul.f32 %v6206_v3, %v1667_v20  ;;  %v1670_v25 = vmul.f32 %v6211_v61, %v1668_v56 }
 0x7db   : > { %1758 = vmatpush.msra.mxu0 %v1669_v36 }
 0x7dd   : > { %1759 = vmatpush.msra.mxu0 %v1659_v37 }
 0x7de   : > { %v1646_v34 = vpop.permute.xlu1 %1645  ;;  %v1602_v50 = vpop.permute.xlu2 %1601 }
 0x7df   : > { %v1644_v7 = vpop.permute.xlu0 %1643 }
 0x7e0   : > { %v1647_v28 = vsel %vm387_vm2, %v1644_v7, %v1646_v34  ;;  %v1648_v8 = vsel %vm387_vm2, %v1646_v34, %v1644_v7  ;;  %v1750_v34 = vpop.f32.mrf.mxu1 }
 0x7e1   : > { %v1649_v18 = vmul.f32 %v1647_v28, %v5758_v22  ;;  %v1650_v33 = vmul.f32 %v1648_v8, %v5761_v23 }
 0x7e3   : > { %1760 = vmatpush.msra.mxu0 %v1649_v18 }
 0x7e6   : > { %v1622_v3 = vpop.permute.xlu1 %1621  ;;  %v1594_v1 = vpop.permute.xlu2 %1593 }
 0x7e7   : > { %v1636_v38 = vpop.permute.xlu0 %1635  ;;  %v1626_v44 = vsel %vm363_vm4, %v1624_v58, %v1622_v3  ;;  %v1625_v61 = vsel %vm363_vm4, %v1622_v3, %v1624_v58 }
 0x7e8   : > { %v1637_v4 = vsel %vm376_vm3, %v1634_v17, %v1636_v38  ;;  %v1627_v52 = vmul.f32 %v1626_v44, %v5806_v39  ;;  %v1628_v60 = vmul.f32 %v1625_v61, %v5811_v40  ;;  %v1790_v44 = vpop.f32.mrf.mxu3 }
 0x7e9   : > { %v1639_v12 = vmul.f32 %v1637_v4, %v5785_v31 }
 0x7eb   : > { %1761 = vmatpush.msra.mxu0 %v1639_v12 }
 0x7ed   : > { %1762 = vmatpush.msra.mxu0 %v6482_v41 }
 0x7ee   : > { %v1614_v21 = vpop.permute.xlu1 %1613 }
 0x7ef   : > { %v1612_v49 = vpop.permute.xlu0 %1611  ;;  %1763 = vmatpush.msra.mxu0 %v1627_v52 }
 0x7f0   : > { %v1616_v35 = vsel %vm352_vm5, %v1614_v21, %v1612_v49 }
 0x7f1   : > { %v1617_v45 = vmul.f32 %v1616_v35, %v5815_v42 }
 0x7f3   : > { %1764 = vmatpush.msra.mxu0 %v1617_v45 }
 0x7f6   : > { %v1592_v57 = vpop.permute.xlu1 %1591 }
 0x7f7   : > { %v1604_v19 = vpop.permute.xlu0 %1603  ;;  %v1596_v29 = vsel %vm330_vm7, %v1594_v1, %v1592_v57 }
 0x7f8   : > { %v1606_v26 = vsel %vm341_vm6, %v1604_v19, %v1602_v50  ;;  %v1597_v11 = vmul.f32 %v1596_v29, %v5865_v63  ;;  %v1605_v20 = vsel %vm341_vm6, %v1602_v50, %v1604_v19 }
 0x7f9   : > { %v1607_v62 = vmul.f32 %v1606_v26, %v5846_v54  ;;  %v1608_v36 = vmul.f32 %v1605_v20, %v5849_v55 }
 0x7fb   : > { %1765 = vmatpush.msra.mxu0 %v1607_v62 }
 0x7fd   : > { %1766 = vmatpush.msra.mxu0 %v1597_v11 }
 0x7ff   : > { %1767 = vmatpush.msra.mxu0 %v6411_v53  ;;  %v1638_v53 = vsel %vm376_vm3, %v1636_v38, %v1634_v17  ;;  %v1595_v17 = vsel %vm330_vm7, %v1592_v57, %v1594_v1 }
 0x800   : > { %v1640_v9 = vmul.f32 %v1638_v53, %v5788_v32  ;;  %v1598_v37 = vmul.f32 %v1595_v17, %v5868_v2 }
 0x801   : > { %1768 = vmatpush.msra.mxu0 %v6432_v13  ;;  %v1615_v13 = vsel %vm352_vm5, %v1612_v49, %v1614_v21 }
 0x802   : > { %5205 = vmatmul.msk.f32.vlgmr.msra.gmra.mxu0 %vm937_vm14, %v5204_v59  ;;  %v1618_v16 = vmul.f32 %v1615_v13, %v5818_v43 }
 0x803   : > { %1798 = vmatpush.msrb.mxu0 %v1670_v25 }
 0x805   : > { %1799 = vmatpush.msrb.mxu0 %v1660_v0 }
 0x807   : > { %1800 = vmatpush.msrb.mxu0 %v1650_v33 }
 0x809   : > { %1801 = vmatpush.msrb.mxu0 %v1640_v9 }
 0x80b   : > { %1802 = vmatpush.msrb.mxu0 %v6484_v30 }
 0x80d   : > { %1803 = vmatpush.msrb.mxu0 %v1628_v60 }
 0x80f   : > { %1804 = vmatpush.msrb.mxu0 %v1618_v16 }
 0x811   : > { %1805 = vmatpush.msrb.mxu0 %v1608_v36 }
 0x813   : > { %1806 = vmatpush.msrb.mxu0 %v1598_v37 }
 0x815   : > { %1807 = vmatpush.msrb.mxu0 %v6414_v47 }
 0x817   : > { %1808 = vmatpush.msrb.mxu0 %v6435_v24 }
 0x818   : > { %5206 = vmatmul.msk.f32.vlgmr.msrb.gmra.mxu0 %vm937_vm14, %v5204_v59 }
 0x87f   : > { %v1770_v7 = vpop.f32.mrf.mxu0 }
 0x880   : > { %v1771_v28 = vadd.f32 %v1770_v7, %v1750_v34 }
 0x882   : > { %v1815_v18 = vmul.f32 0.70710677, %v1771_v28  ;;  %v1813_v37 = vmul.f32 0.5, %v1771_v28 }
 0x884   : > { %v1817_v51 = vand.u32 2147483647, %v1815_v18  ;;  %vm1861_vm12 = vcmp.lt.f32.partialorder %v1815_v18, 0.0 }
 0x886   : > { %v1819_v58 = vmul.f32 0.3275911, %v1817_v51  ;;  %v1849_v21 = vsub.f32 0.0, %v1817_v51 }
 0x888   : > { %v1821_v3 = vadd.f32 1.0, %v1819_v58  ;;  %v1851_v45 = vmul.f32 %v1849_v21, %v1817_v51 }
 0x88a   : > { %5354 = vrcp.f32 %v1821_v3  ;;  %v1853_v29 = vmul.f32 1.442695, %v1851_v45 }
 0x890   : > { %v5355_v38 = vpop.eup %5354 }
 0x891   : > { %v1825_v4 = vmul.f32 %v5355_v38, %v1821_v3 }
 0x893   : > { %v1827_v12 = vsub.f32 2.0, %v1825_v4 }
 0x895   : > { %v1829_v50 = vmul.f32 %v5355_v38, %v1827_v12  ;;  %v1810_v52 = vpop.f32.mrf.mxu0 }
 0x896   : > { %v1811_v47 = vadd.f32 %v1810_v52, %v1790_v44  ;;  %v1872_v44 = vld [vmem:[#allocation5 + $0x8] sm:$0xff] }
 0x897   : > { %v1831_v49 = vmul.f32 1.0614054, %v1829_v50 }
 0x898   : > { %v1816_v24 = vmul.f32 0.70710677, %v1811_v47 }
 0x899   : > { %v1833_v35 = vadd.f32 -1.4531521, %v1831_v49 }
 0x89a   : > { %v1818_v57 = vand.u32 2147483647, %v1816_v24  ;;  %vm1862_vm13 = vcmp.lt.f32.partialorder %v1816_v24, 0.0 }
 0x89b   : > { %v1835_v1 = vmul.f32 %v1833_v35, %v1829_v50 }
 0x89c   : > { %v1820_v19 = vmul.f32 0.3275911, %v1818_v57  ;;  %v1850_v60 = vsub.f32 0.0, %v1818_v57 }
 0x89d   : > { %v1837_v26 = vadd.f32 1.4214138, %v1835_v1 }
 0x89e   : > { %v1822_v62 = vadd.f32 1.0, %v1820_v19  ;;  %v1852_v7 = vmul.f32 %v1850_v60, %v1818_v57  ;;  %v1814_v57 = vmul.f32 0.5, %v1811_v47 }
 0x89f   : > { %v1839_v11 = vmul.f32 %v1837_v26, %v1829_v50 }
 0x8a0   : > { %5356 = vrcp.f32 %v1822_v62  ;;  %v1855_v38 = vmul.f32 1.442695, %v1852_v7 }
 0x8a1   : > { %v1841_v56 = vadd.f32 -0.28449672, %v1839_v11  ;;  %5358 = vpow2.f32 %v1853_v29 }
 0x8a2   : > { %5360 = vpow2.f32 %v1855_v38 }
 0x8a3   : > { %v1843_v59 = vmul.f32 %v1841_v56, %v1829_v50 }
 0x8a5   : > { %v1845_v10 = vadd.f32 0.2548296, %v1843_v59 }
 0x8a6   : > { %v5357_v25 = vpop.eup %5356 }
 0x8a7   : > { %v1847_v8 = vmul.f32 %v1845_v10, %v1829_v50  ;;  %v1826_v0 = vmul.f32 %v5357_v25, %v1822_v62  ;;  %v5359_v53 = vpop.eup %5358  ;;  %v6630_v10 = vld [vmem:[#allocation7 + $0x10] ss:$0 sm:$0xff] }
 0x8a8   : > { %v5361_v52 = vpop.eup %5360 }
 0x8a9   : > { %v1857_v33 = vmul.f32 %v5359_v53, %v1847_v8  ;;  %v1828_v9 = vsub.f32 2.0, %v1826_v0  ;;  %v6635_v8 = vld [vmem:[#allocation7 + $0x18] ss:$0 sm:$0xff] }
 0x8ab   : > { %v1859_v61 = vsub.f32 1.0, %v1857_v33  ;;  %v1830_v13 = vmul.f32 %v5357_v25, %v1828_v9 }
 0x8ad   : > { %v1863_v20 = vsub.f32 0.0, %v1859_v61  ;;  %v1832_v16 = vmul.f32 1.0614054, %v1830_v13 }
 0x8af   : > { %v1865_v17 = vsel %vm1861_vm12, %v1863_v20, %v1859_v61  ;;  %v1834_v36 = vadd.f32 -1.4531521, %v1832_v16 }
 0x8b0   : > { %v1867_v34 = vadd.f32 1.0, %v1865_v17 }
 0x8b1   : > { %v1836_v51 = vmul.f32 %v1834_v36, %v1830_v13 }
 0x8b2   : > { %v1869_v58 = vmul.f32 %v1867_v34, %v1813_v37 }
 0x8b3   : > { %v1838_v3 = vadd.f32 1.4214138, %v1836_v51 }
 0x8b4   : > { %1888 = vmatpush.msrb.mxu2 %v1869_v58 }
 0x8b5   : > { %v1840_v4 = vmul.f32 %v1838_v3, %v1830_v13 }
 0x8b6   : > { %1889 = vmatpush.msrb.mxu2 %v6482_v41 }
 0x8b7   : > { %v1842_v12 = vadd.f32 -0.28449672, %v1840_v4 }
 0x8b8   : > { %1890 = vmatpush.msrb.mxu2 %v6306_v5 }
 0x8b9   : > { %v1844_v50 = vmul.f32 %v1842_v12, %v1830_v13 }
 0x8ba   : > { %1891 = vmatpush.msrb.mxu2 %v6166_v27 }
 0x8bb   : > { %v1846_v18 = vadd.f32 0.2548296, %v1844_v50  ;;  %5207 = vmatmul.msk.f32.vlgmr.msrb.gmra.mxu2 %vm1080_vm10, %v1872_v44 }
 0x8bd   : > { %v1848_v28 = vmul.f32 %v1846_v18, %v1830_v13 }
 0x8bf   : > { %v1858_v21 = vmul.f32 %v5361_v52, %v1848_v28 }
 0x8c1   : > { %v1860_v49 = vsub.f32 1.0, %v1858_v21 }
 0x8c3   : > { %v1864_v35 = vsub.f32 0.0, %v1860_v49 }
 0x8c5   : > { %v1866_v45 = vsel %vm1862_vm13, %v1864_v35, %v1860_v49 }
 0x8c6   : > { %v1868_v41 = vadd.f32 1.0, %v1866_v45 }
 0x8c8   : > { %v1870_v1 = vmul.f32 %v1868_v41, %v1814_v57 }
 0x8ca   : > { %1908 = vmatpush.msra.mxu1 %v1870_v1 }
 0x8cc   : > { %1909 = vmatpush.msra.mxu1 %v6484_v30 }
 0x8ce   : > { %1910 = vmatpush.msra.mxu1 %v6308_v48 }
 0x8d0   : > { %1911 = vmatpush.msra.mxu1 %v6180_v46 }
 0x8d1   : > { %5208 = vmatmul.msk.f32.vlgmr.msra.gmra.mxu1 %vm1080_vm10, %v1872_v44 }
 0x93e   : > { %v1893_v5 = vpop.f32.mrf.mxu2 }
 0x93f   : > { %v6589_v19 = vadd.f32 %v1893_v5, %v6166_v27 }
 0x941   : > { %1970 = vrot.lane.b32.xlu1 %v6589_v19, %s5585_s28  ;;  %1980 = vrot.lane.b32.xlu2 %v6589_v19, %s5583_s26 }
 0x942   : > { %1990 = vrot.lane.b32.xlu0 %v6589_v19, %s5584_s27 }
 0x949   : > { %1938 = vrot.lane.b32.xlu1 %v6589_v19, %s5588_s7  ;;  %1948 = vrot.lane.b32.xlu2 %v6589_v19, %s5587_s30 }
 0x94a   : > { %1960 = vrot.lane.b32.xlu0 %v6589_v19, %s5586_s29 }
 0x94e   : > { %v1913_v27 = vpop.f32.mrf.mxu1 }
 0x94f   : > { %v6604_v48 = vadd.f32 %v1913_v27, %v6180_v46 }
 0x951   : > { %1972 = vrot.lane.b32.xlu2 %v6604_v48, %s5585_s28  ;;  %1992 = vrot.lane.b32.xlu1 %v6604_v48, %s5584_s27 }
 0x952   : > { %1928 = vrot.lane.b32.xlu0 %v6589_v19, %s5589_s8 }
 0x959   : > { %1940 = vrot.lane.b32.xlu2 %v6604_v48, %s5588_s7  ;;  %1962 = vrot.lane.b32.xlu1 %v6604_v48, %s5586_s29 }
 0x95a   : > { %1982 = vrot.lane.b32.xlu0 %v6604_v48, %s5583_s26 }
 0x961   : > { %1918 = vrot.lane.b32.xlu2 %v6589_v19, %s5590_s9  ;;  %1930 = vrot.lane.b32.xlu1 %v6604_v48, %s5589_s8 }
 0x962   : > { %1950 = vrot.lane.b32.xlu0 %v6604_v48, %s5587_s30 }
 0x96a   : > { %1920 = vrot.lane.b32.xlu0 %v6604_v48, %s5590_s9 }
 0x99b   : > { %v1981_v30 = vpop.permute.xlu2 %1980 }
 0x9a3   : > { %v1949_v29 = vpop.permute.xlu2 %1948 }
 0x9ab   : > { %v1973_v53 = vpop.permute.xlu2 %1972 }
 0x9b3   : > { %v1971_v46 = vpop.permute.xlu1 %1970  ;;  %v1941_v51 = vpop.permute.xlu2 %1940 }
 0x9b4   : > { %v1991_v47 = vpop.permute.xlu0 %1990  ;;  %v1974_v61 = vsel %vm387_vm2, %v1971_v46, %v1973_v53  ;;  %v1975_v13 = vsel %vm387_vm2, %v1973_v53, %v1971_v46 }
 0x9b5   : > { %v6663_v34 = vmul.f32 %v1974_v61, %v5758_v22  ;;  %v6666_v7 = vmul.f32 %v1975_v13, %v5761_v23 }
 0x9bb   : > { %v1939_v24 = vpop.permute.xlu1 %1938  ;;  %v1919_v1 = vpop.permute.xlu2 %1918 }
 0x9bc   : > { %v1961_v26 = vpop.permute.xlu0 %1960  ;;  %v1942_v12 = vsel %vm352_vm5, %v1939_v24, %v1941_v51  ;;  %v1943_v44 = vsel %vm352_vm5, %v1941_v51, %v1939_v24  ;;  %v2019_v24 = vld [vmem:[#allocation3 + $0x10] sm:$0xff] }
 0x9bd   : > { %v6701_v35 = vmul.f32 %v1943_v44, %v5815_v42  ;;  %v6704_v45 = vmul.f32 %v1942_v12, %v5818_v43 }
 0x9c3   : > { %v1993_v62 = vpop.permute.xlu1 %1992 }
 0x9c4   : > { %v1929_v11 = vpop.permute.xlu0 %1928  ;;  %v1994_v56 = vsel %vm409_vm1, %v1991_v47, %v1993_v62  ;;  %v1995_v59 = vsel %vm409_vm1, %v1993_v62, %v1991_v47 }
 0x9c5   : > { %v6633_v25 = vmul.f32 %v6630_v10, %v1994_v56  ;;  %v6638_v0 = vmul.f32 %v6635_v8, %v1995_v59 }
 0x9c7   : > { %2030 = vmatpush.msra.mxu2 %v6633_v25  ;;  %2050 = vmatpush.msrb.mxu1 %v6638_v0 }
 0x9cb   : > { %v1963_v33 = vpop.permute.xlu1 %1962 }
 0x9cc   : > { %v1983_v9 = vpop.permute.xlu0 %1982  ;;  %v1964_v36 = vsel %vm376_vm3, %v1961_v26, %v1963_v33  ;;  %v1965_v37 = vsel %vm376_vm3, %v1963_v33, %v1961_v26 }
 0x9cd   : > { %v1984_v60 = vsel %vm398_vm0, %v1981_v30, %v1983_v9  ;;  %v1985_v20 = vsel %vm398_vm0, %v1983_v9, %v1981_v30  ;;  %v6671_v58 = vmul.f32 %v1964_v36, %v5785_v31  ;;  %v6674_v3 = vmul.f32 %v1965_v37, %v5788_v32 }
 0x9ce   : > { %v6651_v16 = vmul.f32 %v1984_v60, %v5738_v14  ;;  %v6654_v17 = vmul.f32 %v1985_v20, %v5741_v15 }
 0x9d0   : > { %2031 = vmatpush.msra.mxu2 %v6651_v16  ;;  %2051 = vmatpush.msrb.mxu1 %v6654_v17 }
 0x9d2   : > { %2032 = vmatpush.msra.mxu2 %v6663_v34  ;;  %2052 = vmatpush.msrb.mxu1 %v6666_v7 }
 0x9d3   : > { %v1931_v4 = vpop.permute.xlu1 %1930 }
 0x9d4   : > { %v1951_v38 = vpop.permute.xlu0 %1950  ;;  %2033 = vmatpush.msra.mxu2 %v6671_v58  ;;  %2053 = vmatpush.msrb.mxu1 %v6674_v3  ;;  %v1932_v21 = vsel %vm341_vm6, %v1929_v11, %v1931_v4  ;;  %v1933_v49 = vsel %vm341_vm6, %v1931_v4, %v1929_v11 }
 0x9d5   : > { %v1952_v50 = vsel %vm363_vm4, %v1949_v29, %v1951_v38  ;;  %v1953_v18 = vsel %vm363_vm4, %v1951_v38, %v1949_v29  ;;  %v6709_v57 = vmul.f32 %v1933_v49, %v5846_v54  ;;  %v6712_v41 = vmul.f32 %v1932_v21, %v5849_v55 }
 0x9d6   : > { %2034 = vmatpush.msra.mxu2 %v6589_v19  ;;  %2054 = vmatpush.msrb.mxu1 %v6604_v48  ;;  %v6689_v28 = vmul.f32 %v1953_v18, %v5806_v39  ;;  %v6692_v52 = vmul.f32 %v1952_v50, %v5811_v40 }
 0x9d8   : > { %2035 = vmatpush.msra.mxu2 %v6689_v28  ;;  %2055 = vmatpush.msrb.mxu1 %v6692_v52 }
 0x9da   : > { %2036 = vmatpush.msra.mxu2 %v6701_v35  ;;  %2056 = vmatpush.msrb.mxu1 %v6704_v45 }
 0x9dc   : > { %v1921_v5 = vpop.permute.xlu0 %1920  ;;  %2037 = vmatpush.msra.mxu2 %v6709_v57  ;;  %2057 = vmatpush.msrb.mxu1 %v6712_v41 }
 0x9dd   : > { %v1922_v27 = vsel %vm330_vm7, %v1919_v1, %v1921_v5  ;;  %v1923_v46 = vsel %vm330_vm7, %v1921_v5, %v1919_v1 }
 0x9de   : > { %v6721_v30 = vmul.f32 %v1923_v46, %v5865_v63  ;;  %v6724_v47 = vmul.f32 %v1922_v27, %v5868_v2 }
 0x9e0   : > { %8311 = vst [vmem:[#allocation10_spill] sm:$0xff] %v6724_v47  ;;  %2038 = vmatpush.msra.mxu2 %v6721_v30  ;;  %2058 = vmatpush.msrb.mxu1 %v6724_v47 }
 0x9e1   : > { %5209 = vmatmul.msk.f32.vlgmr.msra.gmra.mxu2 %vm435_vm8, %v2019_v24  ;;  %5210 = vmatmul.msk.f32.vlgmr.msrb.gmra.mxu1 %vm435_vm8, %v2019_v24 }
 0xa5e   : > { %v2060_v26 = vpop.f32.mrf.mxu1 }
 0xa5f   : > { %v2066_v29 = vmul.f32 0.70710677, %v2060_v26 }
 0xa61   : > { %v2068_v62 = vand.u32 2147483647, %v2066_v29  ;;  %vm2112_vm15 = vcmp.lt.f32.partialorder %v2066_v29, 0.0 }
 0xa63   : > { %v2070_v11 = vmul.f32 0.3275911, %v2068_v62  ;;  %v2100_v51 = vsub.f32 0.0, %v2068_v62 }
 0xa64   : > { %v2040_v56 = vpop.f32.mrf.mxu2 }
 0xa65   : > { %v2072_v59 = vadd.f32 1.0, %v2070_v11  ;;  %v2065_v53 = vmul.f32 0.70710677, %v2040_v56  ;;  %v2102_v50 = vmul.f32 %v2100_v51, %v2068_v62 }
 0xa67   : > { %5362 = vrcp.f32 %v2072_v59  ;;  %v2067_v33 = vand.u32 2147483647, %v2065_v53  ;;  %v2105_v27 = vmul.f32 1.442695, %v2102_v50  ;;  %vm2111_vm9 = vcmp.lt.f32.partialorder %v2065_v53, 0.0 }
 0xa69   : > { %v2069_v9 = vmul.f32 0.3275911, %v2067_v33  ;;  %v2099_v49 = vsub.f32 0.0, %v2067_v33 }
 0xa6b   : > { %v2071_v61 = vadd.f32 1.0, %v2069_v9  ;;  %v2101_v11 = vmul.f32 %v2099_v49, %v2067_v33 }
 0xa6d   : > { %v5363_v13 = vpop.eup %5362  ;;  %5364 = vrcp.f32 %v2071_v61 }
 0xa6e   : > { %v2076_v60 = vmul.f32 %v5363_v13, %v2072_v59  ;;  %5366 = vpow2.f32 %v2105_v27 }
 0xa70   : > { %v2078_v20 = vsub.f32 2.0, %v2076_v60 }
 0xa72   : > { %v2080_v36 = vmul.f32 %v5363_v13, %v2078_v20  ;;  %v2103_v20 = vmul.f32 1.442695, %v2101_v11 }
 0xa73   : > { %v5365_v37 = vpop.eup %5364 }
 0xa74   : > { %v2082_v38 = vmul.f32 1.0614054, %v2080_v36  ;;  %v2075_v4 = vmul.f32 %v5365_v37, %v2071_v61  ;;  %v5367_v62 = vpop.eup %5366  ;;  %5368 = vpow2.f32 %v2103_v20 }
 0xa76   : > { %v2084_v12 = vadd.f32 -1.4531521, %v2082_v38  ;;  %v2077_v44 = vsub.f32 2.0, %v2075_v4 }
 0xa78   : > { %v2086_v18 = vmul.f32 %v2084_v12, %v2080_v36  ;;  %v2079_v21 = vmul.f32 %v5365_v37, %v2077_v44 }
 0xa7a   : > { %v2088_v1 = vadd.f32 1.4214138, %v2086_v18  ;;  %v2081_v5 = vmul.f32 1.0614054, %v2079_v21 }
 0xa7c   : > { %v2090_v46 = vmul.f32 %v2088_v1, %v2080_v36  ;;  %v2083_v24 = vadd.f32 -1.4531521, %v2081_v5  ;;  %v5369_v1 = vpop.eup %5368  ;;  %v2064_v5 = vmul.f32 0.5, %v2060_v26 }
 0xa7e   : > { %v2092_v9 = vadd.f32 -0.28449672, %v2090_v46  ;;  %v2085_v59 = vmul.f32 %v2083_v24, %v2079_v21 }
 0xa80   : > { %v2094_v13 = vmul.f32 %v2092_v9, %v2080_v36  ;;  %v2087_v60 = vadd.f32 1.4214138, %v2085_v59 }
 0xa82   : > { %v2096_v47 = vadd.f32 0.2548296, %v2094_v13  ;;  %v2089_v61 = vmul.f32 %v2087_v60, %v2079_v21 }
 0xa84   : > { %v2098_v38 = vmul.f32 %v2096_v47, %v2080_v36  ;;  %v2091_v4 = vadd.f32 -0.28449672, %v2089_v61  ;;  %v2063_v36 = vmul.f32 0.5, %v2040_v56 }
 0xa86   : > { %v2108_v37 = vmul.f32 %v5367_v62, %v2098_v38  ;;  %v2093_v51 = vmul.f32 %v2091_v4, %v2079_v21 }
 0xa88   : > { %v2110_v12 = vsub.f32 1.0, %v2108_v37  ;;  %v2095_v44 = vadd.f32 0.2548296, %v2093_v51 }
 0xa8a   : > { %v2114_v50 = vsub.f32 0.0, %v2110_v12  ;;  %v2097_v18 = vmul.f32 %v2095_v44, %v2079_v21 }
 0xa8c   : > { %v2116_v33 = vsel %vm2112_vm15, %v2114_v50, %v2110_v12  ;;  %v2107_v49 = vmul.f32 %v5369_v1, %v2097_v18 }
 0xa8d   : > { %v2118_v27 = vadd.f32 1.0, %v2116_v33 }
 0xa8e   : > { %v2109_v46 = vsub.f32 1.0, %v2107_v49 }
 0xa8f   : > { %v6730_v24 = vmul.f32 %v2118_v27, %v2064_v5 }
 0xa90   : > { %v2113_v11 = vsub.f32 0.0, %v2109_v46 }
 0xa91   : > { %2153 = vrot.lane.b32.xlu0 %v6730_v24, %s5587_s30  ;;  %2165 = vrot.lane.b32.xlu1 %v6730_v24, %s5586_s29 }
 0xa92   : > { %v2115_v47 = vsel %vm2111_vm9, %v2113_v11, %v2109_v46  ;;  %2175 = vrot.lane.b32.xlu2 %v6730_v24, %s5585_s28 }
 0xa93   : > { %v2117_v29 = vadd.f32 1.0, %v2115_v47 }
 0xa95   : > { %v6738_v21 = vmul.f32 %v2117_v29, %v2063_v36 }
 0xa99   : > { %2163 = vrot.lane.b32.xlu0 %v6738_v21, %s5586_s29  ;;  %2173 = vrot.lane.b32.xlu1 %v6738_v21, %s5585_s28 }
 0xa9a   : > { %2143 = vrot.lane.b32.xlu2 %v6730_v24, %s5588_s7 }
 0xaa1   : > { %2131 = vrot.lane.b32.xlu0 %v6738_v21, %s5589_s8  ;;  %2141 = vrot.lane.b32.xlu1 %v6738_v21, %s5588_s7 }
 0xaa2   : > { %2151 = vrot.lane.b32.xlu2 %v6738_v21, %s5587_s30 }
 0xaa9   : > { %2123 = vrot.lane.b32.xlu0 %v6730_v24, %s5590_s9  ;;  %2133 = vrot.lane.b32.xlu1 %v6730_v24, %s5589_s8 }
 0xaaa   : > { %2121 = vrot.lane.b32.xlu2 %v6738_v21, %s5590_s9 }
 0xab1   : > { %2183 = vrot.lane.b32.xlu0 %v6738_v21, %s5583_s26  ;;  %2193 = vrot.lane.b32.xlu1 %v6738_v21, %s5584_s27 }
 0xab2   : > { %2195 = vrot.lane.b32.xlu2 %v6730_v24, %s5584_s27 }
 0xab9   : > { %2185 = vrot.lane.b32.xlu1 %v6730_v24, %s5583_s26 }
 0xaec   : > { %v2176_v26 = vpop.permute.xlu2 %2175 }
 0xaf4   : > { %v2144_v9 = vpop.permute.xlu2 %2143 }
 0xafc   : > { %v2152_v37 = vpop.permute.xlu2 %2151 }
 0xb03   : > { %v2154_v56 = vpop.permute.xlu0 %2153  ;;  %v2166_v53 = vpop.permute.xlu1 %2165 }
 0xb04   : > { %v2155_v44 = vsel %vm363_vm4, %v2152_v37, %v2154_v56  ;;  %v2156_v50 = vsel %vm363_vm4, %v2154_v56, %v2152_v37  ;;  %v2122_v47 = vpop.permute.xlu2 %2121 }
 0xb05   : > { %v2157_v33 = vmul.f32 %v2156_v50, %v5806_v39  ;;  %v6792_v49 = vmul.f32 %v2155_v44, %v5811_v40 }
 0xb0b   : > { %v2164_v59 = vpop.permute.xlu0 %2163  ;;  %v2174_v13 = vpop.permute.xlu1 %2173 }
 0xb0c   : > { %v2167_v60 = vsel %vm376_vm3, %v2164_v59, %v2166_v53  ;;  %v2168_v20 = vsel %vm376_vm3, %v2166_v53, %v2164_v59  ;;  %v2177_v61 = vsel %vm387_vm2, %v2174_v13, %v2176_v26  ;;  %v2178_v38 = vsel %vm387_vm2, %v2176_v26, %v2174_v13 }
 0xb0d   : > { %v2179_v4 = vmul.f32 %v2177_v61, %v5758_v22  ;;  %v6776_v62 = vmul.f32 %v2178_v38, %v5761_v23  ;;  %v2169_v51 = vmul.f32 %v2167_v60, %v5785_v31  ;;  %v6781_v12 = vmul.f32 %v2168_v20, %v5788_v32  ;;  %v2196_v61 = vpop.permute.xlu2 %2195 }
 0xb0f   : > { %2245 = vmatpush.msrb.mxu3 %v2179_v4  ;;  %2285 = vmatpush.msrb.mxu2 %v6776_v62 }
 0xb10   : > { %2525 = vmatpush.msra.mxu1 %v2179_v4 }
 0xb11   : > { %2246 = vmatpush.msrb.mxu3 %v2169_v51  ;;  %2286 = vmatpush.msrb.mxu2 %v6781_v12 }
 0xb12   : > { %2526 = vmatpush.msra.mxu1 %v2169_v51 }
 0xb13   : > { %v2132_v18 = vpop.permute.xlu0 %2131  ;;  %v2142_v1 = vpop.permute.xlu1 %2141  ;;  %2247 = vmatpush.msrb.mxu3 %v6738_v21  ;;  %2287 = vmatpush.msrb.mxu2 %v6730_v24 }
 0xb14   : > { %v2145_v5 = vsel %vm352_vm5, %v2142_v1, %v2144_v9  ;;  %v2146_v27 = vsel %vm352_vm5, %v2144_v9, %v2142_v1  ;;  %2527 = vmatpush.msra.mxu1 %v6738_v21  ;;  %v5211_v1 = vld [vmem:[%s8288_s2 + $0x20] sm:$0xff] }
 0xb15   : > { %2248 = vmatpush.msrb.mxu3 %v2157_v33  ;;  %2288 = vmatpush.msrb.mxu2 %v6792_v49  ;;  %v2147_v46 = vmul.f32 %v2146_v27, %v5815_v42  ;;  %v6802_v11 = vmul.f32 %v2145_v5, %v5818_v43 }
 0xb16   : > { %2528 = vmatpush.msra.mxu1 %v2157_v33 }
 0xb17   : > { %2249 = vmatpush.msrb.mxu3 %v2147_v46  ;;  %2289 = vmatpush.msrb.mxu2 %v6802_v11 }
 0xb18   : > { %2529 = vmatpush.msra.mxu1 %v2147_v46 }
 0xb1b   : > { %v2124_v29 = vpop.permute.xlu0 %2123  ;;  %v2134_v36 = vpop.permute.xlu1 %2133 }
 0xb1c   : > { %v2125_v26 = vsel %vm330_vm7, %v2122_v47, %v2124_v29  ;;  %v2126_v56 = vsel %vm330_vm7, %v2124_v29, %v2122_v47  ;;  %v2135_v53 = vsel %vm341_vm6, %v2132_v18, %v2134_v36  ;;  %v2136_v9 = vsel %vm341_vm6, %v2134_v36, %v2132_v18  ;;  %v5212_v18 = vld [vmem:[%s8288_s2 + $0x28] sm:$0xff] }
 0xb1d   : > { %v2137_v59 = vmul.f32 %v2136_v9, %v5846_v54  ;;  %v2138_v13 = vmul.f32 %v2135_v53, %v5849_v55  ;;  %v2127_v60 = vmul.f32 %v2126_v56, %v5865_v63  ;;  %v2128_v20 = vmul.f32 %v2125_v26, %v5868_v2 }
 0xb1f   : > { %2250 = vmatpush.msrb.mxu3 %v2137_v59  ;;  %2290 = vmatpush.msrb.mxu2 %v2138_v13 }
 0xb20   : > { %2530 = vmatpush.msra.mxu1 %v2137_v59 }
 0xb21   : > { %2251 = vmatpush.msrb.mxu3 %v2127_v60  ;;  %2291 = vmatpush.msrb.mxu2 %v2128_v20 }
 0xb22   : > { %2531 = vmatpush.msra.mxu1 %v2127_v60 }
 0xb23   : > { %v2194_v38 = vpop.permute.xlu1 %2193  ;;  %2252 = vmatpush.msrb.mxu3 %v6633_v25  ;;  %2292 = vmatpush.msrb.mxu2 %v6638_v0 }
 0xb24   : > { %v2197_v4 = vsel %vm409_vm1, %v2194_v38, %v2196_v61  ;;  %2532 = vmatpush.msra.mxu1 %v6633_v25  ;;  %v2184_v25 = vpop.permute.xlu0 %2183 }
 0xb25   : > { %v6823_v37 = vmul.f32 %v6630_v10, %v2197_v4  ;;  %2253 = vmatpush.msrb.mxu3 %v6651_v16  ;;  %2293 = vmatpush.msrb.mxu2 %v6654_v17 }
 0xb26   : > { %2533 = vmatpush.msra.mxu1 %v6651_v16  ;;  %v2198_v16 = vsel %vm409_vm1, %v2196_v61, %v2194_v38 }
 0xb27   : > { %2254 = vmatpush.msrb.mxu3 %v6663_v34  ;;  %2279 = vmatpush.msra.mxu0 %v6823_v37 }
 0xb28   : > { %2294 = vmatpush.msrb.mxu2 %v6666_v7  ;;  %2534 = vmatpush.msra.mxu1 %v6663_v34 }
 0xb29   : > { %2255 = vmatpush.msrb.mxu3 %v6671_v58 }
 0xb2a   : > { %2295 = vmatpush.msrb.mxu2 %v6674_v3  ;;  %2535 = vmatpush.msra.mxu1 %v6671_v58  ;;  %v6849_v58 = vmul.f32 %v6635_v8, %v2198_v16 }
 0xb2b   : > { %v2186_v51 = vpop.permute.xlu1 %2185  ;;  %2256 = vmatpush.msrb.mxu3 %v6589_v19 }
 0xb2c   : > { %v2187_v44 = vsel %vm398_vm0, %v2184_v25, %v2186_v51  ;;  %2296 = vmatpush.msrb.mxu2 %v6604_v48  ;;  %2536 = vmatpush.msra.mxu1 %v6589_v19  ;;  %v2188_v50 = vsel %vm398_vm0, %v2186_v51, %v2184_v25 }
 0xb2d   : > { %2257 = vmatpush.msrb.mxu3 %v6689_v28  ;;  %v6844_v34 = vmul.f32 %v2187_v44, %v5738_v14 }
 0xb2e   : > { %2297 = vmatpush.msrb.mxu2 %v6692_v52  ;;  %2537 = vmatpush.msra.mxu1 %v6689_v28  ;;  %v6865_v28 = vmul.f32 %v2188_v50, %v5741_v15 }
 0xb2f   : > { %2258 = vmatpush.msrb.mxu3 %v6701_v35  ;;  %2280 = vmatpush.msra.mxu0 %v6844_v34 }
 0xb30   : > { %2298 = vmatpush.msrb.mxu2 %v6704_v45  ;;  %2538 = vmatpush.msra.mxu1 %v6701_v35  ;;  %v8312_v35 = vld [vmem:[#allocation10_spill] sm:$0xff] }
 0xb31   : > { %2319 = vmatpush.msrb.mxu0 %v6849_v58  ;;  %2259 = vmatpush.msrb.mxu3 %v6709_v57 }
 0xb32   : > { %2299 = vmatpush.msrb.mxu2 %v6712_v41  ;;  %2539 = vmatpush.msra.mxu1 %v6709_v57 }
 0xb33   : > { %5213 = vmatmul.msk.f32.vlgmr.msra.gmra.mxu0 %vm657_vm11, %v5212_v18  ;;  %2260 = vmatpush.msrb.mxu3 %v6721_v30 }
 0xb34   : > { %2320 = vmatpush.msrb.mxu0 %v6865_v28  ;;  %2300 = vmatpush.msrb.mxu2 %v8312_v35 }
 0xb35   : > { %2540 = vmatpush.msra.mxu1 %v6721_v30  ;;  %2261 = vmatmul.f32.vlgmr.msrb.gmra.mxu3 %v5211_v1 }
 0xb36   : > { %2301 = vmatmul.f32.vlgmr.msrb.gmra.mxu2 %v5211_v1  ;;  %2565 = vmatpush.msra.mxu3 %v6776_v62 }
 0xb38   : > { %2566 = vmatpush.msra.mxu3 %v6781_v12 }
 0xb3a   : > { %2567 = vmatpush.msra.mxu3 %v6730_v24 }
 0xb3b   : > { %5214 = vmatmul.msk.f32.vlgmr.msrb.gmra.mxu0 %vm657_vm11, %v5212_v18 }
 0xb3c   : > { %2568 = vmatpush.msra.mxu3 %v6792_v49 }
 0xb3e   : > { %2569 = vmatpush.msra.mxu3 %v6802_v11 }
 0xb40   : > { %2570 = vmatpush.msra.mxu3 %v2138_v13 }
 0xb42   : > { %2571 = vmatpush.msra.mxu3 %v2128_v20 }
 0xb44   : > { %2572 = vmatpush.msra.mxu3 %v6638_v0 }
 0xb46   : > { %2573 = vmatpush.msra.mxu3 %v6654_v17 }
 0xb48   : > { %2574 = vmatpush.msra.mxu3 %v6666_v7 }
 0xb4a   : > { %2575 = vmatpush.msra.mxu3 %v6674_v3 }
 0xb4c   : > { %2576 = vmatpush.msra.mxu3 %v6604_v48 }
 0xb4e   : > { %2577 = vmatpush.msra.mxu3 %v6692_v52 }
 0xb50   : > { %2578 = vmatpush.msra.mxu3 %v6704_v45 }
 0xb52   : > { %2579 = vmatpush.msra.mxu3 %v6712_v41 }
 0xb54   : > { %2580 = vmatpush.msra.mxu3 %v8312_v35 }
 0xbb0   : > { %v2282_v57 = vpop.f32.mrf.mxu0 }
 0xbb8   : > { %v2262_v30 = vpop.f32.mrf.mxu3  ;;  %v2322_v62 = vpop.f32.mrf.mxu0 }
 0xbb9   : > { %v2283_v0 = vadd.f32 %v2282_v57, %v2262_v30  ;;  %v2302_v12 = vpop.f32.mrf.mxu2 }
 0xbba   : > { %v2323_v17 = vadd.f32 %v2322_v62, %v2302_v12 }
 0xbbb   : > { %v2327_v33 = vmul.f32 0.70710677, %v2283_v0 }
 0xbbc   : > { %v2328_v7 = vmul.f32 0.70710677, %v2323_v17 }
 0xbbd   : > { %v2329_v49 = vand.u32 2147483647, %v2327_v33  ;;  %vm2373_vm12 = vcmp.lt.f32.partialorder %v2327_v33, 0.0 }
 0xbbe   : > { %v2330_v3 = vand.u32 2147483647, %v2328_v7  ;;  %vm2374_vm13 = vcmp.lt.f32.partialorder %v2328_v7, 0.0 }
 0xbbf   : > { %v2331_v5 = vmul.f32 0.3275911, %v2329_v49  ;;  %v2361_v56 = vsub.f32 0.0, %v2329_v49 }
 0xbc0   : > { %v2332_v27 = vmul.f32 0.3275911, %v2330_v3  ;;  %v2362_v59 = vsub.f32 0.0, %v2330_v3 }
 0xbc1   : > { %v2333_v46 = vadd.f32 1.0, %v2331_v5  ;;  %v2363_v20 = vmul.f32 %v2361_v56, %v2329_v49  ;;  %v2325_v56 = vmul.f32 0.5, %v2283_v0 }
 0xbc2   : > { %v2334_v52 = vadd.f32 1.0, %v2332_v27  ;;  %v2364_v4 = vmul.f32 %v2362_v59, %v2330_v3 }
 0xbc3   : > { %5370 = vrcp.f32 %v2333_v46  ;;  %v2365_v16 = vmul.f32 1.442695, %v2363_v20 }
 0xbc4   : > { %5372 = vrcp.f32 %v2334_v52  ;;  %v2367_v18 = vmul.f32 1.442695, %v2364_v4 }
 0xbc5   : > { %5374 = vpow2.f32 %v2365_v16 }
 0xbc6   : > { %5376 = vpow2.f32 %v2367_v18 }
 0xbc9   : > { %v5371_v45 = vpop.eup %5370 }
 0xbca   : > { %v5373_v41 = vpop.eup %5372  ;;  %v2337_v11 = vmul.f32 %v5371_v45, %v2333_v46 }
 0xbcb   : > { %v2338_v47 = vmul.f32 %v5373_v41, %v2334_v52  ;;  %v5375_v49 = vpop.eup %5374 }
 0xbcc   : > { %v2339_v29 = vsub.f32 2.0, %v2337_v11  ;;  %v5377_v52 = vpop.eup %5376 }
 0xbcd   : > { %v2340_v36 = vsub.f32 2.0, %v2338_v47 }
 0xbce   : > { %v2341_v26 = vmul.f32 %v5371_v45, %v2339_v29 }
 0xbcf   : > { %v2342_v53 = vmul.f32 %v5373_v41, %v2340_v36 }
 0xbd0   : > { %v2343_v9 = vmul.f32 1.0614054, %v2341_v26 }
 0xbd1   : > { %v2344_v13 = vmul.f32 1.0614054, %v2342_v53 }
 0xbd2   : > { %v2345_v60 = vadd.f32 -1.4531521, %v2343_v9 }
 0xbd3   : > { %v2346_v61 = vadd.f32 -1.4531521, %v2344_v13  ;;  %v2326_v13 = vmul.f32 0.5, %v2323_v17 }
 0xbd4   : > { %v2347_v38 = vmul.f32 %v2345_v60, %v2341_v26 }
 0xbd5   : > { %v2348_v25 = vmul.f32 %v2346_v61, %v2342_v53 }
 0xbd6   : > { %v2349_v51 = vadd.f32 1.4214138, %v2347_v38 }
 0xbd7   : > { %v2350_v44 = vadd.f32 1.4214138, %v2348_v25 }
 0xbd8   : > { %v2351_v50 = vmul.f32 %v2349_v51, %v2341_v26 }
 0xbd9   : > { %v2352_v1 = vmul.f32 %v2350_v44, %v2342_v53 }
 0xbda   : > { %v2353_v35 = vadd.f32 -0.28449672, %v2351_v50 }
 0xbdb   : > { %v2354_v57 = vadd.f32 -0.28449672, %v2352_v1 }
 0xbdc   : > { %v2355_v30 = vmul.f32 %v2353_v35, %v2341_v26 }
 0xbdd   : > { %v2356_v62 = vmul.f32 %v2354_v57, %v2342_v53 }
 0xbde   : > { %v2357_v12 = vadd.f32 0.2548296, %v2355_v30  ;;  %v5215_v30 = vld [vmem:[%s8289_s3 + $0x20] sm:$0xff] }
 0xbdf   : > { %v2358_v5 = vadd.f32 0.2548296, %v2356_v62  ;;  %2541 = vmatmul.f32.vlgmr.msra.gmra.mxu1 %v5215_v30  ;;  %2581 = vmatmul.f32.vlgmr.msra.gmra.mxu3 %v5215_v30 }
 0xbe0   : > { %v2359_v27 = vmul.f32 %v2357_v12, %v2341_v26 }
 0xbe1   : > { %v2360_v46 = vmul.f32 %v2358_v5, %v2342_v53 }
 0xbe2   : > { %v2369_v3 = vmul.f32 %v5375_v49, %v2359_v27 }
 0xbe3   : > { %v2370_v45 = vmul.f32 %v5377_v52, %v2360_v46 }
 0xbe4   : > { %v2371_v41 = vsub.f32 1.0, %v2369_v3 }
 0xbe5   : > { %v2372_v11 = vsub.f32 1.0, %v2370_v45 }
 0xbe6   : > { %v2375_v47 = vsub.f32 0.0, %v2371_v41 }
 0xbe7   : > { %v2376_v29 = vsub.f32 0.0, %v2372_v11 }
 0xbe8   : > { %v2377_v36 = vsel %vm2373_vm12, %v2375_v47, %v2371_v41 }
 0xbe9   : > { %v2379_v9 = vadd.f32 1.0, %v2377_v36  ;;  %v2378_v59 = vsel %vm2374_vm13, %v2376_v29, %v2372_v11 }
 0xbea   : > { %v2380_v60 = vadd.f32 1.0, %v2378_v59 }
 0xbeb   : > { %v6890_v20 = vmul.f32 %v2379_v9, %v2325_v56 }
 0xbec   : > { %v6892_v26 = vmul.f32 %v2380_v60, %v2326_v13 }
 0xbed   : > { %2445 = vrot.lane.b32.xlu1 %v6890_v20, %s5583_s26  ;;  %2455 = vrot.lane.b32.xlu2 %v6890_v20, %s5584_s27 }
 0xbee   : > { %2457 = vrot.lane.b32.xlu0 %v6892_v26, %s5584_s27 }
 0xbf5   : > { %2437 = vrot.lane.b32.xlu1 %v6892_v26, %s5585_s28  ;;  %2447 = vrot.lane.b32.xlu2 %v6892_v26, %s5583_s26 }
 0xbf6   : > { %2435 = vrot.lane.b32.xlu0 %v6890_v20, %s5585_s28 }
 0xbfd   : > { %2413 = vrot.lane.b32.xlu1 %v6890_v20, %s5587_s30  ;;  %2425 = vrot.lane.b32.xlu2 %v6890_v20, %s5586_s29 }
 0xbfe   : > { %2427 = vrot.lane.b32.xlu0 %v6892_v26, %s5586_s29 }
 0xc05   : > { %2405 = vrot.lane.b32.xlu1 %v6892_v26, %s5588_s7  ;;  %2415 = vrot.lane.b32.xlu2 %v6892_v26, %s5587_s30 }
 0xc06   : > { %2403 = vrot.lane.b32.xlu0 %v6890_v20, %s5588_s7 }
 0xc0d   : > { %2383 = vrot.lane.b32.xlu1 %v6890_v20, %s5590_s9  ;;  %2393 = vrot.lane.b32.xlu2 %v6890_v20, %s5589_s8 }
 0xc0e   : > { %2395 = vrot.lane.b32.xlu0 %v6892_v26, %s5589_s8 }
 0xc15   : > { %2385 = vrot.lane.b32.xlu2 %v6892_v26, %s5590_s9 }
 0xc47   : > { %v2456_v0 = vpop.permute.xlu2 %2455 }
 0xc4f   : > { %v2448_v17 = vpop.permute.xlu2 %2447 }
 0xc57   : > { %v2426_v25 = vpop.permute.xlu2 %2425 }
 0xc5f   : > { %v2446_v33 = vpop.permute.xlu1 %2445  ;;  %v2416_v62 = vpop.permute.xlu2 %2415 }
 0xc60   : > { %v2458_v7 = vpop.permute.xlu0 %2457  ;;  %v2449_v38 = vsel %vm398_vm0, %v2446_v33, %v2448_v17  ;;  %v2450_v4 = vsel %vm398_vm0, %v2448_v17, %v2446_v33 }
 0xc61   : > { %v2459_v53 = vsel %vm409_vm1, %v2456_v0, %v2458_v7  ;;  %v2460_v61 = vsel %vm409_vm1, %v2458_v7, %v2456_v0  ;;  %v2451_v44 = vmul.f32 %v2449_v38, %v5738_v14  ;;  %v2452_v50 = vmul.f32 %v2450_v4, %v5741_v15 }
 0xc62   : > { %v2461_v51 = vmul.f32 %v6630_v10, %v2459_v53  ;;  %v2462_v16 = vmul.f32 %v6635_v8, %v2460_v61 }
 0xc64   : > { %2550 = vmatpush.msra.mxu0 %v2461_v51  ;;  %2590 = vmatpush.msra.mxu2 %v2462_v16  ;;  %v5216_v16 = vld [vmem:[%s8289_s3 + $0x28] sm:$0xff] }
 0xc66   : > { %2551 = vmatpush.msra.mxu0 %v2451_v44  ;;  %2591 = vmatpush.msra.mxu2 %v2452_v50  ;;  %v2542_v44 = vpop.f32.mrf.mxu1 }
 0xc67   : > { %v2438_v18 = vpop.permute.xlu1 %2437  ;;  %v2394_v41 = vpop.permute.xlu2 %2393 }
 0xc68   : > { %v2436_v1 = vpop.permute.xlu0 %2435 }
 0xc69   : > { %v2439_v35 = vsel %vm387_vm2, %v2436_v1, %v2438_v18  ;;  %v2440_v57 = vsel %vm387_vm2, %v2438_v18, %v2436_v1 }
 0xc6a   : > { %v2441_v10 = vmul.f32 %v2439_v35, %v5758_v22  ;;  %v2442_v8 = vmul.f32 %v2440_v57, %v5761_v23  ;;  %v2582_v35 = vpop.f32.mrf.mxu3 }
 0xc6c   : > { %2552 = vmatpush.msra.mxu0 %v2441_v10  ;;  %2592 = vmatpush.msra.mxu2 %v2442_v8 }
 0xc6f   : > { %v2414_v12 = vpop.permute.xlu1 %2413  ;;  %v2386_v0 = vpop.permute.xlu2 %2385 }
 0xc70   : > { %v2428_v5 = vpop.permute.xlu0 %2427  ;;  %v2417_v3 = vsel %vm363_vm4, %v2414_v12, %v2416_v62  ;;  %v2418_v45 = vsel %vm363_vm4, %v2416_v62, %v2414_v12 }
 0xc71   : > { %v2429_v27 = vsel %vm376_vm3, %v2426_v25, %v2428_v5  ;;  %v2430_v49 = vsel %vm376_vm3, %v2428_v5, %v2426_v25  ;;  %v2419_v11 = vmul.f32 %v2418_v45, %v5806_v39  ;;  %v2420_v47 = vmul.f32 %v2417_v3, %v5811_v40 }
 0xc72   : > { %v2431_v46 = vmul.f32 %v2429_v27, %v5785_v31  ;;  %v2432_v52 = vmul.f32 %v2430_v49, %v5788_v32 }
 0xc74   : > { %2553 = vmatpush.msra.mxu0 %v2431_v46  ;;  %2593 = vmatpush.msra.mxu2 %v2432_v52 }
 0xc76   : > { %2554 = vmatpush.msra.mxu0 %v6890_v20  ;;  %2594 = vmatpush.msra.mxu2 %v6892_v26 }
 0xc77   : > { %v2406_v29 = vpop.permute.xlu1 %2405 }
 0xc78   : > { %v2404_v36 = vpop.permute.xlu0 %2403  ;;  %2555 = vmatpush.msra.mxu0 %v2419_v11  ;;  %2595 = vmatpush.msra.mxu2 %v2420_v47 }
 0xc79   : > { %v2407_v56 = vsel %vm352_vm5, %v2404_v36, %v2406_v29  ;;  %v2408_v9 = vsel %vm352_vm5, %v2406_v29, %v2404_v36 }
 0xc7a   : > { %v2409_v59 = vmul.f32 %v2408_v9, %v5815_v42  ;;  %v2410_v13 = vmul.f32 %v2407_v56, %v5818_v43 }
 0xc7c   : > { %2556 = vmatpush.msra.mxu0 %v2409_v59  ;;  %2596 = vmatpush.msra.mxu2 %v2410_v13 }
 0xc7f   : > { %v2384_v60 = vpop.permute.xlu1 %2383 }
 0xc80   : > { %v2396_v17 = vpop.permute.xlu0 %2395  ;;  %v2387_v53 = vsel %vm330_vm7, %v2384_v60, %v2386_v0  ;;  %v2388_v61 = vsel %vm330_vm7, %v2386_v0, %v2384_v60 }
 0xc81   : > { %v2397_v33 = vsel %vm341_vm6, %v2394_v41, %v2396_v17  ;;  %v2398_v7 = vsel %vm341_vm6, %v2396_v17, %v2394_v41  ;;  %v2389_v25 = vmul.f32 %v2388_v61, %v5865_v63  ;;  %v2390_v51 = vmul.f32 %v2387_v53, %v5868_v2 }
 0xc82   : > { %v2399_v38 = vmul.f32 %v2398_v7, %v5846_v54  ;;  %v2400_v4 = vmul.f32 %v2397_v33, %v5849_v55 }
 0xc84   : > { %2557 = vmatpush.msra.mxu0 %v2399_v38  ;;  %2597 = vmatpush.msra.mxu2 %v2400_v4 }
 0xc86   : > { %2558 = vmatpush.msra.mxu0 %v2389_v25  ;;  %2598 = vmatpush.msra.mxu2 %v2390_v51 }
 0xc88   : > { %2559 = vmatpush.msra.mxu0 %v6823_v37  ;;  %2599 = vmatpush.msra.mxu2 %v6849_v58 }
 0xc8a   : > { %2560 = vmatpush.msra.mxu0 %v6844_v34  ;;  %2600 = vmatpush.msra.mxu2 %v6865_v28 }
 0xc8b   : > { %5217 = vmatmul.msk.f32.vlgmr.msra.gmra.mxu0 %vm937_vm14, %v5216_v16  ;;  %5218 = vmatmul.msk.f32.vlgmr.msra.gmra.mxu2 %vm937_vm14, %v5216_v16 }
 0xd08   : > { %v2562_v50 = vpop.f32.mrf.mxu0 }
 0xd09   : > { %v2563_v18 = vadd.f32 %v2562_v50, %v2542_v44 }
 0xd0b   : > { %v2607_v1 = vmul.f32 0.70710677, %v2563_v18 }
 0xd0d   : > { %v2609_v37 = vand.u32 2147483647, %v2607_v1  ;;  %vm2653_vm15 = vcmp.lt.f32.partialorder %v2607_v1, 0.0 }
 0xd0e   : > { %v2602_v57 = vpop.f32.mrf.mxu2 }
 0xd0f   : > { %v2611_v58 = vmul.f32 0.3275911, %v2609_v37  ;;  %v2603_v10 = vadd.f32 %v2602_v57, %v2582_v35  ;;  %v2641_v52 = vsub.f32 0.0, %v2609_v37 }
 0xd11   : > { %v2613_v8 = vadd.f32 1.0, %v2611_v58  ;;  %v2608_v30 = vmul.f32 0.70710677, %v2603_v10  ;;  %v2643_v47 = vmul.f32 %v2641_v52, %v2609_v37 }
 0xd13   : > { %5378 = vrcp.f32 %v2613_v8  ;;  %v2610_v62 = vand.u32 2147483647, %v2608_v30  ;;  %v2645_v13 = vmul.f32 1.442695, %v2643_v47  ;;  %vm2654_vm9 = vcmp.lt.f32.partialorder %v2608_v30, 0.0 }
 0xd15   : > { %v2612_v34 = vmul.f32 0.3275911, %v2610_v62  ;;  %v2642_v56 = vsub.f32 0.0, %v2610_v62 }
 0xd17   : > { %v2614_v12 = vadd.f32 1.0, %v2612_v34  ;;  %v2644_v17 = vmul.f32 %v2642_v56, %v2610_v62 }
 0xd19   : > { %v5379_v28 = vpop.eup %5378  ;;  %5380 = vrcp.f32 %v2614_v12  ;;  %v2647_v38 = vmul.f32 1.442695, %v2644_v17 }
 0xd1a   : > { %v2617_v5 = vmul.f32 %v5379_v28, %v2613_v8  ;;  %5382 = vpow2.f32 %v2645_v13  ;;  %v7043_v13 = vld [vmem:[#allocation7 + $0x18] ss:$0 sm:$0xff] }
 0xd1b   : > { %5384 = vpow2.f32 %v2647_v38 }
 0xd1c   : > { %v2619_v27 = vsub.f32 2.0, %v2617_v5 }
 0xd1e   : > { %v2621_v49 = vmul.f32 %v5379_v28, %v2619_v27  ;;  %v2605_v28 = vmul.f32 0.5, %v2563_v18 }
 0xd1f   : > { %v5381_v46 = vpop.eup %5380 }
 0xd20   : > { %v2623_v3 = vmul.f32 1.0614054, %v2621_v49  ;;  %v2618_v45 = vmul.f32 %v5381_v46, %v2614_v12  ;;  %v5383_v44 = vpop.eup %5382 }
 0xd21   : > { %v5385_v34 = vpop.eup %5384 }
 0xd22   : > { %v2625_v41 = vadd.f32 -1.4531521, %v2623_v3  ;;  %v2620_v11 = vsub.f32 2.0, %v2618_v45  ;;  %v2606_v3 = vmul.f32 0.5, %v2603_v10 }
 0xd24   : > { %v2627_v29 = vmul.f32 %v2625_v41, %v2621_v49  ;;  %v2622_v36 = vmul.f32 %v5381_v46, %v2620_v11  ;;  %v2664_v11 = vld [vmem:[#allocation5 + $0x10] sm:$0xff] }
 0xd26   : > { %v2629_v9 = vadd.f32 1.4214138, %v2627_v29  ;;  %v2624_v59 = vmul.f32 1.0614054, %v2622_v36 }
 0xd28   : > { %v2631_v60 = vmul.f32 %v2629_v9, %v2621_v49  ;;  %v2626_v0 = vadd.f32 -1.4531521, %v2624_v59  ;;  %v7038_v9 = vld [vmem:[#allocation7 + $0x10] ss:$0 sm:$0xff] }
 0xd2a   : > { %v2633_v33 = vadd.f32 -0.28449672, %v2631_v60  ;;  %v2628_v7 = vmul.f32 %v2626_v0, %v2622_v36 }
 0xd2c   : > { %v2635_v53 = vmul.f32 %v2633_v33, %v2621_v49  ;;  %v2630_v61 = vadd.f32 1.4214138, %v2628_v7 }
 0xd2e   : > { %v2637_v4 = vadd.f32 0.2548296, %v2635_v53  ;;  %v2632_v25 = vmul.f32 %v2630_v61, %v2622_v36 }
 0xd30   : > { %v2639_v51 = vmul.f32 %v2637_v4, %v2621_v49  ;;  %v2634_v16 = vadd.f32 -0.28449672, %v2632_v25 }
 0xd32   : > { %v2649_v50 = vmul.f32 %v5383_v44, %v2639_v51  ;;  %v2636_v35 = vmul.f32 %v2634_v16, %v2622_v36 }
 0xd34   : > { %v2651_v37 = vsub.f32 1.0, %v2649_v50  ;;  %v2638_v57 = vadd.f32 0.2548296, %v2636_v35 }
 0xd36   : > { %v2655_v58 = vsub.f32 0.0, %v2651_v37  ;;  %v2640_v8 = vmul.f32 %v2638_v57, %v2622_v36 }
 0xd38   : > { %v2657_v62 = vsel %vm2653_vm15, %v2655_v58, %v2651_v37  ;;  %v2650_v12 = vmul.f32 %v5385_v34, %v2640_v8 }
 0xd39   : > { %v2659_v5 = vadd.f32 1.0, %v2657_v62 }
 0xd3a   : > { %v2652_v27 = vsub.f32 1.0, %v2650_v12 }
 0xd3b   : > { %v2661_v46 = vmul.f32 %v2659_v5, %v2605_v28 }
 0xd3c   : > { %v2656_v52 = vsub.f32 0.0, %v2652_v27 }
 0xd3d   : > { %2680 = vmatpush.msrb.mxu0 %v2661_v46 }
 0xd3e   : > { %v2658_v49 = vsel %vm2654_vm9, %v2656_v52, %v2652_v27 }
 0xd3f   : > { %v2660_v45 = vadd.f32 1.0, %v2658_v49  ;;  %2681 = vmatpush.msrb.mxu0 %v6890_v20 }
 0xd41   : > { %v2662_v41 = vmul.f32 %v2660_v45, %v2606_v3  ;;  %2682 = vmatpush.msrb.mxu0 %v6738_v21 }
 0xd43   : > { %2683 = vmatpush.msrb.mxu0 %v6589_v19  ;;  %2700 = vmatpush.msrb.mxu1 %v2662_v41 }
 0xd44   : > { %5219 = vmatmul.msk.f32.vlgmr.msrb.gmra.mxu0 %vm1080_vm10, %v2664_v11 }
 0xd45   : > { %2701 = vmatpush.msrb.mxu1 %v6892_v26 }
 0xd47   : > { %2702 = vmatpush.msrb.mxu1 %v6730_v24 }
 0xd49   : > { %2703 = vmatpush.msrb.mxu1 %v6604_v48 }
 0xd4a   : > { %5220 = vmatmul.msk.f32.vlgmr.msrb.gmra.mxu1 %vm1080_vm10, %v2664_v11 }
 0xdc1   : > { %v2685_v18 = vpop.f32.mrf.mxu0 }
 0xdc2   : > { %v6997_v20 = vadd.f32 %v2685_v18, %v6589_v19 }
 0xdc4   : > { %2762 = vrot.lane.b32.xlu1 %v6997_v20, %s5585_s28  ;;  %2772 = vrot.lane.b32.xlu2 %v6997_v20, %s5583_s26 }
 0xdc5   : > { %2782 = vrot.lane.b32.xlu0 %v6997_v20, %s5584_s27 }
 0xdc7   : > { %v2705_v19 = vpop.f32.mrf.mxu1 }
 0xdc8   : > { %v7012_v24 = vadd.f32 %v2705_v19, %v6604_v48 }
 0xdcc   : > { %2730 = vrot.lane.b32.xlu1 %v6997_v20, %s5588_s7  ;;  %2740 = vrot.lane.b32.xlu2 %v6997_v20, %s5587_s30 }
 0xdcd   : > { %2752 = vrot.lane.b32.xlu0 %v6997_v20, %s5586_s29 }
 0xdd4   : > { %2764 = vrot.lane.b32.xlu2 %v7012_v24, %s5585_s28  ;;  %2784 = vrot.lane.b32.xlu1 %v7012_v24, %s5584_s27 }
 0xdd5   : > { %2720 = vrot.lane.b32.xlu0 %v6997_v20, %s5589_s8 }
 0xddc   : > { %2732 = vrot.lane.b32.xlu2 %v7012_v24, %s5588_s7  ;;  %2754 = vrot.lane.b32.xlu1 %v7012_v24, %s5586_s29 }
 0xddd   : > { %2774 = vrot.lane.b32.xlu0 %v7012_v24, %s5583_s26 }
 0xde4   : > { %2710 = vrot.lane.b32.xlu2 %v6997_v20, %s5590_s9  ;;  %2722 = vrot.lane.b32.xlu1 %v7012_v24, %s5589_s8 }
 0xde5   : > { %2742 = vrot.lane.b32.xlu0 %v7012_v24, %s5587_s30 }
 0xded   : > { %2712 = vrot.lane.b32.xlu0 %v7012_v24, %s5590_s9 }
 0xe1e   : > { %v2773_v21 = vpop.permute.xlu2 %2772 }
 0xe26   : > { %v2741_v30 = vpop.permute.xlu2 %2740 }
 0xe2e   : > { %v2765_v0 = vpop.permute.xlu2 %2764 }
 0xe36   : > { %v2763_v48 = vpop.permute.xlu1 %2762  ;;  %v2733_v35 = vpop.permute.xlu2 %2732 }
 0xe37   : > { %v2783_v26 = vpop.permute.xlu0 %2782  ;;  %v2766_v7 = vsel %vm387_vm2, %v2763_v48, %v2765_v0  ;;  %v2767_v53 = vsel %vm387_vm2, %v2765_v0, %v2763_v48 }
 0xe38   : > { %v7069_v44 = vmul.f32 %v2766_v7, %v5758_v22  ;;  %v7072_v50 = vmul.f32 %v2767_v53, %v5761_v23 }
 0xe3e   : > { %v2731_v1 = vpop.permute.xlu1 %2730  ;;  %v2711_v11 = vpop.permute.xlu2 %2710 }
 0xe3f   : > { %v2753_v10 = vpop.permute.xlu0 %2752  ;;  %v2734_v34 = vsel %vm352_vm5, %v2731_v1, %v2733_v35  ;;  %v2735_v62 = vsel %vm352_vm5, %v2733_v35, %v2731_v1  ;;  %v2811_v1 = vld [vmem:[#allocation3 + $0x18] sm:$0xff] }
 0xe40   : > { %v7107_v49 = vmul.f32 %v2735_v62, %v5815_v42  ;;  %v7110_v3 = vmul.f32 %v2734_v34, %v5818_v43 }
 0xe46   : > { %v2785_v47 = vpop.permute.xlu1 %2784 }
 0xe47   : > { %v2721_v29 = vpop.permute.xlu0 %2720  ;;  %v2786_v36 = vsel %vm409_vm1, %v2783_v26, %v2785_v47  ;;  %v2787_v56 = vsel %vm409_vm1, %v2785_v47, %v2783_v26 }
 0xe48   : > { %v7041_v59 = vmul.f32 %v7038_v9, %v2786_v36  ;;  %v7046_v60 = vmul.f32 %v7043_v13, %v2787_v56 }
 0xe4a   : > { %2822 = vmatpush.msra.mxu0 %v7041_v59  ;;  %2842 = vmatpush.msra.mxu1 %v7046_v60 }
 0xe4e   : > { %v2755_v17 = vpop.permute.xlu1 %2754 }
 0xe4f   : > { %v2775_v33 = vpop.permute.xlu0 %2774  ;;  %v2756_v51 = vsel %vm376_vm3, %v2753_v10, %v2755_v17  ;;  %v2757_v16 = vsel %vm376_vm3, %v2755_v17, %v2753_v10 }
 0xe50   : > { %v2776_v61 = vsel %vm398_vm0, %v2773_v21, %v2775_v33  ;;  %v2777_v38 = vsel %vm398_vm0, %v2775_v33, %v2773_v21  ;;  %v7077_v37 = vmul.f32 %v2756_v51, %v5785_v31  ;;  %v7080_v57 = vmul.f32 %v2757_v16, %v5788_v32 }
 0xe51   : > { %v7059_v4 = vmul.f32 %v2776_v61, %v5738_v14  ;;  %v7062_v25 = vmul.f32 %v2777_v38, %v5741_v15 }
 0xe53   : > { %2823 = vmatpush.msra.mxu0 %v7059_v4  ;;  %2843 = vmatpush.msra.mxu1 %v7062_v25 }
 0xe55   : > { %2824 = vmatpush.msra.mxu0 %v7069_v44  ;;  %2844 = vmatpush.msra.mxu1 %v7072_v50 }
 0xe56   : > { %v2723_v8 = vpop.permute.xlu1 %2722 }
 0xe57   : > { %v2743_v58 = vpop.permute.xlu0 %2742  ;;  %2825 = vmatpush.msra.mxu0 %v7077_v37  ;;  %2845 = vmatpush.msra.mxu1 %v7080_v57  ;;  %v2724_v46 = vsel %vm341_vm6, %v2721_v29, %v2723_v8  ;;  %v2725_v52 = vsel %vm341_vm6, %v2723_v8, %v2721_v29 }
 0xe58   : > { %v2744_v12 = vsel %vm363_vm4, %v2741_v30, %v2743_v58  ;;  %v2745_v28 = vsel %vm363_vm4, %v2743_v58, %v2741_v30  ;;  %v7115_v45 = vmul.f32 %v2725_v52, %v5846_v54  ;;  %v7118_v41 = vmul.f32 %v2724_v46, %v5849_v55 }
 0xe59   : > { %v7095_v5 = vmul.f32 %v2745_v28, %v5806_v39  ;;  %v7098_v27 = vmul.f32 %v2744_v12, %v5811_v40  ;;  %2826 = vmatpush.msra.mxu0 %v6997_v20  ;;  %2846 = vmatpush.msra.mxu1 %v7012_v24 }
 0xe5b   : > { %2827 = vmatpush.msra.mxu0 %v7095_v5  ;;  %2847 = vmatpush.msra.mxu1 %v7098_v27 }
 0xe5d   : > { %2828 = vmatpush.msra.mxu0 %v7107_v49  ;;  %2848 = vmatpush.msra.mxu1 %v7110_v3 }
 0xe5f   : > { %v2713_v18 = vpop.permute.xlu0 %2712  ;;  %2829 = vmatpush.msra.mxu0 %v7115_v45  ;;  %2849 = vmatpush.msra.mxu1 %v7118_v41 }
 0xe60   : > { %v2714_v19 = vsel %vm330_vm7, %v2711_v11, %v2713_v18  ;;  %v2715_v48 = vsel %vm330_vm7, %v2713_v18, %v2711_v11 }
 0xe61   : > { %v7129_v21 = vmul.f32 %v2715_v48, %v5865_v63  ;;  %v7132_v26 = vmul.f32 %v2714_v19, %v5868_v2 }
 0xe63   : > { %8313 = vst [vmem:[#allocation10_spill] sm:$0xff] %v7132_v26  ;;  %2830 = vmatpush.msra.mxu0 %v7129_v21  ;;  %2850 = vmatpush.msra.mxu1 %v7132_v26 }
 0xe64   : > { %5221 = vmatmul.msk.f32.vlgmr.msra.gmra.mxu0 %vm435_vm8, %v2811_v1  ;;  %5222 = vmatmul.msk.f32.vlgmr.msra.gmra.mxu1 %vm435_vm8, %v2811_v1 }
 0xee1   : > { %v2832_v10 = vpop.f32.mrf.mxu0  ;;  %v2852_v30 = vpop.f32.mrf.mxu1 }
 0xee2   : > { %v2857_v47 = vmul.f32 0.70710677, %v2832_v10  ;;  %v2858_v29 = vmul.f32 0.70710677, %v2852_v30 }
 0xee4   : > { %v2859_v36 = vand.u32 2147483647, %v2857_v47  ;;  %v2860_v56 = vand.u32 2147483647, %v2858_v29  ;;  %vm2903_vm12 = vcmp.lt.f32.partialorder %v2857_v47, 0.0  ;;  %vm2904_vm13 = vcmp.lt.f32.partialorder %v2858_v29, 0.0 }
 0xee6   : > { %v2861_v0 = vmul.f32 0.3275911, %v2859_v36  ;;  %v2862_v17 = vmul.f32 0.3275911, %v2860_v56  ;;  %v2891_v8 = vsub.f32 0.0, %v2859_v36  ;;  %v2892_v12 = vsub.f32 0.0, %v2860_v56 }
 0xee8   : > { %v2863_v33 = vadd.f32 1.0, %v2861_v0  ;;  %v2864_v7 = vadd.f32 1.0, %v2862_v17  ;;  %v2893_v52 = vmul.f32 %v2891_v8, %v2859_v36  ;;  %v2894_v19 = vmul.f32 %v2892_v12, %v2860_v56 }
 0xeea   : > { %5386 = vrcp.f32 %v2863_v33  ;;  %v2895_v0 = vmul.f32 1.442695, %v2893_v52 }
 0xeeb   : > { %5388 = vrcp.f32 %v2864_v7 }
 0xeec   : > { %5390 = vpow2.f32 %v2895_v0  ;;  %v2856_v0 = vmul.f32 0.5, %v2852_v30 }
 0xef0   : > { %v5387_v53 = vpop.eup %5386 }
 0xef1   : > { %v5389_v61 = vpop.eup %5388  ;;  %v2867_v38 = vmul.f32 %v5387_v53, %v2863_v33  ;;  %v2897_v33 = vmul.f32 1.442695, %v2894_v19 }
 0xef2   : > { %v2868_v51 = vmul.f32 %v5389_v61, %v2864_v7  ;;  %v5391_v36 = vpop.eup %5390 }
 0xef3   : > { %v2869_v16 = vsub.f32 2.0, %v2867_v38  ;;  %5392 = vpow2.f32 %v2897_v33 }
 0xef4   : > { %v2870_v35 = vsub.f32 2.0, %v2868_v51 }
 0xef5   : > { %v2871_v58 = vmul.f32 %v5387_v53, %v2869_v16 }
 0xef6   : > { %v2872_v34 = vmul.f32 %v5389_v61, %v2870_v35 }
 0xef7   : > { %v2873_v62 = vmul.f32 1.0614054, %v2871_v58 }
 0xef8   : > { %v2874_v28 = vmul.f32 1.0614054, %v2872_v34 }
 0xef9   : > { %v2875_v46 = vadd.f32 -1.4531521, %v2873_v62 }
 0xefa   : > { %v2876_v11 = vadd.f32 -1.4531521, %v2874_v28  ;;  %v5393_v28 = vpop.eup %5392 }
 0xefb   : > { %v2877_v18 = vmul.f32 %v2875_v46, %v2871_v58 }
 0xefc   : > { %v2878_v48 = vmul.f32 %v2876_v11, %v2872_v34 }
 0xefd   : > { %v2879_v1 = vadd.f32 1.4214138, %v2877_v18 }
 0xefe   : > { %v2880_v17 = vadd.f32 1.4214138, %v2878_v48 }
 0xeff   : > { %v2881_v26 = vmul.f32 %v2879_v1, %v2871_v58 }
 0xf00   : > { %v2882_v7 = vmul.f32 %v2880_v17, %v2872_v34 }
 0xf01   : > { %v2883_v38 = vadd.f32 -0.28449672, %v2881_v26  ;;  %v2855_v26 = vmul.f32 0.5, %v2832_v10 }
 0xf02   : > { %v2884_v53 = vadd.f32 -0.28449672, %v2882_v7 }
 0xf03   : > { %v2885_v51 = vmul.f32 %v2883_v38, %v2871_v58 }
 0xf04   : > { %v2886_v61 = vmul.f32 %v2884_v53, %v2872_v34 }
 0xf05   : > { %v2887_v16 = vadd.f32 0.2548296, %v2885_v51 }
 0xf06   : > { %v2888_v35 = vadd.f32 0.2548296, %v2886_v61 }
 0xf07   : > { %v2889_v62 = vmul.f32 %v2887_v16, %v2871_v58 }
 0xf08   : > { %v2890_v8 = vmul.f32 %v2888_v35, %v2872_v34 }
 0xf09   : > { %v2899_v56 = vmul.f32 %v5391_v36, %v2889_v62 }
 0xf0a   : > { %v2900_v12 = vmul.f32 %v5393_v28, %v2890_v8 }
 0xf0b   : > { %v2901_v46 = vsub.f32 1.0, %v2899_v56 }
 0xf0c   : > { %v2902_v52 = vsub.f32 1.0, %v2900_v12 }
 0xf0d   : > { %v2905_v11 = vsub.f32 0.0, %v2901_v46 }
 0xf0e   : > { %v2906_v18 = vsub.f32 0.0, %v2902_v52 }
 0xf0f   : > { %v2907_v19 = vsel %vm2903_vm12, %v2905_v11, %v2901_v46 }
 0xf10   : > { %v2909_v48 = vadd.f32 1.0, %v2907_v19  ;;  %v2908_v1 = vsel %vm2904_vm13, %v2906_v18, %v2902_v52 }
 0xf11   : > { %v2910_v17 = vadd.f32 1.0, %v2908_v1 }
 0xf12   : > { %v7138_v33 = vmul.f32 %v2909_v48, %v2855_v26 }
 0xf13   : > { %v7140_v58 = vmul.f32 %v2910_v17, %v2856_v0 }
 0xf14   : > { %2955 = vrot.lane.b32.xlu0 %v7138_v33, %s5586_s29  ;;  %2965 = vrot.lane.b32.xlu1 %v7138_v33, %s5585_s28 }
 0xf15   : > { %2967 = vrot.lane.b32.xlu2 %v7140_v58, %s5585_s28 }
 0xf1c   : > { %2945 = vrot.lane.b32.xlu0 %v7140_v58, %s5587_s30  ;;  %2957 = vrot.lane.b32.xlu1 %v7140_v58, %s5586_s29 }
 0xf1d   : > { %2943 = vrot.lane.b32.xlu2 %v7138_v33, %s5587_s30 }
 0xf24   : > { %2923 = vrot.lane.b32.xlu0 %v7138_v33, %s5589_s8  ;;  %2933 = vrot.lane.b32.xlu1 %v7138_v33, %s5588_s7 }
 0xf25   : > { %2935 = vrot.lane.b32.xlu2 %v7140_v58, %s5588_s7 }
 0xf2c   : > { %2915 = vrot.lane.b32.xlu0 %v7140_v58, %s5590_s9  ;;  %2925 = vrot.lane.b32.xlu1 %v7140_v58, %s5589_s8 }
 0xf2d   : > { %2913 = vrot.lane.b32.xlu2 %v7138_v33, %s5590_s9 }
 0xf34   : > { %2975 = vrot.lane.b32.xlu0 %v7138_v33, %s5583_s26  ;;  %2985 = vrot.lane.b32.xlu1 %v7138_v33, %s5584_s27 }
 0xf35   : > { %2987 = vrot.lane.b32.xlu2 %v7140_v58, %s5584_s27 }
 0xf3c   : > { %2977 = vrot.lane.b32.xlu1 %v7140_v58, %s5583_s26 }
 0xf6f   : > { %v2968_v10 = vpop.permute.xlu2 %2967 }
 0xf77   : > { %v2944_v7 = vpop.permute.xlu2 %2943 }
 0xf7f   : > { %v2936_v56 = vpop.permute.xlu2 %2935 }
 0xf86   : > { %v2956_v30 = vpop.permute.xlu0 %2955  ;;  %v2966_v47 = vpop.permute.xlu1 %2965 }
 0xf87   : > { %v2969_v29 = vsel %vm387_vm2, %v2966_v47, %v2968_v10  ;;  %v2970_v34 = vsel %vm387_vm2, %v2968_v10, %v2966_v47  ;;  %v2914_v1 = vpop.permute.xlu2 %2913 }
 0xf88   : > { %v7179_v38 = vmul.f32 %v2969_v29, %v5758_v22  ;;  %v7182_v53 = vmul.f32 %v2970_v34, %v5761_v23 }
 0xf8a   : > { %3037 = vmatpush.msrb.mxu2 %v7179_v38  ;;  %3077 = vmatpush.msrb.mxu0 %v7182_v53 }
 0xf8e   : > { %v2946_v51 = vpop.permute.xlu0 %2945  ;;  %v2958_v61 = vpop.permute.xlu1 %2957 }
 0xf8f   : > { %v2959_v16 = vsel %vm376_vm3, %v2956_v30, %v2958_v61  ;;  %v2960_v35 = vsel %vm376_vm3, %v2958_v61, %v2956_v30  ;;  %v2947_v8 = vsel %vm363_vm4, %v2944_v7, %v2946_v51  ;;  %v2948_v28 = vsel %vm363_vm4, %v2946_v51, %v2944_v7 }
 0xf90   : > { %v7191_v62 = vmul.f32 %v2959_v16, %v5785_v31  ;;  %v7194_v36 = vmul.f32 %v2960_v35, %v5788_v32  ;;  %v7203_v12 = vmul.f32 %v2948_v28, %v5806_v39  ;;  %v7206_v46 = vmul.f32 %v2947_v8, %v5811_v40  ;;  %v2988_v16 = vpop.permute.xlu2 %2987 }
 0xf92   : > { %3038 = vmatpush.msrb.mxu2 %v7191_v62  ;;  %3078 = vmatpush.msrb.mxu0 %v7194_v36 }
 0xf94   : > { %3039 = vmatpush.msrb.mxu2 %v7138_v33  ;;  %3079 = vmatpush.msrb.mxu0 %v7140_v58 }
 0xf96   : > { %v2924_v52 = vpop.permute.xlu0 %2923  ;;  %v2934_v11 = vpop.permute.xlu1 %2933  ;;  %3040 = vmatpush.msrb.mxu2 %v7203_v12  ;;  %3080 = vmatpush.msrb.mxu0 %v7206_v46 }
 0xf97   : > { %v2937_v18 = vsel %vm352_vm5, %v2934_v11, %v2936_v56  ;;  %v2938_v19 = vsel %vm352_vm5, %v2936_v56, %v2934_v11 }
 0xf98   : > { %v7217_v26 = vmul.f32 %v2938_v19, %v5815_v42  ;;  %v7220_v48 = vmul.f32 %v2937_v18, %v5818_v43 }
 0xf9a   : > { %3041 = vmatpush.msrb.mxu2 %v7217_v26  ;;  %3081 = vmatpush.msrb.mxu0 %v7220_v48 }
 0xf9e   : > { %v2916_v0 = vpop.permute.xlu0 %2915  ;;  %v2926_v17 = vpop.permute.xlu1 %2925 }
 0xf9f   : > { %v2917_v10 = vsel %vm330_vm7, %v2914_v1, %v2916_v0  ;;  %v2918_v30 = vsel %vm330_vm7, %v2916_v0, %v2914_v1  ;;  %v2927_v47 = vsel %vm341_vm6, %v2924_v52, %v2926_v17  ;;  %v2928_v29 = vsel %vm341_vm6, %v2926_v17, %v2924_v52 }
 0xfa0   : > { %v2929_v34 = vmul.f32 %v2928_v29, %v5846_v54  ;;  %v2930_v7 = vmul.f32 %v2927_v47, %v5849_v55  ;;  %v2919_v51 = vmul.f32 %v2918_v30, %v5865_v63  ;;  %v2920_v61 = vmul.f32 %v2917_v10, %v5868_v2  ;;  %v5224_v10 = vld [vmem:[%s8288_s2 + $0x38] sm:$0xff]  ;;  %v5223_v30 = vld [vmem:[%s8288_s2 + $0x30] sm:$0xff]  ;;  %v8314_v47 = vld [vmem:[#allocation10_spill] sm:$0xff] }
 0xfa2   : > { %3042 = vmatpush.msrb.mxu2 %v2929_v34  ;;  %3082 = vmatpush.msrb.mxu0 %v2930_v7 }
 0xfa4   : > { %3043 = vmatpush.msrb.mxu2 %v2919_v51  ;;  %3083 = vmatpush.msrb.mxu0 %v2920_v61 }
 0xfa6   : > { %v2986_v35 = vpop.permute.xlu1 %2985  ;;  %3044 = vmatpush.msrb.mxu2 %v7041_v59  ;;  %3084 = vmatpush.msrb.mxu0 %v7046_v60  ;;  %v2976_v11 = vpop.permute.xlu0 %2975 }
 0xfa7   : > { %v2989_v8 = vsel %vm409_vm1, %v2986_v35, %v2988_v16  ;;  %v2990_v28 = vsel %vm409_vm1, %v2988_v16, %v2986_v35 }
 0xfa8   : > { %v7243_v56 = vmul.f32 %v7038_v9, %v2989_v8  ;;  %v7246_v52 = vmul.f32 %v7043_v13, %v2990_v28  ;;  %3045 = vmatpush.msrb.mxu2 %v7059_v4  ;;  %3085 = vmatpush.msrb.mxu0 %v7062_v25 }
 0xfaa   : > { %3046 = vmatpush.msrb.mxu2 %v7069_v44  ;;  %3071 = vmatpush.msrb.mxu3 %v7243_v56 }
 0xfab   : > { %3086 = vmatpush.msrb.mxu0 %v7072_v50  ;;  %3111 = vmatpush.msrb.mxu1 %v7246_v52 }
 0xfac   : > { %3047 = vmatpush.msrb.mxu2 %v7077_v37 }
 0xfad   : > { %3087 = vmatpush.msrb.mxu0 %v7080_v57 }
 0xfae   : > { %v2978_v18 = vpop.permute.xlu1 %2977  ;;  %3048 = vmatpush.msrb.mxu2 %v6997_v20 }
 0xfaf   : > { %v2979_v19 = vsel %vm398_vm0, %v2976_v11, %v2978_v18  ;;  %v2980_v1 = vsel %vm398_vm0, %v2978_v18, %v2976_v11  ;;  %3088 = vmatpush.msrb.mxu0 %v7012_v24 }
 0xfb0   : > { %v7263_v0 = vmul.f32 %v2979_v19, %v5738_v14  ;;  %v7266_v17 = vmul.f32 %v2980_v1, %v5741_v15  ;;  %3049 = vmatpush.msrb.mxu2 %v7095_v5 }
 0xfb1   : > { %3089 = vmatpush.msrb.mxu0 %v7098_v27 }
 0xfb2   : > { %3050 = vmatpush.msrb.mxu2 %v7107_v49  ;;  %3072 = vmatpush.msrb.mxu3 %v7263_v0 }
 0xfb3   : > { %3090 = vmatpush.msrb.mxu0 %v7110_v3  ;;  %3112 = vmatpush.msrb.mxu1 %v7266_v17 }
 0xfb4   : > { %3317 = vmatpush.msra.mxu3 %v7179_v38  ;;  %3051 = vmatpush.msrb.mxu2 %v7115_v45 }
 0xfb5   : > { %3091 = vmatpush.msrb.mxu0 %v7118_v41  ;;  %5225 = vmatmul.msk.f32.vlgmr.msrb.gmra.mxu3 %vm657_vm11, %v5224_v10 }
 0xfb6   : > { %3318 = vmatpush.msra.mxu3 %v7191_v62  ;;  %3052 = vmatpush.msrb.mxu2 %v7129_v21 }
 0xfb7   : > { %3092 = vmatpush.msrb.mxu0 %v8314_v47  ;;  %3053 = vmatmul.f32.vlgmr.msrb.gmra.mxu2 %v5223_v30 }
 0xfb8   : > { %3093 = vmatmul.f32.vlgmr.msrb.gmra.mxu0 %v5223_v30  ;;  %5226 = vmatmul.msk.f32.vlgmr.msrb.gmra.mxu1 %vm657_vm11, %v5224_v10 }
 0xfb9   : > { %3319 = vmatpush.msra.mxu3 %v7138_v33  ;;  %3357 = vmatpush.msra.mxu2 %v7182_v53 }
 0xfbb   : > { %3320 = vmatpush.msra.mxu3 %v7203_v12  ;;  %3358 = vmatpush.msra.mxu2 %v7194_v36 }
 0xfbd   : > { %3321 = vmatpush.msra.mxu3 %v7217_v26  ;;  %3359 = vmatpush.msra.mxu2 %v7140_v58 }
 0xfbf   : > { %3322 = vmatpush.msra.mxu3 %v2929_v34  ;;  %3360 = vmatpush.msra.mxu2 %v7206_v46 }
 0xfc1   : > { %3323 = vmatpush.msra.mxu3 %v2919_v51  ;;  %3361 = vmatpush.msra.mxu2 %v7220_v48 }
 0xfc3   : > { %3324 = vmatpush.msra.mxu3 %v7041_v59  ;;  %3362 = vmatpush.msra.mxu2 %v2930_v7 }
 0xfc5   : > { %3325 = vmatpush.msra.mxu3 %v7059_v4  ;;  %3363 = vmatpush.msra.mxu2 %v2920_v61 }
 0xfc7   : > { %3326 = vmatpush.msra.mxu3 %v7069_v44  ;;  %3364 = vmatpush.msra.mxu2 %v7046_v60 }
 0xfc9   : > { %3327 = vmatpush.msra.mxu3 %v7077_v37  ;;  %3365 = vmatpush.msra.mxu2 %v7062_v25 }
 0xfcb   : > { %3328 = vmatpush.msra.mxu3 %v6997_v20  ;;  %3366 = vmatpush.msra.mxu2 %v7072_v50 }
 0xfcd   : > { %3329 = vmatpush.msra.mxu3 %v7095_v5  ;;  %3367 = vmatpush.msra.mxu2 %v7080_v57 }
 0xfcf   : > { %3330 = vmatpush.msra.mxu3 %v7107_v49  ;;  %3368 = vmatpush.msra.mxu2 %v7012_v24 }
 0xfd1   : > { %3331 = vmatpush.msra.mxu3 %v7115_v45  ;;  %3369 = vmatpush.msra.mxu2 %v7098_v27 }
 0xfd3   : > { %3332 = vmatpush.msra.mxu3 %v7129_v21  ;;  %3370 = vmatpush.msra.mxu2 %v7110_v3 }
 0xfd5   : > { %3371 = vmatpush.msra.mxu2 %v7118_v41 }
 0xfd7   : > { %3372 = vmatpush.msra.mxu2 %v8314_v47 }
0x1035   : > { %v3094_v59 = vpop.f32.mrf.mxu0  ;;  %v3114_v60 = vpop.f32.mrf.mxu1 }
0x1036   : > { %v3115_v4 = vadd.f32 %v3114_v60, %v3094_v59 }
0x1038   : > { %v3120_v25 = vmul.f32 0.70710677, %v3115_v4  ;;  %v3074_v44 = vpop.f32.mrf.mxu3 }
0x103a   : > { %v3122_v50 = vand.u32 2147483647, %v3120_v25  ;;  %v3054_v37 = vpop.f32.mrf.mxu2  ;;  %vm3166_vm15 = vcmp.lt.f32.partialorder %v3120_v25, 0.0 }
0x103b   : > { %v7314_v57 = vadd.f32 %v3074_v44, %v3054_v37 }
0x103c   : > { %v3124_v5 = vmul.f32 0.3275911, %v3122_v50  ;;  %v3154_v12 = vsub.f32 0.0, %v3122_v50 }
0x103d   : > { %v3119_v27 = vmul.f32 0.70710677, %v7314_v57  ;;  %v3117_v25 = vmul.f32 0.5, %v7314_v57 }
0x103e   : > { %v3126_v49 = vadd.f32 1.0, %v3124_v5  ;;  %v3156_v34 = vmul.f32 %v3154_v12, %v3122_v50  ;;  %v3118_v12 = vmul.f32 0.5, %v3115_v4 }
0x103f   : > { %v3121_v45 = vand.u32 2147483647, %v3119_v27  ;;  %vm3165_vm9 = vcmp.lt.f32.partialorder %v3119_v27, 0.0 }
0x1040   : > { %5394 = vrcp.f32 %v3126_v49  ;;  %v3159_v8 = vmul.f32 1.442695, %v3156_v34 }
0x1041   : > { %v3123_v3 = vmul.f32 0.3275911, %v3121_v45  ;;  %v3153_v16 = vsub.f32 0.0, %v3121_v45 }
0x1043   : > { %v3125_v21 = vadd.f32 1.0, %v3123_v3  ;;  %v3155_v19 = vmul.f32 %v3153_v16, %v3121_v45 }
0x1045   : > { %5396 = vrcp.f32 %v3125_v21  ;;  %v3157_v59 = vmul.f32 1.442695, %v3155_v19 }
0x1046   : > { %v5395_v41 = vpop.eup %5394  ;;  %5398 = vpow2.f32 %v3159_v8 }
0x1047   : > { %v3130_v38 = vmul.f32 %v5395_v41, %v3126_v49  ;;  %5400 = vpow2.f32 %v3157_v59 }
0x1049   : > { %v3132_v53 = vsub.f32 2.0, %v3130_v38 }
0x104b   : > { %v5397_v62 = vpop.eup %5396  ;;  %v3134_v36 = vmul.f32 %v5395_v41, %v3132_v53 }
0x104c   : > { %v3129_v46 = vmul.f32 %v5397_v62, %v3125_v21  ;;  %v5399_v50 = vpop.eup %5398 }
0x104d   : > { %v3136_v26 = vmul.f32 1.0614054, %v3134_v36  ;;  %v5401_v53 = vpop.eup %5400 }
0x104e   : > { %v3131_v48 = vsub.f32 2.0, %v3129_v46 }
0x104f   : > { %v3138_v29 = vadd.f32 -1.4531521, %v3136_v26 }
0x1050   : > { %v3133_v7 = vmul.f32 %v5397_v62, %v3131_v48 }
0x1051   : > { %v3140_v51 = vmul.f32 %v3138_v29, %v3134_v36 }
0x1052   : > { %v3135_v61 = vmul.f32 1.0614054, %v3133_v7 }
0x1053   : > { %v3142_v35 = vadd.f32 1.4214138, %v3140_v51 }
0x1054   : > { %v3137_v28 = vadd.f32 -1.4531521, %v3135_v61 }
0x1055   : > { %v3144_v11 = vmul.f32 %v3142_v35, %v3134_v36 }
0x1056   : > { %v3139_v18 = vmul.f32 %v3137_v28, %v3133_v7 }
0x1057   : > { %v3146_v1 = vadd.f32 -0.28449672, %v3144_v11  ;;  %v5227_v11 = vld [vmem:[%s8289_s3 + $0x30] sm:$0xff] }
0x1058   : > { %v3141_v10 = vadd.f32 1.4214138, %v3139_v18  ;;  %3333 = vmatmul.f32.vlgmr.msra.gmra.mxu3 %v5227_v11  ;;  %3373 = vmatmul.f32.vlgmr.msra.gmra.mxu2 %v5227_v11 }
0x1059   : > { %v3148_v30 = vmul.f32 %v3146_v1, %v3134_v36 }
0x105a   : > { %v3143_v47 = vmul.f32 %v3141_v10, %v3133_v7 }
0x105b   : > { %v3150_v60 = vadd.f32 0.2548296, %v3148_v30 }
0x105c   : > { %v3145_v44 = vadd.f32 -0.28449672, %v3143_v47 }
0x105d   : > { %v3152_v37 = vmul.f32 %v3150_v60, %v3134_v36 }
0x105e   : > { %v3147_v5 = vmul.f32 %v3145_v44, %v3133_v7 }
0x105f   : > { %v3162_v49 = vmul.f32 %v5399_v50, %v3152_v37 }
0x1060   : > { %v3149_v3 = vadd.f32 0.2548296, %v3147_v5 }
0x1061   : > { %v3164_v21 = vsub.f32 1.0, %v3162_v49 }
0x1062   : > { %v3151_v41 = vmul.f32 %v3149_v3, %v3133_v7 }
0x1063   : > { %v3168_v38 = vsub.f32 0.0, %v3164_v21 }
0x1064   : > { %v3161_v62 = vmul.f32 %v5401_v53, %v3151_v41 }
0x1065   : > { %v3170_v45 = vsel %vm3166_vm15, %v3168_v38, %v3164_v21 }
0x1066   : > { %v3172_v46 = vadd.f32 1.0, %v3170_v45  ;;  %v3163_v48 = vsub.f32 1.0, %v3161_v62 }
0x1068   : > { %v7317_v26 = vmul.f32 %v3172_v46, %v3118_v12  ;;  %v3167_v36 = vsub.f32 0.0, %v3163_v48 }
0x106a   : > { %3229 = vrot.lane.b32.xlu1 %v7317_v26, %s5585_s28  ;;  %3239 = vrot.lane.b32.xlu2 %v7317_v26, %s5583_s26  ;;  %v3169_v29 = vsel %vm3165_vm9, %v3167_v36, %v3163_v48 }
0x106b   : > { %3249 = vrot.lane.b32.xlu0 %v7317_v26, %s5584_s27  ;;  %v3171_v4 = vadd.f32 1.0, %v3169_v29 }
0x106d   : > { %v7332_v34 = vmul.f32 %v3171_v4, %v3117_v25 }
0x1072   : > { %3197 = vrot.lane.b32.xlu1 %v7317_v26, %s5588_s7  ;;  %3207 = vrot.lane.b32.xlu2 %v7317_v26, %s5587_s30 }
0x1073   : > { %3219 = vrot.lane.b32.xlu0 %v7317_v26, %s5586_s29 }
0x107a   : > { %3237 = vrot.lane.b32.xlu1 %v7332_v34, %s5583_s26  ;;  %3247 = vrot.lane.b32.xlu2 %v7332_v34, %s5584_s27 }
0x107b   : > { %3227 = vrot.lane.b32.xlu0 %v7332_v34, %s5585_s28 }
0x1082   : > { %3205 = vrot.lane.b32.xlu1 %v7332_v34, %s5587_s30  ;;  %3217 = vrot.lane.b32.xlu2 %v7332_v34, %s5586_s29 }
0x1083   : > { %3195 = vrot.lane.b32.xlu0 %v7332_v34, %s5588_s7 }
0x108a   : > { %3175 = vrot.lane.b32.xlu1 %v7332_v34, %s5590_s9  ;;  %3185 = vrot.lane.b32.xlu2 %v7332_v34, %s5589_s8 }
0x108b   : > { %3187 = vrot.lane.b32.xlu0 %v7317_v26, %s5589_s8 }
0x1092   : > { %3177 = vrot.lane.b32.xlu2 %v7317_v26, %s5590_s9 }
0x10c4   : > { %v3240_v57 = vpop.permute.xlu2 %3239 }
0x10cc   : > { %v3208_v27 = vpop.permute.xlu2 %3207 }
0x10d4   : > { %v3248_v51 = vpop.permute.xlu2 %3247 }
0x10dc   : > { %v3230_v7 = vpop.permute.xlu1 %3229  ;;  %v3218_v1 = vpop.permute.xlu2 %3217 }
0x10dd   : > { %v3250_v61 = vpop.permute.xlu0 %3249 }
0x10de   : > { %v3251_v16 = vsel %vm409_vm1, %v3248_v51, %v3250_v61  ;;  %v3252_v35 = vsel %vm409_vm1, %v3250_v61, %v3248_v51 }
0x10df   : > { %v3253_v8 = vmul.f32 %v7038_v9, %v3251_v16  ;;  %v3254_v28 = vmul.f32 %v7043_v13, %v3252_v35 }
0x10e1   : > { %3342 = vmatpush.msra.mxu1 %v3253_v8  ;;  %3382 = vmatpush.msra.mxu0 %v3254_v28 }
0x10e4   : > { %v3198_v18 = vpop.permute.xlu1 %3197  ;;  %v3186_v41 = vpop.permute.xlu2 %3185 }
0x10e5   : > { %v3220_v19 = vpop.permute.xlu0 %3219 }
0x10e6   : > { %v3221_v37 = vsel %vm376_vm3, %v3218_v1, %v3220_v19  ;;  %v3222_v50 = vsel %vm376_vm3, %v3220_v19, %v3218_v1  ;;  %v3334_v19 = vpop.f32.mrf.mxu3  ;;  %v3374_v1 = vpop.f32.mrf.mxu2 }
0x10e7   : > { %v3223_v3 = vmul.f32 %v3221_v37, %v5785_v31  ;;  %v3224_v21 = vmul.f32 %v3222_v50, %v5788_v32 }
0x10ec   : > { %v3238_v10 = vpop.permute.xlu1 %3237 }
0x10ed   : > { %v3228_v30 = vpop.permute.xlu0 %3227  ;;  %v3241_v47 = vsel %vm398_vm0, %v3238_v10, %v3240_v57  ;;  %v3242_v9 = vsel %vm398_vm0, %v3240_v57, %v3238_v10  ;;  %v3178_v57 = vpop.permute.xlu2 %3177 }
0x10ee   : > { %v3231_v13 = vsel %vm387_vm2, %v3228_v30, %v3230_v7  ;;  %v3232_v59 = vsel %vm387_vm2, %v3230_v7, %v3228_v30  ;;  %v3243_v60 = vmul.f32 %v3241_v47, %v5738_v14  ;;  %v3244_v44 = vmul.f32 %v3242_v9, %v5741_v15 }
0x10ef   : > { %v3233_v5 = vmul.f32 %v3231_v13, %v5758_v22  ;;  %v3234_v49 = vmul.f32 %v3232_v59, %v5761_v23 }
0x10f0   : > { %3343 = vmatpush.msra.mxu1 %v3243_v60  ;;  %3383 = vmatpush.msra.mxu0 %v3244_v44 }
0x10f2   : > { %3344 = vmatpush.msra.mxu1 %v3233_v5  ;;  %3384 = vmatpush.msra.mxu0 %v3234_v49 }
0x10f4   : > { %v3206_v38 = vpop.permute.xlu1 %3205  ;;  %3345 = vmatpush.msra.mxu1 %v3223_v3  ;;  %3385 = vmatpush.msra.mxu0 %v3224_v21 }
0x10f5   : > { %v3196_v53 = vpop.permute.xlu0 %3195  ;;  %v3209_v45 = vsel %vm363_vm4, %v3206_v38, %v3208_v27  ;;  %v3210_v62 = vsel %vm363_vm4, %v3208_v27, %v3206_v38 }
0x10f6   : > { %v3199_v12 = vsel %vm352_vm5, %v3196_v53, %v3198_v18  ;;  %v3200_v46 = vsel %vm352_vm5, %v3198_v18, %v3196_v53  ;;  %v3211_v48 = vmul.f32 %v3210_v62, %v5806_v39  ;;  %v3212_v36 = vmul.f32 %v3209_v45, %v5811_v40  ;;  %3346 = vmatpush.msra.mxu1 %v7332_v34  ;;  %v5228_v18 = vld [vmem:[%s8289_s3 + $0x38] sm:$0xff] }
0x10f7   : > { %3386 = vmatpush.msra.mxu0 %v7317_v26  ;;  %v3201_v29 = vmul.f32 %v3200_v46, %v5815_v42  ;;  %v3202_v4 = vmul.f32 %v3199_v12, %v5818_v43 }
0x10f8   : > { %3347 = vmatpush.msra.mxu1 %v3211_v48 }
0x10f9   : > { %3387 = vmatpush.msra.mxu0 %v3212_v36 }
0x10fa   : > { %3348 = vmatpush.msra.mxu1 %v3201_v29 }
0x10fb   : > { %3388 = vmatpush.msra.mxu0 %v3202_v4 }
0x10fc   : > { %v3176_v25 = vpop.permute.xlu1 %3175 }
0x10fd   : > { %v3188_v27 = vpop.permute.xlu0 %3187  ;;  %v3179_v61 = vsel %vm330_vm7, %v3176_v25, %v3178_v57  ;;  %v3180_v16 = vsel %vm330_vm7, %v3178_v57, %v3176_v25 }
0x10fe   : > { %v3189_v7 = vsel %vm341_vm6, %v3186_v41, %v3188_v27  ;;  %v3190_v51 = vsel %vm341_vm6, %v3188_v27, %v3186_v41  ;;  %v3181_v28 = vmul.f32 %v3180_v16, %v5865_v63  ;;  %v3182_v11 = vmul.f32 %v3179_v61, %v5868_v2 }
0x10ff   : > { %v3191_v35 = vmul.f32 %v3190_v51, %v5846_v54  ;;  %v3192_v8 = vmul.f32 %v3189_v7, %v5849_v55 }
0x1101   : > { %3349 = vmatpush.msra.mxu1 %v3191_v35  ;;  %3389 = vmatpush.msra.mxu0 %v3192_v8 }
0x1103   : > { %3350 = vmatpush.msra.mxu1 %v3181_v28  ;;  %3390 = vmatpush.msra.mxu0 %v3182_v11 }
0x1105   : > { %3351 = vmatpush.msra.mxu1 %v7243_v56  ;;  %3391 = vmatpush.msra.mxu0 %v7246_v52 }
0x1107   : > { %3352 = vmatpush.msra.mxu1 %v7263_v0  ;;  %3392 = vmatpush.msra.mxu0 %v7266_v17 }
0x1108   : > { %5229 = vmatmul.msk.f32.vlgmr.msra.gmra.mxu1 %vm937_vm14, %v5228_v18  ;;  %5230 = vmatmul.msk.f32.vlgmr.msra.gmra.mxu0 %vm937_vm14, %v5228_v18 }
0x1185   : > { %v3354_v10 = vpop.f32.mrf.mxu1  ;;  %v3394_v30 = vpop.f32.mrf.mxu0 }
0x1186   : > { %v3355_v47 = vadd.f32 %v3354_v10, %v3334_v19  ;;  %v3395_v56 = vadd.f32 %v3394_v30, %v3374_v1 }
0x1188   : > { %v3399_v9 = vmul.f32 0.70710677, %v3355_v47  ;;  %v3400_v52 = vmul.f32 0.70710677, %v3395_v56 }
0x118a   : > { %v3401_v13 = vand.u32 2147483647, %v3399_v9  ;;  %v3402_v59 = vand.u32 2147483647, %v3400_v52  ;;  %vm3445_vm12 = vcmp.lt.f32.partialorder %v3399_v9, 0.0  ;;  %vm3446_vm13 = vcmp.lt.f32.partialorder %v3400_v52, 0.0 }
0x118c   : > { %v3403_v60 = vmul.f32 0.3275911, %v3401_v13  ;;  %v3404_v44 = vmul.f32 0.3275911, %v3402_v59  ;;  %v3433_v38 = vsub.f32 0.0, %v3401_v13  ;;  %v3434_v62 = vsub.f32 0.0, %v3402_v59 }
0x118e   : > { %v3405_v37 = vadd.f32 1.0, %v3403_v60  ;;  %v3406_v0 = vadd.f32 1.0, %v3404_v44  ;;  %v3435_v48 = vmul.f32 %v3433_v38, %v3401_v13  ;;  %v3436_v4 = vmul.f32 %v3434_v62, %v3402_v59 }
0x1190   : > { %5402 = vrcp.f32 %v3405_v37  ;;  %v3437_v27 = vmul.f32 1.442695, %v3435_v48  ;;  %v3439_v61 = vmul.f32 1.442695, %v3436_v4  ;;  %v7471_v4 = vld [vmem:[#allocation7 + $0x18] ss:$0 sm:$0xff] }
0x1191   : > { %5404 = vrcp.f32 %v3406_v0 }
0x1192   : > { %5406 = vpow2.f32 %v3437_v27 }
0x1193   : > { %5408 = vpow2.f32 %v3439_v61 }
0x1196   : > { %v5403_v17 = vpop.eup %5402 }
0x1197   : > { %v5405_v50 = vpop.eup %5404  ;;  %v3409_v5 = vmul.f32 %v5403_v17, %v3405_v37 }
0x1198   : > { %v3410_v49 = vmul.f32 %v5405_v50, %v3406_v0  ;;  %v5407_v10 = vpop.eup %5406 }
0x1199   : > { %v3411_v3 = vsub.f32 2.0, %v3409_v5  ;;  %v5409_v13 = vpop.eup %5408  ;;  %v3397_v5 = vmul.f32 0.5, %v3355_v47 }
0x119a   : > { %v3412_v21 = vsub.f32 2.0, %v3410_v49 }
0x119b   : > { %v3413_v41 = vmul.f32 %v5403_v17, %v3411_v3 }
0x119c   : > { %v3414_v53 = vmul.f32 %v5405_v50, %v3412_v21  ;;  %v3398_v21 = vmul.f32 0.5, %v3395_v56 }
0x119d   : > { %v3415_v45 = vmul.f32 1.0614054, %v3413_v41 }
0x119e   : > { %v3416_v12 = vmul.f32 1.0614054, %v3414_v53 }
0x119f   : > { %v3417_v46 = vadd.f32 -1.4531521, %v3415_v45 }
0x11a0   : > { %v3418_v36 = vadd.f32 -1.4531521, %v3416_v12 }
0x11a1   : > { %v3419_v29 = vmul.f32 %v3417_v46, %v3413_v41 }
0x11a2   : > { %v3420_v25 = vmul.f32 %v3418_v36, %v3414_v53  ;;  %v7466_v36 = vld [vmem:[#allocation7 + $0x10] ss:$0 sm:$0xff] }
0x11a3   : > { %v3421_v57 = vadd.f32 1.4214138, %v3419_v29 }
0x11a4   : > { %v3422_v7 = vadd.f32 1.4214138, %v3420_v25 }
0x11a5   : > { %v3423_v51 = vmul.f32 %v3421_v57, %v3413_v41 }
0x11a6   : > { %v3424_v16 = vmul.f32 %v3422_v7, %v3414_v53 }
0x11a7   : > { %v3425_v35 = vadd.f32 -0.28449672, %v3423_v51 }
0x11a8   : > { %v3426_v8 = vadd.f32 -0.28449672, %v3424_v16 }
0x11a9   : > { %v3427_v28 = vmul.f32 %v3425_v35, %v3413_v41 }
0x11aa   : > { %v3428_v11 = vmul.f32 %v3426_v8, %v3414_v53 }
0x11ab   : > { %v3429_v18 = vadd.f32 0.2548296, %v3427_v28 }
0x11ac   : > { %v3430_v19 = vadd.f32 0.2548296, %v3428_v11 }
0x11ad   : > { %v3431_v1 = vmul.f32 %v3429_v18, %v3413_v41  ;;  %v3456_v41 = vld [vmem:[#allocation5 + $0x18] sm:$0xff] }
0x11ae   : > { %v3432_v30 = vmul.f32 %v3430_v19, %v3414_v53 }
0x11af   : > { %v3441_v59 = vmul.f32 %v5407_v10, %v3431_v1 }
0x11b0   : > { %v3442_v60 = vmul.f32 %v5409_v13, %v3432_v30 }
0x11b1   : > { %v3443_v44 = vsub.f32 1.0, %v3441_v59 }
0x11b2   : > { %v3444_v37 = vsub.f32 1.0, %v3442_v60 }
0x11b3   : > { %v3447_v0 = vsub.f32 0.0, %v3443_v44 }
0x11b4   : > { %v3448_v17 = vsub.f32 0.0, %v3444_v37 }
0x11b5   : > { %v3449_v50 = vsel %vm3445_vm12, %v3447_v0, %v3443_v44 }
0x11b6   : > { %v3451_v49 = vadd.f32 1.0, %v3449_v50  ;;  %v3450_v3 = vsel %vm3446_vm13, %v3448_v17, %v3444_v37 }
0x11b7   : > { %v3452_v38 = vadd.f32 1.0, %v3450_v3 }
0x11b8   : > { %v3453_v45 = vmul.f32 %v3451_v49, %v3397_v5 }
0x11b9   : > { %v3454_v62 = vmul.f32 %v3452_v38, %v3398_v21 }
0x11ba   : > { %3472 = vmatpush.msrb.mxu1 %v3453_v45 }
0x11bb   : > { %3492 = vmatpush.msrb.mxu3 %v3454_v62 }
0x11bc   : > { %3473 = vmatpush.msrb.mxu1 %v7332_v34 }
0x11bd   : > { %3493 = vmatpush.msrb.mxu3 %v7317_v26 }
0x11be   : > { %3474 = vmatpush.msrb.mxu1 %v7138_v33 }
0x11bf   : > { %3494 = vmatpush.msrb.mxu3 %v7140_v58 }
0x11c0   : > { %3475 = vmatpush.msrb.mxu1 %v6997_v20 }
0x11c1   : > { %3495 = vmatpush.msrb.mxu3 %v7012_v24  ;;  %5231 = vmatmul.msk.f32.vlgmr.msrb.gmra.mxu1 %vm1080_vm10, %v3456_v41 }
0x11c2   : > { %5232 = vmatmul.msk.f32.vlgmr.msrb.gmra.mxu3 %vm1080_vm10, %v3456_v41 }
0x123e   : > { %v3477_v47 = vpop.f32.mrf.mxu1 }
0x123f   : > { %v7425_v56 = vadd.f32 %v3477_v47, %v6997_v20 }
0x1241   : > { %3554 = vrot.lane.b32.xlu1 %v7425_v56, %s5585_s28  ;;  %3564 = vrot.lane.b32.xlu2 %v7425_v56, %s5583_s26 }
0x1242   : > { %3574 = vrot.lane.b32.xlu0 %v7425_v56, %s5584_s27 }
0x1245   : > { %v3497_v20 = vpop.f32.mrf.mxu3 }
0x1246   : > { %v7440_v33 = vadd.f32 %v3497_v20, %v7012_v24 }
0x1249   : > { %3522 = vrot.lane.b32.xlu1 %v7425_v56, %s5588_s7  ;;  %3532 = vrot.lane.b32.xlu2 %v7425_v56, %s5587_s30 }
0x124a   : > { %3544 = vrot.lane.b32.xlu0 %v7425_v56, %s5586_s29 }
0x1251   : > { %3556 = vrot.lane.b32.xlu2 %v7440_v33, %s5585_s28  ;;  %3576 = vrot.lane.b32.xlu1 %v7440_v33, %s5584_s27 }
0x1252   : > { %3512 = vrot.lane.b32.xlu0 %v7425_v56, %s5589_s8 }
0x1259   : > { %3524 = vrot.lane.b32.xlu2 %v7440_v33, %s5588_s7  ;;  %3546 = vrot.lane.b32.xlu1 %v7440_v33, %s5586_s29 }
0x125a   : > { %3566 = vrot.lane.b32.xlu0 %v7440_v33, %s5583_s26 }
0x1261   : > { %3502 = vrot.lane.b32.xlu2 %v7425_v56, %s5590_s9  ;;  %3514 = vrot.lane.b32.xlu1 %v7440_v33, %s5589_s8 }
0x1262   : > { %3534 = vrot.lane.b32.xlu0 %v7440_v33, %s5587_s30 }
0x126a   : > { %3504 = vrot.lane.b32.xlu0 %v7440_v33, %s5590_s9 }
0x129b   : > { %v3565_v58 = vpop.permute.xlu2 %3564 }
0x12a3   : > { %v3533_v52 = vpop.permute.xlu2 %3532 }
0x12ab   : > { %v3557_v57 = vpop.permute.xlu2 %3556 }
0x12b3   : > { %v3555_v24 = vpop.permute.xlu1 %3554  ;;  %v3525_v10 = vpop.permute.xlu2 %3524 }
0x12b4   : > { %v3575_v26 = vpop.permute.xlu0 %3574  ;;  %v3558_v51 = vsel %vm387_vm2, %v3555_v24, %v3557_v57  ;;  %v3559_v61 = vsel %vm387_vm2, %v3557_v57, %v3555_v24 }
0x12b5   : > { %v7497_v19 = vmul.f32 %v3558_v51, %v5758_v22  ;;  %v7500_v1 = vmul.f32 %v3559_v61, %v5761_v23 }
0x12bb   : > { %v3523_v34 = vpop.permute.xlu1 %3522  ;;  %v3503_v41 = vpop.permute.xlu2 %3502 }
0x12bc   : > { %v3545_v9 = vpop.permute.xlu0 %3544  ;;  %v3526_v44 = vsel %vm352_vm5, %v3523_v34, %v3525_v10  ;;  %v3527_v37 = vsel %vm352_vm5, %v3525_v10, %v3523_v34  ;;  %v3603_v34 = vld [vmem:[#allocation3 + $0x20] sm:$0xff] }
0x12bd   : > { %v7535_v21 = vmul.f32 %v3527_v37, %v5815_v42  ;;  %v7538_v38 = vmul.f32 %v3526_v44, %v5818_v43 }
0x12c3   : > { %v3577_v53 = vpop.permute.xlu1 %3576 }
0x12c4   : > { %v3513_v12 = vpop.permute.xlu0 %3512  ;;  %v3578_v46 = vsel %vm409_vm1, %v3575_v26, %v3577_v53  ;;  %v3579_v48 = vsel %vm409_vm1, %v3577_v53, %v3575_v26 }
0x12c5   : > { %v7469_v29 = vmul.f32 %v7466_v36, %v3578_v46  ;;  %v7474_v25 = vmul.f32 %v7471_v4, %v3579_v48 }
0x12c7   : > { %3614 = vmatpush.msra.mxu1 %v7469_v29  ;;  %3634 = vmatpush.msra.mxu3 %v7474_v25 }
0x12cb   : > { %v3547_v27 = vpop.permute.xlu1 %3546 }
0x12cc   : > { %v3567_v7 = vpop.permute.xlu0 %3566  ;;  %v3548_v11 = vsel %vm376_vm3, %v3545_v9, %v3547_v27  ;;  %v3549_v18 = vsel %vm376_vm3, %v3547_v27, %v3545_v9 }
0x12cd   : > { %v3568_v16 = vsel %vm398_vm0, %v3565_v58, %v3567_v7  ;;  %v3569_v35 = vsel %vm398_vm0, %v3567_v7, %v3565_v58  ;;  %v7505_v30 = vmul.f32 %v3548_v11, %v5785_v31  ;;  %v7508_v13 = vmul.f32 %v3549_v18, %v5788_v32 }
0x12ce   : > { %v7487_v8 = vmul.f32 %v3568_v16, %v5738_v14  ;;  %v7490_v28 = vmul.f32 %v3569_v35, %v5741_v15 }
0x12d0   : > { %3615 = vmatpush.msra.mxu1 %v7487_v8  ;;  %3635 = vmatpush.msra.mxu3 %v7490_v28 }
0x12d2   : > { %3616 = vmatpush.msra.mxu1 %v7497_v19  ;;  %3636 = vmatpush.msra.mxu3 %v7500_v1 }
0x12d3   : > { %v3515_v60 = vpop.permute.xlu1 %3514 }
0x12d4   : > { %v3535_v59 = vpop.permute.xlu0 %3534  ;;  %3617 = vmatpush.msra.mxu1 %v7505_v30  ;;  %3637 = vmatpush.msra.mxu3 %v7508_v13  ;;  %v3516_v49 = vsel %vm341_vm6, %v3513_v12, %v3515_v60  ;;  %v3517_v3 = vsel %vm341_vm6, %v3515_v60, %v3513_v12 }
0x12d5   : > { %v3536_v0 = vsel %vm363_vm4, %v3533_v52, %v3535_v59  ;;  %v3537_v17 = vsel %vm363_vm4, %v3535_v59, %v3533_v52  ;;  %v7543_v45 = vmul.f32 %v3517_v3, %v5846_v54  ;;  %v7546_v62 = vmul.f32 %v3516_v49, %v5849_v55 }
0x12d6   : > { %v7523_v50 = vmul.f32 %v3537_v17, %v5806_v39  ;;  %v7526_v5 = vmul.f32 %v3536_v0, %v5811_v40  ;;  %3618 = vmatpush.msra.mxu1 %v7425_v56  ;;  %3638 = vmatpush.msra.mxu3 %v7440_v33 }
0x12d8   : > { %3619 = vmatpush.msra.mxu1 %v7523_v50  ;;  %3639 = vmatpush.msra.mxu3 %v7526_v5 }
0x12da   : > { %3620 = vmatpush.msra.mxu1 %v7535_v21  ;;  %3640 = vmatpush.msra.mxu3 %v7538_v38 }
0x12dc   : > { %v3505_v47 = vpop.permute.xlu0 %3504  ;;  %3621 = vmatpush.msra.mxu1 %v7543_v45  ;;  %3641 = vmatpush.msra.mxu3 %v7546_v62 }
0x12dd   : > { %v3506_v20 = vsel %vm330_vm7, %v3503_v41, %v3505_v47  ;;  %v3507_v24 = vsel %vm330_vm7, %v3505_v47, %v3503_v41 }
0x12de   : > { %v7557_v58 = vmul.f32 %v3507_v24, %v5865_v63  ;;  %v7560_v26 = vmul.f32 %v3506_v20, %v5868_v2 }
0x12e0   : > { %8315 = vst [vmem:[#allocation10_spill] sm:$0xff] %v7560_v26  ;;  %3622 = vmatpush.msra.mxu1 %v7557_v58  ;;  %3642 = vmatpush.msra.mxu3 %v7560_v26 }
0x12e1   : > { %5233 = vmatmul.msk.f32.vlgmr.msra.gmra.mxu1 %vm435_vm8, %v3603_v34  ;;  %5234 = vmatmul.msk.f32.vlgmr.msra.gmra.mxu3 %vm435_vm8, %v3603_v34 }
0x135e   : > { %v3624_v9 = vpop.f32.mrf.mxu1 }
0x135f   : > { %v3649_v52 = vmul.f32 0.70710677, %v3624_v9 }
0x1361   : > { %v3651_v53 = vand.u32 2147483647, %v3649_v52  ;;  %vm3695_vm15 = vcmp.lt.f32.partialorder %v3649_v52, 0.0 }
0x1363   : > { %v3653_v12 = vmul.f32 0.3275911, %v3651_v53  ;;  %v3683_v10 = vsub.f32 0.0, %v3651_v53 }
0x1364   : > { %v3644_v46 = vpop.f32.mrf.mxu3 }
0x1365   : > { %v3655_v48 = vadd.f32 1.0, %v3653_v12  ;;  %v3650_v57 = vmul.f32 0.70710677, %v3644_v46  ;;  %v3685_v0 = vmul.f32 %v3683_v10, %v3651_v53 }
0x1367   : > { %5410 = vrcp.f32 %v3655_v48  ;;  %v3652_v27 = vand.u32 2147483647, %v3650_v57  ;;  %v3687_v20 = vmul.f32 1.442695, %v3685_v0  ;;  %vm3696_vm9 = vcmp.lt.f32.partialorder %v3650_v57, 0.0 }
0x1369   : > { %v3654_v7 = vmul.f32 0.3275911, %v3652_v27  ;;  %v3684_v3 = vsub.f32 0.0, %v3652_v27 }
0x136b   : > { %v3656_v51 = vadd.f32 1.0, %v3654_v7  ;;  %v3686_v12 = vmul.f32 %v3684_v3, %v3652_v27 }
0x136d   : > { %v5411_v61 = vpop.eup %5410  ;;  %5412 = vrcp.f32 %v3656_v51 }
0x136e   : > { %v3659_v16 = vmul.f32 %v5411_v61, %v3655_v48  ;;  %5414 = vpow2.f32 %v3687_v20 }
0x1370   : > { %v3661_v35 = vsub.f32 2.0, %v3659_v16 }
0x1372   : > { %v3663_v11 = vmul.f32 %v5411_v61, %v3661_v35  ;;  %v3689_v35 = vmul.f32 1.442695, %v3686_v12 }
0x1373   : > { %v5413_v18 = vpop.eup %5412 }
0x1374   : > { %v3665_v59 = vmul.f32 1.0614054, %v3663_v11  ;;  %v3660_v60 = vmul.f32 %v5413_v18, %v3656_v51  ;;  %v5415_v53 = vpop.eup %5414  ;;  %5416 = vpow2.f32 %v3689_v35 }
0x1376   : > { %v3667_v44 = vadd.f32 -1.4531521, %v3665_v59  ;;  %v3662_v37 = vsub.f32 2.0, %v3660_v60 }
0x1378   : > { %v3669_v17 = vmul.f32 %v3667_v44, %v3663_v11  ;;  %v3664_v49 = vmul.f32 %v5413_v18, %v3662_v37 }
0x137a   : > { %v3671_v41 = vadd.f32 1.4214138, %v3669_v17  ;;  %v3666_v47 = vmul.f32 1.0614054, %v3664_v49 }
0x137c   : > { %v3673_v24 = vmul.f32 %v3671_v41, %v3663_v11  ;;  %v3668_v34 = vadd.f32 -1.4531521, %v3666_v47  ;;  %v5417_v41 = vpop.eup %5416  ;;  %v3647_v47 = vmul.f32 0.5, %v3624_v9 }
0x137e   : > { %v3675_v7 = vadd.f32 -0.28449672, %v3673_v24  ;;  %v3670_v48 = vmul.f32 %v3668_v34, %v3664_v49 }
0x1380   : > { %v3677_v61 = vmul.f32 %v3675_v7, %v3663_v11  ;;  %v3672_v16 = vadd.f32 1.4214138, %v3670_v48 }
0x1382   : > { %v3679_v26 = vadd.f32 0.2548296, %v3677_v61  ;;  %v3674_v51 = vmul.f32 %v3672_v16, %v3664_v49 }
0x1384   : > { %v3681_v59 = vmul.f32 %v3679_v26, %v3663_v11  ;;  %v3676_v60 = vadd.f32 -0.28449672, %v3674_v51  ;;  %v3648_v11 = vmul.f32 0.5, %v3644_v46 }
0x1386   : > { %v3691_v18 = vmul.f32 %v5415_v53, %v3681_v59  ;;  %v3678_v10 = vmul.f32 %v3676_v60, %v3664_v49 }
0x1388   : > { %v3693_v44 = vsub.f32 1.0, %v3691_v18  ;;  %v3680_v37 = vadd.f32 0.2548296, %v3678_v10 }
0x138a   : > { %v3697_v0 = vsub.f32 0.0, %v3693_v44  ;;  %v3682_v17 = vmul.f32 %v3680_v37, %v3664_v49 }
0x138c   : > { %v3699_v27 = vsel %vm3695_vm15, %v3697_v0, %v3693_v44  ;;  %v3692_v3 = vmul.f32 %v5417_v41, %v3682_v17 }
0x138d   : > { %v3701_v20 = vadd.f32 1.0, %v3699_v27 }
0x138e   : > { %v3694_v24 = vsub.f32 1.0, %v3692_v3 }
0x138f   : > { %v7566_v34 = vmul.f32 %v3701_v20, %v3647_v47 }
0x1390   : > { %v3698_v12 = vsub.f32 0.0, %v3694_v24 }
0x1391   : > { %3735 = vrot.lane.b32.xlu2 %v7566_v34, %s5587_s30  ;;  %3747 = vrot.lane.b32.xlu0 %v7566_v34, %s5586_s29 }
0x1392   : > { %v3700_v26 = vsel %vm3696_vm9, %v3698_v12, %v3694_v24  ;;  %3757 = vrot.lane.b32.xlu1 %v7566_v34, %s5585_s28 }
0x1393   : > { %v3702_v52 = vadd.f32 1.0, %v3700_v26 }
0x1395   : > { %v7574_v49 = vmul.f32 %v3702_v52, %v3648_v11 }
0x1399   : > { %3715 = vrot.lane.b32.xlu0 %v7566_v34, %s5589_s8  ;;  %3759 = vrot.lane.b32.xlu2 %v7574_v49, %s5585_s28 }
0x139a   : > { %3725 = vrot.lane.b32.xlu1 %v7566_v34, %s5588_s7 }
0x13a1   : > { %3737 = vrot.lane.b32.xlu0 %v7574_v49, %s5587_s30  ;;  %3727 = vrot.lane.b32.xlu2 %v7574_v49, %s5588_s7 }
0x13a2   : > { %3749 = vrot.lane.b32.xlu1 %v7574_v49, %s5586_s29 }
0x13a9   : > { %3707 = vrot.lane.b32.xlu0 %v7574_v49, %s5590_s9  ;;  %3705 = vrot.lane.b32.xlu2 %v7566_v34, %s5590_s9 }
0x13aa   : > { %3717 = vrot.lane.b32.xlu1 %v7574_v49, %s5589_s8 }
0x13b1   : > { %3767 = vrot.lane.b32.xlu0 %v7566_v34, %s5583_s26  ;;  %3779 = vrot.lane.b32.xlu2 %v7574_v49, %s5584_s27 }
0x13b2   : > { %3777 = vrot.lane.b32.xlu1 %v7566_v34, %s5584_s27 }
0x13ba   : > { %3769 = vrot.lane.b32.xlu1 %v7574_v49, %s5583_s26 }
0x13eb   : > { %v3736_v9 = vpop.permute.xlu2 %3735 }
0x13f3   : > { %v3760_v57 = vpop.permute.xlu2 %3759 }
0x13fb   : > { %v3728_v60 = vpop.permute.xlu2 %3727 }
0x1403   : > { %v3748_v46 = vpop.permute.xlu0 %3747  ;;  %v3706_v47 = vpop.permute.xlu2 %3705 }
0x1404   : > { %v3758_v7 = vpop.permute.xlu1 %3757 }
0x1405   : > { %v3761_v48 = vsel %vm387_vm2, %v3758_v7, %v3760_v57  ;;  %v3762_v61 = vsel %vm387_vm2, %v3760_v57, %v3758_v7 }
0x1406   : > { %v7607_v16 = vmul.f32 %v3761_v48, %v5758_v22  ;;  %v7610_v35 = vmul.f32 %v3762_v61, %v5761_v23 }
0x1408   : > { %3829 = vmatpush.msrb.mxu0 %v7607_v16  ;;  %3869 = vmatpush.msrb.mxu2 %v7610_v35 }
0x140b   : > { %v3716_v51 = vpop.permute.xlu0 %3715 }
0x140c   : > { %v3726_v59 = vpop.permute.xlu1 %3725 }
0x140d   : > { %v3729_v27 = vsel %vm352_vm5, %v3726_v59, %v3728_v60  ;;  %v3730_v3 = vsel %vm352_vm5, %v3728_v60, %v3726_v59 }
0x140e   : > { %v7643_v26 = vmul.f32 %v3730_v3, %v5815_v42  ;;  %v7646_v52 = vmul.f32 %v3729_v27, %v5818_v43 }
0x1413   : > { %v3738_v53 = vpop.permute.xlu0 %3737 }
0x1414   : > { %v3750_v18 = vpop.permute.xlu1 %3749  ;;  %v3739_v17 = vsel %vm363_vm4, %v3736_v9, %v3738_v53  ;;  %v3740_v41 = vsel %vm363_vm4, %v3738_v53, %v3736_v9  ;;  %v3780_v53 = vpop.permute.xlu2 %3779 }
0x1415   : > { %v3751_v10 = vsel %vm376_vm3, %v3748_v46, %v3750_v18  ;;  %v3752_v44 = vsel %vm376_vm3, %v3750_v18, %v3748_v46  ;;  %v7635_v20 = vmul.f32 %v3740_v41, %v5806_v39  ;;  %v7638_v24 = vmul.f32 %v3739_v17, %v5811_v40 }
0x1416   : > { %v7619_v37 = vmul.f32 %v3751_v10, %v5785_v31  ;;  %v7622_v0 = vmul.f32 %v3752_v44, %v5788_v32 }
0x1418   : > { %3830 = vmatpush.msrb.mxu0 %v7619_v37  ;;  %3870 = vmatpush.msrb.mxu2 %v7622_v0 }
0x141a   : > { %3831 = vmatpush.msrb.mxu0 %v7566_v34  ;;  %3871 = vmatpush.msrb.mxu2 %v7574_v49 }
0x141b   : > { %v3708_v12 = vpop.permute.xlu0 %3707 }
0x141c   : > { %v3718_v11 = vpop.permute.xlu1 %3717  ;;  %3832 = vmatpush.msrb.mxu0 %v7635_v20  ;;  %3872 = vmatpush.msrb.mxu2 %v7638_v24  ;;  %v3709_v9 = vsel %vm330_vm7, %v3706_v47, %v3708_v12  ;;  %v3710_v46 = vsel %vm330_vm7, %v3708_v12, %v3706_v47 }
0x141d   : > { %v3719_v57 = vsel %vm341_vm6, %v3716_v51, %v3718_v11  ;;  %v3720_v7 = vsel %vm341_vm6, %v3718_v11, %v3716_v51  ;;  %v3711_v59 = vmul.f32 %v3710_v46, %v5865_v63  ;;  %v3712_v60 = vmul.f32 %v3709_v9, %v5868_v2  ;;  %v5236_v9 = vld [vmem:[%s8288_s2 + $0x48] sm:$0xff]  ;;  %v5235_v46 = vld [vmem:[%s8288_s2 + $0x40] sm:$0xff] }
0x141e   : > { %v3721_v48 = vmul.f32 %v3720_v7, %v5846_v54  ;;  %v3722_v61 = vmul.f32 %v3719_v57, %v5849_v55  ;;  %3833 = vmatpush.msrb.mxu0 %v7643_v26  ;;  %3873 = vmatpush.msrb.mxu2 %v7646_v52  ;;  %v8316_v57 = vld [vmem:[#allocation10_spill] sm:$0xff] }
0x1420   : > { %3834 = vmatpush.msrb.mxu0 %v3721_v48  ;;  %3874 = vmatpush.msrb.mxu2 %v3722_v61 }
0x1422   : > { %3835 = vmatpush.msrb.mxu0 %v3711_v59  ;;  %3875 = vmatpush.msrb.mxu2 %v3712_v60 }
0x1423   : > { %v3768_v41 = vpop.permute.xlu0 %3767 }
0x1424   : > { %v3778_v18 = vpop.permute.xlu1 %3777  ;;  %3836 = vmatpush.msrb.mxu0 %v7469_v29  ;;  %3876 = vmatpush.msrb.mxu2 %v7474_v25 }
0x1425   : > { %v3781_v51 = vsel %vm409_vm1, %v3778_v18, %v3780_v53  ;;  %v3782_v10 = vsel %vm409_vm1, %v3780_v53, %v3778_v18 }
0x1426   : > { %v7671_v44 = vmul.f32 %v7466_v36, %v3781_v51  ;;  %v7674_v17 = vmul.f32 %v7471_v4, %v3782_v10  ;;  %3837 = vmatpush.msrb.mxu0 %v7487_v8  ;;  %3877 = vmatpush.msrb.mxu2 %v7490_v28 }
0x1428   : > { %3838 = vmatpush.msrb.mxu0 %v7497_v19  ;;  %3863 = vmatpush.msrb.mxu1 %v7671_v44 }
0x1429   : > { %3878 = vmatpush.msrb.mxu2 %v7500_v1  ;;  %3903 = vmatpush.msrb.mxu3 %v7674_v17 }
0x142a   : > { %3839 = vmatpush.msrb.mxu0 %v7505_v30 }
0x142b   : > { %3879 = vmatpush.msrb.mxu2 %v7508_v13 }
0x142c   : > { %v3770_v27 = vpop.permute.xlu1 %3769  ;;  %3840 = vmatpush.msrb.mxu0 %v7425_v56 }
0x142d   : > { %v3771_v3 = vsel %vm398_vm0, %v3768_v41, %v3770_v27  ;;  %v3772_v47 = vsel %vm398_vm0, %v3770_v27, %v3768_v41  ;;  %3880 = vmatpush.msrb.mxu2 %v7440_v33 }
0x142e   : > { %v7691_v12 = vmul.f32 %v3771_v3, %v5738_v14  ;;  %v7694_v11 = vmul.f32 %v3772_v47, %v5741_v15  ;;  %3841 = vmatpush.msrb.mxu0 %v7523_v50 }
0x142f   : > { %3881 = vmatpush.msrb.mxu2 %v7526_v5 }
0x1430   : > { %3842 = vmatpush.msrb.mxu0 %v7535_v21  ;;  %3864 = vmatpush.msrb.mxu1 %v7691_v12 }
0x1431   : > { %3882 = vmatpush.msrb.mxu2 %v7538_v38  ;;  %3904 = vmatpush.msrb.mxu3 %v7694_v11 }
0x1432   : > { %4109 = vmatpush.msra.mxu1 %v7607_v16  ;;  %3843 = vmatpush.msrb.mxu0 %v7543_v45 }
0x1433   : > { %3883 = vmatpush.msrb.mxu2 %v7546_v62  ;;  %5237 = vmatmul.msk.f32.vlgmr.msrb.gmra.mxu1 %vm657_vm11, %v5236_v9 }
0x1434   : > { %4110 = vmatpush.msra.mxu1 %v7619_v37  ;;  %3844 = vmatpush.msrb.mxu0 %v7557_v58 }
0x1435   : > { %3884 = vmatpush.msrb.mxu2 %v8316_v57  ;;  %3845 = vmatmul.f32.vlgmr.msrb.gmra.mxu0 %v5235_v46 }
0x1436   : > { %3885 = vmatmul.f32.vlgmr.msrb.gmra.mxu2 %v5235_v46  ;;  %5238 = vmatmul.msk.f32.vlgmr.msrb.gmra.mxu3 %vm657_vm11, %v5236_v9 }
0x1437   : > { %4111 = vmatpush.msra.mxu1 %v7566_v34  ;;  %4149 = vmatpush.msra.mxu0 %v7610_v35 }
0x1439   : > { %4112 = vmatpush.msra.mxu1 %v7635_v20  ;;  %4150 = vmatpush.msra.mxu0 %v7622_v0 }
0x143b   : > { %4113 = vmatpush.msra.mxu1 %v7643_v26  ;;  %4151 = vmatpush.msra.mxu0 %v7574_v49 }
0x143d   : > { %4114 = vmatpush.msra.mxu1 %v3721_v48  ;;  %4152 = vmatpush.msra.mxu0 %v7638_v24 }
0x143f   : > { %4115 = vmatpush.msra.mxu1 %v3711_v59  ;;  %4153 = vmatpush.msra.mxu0 %v7646_v52 }
0x1441   : > { %4116 = vmatpush.msra.mxu1 %v7469_v29  ;;  %4154 = vmatpush.msra.mxu0 %v3722_v61 }
0x1443   : > { %4117 = vmatpush.msra.mxu1 %v7487_v8  ;;  %4155 = vmatpush.msra.mxu0 %v3712_v60 }
0x1445   : > { %4118 = vmatpush.msra.mxu1 %v7497_v19  ;;  %4156 = vmatpush.msra.mxu0 %v7474_v25 }
0x1447   : > { %4119 = vmatpush.msra.mxu1 %v7505_v30  ;;  %4157 = vmatpush.msra.mxu0 %v7490_v28 }
0x1449   : > { %4120 = vmatpush.msra.mxu1 %v7425_v56  ;;  %4158 = vmatpush.msra.mxu0 %v7500_v1 }
0x144b   : > { %4121 = vmatpush.msra.mxu1 %v7523_v50  ;;  %4159 = vmatpush.msra.mxu0 %v7508_v13 }
0x144d   : > { %4122 = vmatpush.msra.mxu1 %v7535_v21  ;;  %4160 = vmatpush.msra.mxu0 %v7440_v33 }
0x144f   : > { %4123 = vmatpush.msra.mxu1 %v7543_v45  ;;  %4161 = vmatpush.msra.mxu0 %v7526_v5 }
0x1451   : > { %4124 = vmatpush.msra.mxu1 %v7557_v58  ;;  %4162 = vmatpush.msra.mxu0 %v7538_v38 }
0x1453   : > { %4163 = vmatpush.msra.mxu0 %v7546_v62 }
0x1455   : > { %4164 = vmatpush.msra.mxu0 %v8316_v57 }
0x14b0   : > { %v3866_v29 = vpop.f32.mrf.mxu1 }
0x14b2   : > { %v3846_v25 = vpop.f32.mrf.mxu0 }
0x14b3   : > { %v3867_v8 = vadd.f32 %v3866_v29, %v3846_v25 }
0x14b5   : > { %v3911_v28 = vmul.f32 0.70710677, %v3867_v8 }
0x14b7   : > { %v3913_v19 = vand.u32 2147483647, %v3911_v28  ;;  %vm3957_vm12 = vcmp.lt.f32.partialorder %v3911_v28, 0.0 }
0x14b9   : > { %v3915_v1 = vmul.f32 0.3275911, %v3913_v19  ;;  %v3886_v30 = vpop.f32.mrf.mxu2  ;;  %v3906_v13 = vpop.f32.mrf.mxu3  ;;  %v3945_v0 = vsub.f32 0.0, %v3913_v19 }
0x14ba   : > { %v7742_v50 = vadd.f32 %v3906_v13, %v3886_v30 }
0x14bb   : > { %v3917_v21 = vadd.f32 1.0, %v3915_v1  ;;  %v3947_v7 = vmul.f32 %v3945_v0, %v3913_v19  ;;  %v3909_v0 = vmul.f32 0.5, %v3867_v8 }
0x14bc   : > { %v3912_v5 = vmul.f32 0.70710677, %v7742_v50 }
0x14bd   : > { %5418 = vrcp.f32 %v3917_v21  ;;  %v3949_v18 = vmul.f32 1.442695, %v3947_v7  ;;  %v3910_v7 = vmul.f32 0.5, %v7742_v50 }
0x14be   : > { %v3914_v45 = vand.u32 2147483647, %v3912_v5  ;;  %vm3958_vm13 = vcmp.lt.f32.partialorder %v3912_v5, 0.0 }
0x14c0   : > { %v3916_v38 = vmul.f32 0.3275911, %v3914_v45  ;;  %v3946_v53 = vsub.f32 0.0, %v3914_v45 }
0x14c2   : > { %v3918_v58 = vadd.f32 1.0, %v3916_v38  ;;  %v3948_v3 = vmul.f32 %v3946_v53, %v3914_v45 }
0x14c3   : > { %v5419_v62 = vpop.eup %5418 }
0x14c4   : > { %v3921_v16 = vmul.f32 %v5419_v62, %v3917_v21  ;;  %5420 = vrcp.f32 %v3918_v58  ;;  %v3951_v29 = vmul.f32 1.442695, %v3948_v3 }
0x14c5   : > { %5422 = vpow2.f32 %v3949_v18 }
0x14c6   : > { %v3923_v35 = vsub.f32 2.0, %v3921_v16  ;;  %5424 = vpow2.f32 %v3951_v29 }
0x14c8   : > { %v3925_v37 = vmul.f32 %v5419_v62, %v3923_v35 }
0x14ca   : > { %v5421_v20 = vpop.eup %5420  ;;  %v3927_v24 = vmul.f32 1.0614054, %v3925_v37 }
0x14cb   : > { %v3922_v26 = vmul.f32 %v5421_v20, %v3918_v58  ;;  %v5423_v19 = vpop.eup %5422 }
0x14cc   : > { %v3929_v52 = vadd.f32 -1.4531521, %v3927_v24  ;;  %v5425_v35 = vpop.eup %5424 }
0x14cd   : > { %v3924_v48 = vsub.f32 2.0, %v3922_v26 }
0x14ce   : > { %v3931_v61 = vmul.f32 %v3929_v52, %v3925_v37 }
0x14cf   : > { %v3926_v59 = vmul.f32 %v5421_v20, %v3924_v48 }
0x14d0   : > { %v3933_v60 = vadd.f32 1.4214138, %v3931_v61 }
0x14d1   : > { %v3928_v51 = vmul.f32 1.0614054, %v3926_v59 }
0x14d2   : > { %v3935_v10 = vmul.f32 %v3933_v60, %v3925_v37 }
0x14d3   : > { %v3930_v41 = vadd.f32 -1.4531521, %v3928_v51 }
0x14d4   : > { %v3937_v27 = vadd.f32 -0.28449672, %v3935_v10  ;;  %v5239_v10 = vld [vmem:[%s8289_s3 + $0x40] sm:$0xff] }
0x14d5   : > { %v3932_v47 = vmul.f32 %v3930_v41, %v3926_v59  ;;  %4125 = vmatmul.f32.vlgmr.msra.gmra.mxu1 %v5239_v10  ;;  %4165 = vmatmul.f32.vlgmr.msra.gmra.mxu0 %v5239_v10 }
0x14d6   : > { %v3939_v9 = vmul.f32 %v3937_v27, %v3925_v37 }
0x14d7   : > { %v3934_v46 = vadd.f32 1.4214138, %v3932_v47 }
0x14d8   : > { %v3941_v57 = vadd.f32 0.2548296, %v3939_v9 }
0x14d9   : > { %v3936_v25 = vmul.f32 %v3934_v46, %v3926_v59 }
0x14da   : > { %v3943_v1 = vmul.f32 %v3941_v57, %v3925_v37 }
0x14db   : > { %v3938_v30 = vadd.f32 -0.28449672, %v3936_v25 }
0x14dc   : > { %v3953_v13 = vmul.f32 %v5423_v19, %v3943_v1 }
0x14dd   : > { %v3940_v21 = vmul.f32 %v3938_v30, %v3926_v59 }
0x14de   : > { %v3955_v38 = vsub.f32 1.0, %v3953_v13 }
0x14df   : > { %v3942_v58 = vadd.f32 0.2548296, %v3940_v21 }
0x14e0   : > { %v3959_v62 = vsub.f32 0.0, %v3955_v38 }
0x14e1   : > { %v3944_v16 = vmul.f32 %v3942_v58, %v3926_v59 }
0x14e2   : > { %v3961_v45 = vsel %vm3957_vm12, %v3959_v62, %v3955_v38 }
0x14e3   : > { %v3963_v20 = vadd.f32 1.0, %v3961_v45  ;;  %v3954_v24 = vmul.f32 %v5425_v35, %v3944_v16 }
0x14e5   : > { %v7745_v26 = vmul.f32 %v3963_v20, %v3909_v0  ;;  %v3956_v52 = vsub.f32 1.0, %v3954_v24 }
0x14e7   : > { %4019 = vrot.lane.b32.xlu0 %v7745_v26, %s5585_s28  ;;  %4029 = vrot.lane.b32.xlu1 %v7745_v26, %s5583_s26  ;;  %v3960_v37 = vsub.f32 0.0, %v3956_v52 }
0x14e8   : > { %4039 = vrot.lane.b32.xlu2 %v7745_v26, %s5584_s27 }
0x14e9   : > { %v3962_v28 = vsel %vm3958_vm13, %v3960_v37, %v3956_v52 }
0x14ea   : > { %v3964_v8 = vadd.f32 1.0, %v3962_v28 }
0x14ec   : > { %v7760_v48 = vmul.f32 %v3964_v8, %v3910_v7 }
0x14ef   : > { %3987 = vrot.lane.b32.xlu0 %v7745_v26, %s5588_s7  ;;  %3997 = vrot.lane.b32.xlu1 %v7745_v26, %s5587_s30 }
0x14f0   : > { %4009 = vrot.lane.b32.xlu2 %v7745_v26, %s5586_s29 }
0x14f7   : > { %4041 = vrot.lane.b32.xlu0 %v7760_v48, %s5584_s27  ;;  %4021 = vrot.lane.b32.xlu1 %v7760_v48, %s5585_s28 }
0x14f8   : > { %3977 = vrot.lane.b32.xlu2 %v7745_v26, %s5589_s8 }
0x14ff   : > { %4011 = vrot.lane.b32.xlu0 %v7760_v48, %s5586_s29  ;;  %3989 = vrot.lane.b32.xlu1 %v7760_v48, %s5588_s7 }
0x1500   : > { %4031 = vrot.lane.b32.xlu2 %v7760_v48, %s5583_s26 }
0x1507   : > { %3979 = vrot.lane.b32.xlu0 %v7760_v48, %s5589_s8  ;;  %3967 = vrot.lane.b32.xlu1 %v7745_v26, %s5590_s9 }
0x1508   : > { %3999 = vrot.lane.b32.xlu2 %v7760_v48, %s5587_s30 }
0x1510   : > { %3969 = vrot.lane.b32.xlu2 %v7760_v48, %s5590_s9 }
0x1542   : > { %v4040_v50 = vpop.permute.xlu2 %4039 }
0x154a   : > { %v4010_v5 = vpop.permute.xlu2 %4009 }
0x1552   : > { %v3978_v60 = vpop.permute.xlu2 %3977 }
0x1559   : > { %v4020_v61 = vpop.permute.xlu0 %4019  ;;  %v4030_v59 = vpop.permute.xlu1 %4029 }
0x155a   : > { %v4032_v51 = vpop.permute.xlu2 %4031 }
0x155b   : > { %v4033_v3 = vsel %vm398_vm0, %v4030_v59, %v4032_v51  ;;  %v4034_v47 = vsel %vm398_vm0, %v4032_v51, %v4030_v59 }
0x155c   : > { %v4035_v19 = vmul.f32 %v4033_v3, %v5738_v14  ;;  %v4036_v30 = vmul.f32 %v4034_v47, %v5741_v15  ;;  %v4126_v3 = vpop.f32.mrf.mxu1  ;;  %v4166_v47 = vpop.f32.mrf.mxu0 }
0x1561   : > { %v3988_v53 = vpop.permute.xlu0 %3987  ;;  %v3998_v18 = vpop.permute.xlu1 %3997 }
0x1562   : > { %v4000_v13 = vpop.permute.xlu2 %3999 }
0x1563   : > { %v4001_v45 = vsel %vm363_vm4, %v3998_v18, %v4000_v13  ;;  %v4002_v0 = vsel %vm363_vm4, %v4000_v13, %v3998_v18 }
0x1564   : > { %v4003_v24 = vmul.f32 %v4002_v0, %v5806_v39  ;;  %v4004_v52 = vmul.f32 %v4001_v45, %v5811_v40 }
0x1569   : > { %v4042_v41 = vpop.permute.xlu0 %4041  ;;  %v4022_v27 = vpop.permute.xlu1 %4021 }
0x156a   : > { %v4043_v9 = vsel %vm409_vm1, %v4040_v50, %v4042_v41  ;;  %v4044_v46 = vsel %vm409_vm1, %v4042_v41, %v4040_v50  ;;  %v4023_v25 = vsel %vm387_vm2, %v4020_v61, %v4022_v27  ;;  %v4024_v1 = vsel %vm387_vm2, %v4022_v27, %v4020_v61  ;;  %v3970_v28 = vpop.permute.xlu2 %3969 }
0x156b   : > { %v4045_v57 = vmul.f32 %v7466_v36, %v4043_v9  ;;  %v4046_v29 = vmul.f32 %v7471_v4, %v4044_v46  ;;  %v4025_v21 = vmul.f32 %v4023_v25, %v5758_v22  ;;  %v4026_v38 = vmul.f32 %v4024_v1, %v5761_v23 }
0x156d   : > { %4134 = vmatpush.msra.mxu3 %v4045_v57  ;;  %4174 = vmatpush.msra.mxu2 %v4046_v29 }
0x156f   : > { %4135 = vmatpush.msra.mxu3 %v4035_v19  ;;  %4175 = vmatpush.msra.mxu2 %v4036_v30 }
0x1571   : > { %v4012_v36 = vpop.permute.xlu0 %4011  ;;  %v3990_v4 = vpop.permute.xlu1 %3989  ;;  %4136 = vmatpush.msra.mxu3 %v4025_v21  ;;  %4176 = vmatpush.msra.mxu2 %v4026_v38 }
0x1572   : > { %v4013_v58 = vsel %vm376_vm3, %v4010_v5, %v4012_v36  ;;  %v4014_v62 = vsel %vm376_vm3, %v4012_v36, %v4010_v5  ;;  %v3992_v20 = vsel %vm352_vm5, %v3990_v4, %v3988_v53  ;;  %v3991_v37 = vsel %vm352_vm5, %v3988_v53, %v3990_v4 }
0x1573   : > { %v4015_v16 = vmul.f32 %v4013_v58, %v5785_v31  ;;  %v4016_v35 = vmul.f32 %v4014_v62, %v5788_v32  ;;  %v3993_v8 = vmul.f32 %v3992_v20, %v5815_v42  ;;  %v3994_v5 = vmul.f32 %v3991_v37, %v5818_v43 }
0x1575   : > { %4137 = vmatpush.msra.mxu3 %v4015_v16  ;;  %4177 = vmatpush.msra.mxu2 %v4016_v35 }
0x1577   : > { %4138 = vmatpush.msra.mxu3 %v7745_v26  ;;  %4178 = vmatpush.msra.mxu2 %v7760_v48 }
0x1579   : > { %v3980_v7 = vpop.permute.xlu0 %3979  ;;  %v3968_v50 = vpop.permute.xlu1 %3967  ;;  %4139 = vmatpush.msra.mxu3 %v4003_v24  ;;  %4179 = vmatpush.msra.mxu2 %v4004_v52 }
0x157a   : > { %v3981_v61 = vsel %vm341_vm6, %v3978_v60, %v3980_v7  ;;  %v3982_v59 = vsel %vm341_vm6, %v3980_v7, %v3978_v60  ;;  %v3972_v53 = vsel %vm330_vm7, %v3970_v28, %v3968_v50  ;;  %v3971_v10 = vsel %vm330_vm7, %v3968_v50, %v3970_v28  ;;  %v5240_v60 = vld [vmem:[%s8289_s3 + $0x48] sm:$0xff] }
0x157b   : > { %v3983_v18 = vmul.f32 %v3982_v59, %v5846_v54  ;;  %v3984_v51 = vmul.f32 %v3981_v61, %v5849_v55  ;;  %4140 = vmatpush.msra.mxu3 %v3993_v8  ;;  %4180 = vmatpush.msra.mxu2 %v3994_v5  ;;  %v3973_v41 = vmul.f32 %v3972_v53, %v5865_v63 }
0x157c   : > { %v3974_v27 = vmul.f32 %v3971_v10, %v5868_v2 }
0x157d   : > { %4141 = vmatpush.msra.mxu3 %v3983_v18  ;;  %4181 = vmatpush.msra.mxu2 %v3984_v51 }
0x157f   : > { %4142 = vmatpush.msra.mxu3 %v3973_v41  ;;  %4182 = vmatpush.msra.mxu2 %v3974_v27 }
0x1581   : > { %4143 = vmatpush.msra.mxu3 %v7671_v44  ;;  %4183 = vmatpush.msra.mxu2 %v7674_v17 }
0x1583   : > { %4144 = vmatpush.msra.mxu3 %v7691_v12  ;;  %4184 = vmatpush.msra.mxu2 %v7694_v11 }
0x1584   : > { %5241 = vmatmul.msk.f32.vlgmr.msra.gmra.mxu3 %vm937_vm14, %v5240_v60  ;;  %5242 = vmatmul.msk.f32.vlgmr.msra.gmra.mxu2 %vm937_vm14, %v5240_v60 }
0x1607   : > { %v4146_v9 = vpop.f32.mrf.mxu3  ;;  %v4186_v57 = vpop.f32.mrf.mxu2 }
0x1608   : > { %v4147_v46 = vadd.f32 %v4146_v9, %v4126_v3  ;;  %v4187_v44 = vadd.f32 %v4186_v57, %v4166_v47 }
0x160a   : > { %v4191_v29 = vmul.f32 0.70710677, %v4147_v46  ;;  %v4192_v25 = vmul.f32 0.70710677, %v4187_v44 }
0x160c   : > { %v4193_v1 = vand.u32 2147483647, %v4191_v29  ;;  %v4194_v19 = vand.u32 2147483647, %v4192_v25  ;;  %vm4237_vm15 = vcmp.lt.f32.partialorder %v4191_v29, 0.0  ;;  %vm4238_vm9 = vcmp.lt.f32.partialorder %v4192_v25, 0.0 }
0x160e   : > { %v4195_v30 = vmul.f32 0.3275911, %v4193_v1  ;;  %v4196_v17 = vmul.f32 0.3275911, %v4194_v19  ;;  %v4225_v16 = vsub.f32 0.0, %v4193_v1  ;;  %v4226_v0 = vsub.f32 0.0, %v4194_v19 }
0x1610   : > { %v4197_v13 = vadd.f32 1.0, %v4195_v30  ;;  %v4198_v12 = vadd.f32 1.0, %v4196_v17  ;;  %v4227_v52 = vmul.f32 %v4225_v16, %v4193_v1  ;;  %v4228_v8 = vmul.f32 %v4226_v0, %v4194_v19 }
0x1612   : > { %5426 = vrcp.f32 %v4197_v13  ;;  %v4229_v5 = vmul.f32 1.442695, %v4227_v52  ;;  %v4231_v53 = vmul.f32 1.442695, %v4228_v8 }
0x1613   : > { %5428 = vrcp.f32 %v4198_v12 }
0x1614   : > { %5430 = vpow2.f32 %v4229_v5  ;;  %v7903_v5 = vld [vmem:[#allocation7 + $0x18] ss:$0 sm:$0xff] }
0x1615   : > { %5432 = vpow2.f32 %v4231_v53 }
0x1618   : > { %v5427_v11 = vpop.eup %5426 }
0x1619   : > { %v5429_v21 = vpop.eup %5428  ;;  %v4201_v38 = vmul.f32 %v5427_v11, %v4197_v13 }
0x161a   : > { %v4202_v36 = vmul.f32 %v5429_v21, %v4198_v12  ;;  %v5431_v9 = vpop.eup %5430 }
0x161b   : > { %v4203_v4 = vsub.f32 2.0, %v4201_v38  ;;  %v5433_v1 = vpop.eup %5432  ;;  %v4189_v38 = vmul.f32 0.5, %v4147_v46 }
0x161c   : > { %v4204_v58 = vsub.f32 2.0, %v4202_v36 }
0x161d   : > { %v4205_v62 = vmul.f32 %v5427_v11, %v4203_v4 }
0x161e   : > { %v4206_v35 = vmul.f32 %v5429_v21, %v4204_v58  ;;  %v4190_v58 = vmul.f32 0.5, %v4187_v44 }
0x161f   : > { %v4207_v45 = vmul.f32 1.0614054, %v4205_v62 }
0x1620   : > { %v4208_v20 = vmul.f32 1.0614054, %v4206_v35 }
0x1621   : > { %v4209_v24 = vadd.f32 -1.4531521, %v4207_v45 }
0x1622   : > { %v4210_v37 = vadd.f32 -1.4531521, %v4208_v20 }
0x1623   : > { %v4211_v28 = vmul.f32 %v4209_v24, %v4205_v62 }
0x1624   : > { %v4212_v7 = vmul.f32 %v4210_v37, %v4206_v35 }
0x1625   : > { %v4213_v50 = vadd.f32 1.4214138, %v4211_v28 }
0x1626   : > { %v4214_v61 = vadd.f32 1.4214138, %v4212_v7  ;;  %v7898_v7 = vld [vmem:[#allocation7 + $0x10] ss:$0 sm:$0xff] }
0x1627   : > { %v4215_v59 = vmul.f32 %v4213_v50, %v4205_v62 }
0x1628   : > { %v4216_v18 = vmul.f32 %v4214_v61, %v4206_v35 }
0x1629   : > { %v4217_v51 = vadd.f32 -0.28449672, %v4215_v59 }
0x162a   : > { %v4218_v10 = vadd.f32 -0.28449672, %v4216_v18 }
0x162b   : > { %v4219_v41 = vmul.f32 %v4217_v51, %v4205_v62 }
0x162c   : > { %v4220_v27 = vmul.f32 %v4218_v10, %v4206_v35 }
0x162d   : > { %v4221_v60 = vadd.f32 0.2548296, %v4219_v41 }
0x162e   : > { %v4222_v3 = vadd.f32 0.2548296, %v4220_v27 }
0x162f   : > { %v4223_v47 = vmul.f32 %v4221_v60, %v4205_v62  ;;  %v4248_v62 = vld [vmem:[#allocation5 + $0x20] sm:$0xff] }
0x1630   : > { %v4224_v57 = vmul.f32 %v4222_v3, %v4206_v35 }
0x1631   : > { %v4233_v19 = vmul.f32 %v5431_v9, %v4223_v47 }
0x1632   : > { %v4234_v30 = vmul.f32 %v5433_v1, %v4224_v57 }
0x1633   : > { %v4235_v17 = vsub.f32 1.0, %v4233_v19 }
0x1634   : > { %v4236_v13 = vsub.f32 1.0, %v4234_v30 }
0x1635   : > { %v4239_v12 = vsub.f32 0.0, %v4235_v17 }
0x1636   : > { %v4240_v11 = vsub.f32 0.0, %v4236_v13 }
0x1637   : > { %v4241_v21 = vsel %vm4237_vm15, %v4239_v12, %v4235_v17 }
0x1638   : > { %v4243_v36 = vadd.f32 1.0, %v4241_v21  ;;  %v4242_v4 = vsel %vm4238_vm9, %v4240_v11, %v4236_v13 }
0x1639   : > { %v4244_v16 = vadd.f32 1.0, %v4242_v4 }
0x163a   : > { %v4245_v45 = vmul.f32 %v4243_v36, %v4189_v38 }
0x163b   : > { %v4246_v0 = vmul.f32 %v4244_v16, %v4190_v58 }
0x163c   : > { %4264 = vmatpush.msrb.mxu3 %v4245_v45 }
0x163d   : > { %4284 = vmatpush.msrb.mxu1 %v4246_v0 }
0x163e   : > { %4265 = vmatpush.msrb.mxu3 %v7745_v26 }
0x163f   : > { %4285 = vmatpush.msrb.mxu1 %v7760_v48 }
0x1640   : > { %4266 = vmatpush.msrb.mxu3 %v7566_v34 }
0x1641   : > { %4286 = vmatpush.msrb.mxu1 %v7574_v49 }
0x1642   : > { %4267 = vmatpush.msrb.mxu3 %v7425_v56 }
0x1643   : > { %4287 = vmatpush.msrb.mxu1 %v7440_v33  ;;  %5243 = vmatmul.msk.f32.vlgmr.msrb.gmra.mxu3 %vm1080_vm10, %v4248_v62 }
0x1644   : > { %5244 = vmatmul.msk.f32.vlgmr.msrb.gmra.mxu1 %vm1080_vm10, %v4248_v62 }
0x16c1   : > { %v4289_v46 = vpop.f32.mrf.mxu1 }
0x16c2   : > { %v7853_v44 = vadd.f32 %v4289_v46, %v7440_v33 }
0x16c4   : > { %4348 = vrot.lane.b32.xlu2 %v7853_v44, %s5585_s28  ;;  %4358 = vrot.lane.b32.xlu0 %v7853_v44, %s5583_s26 }
0x16c5   : > { %4368 = vrot.lane.b32.xlu1 %v7853_v44, %s5584_s27 }
0x16c6   : > { %v4269_v33 = vpop.f32.mrf.mxu3 }
0x16c7   : > { %v7868_v34 = vadd.f32 %v4269_v33, %v7425_v56 }
0x16cc   : > { %4316 = vrot.lane.b32.xlu2 %v7853_v44, %s5588_s7  ;;  %4326 = vrot.lane.b32.xlu0 %v7853_v44, %s5587_s30 }
0x16cd   : > { %4338 = vrot.lane.b32.xlu1 %v7853_v44, %s5586_s29 }
0x16d4   : > { %4356 = vrot.lane.b32.xlu2 %v7868_v34, %s5583_s26  ;;  %4366 = vrot.lane.b32.xlu0 %v7868_v34, %s5584_s27 }
0x16d5   : > { %4346 = vrot.lane.b32.xlu1 %v7868_v34, %s5585_s28 }
0x16dc   : > { %4324 = vrot.lane.b32.xlu2 %v7868_v34, %s5587_s30  ;;  %4336 = vrot.lane.b32.xlu0 %v7868_v34, %s5586_s29 }
0x16dd   : > { %4314 = vrot.lane.b32.xlu1 %v7868_v34, %s5588_s7 }
0x16e4   : > { %4294 = vrot.lane.b32.xlu2 %v7868_v34, %s5590_s9  ;;  %4304 = vrot.lane.b32.xlu0 %v7868_v34, %s5589_s8 }
0x16e5   : > { %4306 = vrot.lane.b32.xlu1 %v7853_v44, %s5589_s8 }
0x16ec   : > { %4296 = vrot.lane.b32.xlu0 %v7853_v44, %s5590_s9 }
0x171e   : > { %v4349_v56 = vpop.permute.xlu2 %4348 }
0x1726   : > { %v4317_v48 = vpop.permute.xlu2 %4316 }
0x172e   : > { %v4357_v35 = vpop.permute.xlu2 %4356 }
0x1736   : > { %v4359_v49 = vpop.permute.xlu0 %4358  ;;  %v4325_v9 = vpop.permute.xlu2 %4324 }
0x1737   : > { %v4369_v26 = vpop.permute.xlu1 %4368  ;;  %v4360_v24 = vsel %vm398_vm0, %v4357_v35, %v4359_v49  ;;  %v4361_v52 = vsel %vm398_vm0, %v4359_v49, %v4357_v35 }
0x1738   : > { %v7913_v18 = vmul.f32 %v4360_v24, %v5738_v14  ;;  %v7916_v51 = vmul.f32 %v4361_v52, %v5741_v15 }
0x173e   : > { %v4327_v29 = vpop.permute.xlu0 %4326  ;;  %v4295_v62 = vpop.permute.xlu2 %4294 }
0x173f   : > { %v4339_v25 = vpop.permute.xlu1 %4338  ;;  %v4328_v19 = vsel %vm363_vm4, %v4325_v9, %v4327_v29  ;;  %v4329_v30 = vsel %vm363_vm4, %v4327_v29, %v4325_v9 }
0x1740   : > { %v7951_v12 = vmul.f32 %v4329_v30, %v5806_v39  ;;  %v7954_v11 = vmul.f32 %v4328_v19, %v5811_v40 }
0x1746   : > { %v4367_v20 = vpop.permute.xlu0 %4366 }
0x1747   : > { %v4370_v37 = vsel %vm409_vm1, %v4367_v20, %v4369_v26  ;;  %v4371_v28 = vsel %vm409_vm1, %v4369_v26, %v4367_v20  ;;  %v4347_v8 = vpop.permute.xlu1 %4346 }
0x1748   : > { %v7901_v50 = vmul.f32 %v7898_v7, %v4370_v37  ;;  %v7906_v61 = vmul.f32 %v7903_v5, %v4371_v28  ;;  %v4350_v59 = vsel %vm387_vm2, %v4347_v8, %v4349_v56  ;;  %v4351_v53 = vsel %vm387_vm2, %v4349_v56, %v4347_v8 }
0x1749   : > { %v7921_v10 = vmul.f32 %v4350_v59, %v5758_v22  ;;  %v7924_v41 = vmul.f32 %v4351_v53, %v5761_v23 }
0x174a   : > { %4406 = vmatpush.msra.mxu3 %v7901_v50  ;;  %4426 = vmatpush.msra.mxu1 %v7906_v61 }
0x174c   : > { %4407 = vmatpush.msra.mxu3 %v7913_v18  ;;  %4427 = vmatpush.msra.mxu1 %v7916_v51 }
0x174e   : > { %v4337_v27 = vpop.permute.xlu0 %4336  ;;  %4408 = vmatpush.msra.mxu3 %v7921_v10  ;;  %4428 = vmatpush.msra.mxu1 %v7924_v41 }
0x174f   : > { %v4340_v60 = vsel %vm376_vm3, %v4337_v27, %v4339_v25  ;;  %v4341_v3 = vsel %vm376_vm3, %v4339_v25, %v4337_v27  ;;  %v4315_v47 = vpop.permute.xlu1 %4314 }
0x1750   : > { %v7935_v57 = vmul.f32 %v4340_v60, %v5785_v31  ;;  %v7938_v1 = vmul.f32 %v4341_v3, %v5788_v32  ;;  %v4318_v17 = vsel %vm352_vm5, %v4315_v47, %v4317_v48  ;;  %v4319_v13 = vsel %vm352_vm5, %v4317_v48, %v4315_v47  ;;  %v4395_v48 = vld [vmem:[#allocation3 + $0x28] sm:$0xff] }
0x1751   : > { %v7959_v21 = vmul.f32 %v4319_v13, %v5815_v42  ;;  %v7962_v38 = vmul.f32 %v4318_v17, %v5818_v43 }
0x1752   : > { %4409 = vmatpush.msra.mxu3 %v7935_v57  ;;  %4429 = vmatpush.msra.mxu1 %v7938_v1 }
0x1754   : > { %4410 = vmatpush.msra.mxu3 %v7868_v34  ;;  %4430 = vmatpush.msra.mxu1 %v7853_v44 }
0x1756   : > { %v4305_v36 = vpop.permute.xlu0 %4304  ;;  %4411 = vmatpush.msra.mxu3 %v7951_v12  ;;  %4431 = vmatpush.msra.mxu1 %v7954_v11 }
0x1757   : > { %v4307_v4 = vpop.permute.xlu1 %4306 }
0x1758   : > { %v4308_v58 = vsel %vm341_vm6, %v4305_v36, %v4307_v4  ;;  %v4309_v16 = vsel %vm341_vm6, %v4307_v4, %v4305_v36  ;;  %4412 = vmatpush.msra.mxu3 %v7959_v21  ;;  %4432 = vmatpush.msra.mxu1 %v7962_v38 }
0x1759   : > { %v7973_v45 = vmul.f32 %v4309_v16, %v5846_v54  ;;  %v7976_v0 = vmul.f32 %v4308_v58, %v5849_v55 }
0x175b   : > { %4413 = vmatpush.msra.mxu3 %v7973_v45  ;;  %4433 = vmatpush.msra.mxu1 %v7976_v0 }
0x175e   : > { %v4297_v46 = vpop.permute.xlu0 %4296 }
0x175f   : > { %v4298_v33 = vsel %vm330_vm7, %v4295_v62, %v4297_v46  ;;  %v4299_v56 = vsel %vm330_vm7, %v4297_v46, %v4295_v62 }
0x1760   : > { %v7985_v49 = vmul.f32 %v4299_v56, %v5865_v63  ;;  %v7988_v26 = vmul.f32 %v4298_v33, %v5868_v2 }
0x1762   : > { %8317 = vst [vmem:[#allocation10_spill] sm:$0xff] %v7988_v26  ;;  %4414 = vmatpush.msra.mxu3 %v7985_v49  ;;  %4434 = vmatpush.msra.mxu1 %v7988_v26 }
0x1763   : > { %5245 = vmatmul.msk.f32.vlgmr.msra.gmra.mxu3 %vm435_vm8, %v4395_v48  ;;  %5246 = vmatmul.msk.f32.vlgmr.msra.gmra.mxu1 %vm435_vm8, %v4395_v48 }
0x17e0   : > { %v4436_v29 = vpop.f32.mrf.mxu1 }
0x17e1   : > { %v4442_v25 = vmul.f32 0.70710677, %v4436_v29 }
0x17e3   : > { %v4444_v35 = vand.u32 2147483647, %v4442_v25  ;;  %vm4488_vm8 = vcmp.lt.f32.partialorder %v4442_v25, 0.0 }
0x17e5   : > { %v4446_v20 = vmul.f32 0.3275911, %v4444_v35  ;;  %v4476_v9 = vsub.f32 0.0, %v4444_v35 }
0x17e6   : > { %v4416_v24 = vpop.f32.mrf.mxu3 }
0x17e7   : > { %v4448_v52 = vadd.f32 1.0, %v4446_v20  ;;  %v4441_v37 = vmul.f32 0.70710677, %v4416_v24  ;;  %v4478_v36 = vmul.f32 %v4476_v9, %v4444_v35 }
0x17e9   : > { %5434 = vrcp.f32 %v4448_v52  ;;  %v4443_v28 = vand.u32 2147483647, %v4441_v37  ;;  %v4481_v33 = vmul.f32 1.442695, %v4478_v36  ;;  %vm4487_vm12 = vcmp.lt.f32.partialorder %v4441_v37, 0.0 }
0x17eb   : > { %v4445_v8 = vmul.f32 0.3275911, %v4443_v28  ;;  %v4475_v16 = vsub.f32 0.0, %v4443_v28 }
0x17ed   : > { %v4447_v59 = vadd.f32 1.0, %v4445_v8  ;;  %v4477_v20 = vmul.f32 %v4475_v16, %v4443_v28 }
0x17ef   : > { %v5435_v53 = vpop.eup %5434  ;;  %5436 = vrcp.f32 %v4447_v59 }
0x17f0   : > { %v4452_v27 = vmul.f32 %v5435_v53, %v4448_v52  ;;  %5438 = vpow2.f32 %v4481_v33 }
0x17f2   : > { %v4454_v60 = vsub.f32 2.0, %v4452_v27 }
0x17f4   : > { %v4456_v3 = vmul.f32 %v5435_v53, %v4454_v60  ;;  %v4479_v60 = vmul.f32 1.442695, %v4477_v20 }
0x17f5   : > { %v5437_v47 = vpop.eup %5436 }
0x17f6   : > { %v4458_v19 = vmul.f32 1.0614054, %v4456_v3  ;;  %v4451_v30 = vmul.f32 %v5437_v47, %v4447_v59  ;;  %v5439_v35 = vpop.eup %5438  ;;  %5440 = vpow2.f32 %v4479_v60 }
0x17f8   : > { %v4460_v17 = vadd.f32 -1.4531521, %v4458_v19  ;;  %v4453_v13 = vsub.f32 2.0, %v4451_v30 }
0x17fa   : > { %v4462_v4 = vmul.f32 %v4460_v17, %v4456_v3  ;;  %v4455_v58 = vmul.f32 %v5437_v47, %v4453_v13 }
0x17fc   : > { %v4464_v62 = vadd.f32 1.4214138, %v4462_v4  ;;  %v4457_v46 = vmul.f32 1.0614054, %v4455_v58 }
0x17fe   : > { %v4466_v56 = vmul.f32 %v4464_v62, %v4456_v3  ;;  %v4459_v48 = vadd.f32 -1.4531521, %v4457_v46  ;;  %v5441_v62 = vpop.eup %5440  ;;  %v4440_v46 = vmul.f32 0.5, %v4436_v29 }
0x1800   : > { %v4468_v8 = vadd.f32 -0.28449672, %v4466_v56  ;;  %v4461_v52 = vmul.f32 %v4459_v48, %v4455_v58 }
0x1802   : > { %v4470_v53 = vmul.f32 %v4468_v8, %v4456_v3  ;;  %v4463_v27 = vadd.f32 1.4214138, %v4461_v52 }
0x1804   : > { %v4472_v26 = vadd.f32 0.2548296, %v4470_v53  ;;  %v4465_v59 = vmul.f32 %v4463_v27, %v4455_v58 }
0x1806   : > { %v4474_v19 = vmul.f32 %v4472_v26, %v4456_v3  ;;  %v4467_v30 = vadd.f32 -0.28449672, %v4465_v59  ;;  %v4439_v3 = vmul.f32 0.5, %v4416_v24 }
0x1808   : > { %v4484_v47 = vmul.f32 %v5439_v35, %v4474_v19  ;;  %v4469_v9 = vmul.f32 %v4467_v30, %v4455_v58 }
0x180a   : > { %v4486_v17 = vsub.f32 1.0, %v4484_v47  ;;  %v4471_v13 = vadd.f32 0.2548296, %v4469_v9 }
0x180c   : > { %v4490_v36 = vsub.f32 0.0, %v4486_v17  ;;  %v4473_v4 = vmul.f32 %v4471_v13, %v4455_v58 }
0x180e   : > { %v4492_v28 = vsel %vm4488_vm8, %v4490_v36, %v4486_v17  ;;  %v4483_v16 = vmul.f32 %v5441_v62, %v4473_v4 }
0x180f   : > { %v4494_v33 = vadd.f32 1.0, %v4492_v28 }
0x1810   : > { %v4485_v56 = vsub.f32 1.0, %v4483_v16 }
0x1811   : > { %v7994_v48 = vmul.f32 %v4494_v33, %v4440_v46 }
0x1812   : > { %v4489_v20 = vsub.f32 0.0, %v4485_v56 }
0x1813   : > { %4529 = vrot.lane.b32.xlu0 %v7994_v48, %s5587_s30  ;;  %4541 = vrot.lane.b32.xlu1 %v7994_v48, %s5586_s29 }
0x1814   : > { %v4491_v26 = vsel %vm4487_vm12, %v4489_v20, %v4485_v56  ;;  %4551 = vrot.lane.b32.xlu2 %v7994_v48, %s5585_s28 }
0x1815   : > { %v4493_v25 = vadd.f32 1.0, %v4491_v26 }
0x1817   : > { %v8002_v58 = vmul.f32 %v4493_v25, %v4439_v3 }
0x181b   : > { %4539 = vrot.lane.b32.xlu0 %v8002_v58, %s5586_s29  ;;  %4549 = vrot.lane.b32.xlu1 %v8002_v58, %s5585_s28 }
0x181c   : > { %4519 = vrot.lane.b32.xlu2 %v7994_v48, %s5588_s7 }
0x1823   : > { %4507 = vrot.lane.b32.xlu0 %v8002_v58, %s5589_s8  ;;  %4517 = vrot.lane.b32.xlu1 %v8002_v58, %s5588_s7 }
0x1824   : > { %4527 = vrot.lane.b32.xlu2 %v8002_v58, %s5587_s30 }
0x182b   : > { %4499 = vrot.lane.b32.xlu0 %v7994_v48, %s5590_s9  ;;  %4509 = vrot.lane.b32.xlu1 %v7994_v48, %s5589_s8 }
0x182c   : > { %4497 = vrot.lane.b32.xlu2 %v8002_v58, %s5590_s9 }
0x1833   : > { %4559 = vrot.lane.b32.xlu0 %v8002_v58, %s5583_s26  ;;  %4569 = vrot.lane.b32.xlu1 %v8002_v58, %s5584_s27 }
0x1834   : > { %4571 = vrot.lane.b32.xlu2 %v7994_v48, %s5584_s27 }
0x183b   : > { %4561 = vrot.lane.b32.xlu1 %v7994_v48, %s5583_s26 }
0x186e   : > { %v4552_v29 = vpop.permute.xlu2 %4551 }
0x1876   : > { %v4520_v8 = vpop.permute.xlu2 %4519 }
0x187e   : > { %v4528_v47 = vpop.permute.xlu2 %4527 }
0x1885   : > { %v4530_v24 = vpop.permute.xlu0 %4529  ;;  %v4542_v37 = vpop.permute.xlu1 %4541 }
0x1886   : > { %v4531_v13 = vsel %vm363_vm4, %v4528_v47, %v4530_v24  ;;  %v4532_v36 = vsel %vm363_vm4, %v4530_v24, %v4528_v47  ;;  %v4498_v26 = vpop.permute.xlu2 %4497 }
0x1887   : > { %v8059_v4 = vmul.f32 %v4532_v36, %v5806_v39  ;;  %v8062_v62 = vmul.f32 %v4531_v13, %v5811_v40 }
0x188d   : > { %v4540_v52 = vpop.permute.xlu0 %4539  ;;  %v4550_v53 = vpop.permute.xlu1 %4549 }
0x188e   : > { %v4543_v27 = vsel %vm376_vm3, %v4540_v52, %v4542_v37  ;;  %v4544_v60 = vsel %vm376_vm3, %v4542_v37, %v4540_v52  ;;  %v4553_v59 = vsel %vm387_vm2, %v4550_v53, %v4552_v29  ;;  %v4554_v19 = vsel %vm387_vm2, %v4552_v29, %v4550_v53 }
0x188f   : > { %v8039_v30 = vmul.f32 %v4553_v59, %v5758_v22  ;;  %v8042_v35 = vmul.f32 %v4554_v19, %v5761_v23  ;;  %v8045_v9 = vmul.f32 %v4543_v27, %v5785_v31  ;;  %v8048_v17 = vmul.f32 %v4544_v60, %v5788_v32  ;;  %v4572_v59 = vpop.permute.xlu2 %4571 }
0x1891   : > { %4621 = vmatpush.msrb.mxu2 %v8039_v30  ;;  %4661 = vmatpush.msrb.mxu3 %v8042_v35 }
0x1893   : > { %4622 = vmatpush.msrb.mxu2 %v8045_v9  ;;  %4662 = vmatpush.msrb.mxu3 %v8048_v17 }
0x1895   : > { %v4508_v28 = vpop.permute.xlu0 %4507  ;;  %v4518_v16 = vpop.permute.xlu1 %4517  ;;  %4623 = vmatpush.msrb.mxu2 %v8002_v58  ;;  %4663 = vmatpush.msrb.mxu3 %v7994_v48 }
0x1896   : > { %v4521_v46 = vsel %vm352_vm5, %v4518_v16, %v4520_v8  ;;  %v4522_v33 = vsel %vm352_vm5, %v4520_v8, %v4518_v16 }
0x1897   : > { %v8071_v56 = vmul.f32 %v4522_v33, %v5815_v42  ;;  %v8074_v20 = vmul.f32 %v4521_v46, %v5818_v43  ;;  %4624 = vmatpush.msrb.mxu2 %v8059_v4  ;;  %4664 = vmatpush.msrb.mxu3 %v8062_v62 }
0x1899   : > { %4625 = vmatpush.msrb.mxu2 %v8071_v56  ;;  %4665 = vmatpush.msrb.mxu3 %v8074_v20 }
0x189d   : > { %v4500_v25 = vpop.permute.xlu0 %4499  ;;  %v4510_v3 = vpop.permute.xlu1 %4509 }
0x189e   : > { %v4501_v29 = vsel %vm330_vm7, %v4498_v26, %v4500_v25  ;;  %v4502_v24 = vsel %vm330_vm7, %v4500_v25, %v4498_v26  ;;  %v4511_v37 = vsel %vm341_vm6, %v4508_v28, %v4510_v3  ;;  %v4512_v8 = vsel %vm341_vm6, %v4510_v3, %v4508_v28 }
0x189f   : > { %v4513_v52 = vmul.f32 %v4512_v8, %v5846_v54  ;;  %v4514_v53 = vmul.f32 %v4511_v37, %v5849_v55  ;;  %v4503_v27 = vmul.f32 %v4502_v24, %v5865_v63  ;;  %v4504_v60 = vmul.f32 %v4501_v29, %v5868_v2  ;;  %v5248_v29 = vld [vmem:[%s8288_s2 + $0x58] sm:$0xff]  ;;  %v5247_v24 = vld [vmem:[%s8288_s2 + $0x50] sm:$0xff]  ;;  %v8318_v37 = vld [vmem:[#allocation10_spill] sm:$0xff] }
0x18a1   : > { %4626 = vmatpush.msrb.mxu2 %v4513_v52  ;;  %4666 = vmatpush.msrb.mxu3 %v4514_v53 }
0x18a3   : > { %4627 = vmatpush.msrb.mxu2 %v4503_v27  ;;  %4667 = vmatpush.msrb.mxu3 %v4504_v60 }
0x18a5   : > { %v4570_v19 = vpop.permute.xlu1 %4569  ;;  %4628 = vmatpush.msrb.mxu2 %v7901_v50  ;;  %4668 = vmatpush.msrb.mxu3 %v7906_v61  ;;  %v4560_v16 = vpop.permute.xlu0 %4559 }
0x18a6   : > { %v4573_v47 = vsel %vm409_vm1, %v4570_v19, %v4572_v59  ;;  %v4574_v13 = vsel %vm409_vm1, %v4572_v59, %v4570_v19 }
0x18a7   : > { %v8099_v36 = vmul.f32 %v7898_v7, %v4573_v47  ;;  %v8102_v28 = vmul.f32 %v7903_v5, %v4574_v13  ;;  %4629 = vmatpush.msrb.mxu2 %v7913_v18  ;;  %4669 = vmatpush.msrb.mxu3 %v7916_v51 }
0x18a9   : > { %4630 = vmatpush.msrb.mxu2 %v7921_v10  ;;  %4655 = vmatpush.msrb.mxu0 %v8099_v36 }
0x18aa   : > { %4670 = vmatpush.msrb.mxu3 %v7924_v41  ;;  %4695 = vmatpush.msrb.mxu1 %v8102_v28 }
0x18ab   : > { %4631 = vmatpush.msrb.mxu2 %v7935_v57 }
0x18ac   : > { %4671 = vmatpush.msrb.mxu3 %v7938_v1 }
0x18ad   : > { %v4562_v46 = vpop.permute.xlu1 %4561  ;;  %4632 = vmatpush.msrb.mxu2 %v7868_v34 }
0x18ae   : > { %v4563_v33 = vsel %vm398_vm0, %v4560_v16, %v4562_v46  ;;  %v4564_v26 = vsel %vm398_vm0, %v4562_v46, %v4560_v16  ;;  %4672 = vmatpush.msrb.mxu3 %v7853_v44 }
0x18af   : > { %v8119_v25 = vmul.f32 %v4563_v33, %v5738_v14  ;;  %v8122_v3 = vmul.f32 %v4564_v26, %v5741_v15  ;;  %4633 = vmatpush.msrb.mxu2 %v7951_v12 }
0x18b0   : > { %4673 = vmatpush.msrb.mxu3 %v7954_v11 }
0x18b1   : > { %4634 = vmatpush.msrb.mxu2 %v7959_v21  ;;  %4656 = vmatpush.msrb.mxu0 %v8119_v25 }
0x18b2   : > { %4674 = vmatpush.msrb.mxu3 %v7962_v38  ;;  %4696 = vmatpush.msrb.mxu1 %v8122_v3 }
0x18b3   : > { %4901 = vmatpush.msra.mxu0 %v8039_v30  ;;  %4635 = vmatpush.msrb.mxu2 %v7973_v45 }
0x18b4   : > { %4675 = vmatpush.msrb.mxu3 %v7976_v0  ;;  %5249 = vmatmul.msk.f32.vlgmr.msrb.gmra.mxu0 %vm657_vm11, %v5248_v29 }
0x18b5   : > { %4902 = vmatpush.msra.mxu0 %v8045_v9  ;;  %4636 = vmatpush.msrb.mxu2 %v7985_v49 }
0x18b6   : > { %4676 = vmatpush.msrb.mxu3 %v8318_v37  ;;  %4637 = vmatmul.f32.vlgmr.msrb.gmra.mxu2 %v5247_v24 }
0x18b7   : > { %4677 = vmatmul.f32.vlgmr.msrb.gmra.mxu3 %v5247_v24  ;;  %4903 = vmatpush.msra.mxu0 %v8002_v58 }
0x18b8   : > { %4941 = vmatpush.msra.mxu2 %v8042_v35  ;;  %5250 = vmatmul.msk.f32.vlgmr.msrb.gmra.mxu1 %vm657_vm11, %v5248_v29 }
0x18b9   : > { %4904 = vmatpush.msra.mxu0 %v8059_v4 }
0x18ba   : > { %4942 = vmatpush.msra.mxu2 %v8048_v17 }
0x18bb   : > { %4905 = vmatpush.msra.mxu0 %v8071_v56 }
0x18bc   : > { %4943 = vmatpush.msra.mxu2 %v7994_v48 }
0x18bd   : > { %4906 = vmatpush.msra.mxu0 %v4513_v52 }
0x18be   : > { %4944 = vmatpush.msra.mxu2 %v8062_v62 }
0x18bf   : > { %4907 = vmatpush.msra.mxu0 %v4503_v27 }
0x18c0   : > { %4945 = vmatpush.msra.mxu2 %v8074_v20 }
0x18c1   : > { %4908 = vmatpush.msra.mxu0 %v7901_v50 }
0x18c2   : > { %4946 = vmatpush.msra.mxu2 %v4514_v53 }
0x18c3   : > { %4909 = vmatpush.msra.mxu0 %v7913_v18 }
0x18c4   : > { %4947 = vmatpush.msra.mxu2 %v4504_v60 }
0x18c5   : > { %4910 = vmatpush.msra.mxu0 %v7921_v10 }
0x18c6   : > { %4948 = vmatpush.msra.mxu2 %v7906_v61 }
0x18c7   : > { %4911 = vmatpush.msra.mxu0 %v7935_v57 }
0x18c8   : > { %4949 = vmatpush.msra.mxu2 %v7916_v51 }
0x18c9   : > { %4912 = vmatpush.msra.mxu0 %v7868_v34 }
0x18ca   : > { %4950 = vmatpush.msra.mxu2 %v7924_v41 }
0x18cb   : > { %4913 = vmatpush.msra.mxu0 %v7951_v12 }
0x18cc   : > { %4951 = vmatpush.msra.mxu2 %v7938_v1 }
0x18cd   : > { %4914 = vmatpush.msra.mxu0 %v7959_v21 }
0x18ce   : > { %4952 = vmatpush.msra.mxu2 %v7853_v44 }
0x18cf   : > { %4915 = vmatpush.msra.mxu0 %v7973_v45 }
0x18d0   : > { %4953 = vmatpush.msra.mxu2 %v7954_v11 }
0x18d1   : > { %4916 = vmatpush.msra.mxu0 %v7985_v49 }
0x18d2   : > { %4954 = vmatpush.msra.mxu2 %v7962_v38 }
0x18d4   : > { %4955 = vmatpush.msra.mxu2 %v7976_v0 }
0x18d6   : > { %4956 = vmatpush.msra.mxu2 %v8318_v37 }
0x1931   : > { %v4658_v50 = vpop.f32.mrf.mxu0 }
0x1935   : > { %v4698_v61 = vpop.f32.mrf.mxu1 }
0x1939   : > { %v4638_v18 = vpop.f32.mrf.mxu2 }
0x193a   : > { %v4659_v51 = vadd.f32 %v4658_v50, %v4638_v18  ;;  %v4678_v10 = vpop.f32.mrf.mxu3 }
0x193b   : > { %v4699_v41 = vadd.f32 %v4698_v61, %v4678_v10 }
0x193c   : > { %v4703_v57 = vmul.f32 0.70710677, %v4659_v51 }
0x193d   : > { %v4704_v1 = vmul.f32 0.70710677, %v4699_v41 }
0x193e   : > { %v4705_v12 = vand.u32 2147483647, %v4703_v57  ;;  %vm4749_vm11 = vcmp.lt.f32.partialorder %v4703_v57, 0.0 }
0x193f   : > { %v4706_v21 = vand.u32 2147483647, %v4704_v1  ;;  %vm4750_vm13 = vcmp.lt.f32.partialorder %v4704_v1, 0.0 }
0x1940   : > { %v4707_v45 = vmul.f32 0.3275911, %v4705_v12  ;;  %v4737_v56 = vsub.f32 0.0, %v4705_v12 }
0x1941   : > { %v4708_v11 = vmul.f32 0.3275911, %v4706_v21  ;;  %v4738_v52 = vsub.f32 0.0, %v4706_v21 }
0x1942   : > { %v4709_v30 = vadd.f32 1.0, %v4707_v45  ;;  %v4739_v60 = vmul.f32 %v4737_v56, %v4705_v12  ;;  %v4701_v56 = vmul.f32 0.5, %v4659_v51 }
0x1943   : > { %v4710_v49 = vadd.f32 1.0, %v4708_v11  ;;  %v4740_v47 = vmul.f32 %v4738_v52, %v4706_v21 }
0x1944   : > { %5442 = vrcp.f32 %v4709_v30  ;;  %v4741_v46 = vmul.f32 1.442695, %v4739_v60 }
0x1945   : > { %5444 = vrcp.f32 %v4710_v49  ;;  %v4743_v29 = vmul.f32 1.442695, %v4740_v47 }
0x1946   : > { %5446 = vpow2.f32 %v4741_v46 }
0x1947   : > { %5448 = vpow2.f32 %v4743_v29 }
0x194a   : > { %v5443_v38 = vpop.eup %5442 }
0x194b   : > { %v5445_v0 = vpop.eup %5444  ;;  %v4713_v35 = vmul.f32 %v5443_v38, %v4709_v30 }
0x194c   : > { %v4714_v9 = vmul.f32 %v5445_v0, %v4710_v49  ;;  %v5447_v12 = vpop.eup %5446 }
0x194d   : > { %v4715_v17 = vsub.f32 2.0, %v4713_v35  ;;  %v5449_v49 = vpop.eup %5448 }
0x194e   : > { %v4716_v4 = vsub.f32 2.0, %v4714_v9 }
0x194f   : > { %v4717_v62 = vmul.f32 %v5443_v38, %v4715_v17 }
0x1950   : > { %v4718_v20 = vmul.f32 %v5445_v0, %v4716_v4 }
0x1951   : > { %v4719_v8 = vmul.f32 1.0614054, %v4717_v62 }
0x1952   : > { %v4720_v53 = vmul.f32 1.0614054, %v4718_v20 }
0x1953   : > { %v4721_v27 = vadd.f32 -1.4531521, %v4719_v8 }
0x1954   : > { %v4722_v59 = vadd.f32 -1.4531521, %v4720_v53  ;;  %v4702_v53 = vmul.f32 0.5, %v4699_v41 }
0x1955   : > { %v4723_v19 = vmul.f32 %v4721_v27, %v4717_v62 }
0x1956   : > { %v4724_v13 = vmul.f32 %v4722_v59, %v4718_v20 }
0x1957   : > { %v4725_v16 = vadd.f32 1.4214138, %v4723_v19 }
0x1958   : > { %v4726_v33 = vadd.f32 1.4214138, %v4724_v13 }
0x1959   : > { %v4727_v26 = vmul.f32 %v4725_v16, %v4717_v62 }
0x195a   : > { %v4728_v24 = vmul.f32 %v4726_v33, %v4718_v20 }
0x195b   : > { %v4729_v37 = vadd.f32 -0.28449672, %v4727_v26 }
0x195c   : > { %v4730_v50 = vadd.f32 -0.28449672, %v4728_v24 }
0x195d   : > { %v4731_v61 = vmul.f32 %v4729_v37, %v4717_v62 }
0x195e   : > { %v4732_v18 = vmul.f32 %v4730_v50, %v4718_v20 }
0x195f   : > { %v4733_v10 = vadd.f32 0.2548296, %v4731_v61 }
0x1960   : > { %v4734_v45 = vadd.f32 0.2548296, %v4732_v18 }
0x1961   : > { %v4735_v11 = vmul.f32 %v4733_v10, %v4717_v62 }
0x1962   : > { %v4736_v30 = vmul.f32 %v4734_v45, %v4718_v20 }
0x1963   : > { %v4745_v21 = vmul.f32 %v5447_v12, %v4735_v11 }
0x1964   : > { %v4746_v38 = vmul.f32 %v5449_v49, %v4736_v30 }
0x1965   : > { %v4747_v0 = vsub.f32 1.0, %v4745_v21 }
0x1966   : > { %v4748_v35 = vsub.f32 1.0, %v4746_v38 }
0x1967   : > { %v4751_v9 = vsub.f32 0.0, %v4747_v0 }
0x1968   : > { %v4752_v17 = vsub.f32 0.0, %v4748_v35 }
0x1969   : > { %v4753_v4 = vsel %vm4749_vm11, %v4751_v9, %v4747_v0 }
0x196a   : > { %v4755_v8 = vadd.f32 1.0, %v4753_v4  ;;  %v4754_v52 = vsel %vm4750_vm13, %v4752_v17, %v4748_v35 }
0x196b   : > { %v4756_v27 = vadd.f32 1.0, %v4754_v52 }
0x196c   : > { %v8170_v60 = vmul.f32 %v4755_v8, %v4701_v56 }
0x196d   : > { %v8172_v62 = vmul.f32 %v4756_v27, %v4702_v53 }
0x196e   : > { %4821 = vrot.lane.b32.xlu1 %v8170_v60, %s5583_s26  ;;  %4831 = vrot.lane.b32.xlu2 %v8170_v60, %s5584_s27 }
0x196f   : > { %4833 = vrot.lane.b32.xlu0 %v8172_v62, %s5584_s27 }
0x1976   : > { %4813 = vrot.lane.b32.xlu1 %v8172_v62, %s5585_s28  ;;  %4823 = vrot.lane.b32.xlu2 %v8172_v62, %s5583_s26 }
0x1977   : > { %4811 = vrot.lane.b32.xlu0 %v8170_v60, %s5585_s28 }
0x197e   : > { %4789 = vrot.lane.b32.xlu1 %v8170_v60, %s5587_s30  ;;  %4801 = vrot.lane.b32.xlu2 %v8170_v60, %s5586_s29 }
0x197f   : > { %4803 = vrot.lane.b32.xlu0 %v8172_v62, %s5586_s29 }
0x1986   : > { %4781 = vrot.lane.b32.xlu1 %v8172_v62, %s5588_s7  ;;  %4791 = vrot.lane.b32.xlu2 %v8172_v62, %s5587_s30 }
0x1987   : > { %4779 = vrot.lane.b32.xlu0 %v8170_v60, %s5588_s7 }
0x198e   : > { %4759 = vrot.lane.b32.xlu1 %v8170_v60, %s5590_s9  ;;  %4769 = vrot.lane.b32.xlu2 %v8170_v60, %s5589_s8 }
0x198f   : > { %4771 = vrot.lane.b32.xlu0 %v8172_v62, %s5589_s8  ;;  %s301_s8 = scalar_lea.vmem %s8292_s6, %s5259_s20 }
0x1996   : > { %4761 = vrot.lane.b32.xlu2 %v8172_v62, %s5590_s9 }
0x19c8   : > { %v4832_v51 = vpop.permute.xlu2 %4831 }
0x19d0   : > { %v4824_v41 = vpop.permute.xlu2 %4823 }
0x19d8   : > { %v4802_v13 = vpop.permute.xlu2 %4801 }
0x19e0   : > { %v4822_v57 = vpop.permute.xlu1 %4821 }
0x19e1   : > { %v4834_v1 = vpop.permute.xlu0 %4833  ;;  %v4825_v19 = vsel %vm398_vm0, %v4822_v57, %v4824_v41  ;;  %v4826_v47 = vsel %vm398_vm0, %v4824_v41, %v4822_v57 }
0x19e2   : > { %v4835_v20 = vsel %vm409_vm1, %v4832_v51, %v4834_v1  ;;  %v4836_v59 = vsel %vm409_vm1, %v4834_v1, %v4832_v51  ;;  %v4827_v33 = vmul.f32 %v4825_v19, %v5738_v14  ;;  %v4828_v26 = vmul.f32 %v4826_v47, %v5741_v15  ;;  %v5251_v14 = vld [vmem:[%s8289_s3 + $0x50] sm:$0xff]  ;;  %v4792_v15 = vpop.permute.xlu2 %4791 }
0x19e3   : > { %v4837_v16 = vmul.f32 %v7898_v7, %v4835_v20  ;;  %v4838_v46 = vmul.f32 %v7903_v5, %v4836_v59  ;;  %4917 = vmatmul.f32.vlgmr.msra.gmra.mxu0 %v5251_v14  ;;  %4957 = vmatmul.f32.vlgmr.msra.gmra.mxu2 %v5251_v14 }
0x19e5   : > { %4926 = vmatpush.msra.mxu1 %v4837_v16  ;;  %4966 = vmatpush.msra.mxu3 %v4838_v46 }
0x19e7   : > { %4927 = vmatpush.msra.mxu1 %v4827_v33  ;;  %4967 = vmatpush.msra.mxu3 %v4828_v26 }
0x19e8   : > { %v4814_v29 = vpop.permute.xlu1 %4813 }
0x19e9   : > { %v4812_v24 = vpop.permute.xlu0 %4811 }
0x19ea   : > { %v4815_v37 = vsel %vm387_vm2, %v4812_v24, %v4814_v29  ;;  %v4816_v50 = vsel %vm387_vm2, %v4814_v29, %v4812_v24  ;;  %v4770_v30 = vpop.permute.xlu2 %4769 }
0x19eb   : > { %v4817_v7 = vmul.f32 %v4815_v37, %v5758_v22  ;;  %v4818_v5 = vmul.f32 %v4816_v50, %v5761_v23 }
0x19ed   : > { %4928 = vmatpush.msra.mxu1 %v4817_v7  ;;  %4968 = vmatpush.msra.mxu3 %v4818_v5 }
0x19f0   : > { %v4790_v61 = vpop.permute.xlu1 %4789 }
0x19f1   : > { %v4804_v18 = vpop.permute.xlu0 %4803  ;;  %v4793_v11 = vsel %vm363_vm4, %v4790_v61, %v4792_v15  ;;  %v4794_v12 = vsel %vm363_vm4, %v4792_v15, %v4790_v61 }
0x19f2   : > { %v4805_v10 = vsel %vm376_vm3, %v4802_v13, %v4804_v18  ;;  %v4806_v45 = vsel %vm376_vm3, %v4804_v18, %v4802_v13  ;;  %v4795_v49 = vmul.f32 %v4794_v12, %v5806_v39  ;;  %v4796_v21 = vmul.f32 %v4793_v11, %v5811_v40  ;;  %v4762_v9 = vpop.permute.xlu2 %4761 }
0x19f3   : > { %v4807_v22 = vmul.f32 %v4805_v10, %v5785_v31  ;;  %v4808_v23 = vmul.f32 %v4806_v45, %v5788_v32 }
0x19f5   : > { %4929 = vmatpush.msra.mxu1 %v4807_v22  ;;  %4969 = vmatpush.msra.mxu3 %v4808_v23 }
0x19f7   : > { %4930 = vmatpush.msra.mxu1 %v8170_v60  ;;  %4970 = vmatpush.msra.mxu3 %v8172_v62 }
0x19f8   : > { %v4782_v31 = vpop.permute.xlu1 %4781 }
0x19f9   : > { %v4780_v38 = vpop.permute.xlu0 %4779  ;;  %4931 = vmatpush.msra.mxu1 %v4795_v49  ;;  %4971 = vmatpush.msra.mxu3 %v4796_v21 }
0x19fa   : > { %v4783_v32 = vsel %vm352_vm5, %v4780_v38, %v4782_v31  ;;  %v4784_v0 = vsel %vm352_vm5, %v4782_v31, %v4780_v38 }
0x19fb   : > { %v4785_v35 = vmul.f32 %v4784_v0, %v5815_v42  ;;  %v4786_v39 = vmul.f32 %v4783_v32, %v5818_v43 }
0x19fd   : > { %4932 = vmatpush.msra.mxu1 %v4785_v35  ;;  %4972 = vmatpush.msra.mxu3 %v4786_v39 }
0x1a00   : > { %v4760_v40 = vpop.permute.xlu1 %4759 }
0x1a01   : > { %v4772_v17 = vpop.permute.xlu0 %4771  ;;  %v4763_v8 = vsel %vm330_vm7, %v4760_v40, %v4762_v9  ;;  %v4764_v52 = vsel %vm330_vm7, %v4762_v9, %v4760_v40 }
0x1a02   : > { %v4773_v4 = vsel %vm341_vm6, %v4770_v30, %v4772_v17  ;;  %v4774_v56 = vsel %vm341_vm6, %v4772_v17, %v4770_v30  ;;  %v4765_v53 = vmul.f32 %v4764_v52, %v5865_v63  ;;  %v4766_v27 = vmul.f32 %v4763_v8, %v5868_v2 }
0x1a03   : > { %v4775_v42 = vmul.f32 %v4774_v56, %v5846_v54  ;;  %v4776_v43 = vmul.f32 %v4773_v4, %v5849_v55 }
0x1a05   : > { %4933 = vmatpush.msra.mxu1 %v4775_v42  ;;  %4973 = vmatpush.msra.mxu3 %v4776_v43 }
0x1a07   : > { %4934 = vmatpush.msra.mxu1 %v4765_v53  ;;  %4974 = vmatpush.msra.mxu3 %v4766_v27 }
0x1a09   : > { %4935 = vmatpush.msra.mxu1 %v8099_v36  ;;  %4975 = vmatpush.msra.mxu3 %v8102_v28 }
0x1a0b   : > { %4936 = vmatpush.msra.mxu1 %v8119_v25  ;;  %4976 = vmatpush.msra.mxu3 %v8122_v3 }
0x1a0c   : > { %5253 = vmatmul.msk.f32.vlgmr.msra.gmra.mxu1 %vm937_vm14, %v5252_v6  ;;  %5254 = vmatmul.msk.f32.vlgmr.msra.gmra.mxu3 %vm937_vm14, %v5252_v6 }
0x1a60   : > { %v4918_v54 = vpop.f32.mrf.mxu0 }
0x1a66   : > { %v4958_v51 = vpop.f32.mrf.mxu2 }
0x1a89   : > { %v4938_v55 = vpop.f32.mrf.mxu1 }
0x1a8a   : > { %v4939_v63 = vadd.f32 %v4938_v55, %v4918_v54 }
0x1a8c   : > { %v4983_v2 = vmul.f32 0.70710677, %v4939_v63  ;;  %v4981_v42 = vmul.f32 0.5, %v4939_v63 }
0x1a8e   : > { %v4985_v36 = vand.u32 2147483647, %v4983_v2  ;;  %vm5029_vm0 = vcmp.lt.f32.partialorder %v4983_v2, 0.0 }
0x1a8f   : > { %v4978_v41 = vpop.f32.mrf.mxu3 }
0x1a90   : > { %v4987_v28 = vmul.f32 0.3275911, %v4985_v36  ;;  %v4979_v57 = vadd.f32 %v4978_v41, %v4958_v51  ;;  %v5017_v33 = vsub.f32 0.0, %v4985_v36  ;;  %v5040_v41 = vld [vmem:[#allocation5 + $0x28] sm:$0xff] }
0x1a92   : > { %v4989_v1 = vadd.f32 1.0, %v4987_v28  ;;  %v4984_v20 = vmul.f32 0.70710677, %v4979_v57  ;;  %v5019_v50 = vmul.f32 %v5017_v33, %v4985_v36  ;;  %v4982_v55 = vmul.f32 0.5, %v4979_v57 }
0x1a94   : > { %5450 = vrcp.f32 %v4989_v1  ;;  %v4986_v59 = vand.u32 2147483647, %v4984_v20  ;;  %v5021_v18 = vmul.f32 1.442695, %v5019_v50  ;;  %vm5030_vm1 = vcmp.lt.f32.partialorder %v4984_v20, 0.0 }
0x1a96   : > { %v4988_v25 = vmul.f32 0.3275911, %v4986_v59  ;;  %v5018_v14 = vsub.f32 0.0, %v4986_v59 }
0x1a98   : > { %v4990_v19 = vadd.f32 1.0, %v4988_v25  ;;  %v5020_v22 = vmul.f32 %v5018_v14, %v4986_v59 }
0x1a9a   : > { %v5451_v3 = vpop.eup %5450  ;;  %5452 = vrcp.f32 %v4990_v19  ;;  %v5023_v49 = vmul.f32 1.442695, %v5020_v22 }
0x1a9b   : > { %v4993_v47 = vmul.f32 %v5451_v3, %v4989_v1  ;;  %5454 = vpow2.f32 %v5021_v18 }
0x1a9c   : > { %5456 = vpow2.f32 %v5023_v49 }
0x1a9d   : > { %v4995_v13 = vsub.f32 2.0, %v4993_v47 }
0x1a9f   : > { %v4997_v16 = vmul.f32 %v5451_v3, %v4995_v13 }
0x1aa0   : > { %v5453_v46 = vpop.eup %5452 }
0x1aa1   : > { %v4999_v26 = vmul.f32 1.0614054, %v4997_v16  ;;  %v4994_v29 = vmul.f32 %v5453_v46, %v4990_v19  ;;  %v5455_v0 = vpop.eup %5454 }
0x1aa2   : > { %v5457_v56 = vpop.eup %5456 }
0x1aa3   : > { %v5001_v24 = vadd.f32 -1.4531521, %v4999_v26  ;;  %v4996_v37 = vsub.f32 2.0, %v4994_v29 }
0x1aa5   : > { %v5003_v7 = vmul.f32 %v5001_v24, %v4997_v16  ;;  %v4998_v5 = vmul.f32 %v5453_v46, %v4996_v37 }
0x1aa7   : > { %v5005_v15 = vadd.f32 1.4214138, %v5003_v7  ;;  %v5000_v61 = vmul.f32 1.0614054, %v4998_v5 }
0x1aa9   : > { %v5007_v10 = vmul.f32 %v5005_v15, %v4997_v16  ;;  %v5002_v45 = vadd.f32 -1.4531521, %v5000_v61 }
0x1aab   : > { %v5009_v23 = vadd.f32 -0.28449672, %v5007_v10  ;;  %v5004_v11 = vmul.f32 %v5002_v45, %v4998_v5 }
0x1aad   : > { %v5011_v12 = vmul.f32 %v5009_v23, %v4997_v16  ;;  %v5006_v30 = vadd.f32 1.4214138, %v5004_v11 }
0x1aaf   : > { %v5013_v21 = vadd.f32 0.2548296, %v5011_v12  ;;  %v5008_v31 = vmul.f32 %v5006_v30, %v4998_v5 }
0x1ab1   : > { %v5015_v38 = vmul.f32 %v5013_v21, %v4997_v16  ;;  %v5010_v32 = vadd.f32 -0.28449672, %v5008_v31 }
0x1ab3   : > { %v5025_v35 = vmul.f32 %v5455_v0, %v5015_v38  ;;  %v5012_v39 = vmul.f32 %v5010_v32, %v4998_v5 }
0x1ab5   : > { %v5027_v40 = vsub.f32 1.0, %v5025_v35  ;;  %v5014_v9 = vadd.f32 0.2548296, %v5012_v39 }
0x1ab7   : > { %v5031_v17 = vsub.f32 0.0, %v5027_v40  ;;  %v5016_v4 = vmul.f32 %v5014_v9, %v4998_v5 }
0x1ab9   : > { %v5033_v8 = vsel %vm5029_vm0, %v5031_v17, %v5027_v40  ;;  %v5026_v52 = vmul.f32 %v5457_v56, %v5016_v4 }
0x1aba   : > { %v5035_v43 = vadd.f32 1.0, %v5033_v8 }
0x1abb   : > { %v5028_v53 = vsub.f32 1.0, %v5026_v52 }
0x1abc   : > { %v5037_v27 = vmul.f32 %v5035_v43, %v4981_v42 }
0x1abd   : > { %v5032_v6 = vsub.f32 0.0, %v5028_v53 }
0x1abe   : > { %5056 = vmatpush.msrb.mxu1 %v5037_v27 }
0x1abf   : > { %v5034_v54 = vsel %vm5030_vm1, %v5032_v6, %v5028_v53 }
0x1ac0   : > { %v5036_v51 = vadd.f32 1.0, %v5034_v54  ;;  %5057 = vmatpush.msrb.mxu1 %v8170_v60 }
0x1ac2   : > { %v5038_v36 = vmul.f32 %v5036_v51, %v4982_v55  ;;  %5058 = vmatpush.msrb.mxu1 %v8002_v58 }
0x1ac4   : > { %5059 = vmatpush.msrb.mxu1 %v7868_v34  ;;  %5076 = vmatpush.msrb.mxu0 %v5038_v36 }
0x1ac5   : > { %5255 = vmatmul.msk.f32.vlgmr.msrb.gmra.mxu1 %vm1080_vm10, %v5040_v41 }
0x1ac6   : > { %5077 = vmatpush.msrb.mxu0 %v8172_v62 }
0x1ac8   : > { %5078 = vmatpush.msrb.mxu0 %v7994_v48 }
0x1aca   : > { %5079 = vmatpush.msrb.mxu0 %v7853_v44 }
0x1acb   : > { %5256 = vmatmul.msk.f32.vlgmr.msrb.gmra.mxu0 %vm1080_vm10, %v5040_v41 }
0x1b42   : > { %v5061_v58 = vpop.f32.mrf.mxu1 }
0x1b43   : > { %v5084_v60 = vadd.f32 %v5061_v58, %v7868_v34 }
0x1b45   : > { %5086 = vst [vmem:[%s301_s8] sm:$0xff] %v5084_v60 }
0x1b48   : > { %v5081_v63 = vpop.f32.mrf.mxu0 }
0x1b49   : > { %v5085_v2 = vadd.f32 %v5081_v63, %v7853_v44 }
0x1b4b   : > { %5087 = vst [vmem:[%s301_s8 + $0x8] sm:$0xff] %v5085_v2 }
0x1b4c PF: > { %s18_s21 = sadd.s32 1, %s5574_s21  }
0x1b4d   : > { %p15_p7 = scmp.ge.s32.totalorder %s18_s21, 4  }
0x1b4f   :  { %17 = sbr.rel (!%p15_p7) target bundleno = 2 (0x2), region = 107 }
0x1b54   :  { %5109 = vsyncpa [#allocation4], 1 }
0x1b55   :  { %5111 = vsyncpa [#allocation4 + $0x1], 1 }
0x1b56   :  { %5112 = vsyncpa [#allocation6], 1 }

</bundles_post_ra>
